<compile_context>
chip_gen: v7x
topology: tpu7x:2x2x1
jax: 0.10.0
libtpu: 0.0.40
codegen_flags: <defaults>
</compile_context>

<pallas_src>
import jax
import jax.numpy as jnp
from jax.experimental import pallas as pl
from jax.experimental.pallas import tpu as pltpu

L = 90                 # sequence length (hard-coded by .repeat(1, 90, 1))
D_DATA = 6             # data channels
D_TIME = 8             # time-embedding dim
D_COND = 18            # condition_proj output dim
D_AUX = D_TIME + D_COND          # 26: channels constant along L
C_IN = D_DATA + D_AUX            # 32 = conv1 in_channels
D_OUT = 6


def _big_vmem():
    """True on 128-MiB-VMEM parts (v5e/v6e) -> allow bigger tiles / limits."""
    try:
        return pltpu.get_tpu_info().vmem_capacity_bytes >= 128 * 1024 * 1024
    except Exception:
        return False


_BIG_VMEM = _big_vmem()
_TB_CAP = 128 if _BIG_VMEM else 64                       # sequences per tile
_VMEM_LIMIT_BYTES = (96 if _BIG_VMEM else 48) * 1024 * 1024


def _model_kernel(x_ref, nf_ref, nl_ref,
                  w1_ref, b1_ref, w2_ref, b2_ref, w3_ref, b3_ref,
                  wf_ref, bf_ref, o_ref):
    """One batch tile.

    x_ref : (TB*L, 32) f32  — data | time-emb | cond-proj, channels-last flat.
    nf_ref: (TB*L, 1)  f32  — 0 at l == 0     (kills the l-1 conv tap).
    nl_ref: (TB*L, 1)  f32  — 0 at l == L-1   (kills the l+1 conv tap).
    w*_ref: (3*Cin, Cout) bf16 conv weights (taps stacked along rows),
    wf_ref: (128, 6) f32, biases (1, Cout) f32.
    o_ref : (TB*L, 6)  f32.
    """
    M = x_ref.shape[0]            # TB * L   (static)
    not_first = nf_ref[...]       # (M, 1) f32, resident across the grid
    not_last = nl_ref[...]        # (M, 1) f32

    def conv_relu(h, w_ref, b_ref, cin):
        # Rolls are XLU work (hide under the MXU); boundary rows are zeroed in
        # f32; operands cast to bf16 only at the matmul boundary (f32 acc).
        h_prev = (pltpu.roll(h, shift=1, axis=0) * not_first).astype(jnp.bfloat16)
        h_next = (pltpu.roll(h, shift=M - 1, axis=0) * not_last).astype(jnp.bfloat16)
        out = jnp.dot(h_prev, w_ref[0:cin, :],
                      preferred_element_type=jnp.float32)
        out += jnp.dot(h.astype(jnp.bfloat16), w_ref[cin:2 * cin, :],
                       preferred_element_type=jnp.float32)
        out += jnp.dot(h_next, w_ref[2 * cin:3 * cin, :],
                       preferred_element_type=jnp.float32)
        return jnp.maximum(out + b_ref[...], 0.0)

    h = x_ref[...]                            # (M, 32) f32
    h = conv_relu(h, w1_ref, b1_ref, 32)      # (M, 32)
    h = conv_relu(h, w2_ref, b2_ref, 32)      # (M, 64)
    h = conv_relu(h, w3_ref, b3_ref, 64)      # (M, 128)

    # Final linear kept in f32 (K=128 accumulation, accuracy-sensitive).
    o_ref[...] = (jnp.dot(h, wf_ref[...], preferred_element_type=jnp.float32)
                  + bf_ref[...])


def _pick_batch_tile(b):
    """Sequences per grid step.

    TB must be a multiple of 4 so TB*90 % 8 == 0 (sublane-aligned rows).
    Prefer >= 2 grid steps when b >= 8 so both v7x TensorCores get work; cap
    by the VMEM-derived _TB_CAP.
    """
    if b <= 4:
        return 4
    half = -(-b // 2)                       # ceil(b / 2)
    return min(_TB_CAP, -(-half // 4) * 4)  # round up to multiple of 4


def conv_stack_pallas(data, aux, params):
    """data: (B, L, 6) f32, aux: (B, 26) f32 -> (B, L, 6) f32."""
    B = data.shape[0]
    w1, b1, w2, b2, w3, b3, wf, bf = params

    tb = _pick_batch_tile(B)
    b_pad = -(-B // tb) * tb
    grid = (b_pad // tb,)
    m_tile = tb * L

    if b_pad != B:
        data = jnp.concatenate(
            [data, jnp.zeros((b_pad - B, L, D_DATA), data.dtype)], axis=0)
        aux = jnp.concatenate(
            [aux, jnp.zeros((b_pad - B, D_AUX), aux.dtype)], axis=0)

    # Pre-broadcast the per-sequence channels along L and pre-concat with the
    # data channels in XLA: removes the in-kernel iota/one-hot broadcast and
    # the lane concat (perf review items 1 & 6).  Kept in f32 (exact).
    x_full = jnp.concatenate(
        [data, jnp.broadcast_to(aux[:, None, :], (b_pad, L, D_AUX))], axis=2)
    x_flat = x_full.reshape(b_pad * L, C_IN)

    # Loop-invariant sequence-boundary masks, resident across the grid.
    pos = jnp.arange(m_tile, dtype=jnp.int32) % L
    not_first = (pos != 0).astype(jnp.float32).reshape(m_tile, 1)
    not_last = (pos != L - 1).astype(jnp.float32).reshape(m_tile, 1)

    # Conv taps stacked along Cin; bf16 operands for the MXU (f32 accumulate).
    w1s = w1.reshape(3 * 32, 32).astype(jnp.bfloat16)
    w2s = w2.reshape(3 * 32, 64).astype(jnp.bfloat16)
    w3s = w3.reshape(3 * 64, 128).astype(jnp.bfloat16)

    def full(arr):
        # Whole-array block, constant index_map -> resident, never re-DMA'd.
        return pl.BlockSpec(arr.shape, lambda i: (0,) * arr.ndim)

    out_flat = pl.pallas_call(
        _model_kernel,
        out_shape=jax.ShapeDtypeStruct((b_pad * L, D_OUT), jnp.float32),
        grid=grid,
        in_specs=[
            pl.BlockSpec((m_tile, C_IN), lambda i: (i, 0)),      # input rows
            full(not_first), full(not_last),                     # masks
            full(w1s), full(b1),                                 # conv1
            full(w2s), full(b2),                                 # conv2
            full(w3s), full(b3),                                 # conv3
            full(wf), full(bf),                                  # fc
        ],
        out_specs=pl.BlockSpec((m_tile, D_OUT), lambda i: (i, 0)),
        compiler_params=pltpu.CompilerParams(
            dimension_semantics=("parallel",),
            vmem_limit_bytes=_VMEM_LIMIT_BYTES),
    )(x_flat, not_first, not_last, w1s, b1, w2s, b2, w3s, b3, wf, bf)

    return out_flat.reshape(b_pad, L, D_OUT)[:B]


def time_embedding(times, embedding_dim=8):
    """times: (B,) -> (B, dim); matches SimpleConv1d.time_embedding (interleaved)."""
    freqs = jnp.power(10000.0, jnp.arange(0, embedding_dim, 2, dtype=jnp.float32)
                      / embedding_dim)                           # (dim/2,)
    sinusoids = times[:, None] / freqs[None, :]                  # (B, dim/2)
    emb = jnp.stack([jnp.sin(sinusoids), jnp.cos(sinusoids)], axis=-1)
    return emb.reshape(times.shape[0], embedding_dim)            # [s0,c0,s1,c1,...]


def init_params(key):
    """Deterministic parameter init (same shapes as SimpleConv1d.__init__).

    Conv weights are stored in kernel layout (k=3, Cin, Cout); to load a real
    PyTorch checkpoint convert with w_kernel = torch_w.permute(2, 1, 0)
    (Conv1d weight is (Cout, Cin, k)); linear weights here are (in, out) =
    torch_linear.weight.T.  Init is Gaussian/sqrt(fan_in) — self-test only.
    """
    ks = jax.random.split(key, 10)

    def lin(k, fan_in, shape):
        return jax.random.normal(k, shape, jnp.float32) / jnp.sqrt(float(fan_in))

    w1 = lin(ks[0], 32 * 3, (3, 32, 32));   b1 = lin(ks[1], 32 * 3, (1, 32))
    w2 = lin(ks[2], 32 * 3, (3, 32, 64));   b2 = lin(ks[3], 32 * 3, (1, 64))
    w3 = lin(ks[4], 64 * 3, (3, 64, 128));  b3 = lin(ks[5], 64 * 3, (1, 128))
    wf = lin(ks[6], 128, (128, 6));         bf = lin(ks[7], 128, (1, 6))
    wc = lin(ks[8], 12, (12, 18));          bc = lin(ks[9], 12, (1, 18))
    return (w1, b1, w2, b2, w3, b3, wf, bf), (wc, bc)


@jax.jit
def my_wrapper_forward(t, data, cond, conv_fc_params, cond_params):
    """Equivalent of my_wrapper.forward(t, (data, cond)).

    t: scalar; data: (B, 90, 6); cond: (B, 2, 6) -> (B, 90, 6).
    """
    B = data.shape[0]
    wc, bc = cond_params

    t_vec = jnp.broadcast_to(jnp.asarray(t, jnp.float32), (B,))  # t.expand(B)
    tt = time_embedding(t_vec, D_TIME)                           # (B, 8)
    cond_proj = cond.reshape(B, -1) @ wc + bc                    # (B, 18)
    aux = jnp.concatenate([tt, cond_proj], axis=1)               # (B, 26)

    return conv_stack_pallas(data.astype(jnp.float32),
                             aux.astype(jnp.float32), conv_fc_params)


def _reference_forward(t, data, cond, conv_fc_params, cond_params):
    """Pure-JAX f32 reference of the same forward pass (sanity check)."""
    w1, b1, w2, b2, w3, b3, wf, bf = conv_fc_params
    wc, bc = cond_params
    B = data.shape[0]
    tt = time_embedding(jnp.broadcast_to(jnp.asarray(t, jnp.float32), (B,)), D_TIME)
    cond_proj = cond.reshape(B, -1) @ wc + bc
    x = jnp.concatenate(
        [data,
         jnp.broadcast_to(tt[:, None, :], (B, L, D_TIME)),
         jnp.broadcast_to(cond_proj[:, None, :], (B, L, D_COND))], axis=2)

    def conv_relu(h, w, b):
        hp = jnp.pad(h, ((0, 0), (1, 1), (0, 0)))
        out = (jnp.einsum('blc,co->blo', hp[:, 0:L], w[0])
               + jnp.einsum('blc,co->blo', hp[:, 1:L + 1], w[1])
               + jnp.einsum('blc,co->blo', hp[:, 2:L + 2], w[2])) + b
        return jnp.maximum(out, 0.0)

    h = conv_relu(x, w1, b1)
    h = conv_relu(h, w2, b2)
    h = conv_relu(h, w3, b3)
    return jnp.einsum('blc,co->blo', h, wf) + bf


if __name__ == "__main__":
    B = 2
    key = jax.random.PRNGKey(0)
    k_data, k_cond = jax.random.split(key)
    data = jax.random.normal(k_data, (B, L, D_DATA), jnp.float32)   # x
    cond = jax.random.normal(k_cond, (B, 2, D_DATA), jnp.float32)   # y
    t = 0.3

    conv_fc_params, cond_params = init_params(jax.random.PRNGKey(1))

    out = my_wrapper_forward(t, data, cond, conv_fc_params, cond_params)
    out = jax.block_until_ready(out)
    assert out.shape == (B, L, D_OUT) and out.dtype == jnp.float32

    ref = jax.block_until_ready(
        _reference_forward(t, data, cond, conv_fc_params, cond_params))
    max_err = float(jnp.max(jnp.abs(out - ref)))
    ref_scale = float(jnp.max(jnp.abs(ref)))
    # bf16 MXU operands (f32 accumulate) through 3 conv layers -> ~1% relative
    # error; allow atol 2e-2 + rtol 2e-2 of the output scale.
    assert max_err < 2e-2 + 2e-2 * ref_scale, (
        f"mismatch vs reference: max_err={max_err}, ref_scale={ref_scale}")

    print("KERNEL_OK")
</pallas_src>

<mosaic_0001>
module attributes {stable_mosaic.version = 11 : i64} {
  func.func @_model_kernel(%arg0: i32, %arg1: memref<360x32xf32, #tpu.memory_space<vmem>>, %arg2: memref<360x1xf32, #tpu.memory_space<vmem>>, %arg3: memref<360x1xf32, #tpu.memory_space<vmem>>, %arg4: memref<96x32xbf16, #tpu.memory_space<vmem>>, %arg5: memref<1x32xf32, #tpu.memory_space<vmem>>, %arg6: memref<96x64xbf16, #tpu.memory_space<vmem>>, %arg7: memref<1x64xf32, #tpu.memory_space<vmem>>, %arg8: memref<192x128xbf16, #tpu.memory_space<vmem>>, %arg9: memref<1x128xf32, #tpu.memory_space<vmem>>, %arg10: memref<128x6xf32, #tpu.memory_space<vmem>>, %arg11: memref<1x6xf32, #tpu.memory_space<vmem>>, %arg12: memref<360x6xf32, #tpu.memory_space<vmem>>) attributes {dimension_semantics = [#tpu.dimension_semantics<parallel>], iteration_bounds = array<i64: 1>, scalar_prefetch = 0 : i64, scratch_operands = 0 : i64, tpu.core_type = #tpu.core_type<tc>, window_params = [{transform_indices = @transform_0, window_bounds = array<i64: 360, 32>}, {pipeline_mode = #tpu.pipeline_mode<synchronous>, transform_indices = @transform_1, window_bounds = array<i64: 360, 1>}, {pipeline_mode = #tpu.pipeline_mode<synchronous>, transform_indices = @transform_2, window_bounds = array<i64: 360, 1>}, {pipeline_mode = #tpu.pipeline_mode<synchronous>, transform_indices = @transform_3, window_bounds = array<i64: 96, 32>}, {pipeline_mode = #tpu.pipeline_mode<synchronous>, transform_indices = @transform_4, window_bounds = array<i64: 1, 32>}, {pipeline_mode = #tpu.pipeline_mode<synchronous>, transform_indices = @transform_5, window_bounds = array<i64: 96, 64>}, {pipeline_mode = #tpu.pipeline_mode<synchronous>, transform_indices = @transform_6, window_bounds = array<i64: 1, 64>}, {pipeline_mode = #tpu.pipeline_mode<synchronous>, transform_indices = @transform_7, window_bounds = array<i64: 192, 128>}, {pipeline_mode = #tpu.pipeline_mode<synchronous>, transform_indices = @transform_8, window_bounds = array<i64: 1, 128>}, {pipeline_mode = #tpu.pipeline_mode<synchronous>, transform_indices = @transform_9, window_bounds = array<i64: 128, 6>}, {pipeline_mode = #tpu.pipeline_mode<synchronous>, transform_indices = @transform_10, window_bounds = array<i64: 1, 6>}, {transform_indices = @transform_11, window_bounds = array<i64: 360, 6>}]} {
    %c0 = arith.constant 0 : index
    %c0_0 = arith.constant 0 : index
    %0 = vector.load %arg2[%c0, %c0_0] : memref<360x1xf32, #tpu.memory_space<vmem>>, vector<360x1xf32>
    %c0_1 = arith.constant 0 : index
    %c0_2 = arith.constant 0 : index
    %1 = vector.load %arg3[%c0_1, %c0_2] : memref<360x1xf32, #tpu.memory_space<vmem>>, vector<360x1xf32>
    %c0_3 = arith.constant 0 : index
    %c0_4 = arith.constant 0 : index
    %2 = vector.load %arg1[%c0_3, %c0_4] : memref<360x32xf32, #tpu.memory_space<vmem>>, vector<360x32xf32>
    %c1_i32 = arith.constant 1 : i32
    %3 = tpu.dynamic_rotate %2 by %c1_i32 dim 0 : vector<360x32xf32>, i32 -> vector<360x32xf32>
    %4 = vector.broadcast %0 : vector<360x1xf32> to vector<360x32xf32>
    %5 = arith.mulf %3, %4 : vector<360x32xf32>
    %6 = arith.truncf %5 : vector<360x32xf32> to vector<360x32xbf16>
    %c359_i32 = arith.constant 359 : i32
    %7 = tpu.dynamic_rotate %2 by %c359_i32 dim 0 : vector<360x32xf32>, i32 -> vector<360x32xf32>
    %8 = vector.broadcast %1 : vector<360x1xf32> to vector<360x32xf32>
    %9 = arith.mulf %7, %8 : vector<360x32xf32>
    %10 = arith.truncf %9 : vector<360x32xf32> to vector<360x32xbf16>
    %c0_5 = arith.constant 0 : index
    %c0_6 = arith.constant 0 : index
    %11 = vector.load %arg4[%c0_5, %c0_6] : memref<96x32xbf16, #tpu.memory_space<vmem>>, vector<32x32xbf16>
    %cst = arith.constant dense<0.000000e+00> : vector<360x32xf32>
    %12 = tpu.matmul %6, %11, %cst {dimension_numbers = #tpu.dot_dimension_numbers<[1], [0], [0], [1], [0, 0, 1, 1], [], []>} : vector<360x32xbf16>, vector<32x32xbf16>, vector<360x32xf32> -> vector<360x32xf32>
    %13 = arith.truncf %2 : vector<360x32xf32> to vector<360x32xbf16>
    %c32 = arith.constant 32 : index
    %c0_7 = arith.constant 0 : index
    %14 = vector.load %arg4[%c32, %c0_7] : memref<96x32xbf16, #tpu.memory_space<vmem>>, vector<32x32xbf16>
    %cst_8 = arith.constant dense<0.000000e+00> : vector<360x32xf32>
    %15 = tpu.matmul %13, %14, %cst_8 {dimension_numbers = #tpu.dot_dimension_numbers<[1], [0], [0], [1], [0, 0, 1, 1], [], []>} : vector<360x32xbf16>, vector<32x32xbf16>, vector<360x32xf32> -> vector<360x32xf32>
    %16 = arith.addf %12, %15 : vector<360x32xf32>
    %c64 = arith.constant 64 : index
    %c0_9 = arith.constant 0 : index
    %17 = vector.load %arg4[%c64, %c0_9] : memref<96x32xbf16, #tpu.memory_space<vmem>>, vector<32x32xbf16>
    %cst_10 = arith.constant dense<0.000000e+00> : vector<360x32xf32>
    %18 = tpu.matmul %10, %17, %cst_10 {dimension_numbers = #tpu.dot_dimension_numbers<[1], [0], [0], [1], [0, 0, 1, 1], [], []>} : vector<360x32xbf16>, vector<32x32xbf16>, vector<360x32xf32> -> vector<360x32xf32>
    %19 = arith.addf %16, %18 : vector<360x32xf32>
    %c0_11 = arith.constant 0 : index
    %c0_12 = arith.constant 0 : index
    %20 = vector.load %arg5[%c0_11, %c0_12] : memref<1x32xf32, #tpu.memory_space<vmem>>, vector<1x32xf32>
    %21 = vector.broadcast %20 : vector<1x32xf32> to vector<360x32xf32>
    %22 = arith.addf %19, %21 : vector<360x32xf32>
    %cst_13 = arith.constant 0.000000e+00 : f32
    %23 = vector.broadcast %cst_13 : f32 to vector<360x32xf32>
    %24 = arith.maximumf %22, %23 : vector<360x32xf32>
    %c1_i32_14 = arith.constant 1 : i32
    %25 = tpu.dynamic_rotate %24 by %c1_i32_14 dim 0 : vector<360x32xf32>, i32 -> vector<360x32xf32>
    %26 = vector.broadcast %0 : vector<360x1xf32> to vector<360x32xf32>
    %27 = arith.mulf %25, %26 : vector<360x32xf32>
    %28 = arith.truncf %27 : vector<360x32xf32> to vector<360x32xbf16>
    %c359_i32_15 = arith.constant 359 : i32
    %29 = tpu.dynamic_rotate %24 by %c359_i32_15 dim 0 : vector<360x32xf32>, i32 -> vector<360x32xf32>
    %30 = vector.broadcast %1 : vector<360x1xf32> to vector<360x32xf32>
    %31 = arith.mulf %29, %30 : vector<360x32xf32>
    %32 = arith.truncf %31 : vector<360x32xf32> to vector<360x32xbf16>
    %c0_16 = arith.constant 0 : index
    %c0_17 = arith.constant 0 : index
    %33 = vector.load %arg6[%c0_16, %c0_17] : memref<96x64xbf16, #tpu.memory_space<vmem>>, vector<32x64xbf16>
    %cst_18 = arith.constant dense<0.000000e+00> : vector<360x64xf32>
    %34 = tpu.matmul %28, %33, %cst_18 {dimension_numbers = #tpu.dot_dimension_numbers<[1], [0], [0], [1], [0, 0, 1, 1], [], []>} : vector<360x32xbf16>, vector<32x64xbf16>, vector<360x64xf32> -> vector<360x64xf32>
    %35 = arith.truncf %24 : vector<360x32xf32> to vector<360x32xbf16>
    %c32_19 = arith.constant 32 : index
    %c0_20 = arith.constant 0 : index
    %36 = vector.load %arg6[%c32_19, %c0_20] : memref<96x64xbf16, #tpu.memory_space<vmem>>, vector<32x64xbf16>
    %cst_21 = arith.constant dense<0.000000e+00> : vector<360x64xf32>
    %37 = tpu.matmul %35, %36, %cst_21 {dimension_numbers = #tpu.dot_dimension_numbers<[1], [0], [0], [1], [0, 0, 1, 1], [], []>} : vector<360x32xbf16>, vector<32x64xbf16>, vector<360x64xf32> -> vector<360x64xf32>
    %38 = arith.addf %34, %37 : vector<360x64xf32>
    %c64_22 = arith.constant 64 : index
    %c0_23 = arith.constant 0 : index
    %39 = vector.load %arg6[%c64_22, %c0_23] : memref<96x64xbf16, #tpu.memory_space<vmem>>, vector<32x64xbf16>
    %cst_24 = arith.constant dense<0.000000e+00> : vector<360x64xf32>
    %40 = tpu.matmul %32, %39, %cst_24 {dimension_numbers = #tpu.dot_dimension_numbers<[1], [0], [0], [1], [0, 0, 1, 1], [], []>} : vector<360x32xbf16>, vector<32x64xbf16>, vector<360x64xf32> -> vector<360x64xf32>
    %41 = arith.addf %38, %40 : vector<360x64xf32>
    %c0_25 = arith.constant 0 : index
    %c0_26 = arith.constant 0 : index
    %42 = vector.load %arg7[%c0_25, %c0_26] : memref<1x64xf32, #tpu.memory_space<vmem>>, vector<1x64xf32>
    %43 = vector.broadcast %42 : vector<1x64xf32> to vector<360x64xf32>
    %44 = arith.addf %41, %43 : vector<360x64xf32>
    %cst_27 = arith.constant 0.000000e+00 : f32
    %45 = vector.broadcast %cst_27 : f32 to vector<360x64xf32>
    %46 = arith.maximumf %44, %45 : vector<360x64xf32>
    %c1_i32_28 = arith.constant 1 : i32
    %47 = tpu.dynamic_rotate %46 by %c1_i32_28 dim 0 : vector<360x64xf32>, i32 -> vector<360x64xf32>
    %48 = vector.broadcast %0 : vector<360x1xf32> to vector<360x64xf32>
    %49 = arith.mulf %47, %48 : vector<360x64xf32>
    %50 = arith.truncf %49 : vector<360x64xf32> to vector<360x64xbf16>
    %c359_i32_29 = arith.constant 359 : i32
    %51 = tpu.dynamic_rotate %46 by %c359_i32_29 dim 0 : vector<360x64xf32>, i32 -> vector<360x64xf32>
    %52 = vector.broadcast %1 : vector<360x1xf32> to vector<360x64xf32>
    %53 = arith.mulf %51, %52 : vector<360x64xf32>
    %54 = arith.truncf %53 : vector<360x64xf32> to vector<360x64xbf16>
    %c0_30 = arith.constant 0 : index
    %c0_31 = arith.constant 0 : index
    %55 = vector.load %arg8[%c0_30, %c0_31] : memref<192x128xbf16, #tpu.memory_space<vmem>>, vector<64x128xbf16>
    %cst_32 = arith.constant dense<0.000000e+00> : vector<360x128xf32>
    %56 = tpu.matmul %50, %55, %cst_32 {dimension_numbers = #tpu.dot_dimension_numbers<[1], [0], [0], [1], [0, 0, 1, 1], [], []>} : vector<360x64xbf16>, vector<64x128xbf16>, vector<360x128xf32> -> vector<360x128xf32>
    %57 = arith.truncf %46 : vector<360x64xf32> to vector<360x64xbf16>
    %c64_33 = arith.constant 64 : index
    %c0_34 = arith.constant 0 : index
    %58 = vector.load %arg8[%c64_33, %c0_34] : memref<192x128xbf16, #tpu.memory_space<vmem>>, vector<64x128xbf16>
    %cst_35 = arith.constant dense<0.000000e+00> : vector<360x128xf32>
    %59 = tpu.matmul %57, %58, %cst_35 {dimension_numbers = #tpu.dot_dimension_numbers<[1], [0], [0], [1], [0, 0, 1, 1], [], []>} : vector<360x64xbf16>, vector<64x128xbf16>, vector<360x128xf32> -> vector<360x128xf32>
    %60 = arith.addf %56, %59 : vector<360x128xf32>
    %c128 = arith.constant 128 : index
    %c0_36 = arith.constant 0 : index
    %61 = vector.load %arg8[%c128, %c0_36] : memref<192x128xbf16, #tpu.memory_space<vmem>>, vector<64x128xbf16>
    %cst_37 = arith.constant dense<0.000000e+00> : vector<360x128xf32>
    %62 = tpu.matmul %54, %61, %cst_37 {dimension_numbers = #tpu.dot_dimension_numbers<[1], [0], [0], [1], [0, 0, 1, 1], [], []>} : vector<360x64xbf16>, vector<64x128xbf16>, vector<360x128xf32> -> vector<360x128xf32>
    %63 = arith.addf %60, %62 : vector<360x128xf32>
    %c0_38 = arith.constant 0 : index
    %c0_39 = arith.constant 0 : index
    %64 = vector.load %arg9[%c0_38, %c0_39] : memref<1x128xf32, #tpu.memory_space<vmem>>, vector<1x128xf32>
    %65 = vector.broadcast %64 : vector<1x128xf32> to vector<360x128xf32>
    %66 = arith.addf %63, %65 : vector<360x128xf32>
    %cst_40 = arith.constant 0.000000e+00 : f32
    %67 = vector.broadcast %cst_40 : f32 to vector<360x128xf32>
    %68 = arith.maximumf %66, %67 : vector<360x128xf32>
    %c0_41 = arith.constant 0 : index
    %c0_42 = arith.constant 0 : index
    %69 = vector.load %arg10[%c0_41, %c0_42] : memref<128x6xf32, #tpu.memory_space<vmem>>, vector<128x6xf32>
    %cst_43 = arith.constant dense<0.000000e+00> : vector<360x6xf32>
    %70 = tpu.matmul %68, %69, %cst_43 {dimension_numbers = #tpu.dot_dimension_numbers<[1], [0], [0], [1], [0, 0, 1, 1], [], []>} : vector<360x128xf32>, vector<128x6xf32>, vector<360x6xf32> -> vector<360x6xf32>
    %c0_44 = arith.constant 0 : index
    %c0_45 = arith.constant 0 : index
    %71 = vector.load %arg11[%c0_44, %c0_45] : memref<1x6xf32, #tpu.memory_space<vmem>>, vector<1x6xf32>
    %72 = vector.broadcast %71 : vector<1x6xf32> to vector<360x6xf32>
    %73 = arith.addf %70, %72 : vector<360x6xf32>
    %c0_46 = arith.constant 0 : index
    %c0_47 = arith.constant 0 : index
    %74 = vector.load %arg12[%c0_46, %c0_47] : memref<360x6xf32, #tpu.memory_space<vmem>>, vector<360x6xf32>
    tpu.vector_store %arg12[%c0_46, %c0_47], %73 {strides = array<i32>} : memref<360x6xf32, #tpu.memory_space<vmem>>, vector<360x6xf32>,
    return
  }
  func.func @transform_0(%arg0: i32) -> (i32, i32) {
    %c0_i32 = arith.constant 0 : i32
    %c0_i32_0 = arith.constant 0 : i32
    return %arg0, %c0_i32 : i32, i32
  }
  func.func @transform_1(%arg0: i32) -> (i32, i32) {
    %c0_i32 = arith.constant 0 : i32
    %c0_i32_0 = arith.constant 0 : i32
    %c0_i32_1 = arith.constant 0 : i32
    return %c0_i32, %c0_i32_0 : i32, i32
  }
  func.func @transform_2(%arg0: i32) -> (i32, i32) {
    %c0_i32 = arith.constant 0 : i32
    %c0_i32_0 = arith.constant 0 : i32
    %c0_i32_1 = arith.constant 0 : i32
    return %c0_i32, %c0_i32_0 : i32, i32
  }
  func.func @transform_3(%arg0: i32) -> (i32, i32) {
    %c0_i32 = arith.constant 0 : i32
    %c0_i32_0 = arith.constant 0 : i32
    %c0_i32_1 = arith.constant 0 : i32
    return %c0_i32, %c0_i32_0 : i32, i32
  }
  func.func @transform_4(%arg0: i32) -> (i32, i32) {
    %c0_i32 = arith.constant 0 : i32
    %c0_i32_0 = arith.constant 0 : i32
    %c0_i32_1 = arith.constant 0 : i32
    return %c0_i32, %c0_i32_0 : i32, i32
  }
  func.func @transform_5(%arg0: i32) -> (i32, i32) {
    %c0_i32 = arith.constant 0 : i32
    %c0_i32_0 = arith.constant 0 : i32
    %c0_i32_1 = arith.constant 0 : i32
    return %c0_i32, %c0_i32_0 : i32, i32
  }
  func.func @transform_6(%arg0: i32) -> (i32, i32) {
    %c0_i32 = arith.constant 0 : i32
    %c0_i32_0 = arith.constant 0 : i32
    %c0_i32_1 = arith.constant 0 : i32
    return %c0_i32, %c0_i32_0 : i32, i32
  }
  func.func @transform_7(%arg0: i32) -> (i32, i32) {
    %c0_i32 = arith.constant 0 : i32
    %c0_i32_0 = arith.constant 0 : i32
    %c0_i32_1 = arith.constant 0 : i32
    return %c0_i32, %c0_i32_0 : i32, i32
  }
  func.func @transform_8(%arg0: i32) -> (i32, i32) {
    %c0_i32 = arith.constant 0 : i32
    %c0_i32_0 = arith.constant 0 : i32
    %c0_i32_1 = arith.constant 0 : i32
    return %c0_i32, %c0_i32_0 : i32, i32
  }
  func.func @transform_9(%arg0: i32) -> (i32, i32) {
    %c0_i32 = arith.constant 0 : i32
    %c0_i32_0 = arith.constant 0 : i32
    %c0_i32_1 = arith.constant 0 : i32
    return %c0_i32, %c0_i32_0 : i32, i32
  }
  func.func @transform_10(%arg0: i32) -> (i32, i32) {
    %c0_i32 = arith.constant 0 : i32
    %c0_i32_0 = arith.constant 0 : i32
    %c0_i32_1 = arith.constant 0 : i32
    return %c0_i32, %c0_i32_0 : i32, i32
  }
  func.func @transform_11(%arg0: i32) -> (i32, i32) {
    %c0_i32 = arith.constant 0 : i32
    %c0_i32_0 = arith.constant 0 : i32
    return %arg0, %c0_i32 : i32, i32
  }
}

</mosaic_0001>

<bundles_post_ra>
// kernel: my_wrapper_forward.1
= control target key start
LH: loop header
LB: loop body
LE: loop exit
PB: predicated region body
PF: predicated region fallthrough
CT: control target
= control target key end

     0   :  { %v6820_v0 = vmov 0   ;;  %v219_v3 = vlaneseq  ;;  %v11315_v6 = vmov 0.0   ;;  %vm6822_vm0 = vmmov 0   ;;  %s11299_s2 = inlined_call_operand.vmem [shape: f32[360,1], index: 2, kind: input, shape index: {}]   ;;  %s11300_s1 = inlined_call_operand.vmem [shape: f32[360,1], index: 1, kind: input, shape index: {}]   ;;  %s11301_s3 = inlined_call_operand.vmem [shape: bf16[96,32], index: 3, kind: input, shape index: {}]   ;;  %s11302_s0 = inlined_call_operand.vmem [shape: f32[360,32], index: 0, kind: input, shape index: {}]   ;;  %s11303_s5 = inlined_call_operand.vmem [shape: bf16[96,64], index: 5, kind: input, shape index: {}]   ;;  %s11304_s4 = inlined_call_operand.vmem [shape: f32[1,32], index: 4, kind: input, shape index: {}]   ;;  %s11305_s7 = inlined_call_operand.vmem [shape: bf16[192,128], index: 7, kind: input, shape index: {}]   ;;  %s11306_s6 = inlined_call_operand.vmem [shape: f32[1,64], index: 6, kind: input, shape index: {}]   ;;  %s11307_s9 = inlined_call_operand.vmem [shape: f32[128,6], index: 9, kind: input, shape index: {}]   ;;  %s11308_s8 = inlined_call_operand.vmem [shape: f32[1,128], index: 8, kind: input, shape index: {}]   ;;  %s11309_s10 = inlined_call_operand.vmem [shape: f32[1,6], index: 10, kind: input, shape index: {}]   ;;  %s11310_s11 = inlined_call_operand.vmem [shape: f32[360,6], index: 11, kind: output, shape index: {}]  }
   0x1   :  { %6792 = vset.pattern.permute.xlu1 %v6820_v0  ;;  %6791 = vset.pattern.permute.xlu0 %v6820_v0  ;;  %v84_v1 = vld [vmem:[%s11299_s2] sm:$0xff]  ;;  %v6793_v4 = vld [vmem:[%s11301_s3 + $0x10] sm:$0xff]   ;;  %v85_v5 = vld [vmem:[%s11299_s2 + $0x8] sm:$0xff]  ;;  %vm987_vm2 = vcmask 261120   ;;  %vm3776_vm4 = vcmask 523264   ;;  %vm5143_vm5 = vcmask 48128  }
   0x2   :  { %v39_v2 = vld [vmem:[%s11300_s1] sm:$0xff]  ;;  %653 = vperm.xlu1 %6792, %v84_v1   ;;  %5720 = vmatprep.subr.bf16.mxu0 %v11315_v6  ;;  %v40_v7 = vld [vmem:[%s11300_s1 + $0x8] sm:$0xff]  ;;  %v6902_v8 = vshrl.u32 %v219_v3, 7  ;;  %v6794_v9 = vld [vmem:[%s11301_s3 + $0x18] sm:$0xff]  }
   0x3   :  { %269 = vperm.xlu0 %6791, %v39_v2   ;;  %5724 = vmatprep.mubr.msk.bf16.mxu0 %vm6822_vm0, %v11315_v6  ;;  %v6912_v10 = vld [vmem:[%s11302_s0] sm:$0xff]  ;;  %v6917_v11 = vld [vmem:[%s11302_s0 + $0x8] sm:$0xff]  ;;  %v42_v12 = vld [vmem:[%s11300_s1 + $0x18] sm:$0xff] }
   0x4   :  { %5721 = vmatpush3.bf16.msra.mxu0 %v6793_v4  ;;  %5816 = vmatprep.subr.bf16.mxu1 %v11315_v6  ;;  %11607 = vst [vmem:[#allocation2_spill] sm:$0xff] %v6912_v10  ;;  %vm221_vm1 = vcmp.lt.s32.totalorder %v6902_v8, 1  ;;  %v41_v13 = vld [vmem:[%s11300_s1 + $0x10] sm:$0xff]  ;;  %v948_v14 = vpack.c.bf16 %v6917_v11, %v6912_v10  ;;  %v11314_v15 = vrot.slane %v6917_v11, 1  ;;  %v11313_v16 = vrot.slane %v6912_v10, 7  ;;  %v6795_v18 = vld [vmem:[%s11301_s3 + $0x20] sm:$0xff]  }
   0x5   :  { %5722 = vmatprep.subr.bf16.mxu0 %v11315_v6  ;;  %5820 = vmatprep.mubr.msk.bf16.mxu1 %vm6822_vm0, %v11315_v6  ;;  %v175_v17 = vrot.slane %v6917_v11, 7  ;;  %v131_v19 = vld [vmem:[%s11302_s0 + $0x10] sm:$0xff]  ;;  %v132_v20 = vld [vmem:[%s11302_s0 + $0x18] sm:$0xff]  ;;  %vm605_vm3 = vcmp.lt.s32.totalorder %v6902_v8, 7  ;;  %v133_v29 = vld [vmem:[%s11302_s0 + $0x20] sm:$0xff] }
   0x6   :  { %658 = vperm.xlu1 %6792, %v85_v5   ;;  %v562_v21 = vrot.slane %v131_v19, 1  ;;  %v176_v23 = vrot.slane %v131_v19, 7  ;;  %v177_v24 = vrot.slane %v132_v20, 7  ;;  %v87_v25 = vld [vmem:[%s11299_s2 + $0x18] sm:$0xff]  ;;  %v86_v26 = vld [vmem:[%s11299_s2 + $0x10] sm:$0xff]  ;;  %v563_v31 = vrot.slane %v132_v20, 1 }
   0x7   :  { %274 = vperm.xlu0 %6791, %v40_v7   ;;  %v6947_v22 = vsel %vm221_vm1, %v11313_v16, %v175_v17  ;;  %v564_v32 = vrot.slane %v133_v29, 1  ;;  %v44_v33 = vld [vmem:[%s11300_s1 + $0x28] sm:$0xff]  ;;  %v43_v34 = vld [vmem:[%s11300_s1 + $0x20] sm:$0xff]  ;;  %v949_v35 = vpack.c.bf16 %v132_v20, %v131_v19  ;;  %v178_v39 = vrot.slane %v133_v29, 7  ;;  %v135_v45 = vld [vmem:[%s11302_s0 + $0x30] sm:$0xff] }
   0x8   :  { %5723 = vmatpush3.bf16.msra.mxu0 %v6794_v9  ;;  %v6961_v27 = vsel %vm605_vm3, %v11314_v15, %v562_v21  ;;  %v6965_v28 = vsel %vm221_vm1, %v175_v17, %v176_v23  ;;  %v6974_v30 = vsel %vm221_vm1, %v176_v23, %v177_v24  ;;  %v6989_v37 = vsel %vm605_vm3, %v562_v21, %v563_v31  ;;  %v134_v38 = vld [vmem:[%s11302_s0 + $0x28] sm:$0xff]  ;;  %v88_v42 = vld [vmem:[%s11299_s2 + $0x20] sm:$0xff]  ;;  %v46_v48 = vld [vmem:[%s11300_s1 + $0x38] sm:$0xff] }
   0x9   :  { %5912 = vmatprep.subr.bf16.mxu0 %v11315_v6  ;;  %v6985_v36 = vsel %vm605_vm3, %v563_v31, %v564_v32  ;;  %v179_v40 = vrot.slane %v134_v38, 7  ;;  %v89_v41 = vld [vmem:[%s11299_s2 + $0x28] sm:$0xff]  ;;  %v7007_v44 = vsel %vm221_vm1, %v177_v24, %v178_v39  ;;  %v565_v46 = vrot.slane %v134_v38, 1  ;;  %v45_v49 = vld [vmem:[%s11300_s1 + $0x30] sm:$0xff]  ;;  %v136_v53 = vld [vmem:[%s11302_s0 + $0x38] sm:$0xff] }
   0xa   :  { %284 = vperm.xlu1 %6792, %v42_v12   ;;  %v566_v47 = vrot.slane %v135_v45, 1  ;;  %v950_v50 = vpack.c.bf16 %v134_v38, %v133_v29  ;;  %v180_v54 = vrot.slane %v135_v45, 7  ;;  %v181_v55 = vrot.slane %v136_v53, 7  ;;  %v91_v56 = vld [vmem:[%s11299_s2 + $0x38] sm:$0xff]  ;;  %v90_v57 = vld [vmem:[%s11299_s2 + $0x30] sm:$0xff]  ;;  %v137_v60 = vld [vmem:[%s11302_s0 + $0x40] sm:$0xff] }
   0xb   :  { %279 = vperm.xlu0 %6791, %v41_v13   ;;  %5725 = vmatmul.mubr.msk.bf16.vlgmr.msra.gmra.mrb[0].mxu0 %vm987_vm2, %v948_v14  ;;  %v7003_v43 = vsel %vm221_vm1, %v178_v39, %v179_v40  ;;  %v7026_v52 = vsel %vm605_vm3, %v564_v32, %v565_v46  ;;  %v567_v61 = vrot.slane %v136_v53, 1  ;;  %v6796_v62 = vld [vmem:[%s11301_s3 + $0x28] sm:$0xff]   ;;  %v568_v63 = vrot.slane %v137_v60, 1  ;;  %v47_v1 = vld [vmem:[%s11300_s1 + $0x40] sm:$0xff]  ;;  %v50_v23 = vld [vmem:[%s11300_s1 + $0x58] sm:$0xff] }
   0xc   :  { %5913 = vmatpush3.bf16.msra.mxu0 %v6795_v18  ;;  %5728 = vmatprep.mubr.msk.bf16.mxu0 %vm6822_vm0, %v11315_v6  ;;  %v7022_v51 = vsel %vm605_vm3, %v565_v46, %v566_v47  ;;  %v7040_v58 = vsel %vm221_vm1, %v180_v54, %v181_v55  ;;  %v7044_v59 = vsel %vm221_vm1, %v179_v40, %v180_v54  ;;  %v48_v0 = vld [vmem:[%s11300_s1 + $0x48] sm:$0xff]  ;;  %v182_v7 = vrot.slane %v137_v60, 7  ;;  %v92_v13 = vld [vmem:[%s11299_s2 + $0x40] sm:$0xff]  ;;  %v139_v18 = vld [vmem:[%s11302_s0 + $0x50] sm:$0xff] }
   0xd   :  { %5914 = vmatprep.subr.bf16.mxu0 %v11315_v6  ;;  %v951_v2 = vpack.c.bf16 %v136_v53, %v135_v45  ;;  %v7062_v3 = vsel %vm605_vm3, %v566_v47, %v567_v61  ;;  %v138_v4 = vld [vmem:[%s11302_s0 + $0x48] sm:$0xff]  ;;  %v7069_v5 = vsel %vm605_vm3, %v567_v61, %v568_v63  ;;  %v570_v20 = vrot.slane %v139_v18, 1  ;;  %v6797_v21 = vld [vmem:[%s11301_s3] sm:$0xff]   ;;  %v49_v24 = vld [vmem:[%s11300_s1 + $0x50] sm:$0xff] }
   0xe   :  { %668 = vperm.xlu1 %6792, %v87_v25   ;;  %v183_v9 = vrot.slane %v138_v4, 7  ;;  %v93_v12 = vld [vmem:[%s11299_s2 + $0x48] sm:$0xff]  ;;  %v7085_v17 = vsel %vm221_vm1, %v181_v55, %v182_v7  ;;  %v569_v19 = vrot.slane %v138_v4, 1  ;;  %v952_v25 = vpack.c.bf16 %v138_v4, %v137_v60  ;;  %v140_v31 = vld [vmem:[%s11302_s0 + $0x58] sm:$0xff]  ;;  %5817 = vmatpush3.bf16.msra.mxu1 %v6797_v21  ;;  %v94_v38 = vld [vmem:[%s11299_s2 + $0x50] sm:$0xff] }
   0xf   :  { %663 = vperm.xlu0 %6791, %v86_v26   ;;  %v6798_v32 = vld [vmem:[%s11301_s3 + $0x8] sm:$0xff]   ;;  %5818 = vmatprep.subr.bf16.mxu1 %v11315_v6  ;;  %v51_v47 = vld [vmem:[%s11300_s1 + $0x60] sm:$0xff]  ;;  %v99_v21 = vld [vmem:[%s11299_s2 + $0x78] sm:$0xff]  ;;  %v11619_v15 = vrot.slane %v6912_v10, 7 }
  0x10   :  { %5915 = vmatpush3.bf16.msra.mxu0 %v6796_v62  ;;  %v7081_v14 = vsel %vm221_vm1, %v182_v7, %v183_v9  ;;  %v7103_v26 = vsel %vm605_vm3, %v569_v19, %v570_v20  ;;  %v7107_v29 = vsel %vm605_vm3, %v568_v63, %v569_v19  ;;  %v52_v46 = vld [vmem:[%s11300_s1 + $0x68] sm:$0xff]  ;;  %v143_v62 = vld [vmem:[%s11302_s0 + $0x70] sm:$0xff]  ;;  %v144_v7 = vld [vmem:[%s11302_s0 + $0x78] sm:$0xff] }
  0x11   :  { %6104 = vmatprep.subr.bf16.mxu0 %v11315_v6  ;;  %v142_v53 = vld [vmem:[%s11302_s0 + $0x68] sm:$0xff]  ;;  %v7464_v16 = vld [vmem:[%s11302_s0 + $0x160] sm:$0xff] }
  0x12   :  { %294 = vperm.xlu1 %6792, %v44_v33   ;;  %v184_v33 = vrot.slane %v139_v18, 7  ;;  %5819 = vmatpush3.bf16.msra.mxu1 %v6798_v32  ;;  %v187_v55 = vrot.slane %v142_v53, 7  ;;  %v573_v63 = vrot.slane %v142_v53, 1 }
  0x13   :  { %289 = vperm.xlu0 %6791, %v43_v34   ;;  %5729 = vmatmul.mubr.msk.bf16.gmra.mrb[4].mxu0 %vm987_vm2, %v949_v35  ;;  %v185_v34 = vrot.slane %v140_v31, 7  ;;  %v95_v35 = vld [vmem:[%s11299_s2 + $0x58] sm:$0xff] }
  0x14   :  { %5732 = vmatprep.mubr.msk.bf16.mxu0 %vm6822_vm0, %v11315_v6  ;;  %v7129_v40 = vsel %vm221_vm1, %v183_v9, %v184_v33  ;;  %6008 = vmatprep.subr.bf16.mxu1 %v11315_v6 }
  0x15   :  { %v7125_v39 = vsel %vm221_vm1, %v184_v33, %v185_v34 }
  0x16   :  { %678 = vperm.xlu1 %6792, %v89_v41   ;;  %v141_v41 = vld [vmem:[%s11302_s0 + $0x60] sm:$0xff] }
  0x17   :  { %673 = vperm.xlu0 %6791, %v88_v42   ;;  %v571_v42 = vrot.slane %v140_v31, 1  ;;  %v572_v45 = vrot.slane %v141_v41, 1  ;;  %v186_v54 = vrot.slane %v141_v41, 7  ;;  %v954_v4 = vpack.c.bf16 %v142_v53, %v141_v41  ;;  %v146_v41 = vld [vmem:[%s11302_s0 + $0x88] sm:$0xff]  ;;  %v100_v53 = vld [vmem:[%s11299_s2 + $0x80] sm:$0xff] }
  0x19   :  { %v7163_v60 = vsel %vm221_vm1, %v186_v54, %v187_v55  ;;  %v7167_v61 = vsel %vm221_vm1, %v185_v34, %v186_v54  ;;  %v56_v34 = vld [vmem:[%s11300_s1 + $0x88] sm:$0xff]  ;;  %v147_v54 = vld [vmem:[%s11302_s0 + $0x90] sm:$0xff] }
  0x1a   :  { %304 = vperm.xlu1 %6792, %v46_v48   ;;  %v953_v48 = vpack.c.bf16 %v140_v31, %v139_v18  ;;  %v189_v18 = vrot.slane %v144_v7, 7 }
  0x1b   :  { %299 = vperm.xlu0 %6791, %v45_v49   ;;  %5733 = vmatmul.mubr.msk.bf16.gmra.mrb[8].mxu0 %vm987_vm2, %v950_v50  ;;  %v7145_v49 = vsel %vm605_vm3, %v571_v42, %v572_v45  ;;  %v7149_v50 = vsel %vm605_vm3, %v570_v20, %v571_v42 }
  0x1c   :  { %5736 = vmatprep.mubr.msk.bf16.mxu0 %vm6822_vm0, %v11315_v6 }
  0x1e   :  { %688 = vperm.xlu1 %6792, %v91_v56   ;;  %v97_v56 = vld [vmem:[%s11299_s2 + $0x68] sm:$0xff] }
  0x1f   :  { %683 = vperm.xlu0 %6791, %v90_v57   ;;  %v96_v57 = vld [vmem:[%s11299_s2 + $0x60] sm:$0xff] }
  0x22   :  { %314 = vperm.xlu1 %6792, %v48_v0   ;;  %v574_v0 = vrot.slane %v143_v62, 1 }
  0x23   :  { %309 = vperm.xlu0 %6791, %v47_v1   ;;  %5737 = vmatmul.mubr.msk.bf16.gmra.mrb[12].mxu0 %vm987_vm2, %v951_v2  ;;  %v54_v1 = vld [vmem:[%s11300_s1 + $0x78] sm:$0xff]  ;;  %v53_v2 = vld [vmem:[%s11300_s1 + $0x70] sm:$0xff] }
  0x24   :  { %5740 = vmatprep.mubr.msk.bf16.mxu0 %vm6822_vm0, %v11315_v6  ;;  %v7185_v9 = vsel %vm605_vm3, %v573_v63, %v574_v0 }
  0x26   :  { %698 = vperm.xlu1 %6792, %v93_v12   ;;  %v7189_v12 = vsel %vm605_vm3, %v572_v45, %v573_v63  ;;  %v191_v45 = vrot.slane %v146_v41, 7  ;;  %v58_v63 = vld [vmem:[%s11300_s1 + $0x98] sm:$0xff] }
  0x27   :  { %693 = vperm.xlu0 %6791, %v92_v13   ;;  %v188_v13 = vrot.slane %v143_v62, 7 }
  0x29   :  { %v7193_v19 = vsel %vm221_vm1, %v188_v13, %v189_v18  ;;  %v7197_v20 = vsel %vm221_vm1, %v187_v55, %v188_v13  ;;  %v577_v55 = vrot.slane %v146_v41, 1 }
  0x2a   :  { %324 = vperm.xlu1 %6792, %v50_v23   ;;  %v98_v23 = vld [vmem:[%s11299_s2 + $0x70] sm:$0xff] }
  0x2b   :  { %319 = vperm.xlu0 %6791, %v49_v24   ;;  %5741 = vmatmul.mubr.msk.bf16.gmra.mrb[16].mxu0 %vm987_vm2, %v952_v25  ;;  %v145_v24 = vld [vmem:[%s11302_s0 + $0x80] sm:$0xff]  ;;  %v575_v25 = vrot.slane %v144_v7, 1 }
  0x2c   :  { %5744 = vmatprep.mubr.msk.bf16.mxu0 %vm6822_vm0, %v11315_v6  ;;  %v576_v31 = vrot.slane %v145_v24, 1  ;;  %v190_v42 = vrot.slane %v145_v24, 7 }
  0x2d   :  { %v7217_v33 = vsel %vm605_vm3, %v574_v0, %v575_v25  ;;  %v57_v0 = vld [vmem:[%s11300_s1 + $0x90] sm:$0xff] }
  0x2e   :  { %708 = vperm.xlu1 %6792, %v95_v35   ;;  %v7213_v32 = vsel %vm605_vm3, %v575_v25, %v576_v31  ;;  %v55_v35 = vld [vmem:[%s11300_s1 + $0x80] sm:$0xff] }
  0x2f   :  { %703 = vperm.xlu0 %6791, %v94_v38   ;;  %v955_v38 = vpack.c.bf16 %v144_v7, %v143_v62  ;;  %v7254_v62 = vsel %vm605_vm3, %v576_v31, %v577_v55 }
  0x32   :  { %334 = vperm.xlu1 %6792, %v52_v46   ;;  %v7230_v46 = vsel %vm221_vm1, %v190_v42, %v191_v45 }
  0x33   :  { %329 = vperm.xlu0 %6791, %v51_v47   ;;  %5745 = vmatmul.mubr.msk.bf16.gmra.mrb[20].mxu0 %vm987_vm2, %v953_v48  ;;  %v7234_v47 = vsel %vm221_vm1, %v189_v18, %v190_v42  ;;  %v101_v48 = vld [vmem:[%s11299_s2 + $0x88] sm:$0xff] }
  0x34   :  { %5748 = vmatprep.mubr.msk.bf16.mxu0 %vm6822_vm0, %v11315_v6 }
  0x36   :  { %718 = vperm.xlu1 %6792, %v97_v56   ;;  %v578_v56 = vrot.slane %v147_v54, 1 }
  0x37   :  { %713 = vperm.xlu0 %6791, %v96_v57  }
  0x38   :  { %v7250_v57 = vsel %vm605_vm3, %v577_v55, %v578_v56 }
  0x3a   :  { %344 = vperm.xlu1 %6792, %v54_v1   ;;  %v956_v1 = vpack.c.bf16 %v146_v41, %v145_v24  ;;  %v149_v24 = vld [vmem:[%s11302_s0 + $0xa0] sm:$0xff] }
  0x3b   :  { %339 = vperm.xlu0 %6791, %v53_v2   ;;  %5749 = vmatmul.mubr.msk.bf16.gmra.mrb[24].mxu0 %vm987_vm2, %v954_v4  ;;  %v148_v2 = vld [vmem:[%s11302_s0 + $0x98] sm:$0xff]  ;;  %v192_v4 = vrot.slane %v147_v54, 7  ;;  %v580_v31 = vrot.slane %v149_v24, 1  ;;  %v59_v41 = vld [vmem:[%s11300_s1 + $0xa0] sm:$0xff] }
  0x3c   :  { %5752 = vmatprep.mubr.msk.bf16.mxu0 %vm6822_vm0, %v11315_v6  ;;  %v193_v7 = vrot.slane %v148_v2, 7  ;;  %v579_v25 = vrot.slane %v148_v2, 1  ;;  %v957_v42 = vpack.c.bf16 %v148_v2, %v147_v54  ;;  %v105_v54 = vld [vmem:[%s11299_s2 + $0xa8] sm:$0xff] }
  0x3d   :  { %v7271_v18 = vsel %vm221_vm1, %v191_v45, %v192_v4  ;;  %v150_v45 = vld [vmem:[%s11302_s0 + $0xa8] sm:$0xff] }
  0x3e   :  { %728 = vperm.xlu1 %6792, %v99_v21   ;;  %v7267_v13 = vsel %vm221_vm1, %v192_v4, %v193_v7  ;;  %v103_v21 = vld [vmem:[%s11299_s2 + $0x98] sm:$0xff] }
  0x3f   :  { %723 = vperm.xlu0 %6791, %v98_v23   ;;  %v102_v23 = vld [vmem:[%s11299_s2 + $0x90] sm:$0xff] }
  0x42   :  { %354 = vperm.xlu1 %6792, %v56_v34   ;;  %v7287_v34 = vsel %vm605_vm3, %v579_v25, %v580_v31 }
  0x43   :  { %349 = vperm.xlu0 %6791, %v55_v35   ;;  %5753 = vmatmul.mubr.msk.bf16.gmra.mrb[28].mxu0 %vm987_vm2, %v955_v38  ;;  %v7291_v35 = vsel %vm605_vm3, %v578_v56, %v579_v25  ;;  %v60_v38 = vld [vmem:[%s11300_s1 + $0xa8] sm:$0xff]  ;;  %v958_v25 = vpack.c.bf16 %v150_v45, %v149_v24 }
  0x44   :  { %5756 = vmatprep.mubr.msk.bf16.mxu0 %vm6822_vm0, %v11315_v6 }
  0x46   :  { %738 = vperm.xlu1 %6792, %v101_v48   ;;  %v194_v48 = vrot.slane %v149_v24, 7  ;;  %v107_v24 = vld [vmem:[%s11299_s2 + $0xb8] sm:$0xff] }
  0x47   :  { %733 = vperm.xlu0 %6791, %v100_v53   ;;  %v195_v53 = vrot.slane %v150_v45, 7 }
  0x48   :  { %v7308_v56 = vsel %vm221_vm1, %v193_v7, %v194_v48 }
  0x49   :  { %v7304_v55 = vsel %vm221_vm1, %v194_v48, %v195_v53 }
  0x4a   :  { %364 = vperm.xlu1 %6792, %v58_v63   ;;  %v104_v63 = vld [vmem:[%s11299_s2 + $0xa0] sm:$0xff] }
  0x4b   :  { %359 = vperm.xlu0 %6791, %v57_v0   ;;  %5757 = vmatmul.mubr.msk.bf16.gmra.mrb[32].mxu0 %vm987_vm2, %v956_v1  ;;  %v151_v0 = vld [vmem:[%s11302_s0 + $0xb0] sm:$0xff]  ;;  %v581_v1 = vrot.slane %v150_v45, 1 }
  0x4c   :  { %5760 = vmatprep.mubr.msk.bf16.mxu0 %vm6822_vm0, %v11315_v6  ;;  %v582_v2 = vrot.slane %v151_v0, 1  ;;  %v106_v45 = vld [vmem:[%s11299_s2 + $0xb0] sm:$0xff] }
  0x4d   :  { %v7328_v7 = vsel %vm605_vm3, %v580_v31, %v581_v1 }
  0x4e   :  { %748 = vperm.xlu1 %6792, %v103_v21   ;;  %v7324_v4 = vsel %vm605_vm3, %v581_v1, %v582_v2  ;;  %v62_v21 = vld [vmem:[%s11300_s1 + $0xb8] sm:$0xff] }
  0x4f   :  { %743 = vperm.xlu0 %6791, %v102_v23   ;;  %v61_v23 = vld [vmem:[%s11300_s1 + $0xb0] sm:$0xff] }
  0x52   :  { %374 = vperm.xlu1 %6792, %v60_v38   ;;  %v152_v38 = vld [vmem:[%s11302_s0 + $0xb8] sm:$0xff] }
  0x53   :  { %369 = vperm.xlu0 %6791, %v59_v41   ;;  %5761 = vmatmul.mubr.msk.bf16.gmra.mrb[36].mxu0 %vm987_vm2, %v957_v42  ;;  %v196_v41 = vrot.slane %v151_v0, 7  ;;  %v197_v42 = vrot.slane %v152_v38, 7 }
  0x54   :  { %5764 = vmatprep.mubr.msk.bf16.mxu0 %vm6822_vm0, %v11315_v6 }
  0x55   :  { %v7341_v31 = vsel %vm221_vm1, %v196_v41, %v197_v42  ;;  %v7345_v48 = vsel %vm221_vm1, %v195_v53, %v196_v41  ;;  %v583_v53 = vrot.slane %v152_v38, 1  ;;  %v959_v41 = vpack.c.bf16 %v152_v38, %v151_v0  ;;  %v108_v0 = vld [vmem:[%s11299_s2 + $0xc0] sm:$0xff]  ;;  %v7397_v38 = vld [vmem:[%s11302_s0 + $0xc8] sm:$0xff] }
  0x56   :  { %758 = vperm.xlu1 %6792, %v105_v54   ;;  %v7357_v54 = vld [vmem:[%s11302_s0 + $0xc0] sm:$0xff] }
  0x57   :  { %753 = vperm.xlu0 %6791, %v104_v63   ;;  %11608 = vst [vmem:[#allocation3_spill] sm:$0xff] %v7357_v54  ;;  %v11311_v63 = vrot.slane %v7357_v54, 1 }
  0x59   :  { %v7366_v1 = vsel %vm605_vm3, %v583_v53, %v11311_v63  ;;  %v113_v63 = vld [vmem:[%s11299_s2 + $0xe8] sm:$0xff] }
  0x5a   :  { %384 = vperm.xlu1 %6792, %v62_v21   ;;  %v7370_v21 = vsel %vm605_vm3, %v582_v2, %v583_v53  ;;  %v109_v2 = vld [vmem:[%s11299_s2 + $0xc8] sm:$0xff]  ;;  %v65_v53 = vld [vmem:[%s11300_s1 + $0xd0] sm:$0xff] }
  0x5b   :  { %379 = vperm.xlu0 %6791, %v61_v23   ;;  %5765 = vmatmul.mubr.msk.bf16.gmra.mrb[40].mxu0 %vm987_vm2, %v958_v25  ;;  %v64_v23 = vld [vmem:[%s11300_s1 + $0xc8] sm:$0xff]  ;;  %v63_v25 = vld [vmem:[%s11300_s1 + $0xc0] sm:$0xff] }
  0x5c   :  { %5768 = vmatprep.mubr.msk.bf16.mxu0 %vm6822_vm0, %v11315_v6 }
  0x5e   :  { %768 = vperm.xlu1 %6792, %v107_v24   ;;  %v11312_v24 = vrot.slane %v7357_v54, 7 }
  0x5f   :  { %763 = vperm.xlu0 %6791, %v106_v45  }
  0x60   :  { %v7383_v45 = vsel %vm221_vm1, %v197_v42, %v11312_v24  ;;  %v66_v42 = vld [vmem:[%s11300_s1 + $0xd8] sm:$0xff] }
  0x61   :  { %11609 = vst [vmem:[#allocation4_spill] sm:$0xff] %v7383_v45  ;;  %v11620_v45 = vrot.slane %v7464_v16, 7 }
  0x62   :  { %394 = vperm.xlu1 %6792, %v64_v23   ;;  %v960_v23 = vpack.c.bf16 %v7397_v38, %v7357_v54 }
  0x63   :  { %389 = vperm.xlu0 %6791, %v63_v25   ;;  %5769 = vmatmul.mubr.msk.bf16.gmra.mrb[44].mxu0 %vm987_vm2, %v959_v41  ;;  %v111_v25 = vld [vmem:[%s11299_s2 + $0xd8] sm:$0xff]  ;;  %v110_v41 = vld [vmem:[%s11299_s2 + $0xd0] sm:$0xff]  ;;  %v266_v54 = vsel %vm221_vm1, %v11620_v45, %v11619_v15  ;;  %v7532_v15 = vld [vmem:[%s11302_s0 + $0x108] sm:$0xff] }
  0x64   :  { %5772 = vmatprep.mubr.msk.bf16.mxu0 %vm6822_vm0, %v11315_v6 }
  0x66   :  { %778 = vperm.xlu1 %6792, %v109_v2   ;;  %v7419_v2 = vld [vmem:[%s11302_s0 + $0xd0] sm:$0xff] }
  0x67   :  { %773 = vperm.xlu0 %6791, %v108_v0   ;;  %11610 = vst [vmem:[#allocation5_spill] sm:$0xff] %v7419_v2  ;;  %v7424_v0 = vld [vmem:[%s11302_s0 + $0xd8] sm:$0xff] }
  0x68   :  { %11611 = vst [vmem:[#allocation6_spill] sm:$0xff] %v7424_v0 }
  0x6a   :  { %404 = vperm.xlu1 %6792, %v66_v42   ;;  %v68_v42 = vld [vmem:[%s11300_s1 + $0xe8] sm:$0xff] }
  0x6b   :  { %399 = vperm.xlu0 %6791, %v65_v53   ;;  %5773 = vmatmul.mubr.msk.bf16.gmra.mrb[48].mxu0 %vm987_vm2, %v960_v23  ;;  %v67_v53 = vld [vmem:[%s11300_s1 + $0xe0] sm:$0xff]  ;;  %v961_v23 = vpack.c.bf16 %v7424_v0, %v7419_v2  ;;  %v11617_v2 = vrot.slane %v6917_v11, 1  ;;  %v117_v11 = vld [vmem:[%s11299_s2 + $0x108] sm:$0xff] }
  0x6c   :  { %5776 = vmatprep.mubr.msk.bf16.mxu0 %vm6822_vm0, %v11315_v6 }
  0x6e   :  { %788 = vperm.xlu1 %6792, %v111_v25   ;;  %v112_v25 = vld [vmem:[%s11299_s2 + $0xe0] sm:$0xff] }
  0x6f   :  { %783 = vperm.xlu0 %6791, %v110_v41   ;;  %v7446_v41 = vld [vmem:[%s11302_s0 + $0xe0] sm:$0xff] }
  0x70   :  { %11612 = vst [vmem:[#allocation7_spill] sm:$0xff] %v7446_v41 }
  0x72   :  { %414 = vperm.xlu1 %6792, %v68_v42   ;;  %v7451_v42 = vld [vmem:[%s11302_s0 + $0xe8] sm:$0xff] }
  0x73   :  { %409 = vperm.xlu0 %6791, %v67_v53   ;;  %5777 = vmatmul.mubr.msk.bf16.gmra.mrb[52].mxu0 %vm987_vm2, %v961_v23  ;;  %11613 = vst [vmem:[#allocation8_spill] sm:$0xff] %v7451_v42  ;;  %v70_v53 = vld [vmem:[%s11300_s1 + $0xf8] sm:$0xff]  ;;  %v69_v23 = vld [vmem:[%s11300_s1 + $0xf0] sm:$0xff]  ;;  %v962_v24 = vpack.c.bf16 %v7451_v42, %v7446_v41  ;;  %v71_v42 = vld [vmem:[%s11300_s1 + $0x100] sm:$0xff] }
  0x74   :  { %5780 = vmatprep.mubr.msk.bf16.mxu0 %vm6822_vm0, %v11315_v6 }
  0x76   :  { %798 = vperm.xlu1 %6792, %v113_v63   ;;  %v115_v63 = vld [vmem:[%s11299_s2 + $0xf8] sm:$0xff] }
  0x77   :  { %793 = vperm.xlu0 %6791, %v112_v25   ;;  %v114_v25 = vld [vmem:[%s11299_s2 + $0xf0] sm:$0xff] }
  0x7a   :  { %424 = vperm.xlu1 %6792, %v70_v53   ;;  %v7478_v53 = vld [vmem:[%s11302_s0 + $0xf0] sm:$0xff] }
  0x7b   :  { %419 = vperm.xlu0 %6791, %v69_v23   ;;  %5781 = vmatmul.mubr.msk.bf16.gmra.mrb[56].mxu0 %vm987_vm2, %v962_v24  ;;  %11614 = vst [vmem:[#allocation9_spill] sm:$0xff] %v7478_v53  ;;  %v7483_v24 = vld [vmem:[%s11302_s0 + $0xf8] sm:$0xff]  ;;  %v11327_v23 = vrot.slane %v6912_v10, 1 }
  0x7c   :  { %5784 = vmatprep.mubr.msk.bf16.mxu0 %vm6822_vm0, %v11315_v6  ;;  %11615 = vst [vmem:[#allocation10_spill] sm:$0xff] %v7483_v24  ;;  %v72_v6 = vld [vmem:[%s11300_s1 + $0x108] sm:$0xff]  ;;  %v963_v41 = vpack.c.bf16 %v7483_v24, %v7478_v53  ;;  %v11621_v24 = vmov 0.0  }
  0x7e   :  { %808 = vperm.xlu1 %6792, %v115_v63   ;;  %v649_v63 = vsel %vm605_vm3, %v11327_v23, %v11617_v2  ;;  %v116_v2 = vld [vmem:[%s11299_s2 + $0x100] sm:$0xff] }
  0x7f   :  { %803 = vperm.xlu0 %6791, %v114_v25  }
  0x81   :  { %v7495_v0 = vpop.permute.xlu1 %653 }
  0x82   :  { %11616 = vst [vmem:[#allocation11_spill] sm:$0xff] %v7495_v0  ;;  %v7503_v25 = vpop.permute.xlu0 %269  ;;  %434 = vperm.xlu1 %6792, %v72_v6   ;;  %v7519_v23 = vmul.f32 %v7495_v0, %v649_v63  ;;  %v7527_v6 = vld [vmem:[%s11302_s0 + $0x100] sm:$0xff]  ;;  %v74_v63 = vld [vmem:[%s11300_s1 + $0x118] sm:$0xff] }
  0x83   :  { %11618 = vst [vmem:[#allocation12_spill] sm:$0xff] %v7503_v25  ;;  %429 = vperm.xlu0 %6791, %v71_v42   ;;  %5785 = vmatmul.mubr.msk.bf16.gmra.mrb[60].mxu0 %vm987_vm2, %v963_v41  ;;  %v492_v10 = vmul.f32 %v7503_v25, %v266_v54  ;;  %v73_v25 = vld [vmem:[%s11300_s1 + $0x110] sm:$0xff]  ;;  %v964_v0 = vpack.c.bf16 %v7532_v15, %v7527_v6 }
  0x84   :  { %5788 = vmatprep.mubr.msk.bf16.mxu0 %vm6822_vm0, %v11621_v24 }
  0x85   :  { %v7534_v45 = vpop.permute.xlu1 %658 }
  0x86   :  { %11622 = vst [vmem:[#allocation13_spill] sm:$0xff] %v7534_v45  ;;  %v7536_v41 = vpop.permute.xlu0 %274  ;;  %v7540_v54 = vmul.f32 %v7534_v45, %v6961_v27  ;;  %818 = vperm.xlu1 %6792, %v117_v11   ;;  %v6799_v11 = vld [vmem:[%s11303_s5 + $0x10] sm:$0xff]  }
  0x87   :  { %11623 = vst [vmem:[#allocation14_spill] sm:$0xff] %v7536_v41  ;;  %v493_v42 = vmul.f32 %v7536_v41, %v6947_v22  ;;  %813 = vperm.xlu0 %6791, %v116_v2  }
  0x89   :  { %v537_v45 = vpack.c.bf16 %v493_v42, %v492_v10  ;;  %v7554_v53 = vpop.permute.xlu1 %284  ;;  %v119_v10 = vld [vmem:[%s11299_s2 + $0x118] sm:$0xff]  ;;  %v118_v42 = vld [vmem:[%s11299_s2 + $0x110] sm:$0xff] }
  0x8a   :  { %11624 = vst [vmem:[#allocation15_spill] sm:$0xff] %v7554_v53  ;;  %v7556_v22 = vpop.permute.xlu0 %279  ;;  %v495_v2 = vmul.f32 %v7554_v53, %v6974_v30  ;;  %444 = vperm.xlu1 %6792, %v74_v63   ;;  %v7585_v30 = vld [vmem:[%s11302_s0 + $0x118] sm:$0xff]  ;;  %v76_v63 = vld [vmem:[%s11300_s1 + $0x128] sm:$0xff] }
  0x8b   :  { %11625 = vst [vmem:[#allocation16_spill] sm:$0xff] %v7556_v22  ;;  %v494_v41 = vmul.f32 %v7556_v22, %v6965_v28  ;;  %439 = vperm.xlu0 %6791, %v73_v25   ;;  %5821 = vmatmul.mubr.msk.bf16.vlgmr.msra.gmra.mrb[0].mxu1 %vm987_vm2, %v537_v45  ;;  %v7580_v28 = vld [vmem:[%s11302_s0 + $0x110] sm:$0xff] }
  0x8c   :  { %5789 = vmatmul.mubr.msk.bf16.gmra.mrb[64].mxu0 %vm987_vm2, %v964_v0  ;;  %5824 = vmatprep.mubr.msk.bf16.mxu1 %vm6822_vm0, %v11621_v24 }
  0x8d   :  { %v538_v27 = vpack.c.bf16 %v495_v2, %v494_v41  ;;  %5792 = vmatprep.mubr.msk.bf16.mxu0 %vm6822_vm0, %v11621_v24  ;;  %v7587_v0 = vpop.permute.xlu1 %668  ;;  %6009 = vmatpush3.bf16.msra.mxu1 %v6799_v11  ;;  %v75_v2 = vld [vmem:[%s11300_s1 + $0x120] sm:$0xff]  ;;  %v965_v11 = vpack.c.bf16 %v7585_v30, %v7580_v28 }
  0x8e   :  { %11626 = vst [vmem:[#allocation17_spill] sm:$0xff] %v7587_v0  ;;  %v7589_v25 = vpop.permute.xlu0 %663  ;;  %v7593_v45 = vmul.f32 %v7587_v0, %v6985_v36  ;;  %828 = vperm.xlu1 %6792, %v119_v10   ;;  %6010 = vmatprep.subr.bf16.mxu1 %v11621_v24  ;;  %v121_v36 = vld [vmem:[%s11299_s2 + $0x128] sm:$0xff] }
  0x8f   :  { %11627 = vst [vmem:[#allocation18_spill] sm:$0xff] %v7589_v25  ;;  %v7597_v41 = vmul.f32 %v7589_v25, %v6989_v37  ;;  %823 = vperm.xlu0 %6791, %v118_v42   ;;  %v120_v25 = vld [vmem:[%s11299_s2 + $0x120] sm:$0xff] }
  0x91   :  { %v7610_v37 = vpop.permute.xlu1 %294 }
  0x92   :  { %11628 = vst [vmem:[#allocation19_spill] sm:$0xff] %v7610_v37  ;;  %v7612_v10 = vpop.permute.xlu0 %289  ;;  %v497_v42 = vmul.f32 %v7610_v37, %v7003_v43  ;;  %454 = vperm.xlu1 %6792, %v76_v63   ;;  %v7633_v43 = vld [vmem:[%s11302_s0 + $0x120] sm:$0xff] }
  0x93   :  { %11629 = vst [vmem:[#allocation20_spill] sm:$0xff] %v7612_v10  ;;  %v496_v0 = vmul.f32 %v7612_v10, %v7007_v44  ;;  %449 = vperm.xlu0 %6791, %v75_v2   ;;  %5825 = vmatmul.mubr.msk.bf16.gmra.mrb[4].mxu1 %vm987_vm2, %v538_v27  ;;  %v7638_v44 = vld [vmem:[%s11302_s0 + $0x128] sm:$0xff] }
  0x94   :  { %5793 = vmatmul.mubr.msk.bf16.gmra.mrb[68].mxu0 %vm987_vm2, %v965_v11  ;;  %5828 = vmatprep.mubr.msk.bf16.mxu1 %vm6822_vm0, %v11621_v24  ;;  %v78_v11 = vld [vmem:[%s11300_s1 + $0x138] sm:$0xff]  ;;  %v966_v37 = vpack.c.bf16 %v7638_v44, %v7633_v43 }
  0x95   :  { %v539_v53 = vpack.c.bf16 %v497_v42, %v496_v0  ;;  %5796 = vmatprep.mubr.msk.bf16.mxu0 %vm6822_vm0, %v11621_v24  ;;  %v7640_v27 = vpop.permute.xlu1 %678  ;;  %v77_v42 = vld [vmem:[%s11300_s1 + $0x130] sm:$0xff] }
  0x96   :  { %11630 = vst [vmem:[#allocation21_spill] sm:$0xff] %v7640_v27  ;;  %v7642_v63 = vpop.permute.xlu0 %673  ;;  %v7646_v0 = vmul.f32 %v7640_v27, %v7022_v51  ;;  %838 = vperm.xlu1 %6792, %v121_v36   ;;  %v123_v51 = vld [vmem:[%s11299_s2 + $0x138] sm:$0xff] }
  0x97   :  { %11631 = vst [vmem:[#allocation22_spill] sm:$0xff] %v7642_v63  ;;  %v7650_v2 = vmul.f32 %v7642_v63, %v7026_v52  ;;  %833 = vperm.xlu0 %6791, %v120_v25   ;;  %v122_v63 = vld [vmem:[%s11299_s2 + $0x130] sm:$0xff] }
  0x99   :  { %v7662_v27 = vpop.permute.xlu1 %304 }
  0x9a   :  { %11632 = vst [vmem:[#allocation23_spill] sm:$0xff] %v7662_v27  ;;  %v7664_v52 = vpop.permute.xlu0 %299  ;;  %v499_v25 = vmul.f32 %v7662_v27, %v7040_v58  ;;  %464 = vperm.xlu1 %6792, %v78_v11   ;;  %v7685_v58 = vld [vmem:[%s11302_s0 + $0x130] sm:$0xff] }
  0x9b   :  { %11633 = vst [vmem:[#allocation24_spill] sm:$0xff] %v7664_v52  ;;  %v498_v36 = vmul.f32 %v7664_v52, %v7044_v59  ;;  %459 = vperm.xlu0 %6791, %v77_v42   ;;  %5829 = vmatmul.mubr.msk.bf16.gmra.mrb[8].mxu1 %vm987_vm2, %v539_v53  ;;  %v7690_v59 = vld [vmem:[%s11302_s0 + $0x138] sm:$0xff] }
  0x9c   :  { %5797 = vmatmul.mubr.msk.bf16.gmra.mrb[72].mxu0 %vm987_vm2, %v966_v37  ;;  %5832 = vmatprep.mubr.msk.bf16.mxu1 %vm6822_vm0, %v11621_v24  ;;  %v967_v27 = vpack.c.bf16 %v7690_v59, %v7685_v58 }
  0x9d   :  { %v540_v10 = vpack.c.bf16 %v499_v25, %v498_v36  ;;  %5800 = vmatprep.mubr.msk.bf16.mxu0 %vm6822_vm0, %v11621_v24  ;;  %v7692_v53 = vpop.permute.xlu1 %688  ;;  %v80_v25 = vld [vmem:[%s11300_s1 + $0x148] sm:$0xff]  ;;  %v79_v36 = vld [vmem:[%s11300_s1 + $0x140] sm:$0xff] }
  0x9e   :  { %11634 = vst [vmem:[#allocation25_spill] sm:$0xff] %v7692_v53  ;;  %v7694_v37 = vpop.permute.xlu0 %683  ;;  %v7698_v11 = vmul.f32 %v7692_v53, %v7069_v5  ;;  %848 = vperm.xlu1 %6792, %v123_v51   ;;  %v125_v5 = vld [vmem:[%s11299_s2 + $0x148] sm:$0xff] }
  0x9f   :  { %11635 = vst [vmem:[#allocation26_spill] sm:$0xff] %v7694_v37  ;;  %v7702_v42 = vmul.f32 %v7694_v37, %v7062_v3  ;;  %843 = vperm.xlu0 %6791, %v122_v63   ;;  %v124_v37 = vld [vmem:[%s11299_s2 + $0x140] sm:$0xff] }
  0xa1   :  { %v7714_v53 = vpop.permute.xlu1 %314 }
  0xa2   :  { %11636 = vst [vmem:[#allocation27_spill] sm:$0xff] %v7714_v53  ;;  %v7716_v3 = vpop.permute.xlu0 %309  ;;  %v501_v63 = vmul.f32 %v7714_v53, %v7081_v14  ;;  %474 = vperm.xlu1 %6792, %v80_v25   ;;  %v7737_v14 = vld [vmem:[%s11302_s0 + $0x140] sm:$0xff] }
  0xa3   :  { %11637 = vst [vmem:[#allocation28_spill] sm:$0xff] %v7716_v3  ;;  %v500_v51 = vmul.f32 %v7716_v3, %v7085_v17  ;;  %469 = vperm.xlu0 %6791, %v79_v36   ;;  %5833 = vmatmul.mubr.msk.bf16.gmra.mrb[12].mxu1 %vm987_vm2, %v540_v10  ;;  %v7742_v17 = vld [vmem:[%s11302_s0 + $0x148] sm:$0xff] }
  0xa4   :  { %5801 = vmatmul.mubr.msk.bf16.gmra.mrb[76].mxu0 %vm987_vm2, %v967_v27  ;;  %5836 = vmatprep.mubr.msk.bf16.mxu1 %vm6822_vm0, %v11621_v24  ;;  %v968_v53 = vpack.c.bf16 %v7742_v17, %v7737_v14 }
  0xa5   :  { %v541_v52 = vpack.c.bf16 %v501_v63, %v500_v51  ;;  %5804 = vmatprep.mubr.msk.bf16.mxu0 %vm6822_vm0, %v11621_v24  ;;  %v7744_v10 = vpop.permute.xlu1 %698  ;;  %v82_v63 = vld [vmem:[%s11300_s1 + $0x158] sm:$0xff]  ;;  %v81_v51 = vld [vmem:[%s11300_s1 + $0x150] sm:$0xff] }
  0xa6   :  { %11638 = vst [vmem:[#allocation29_spill] sm:$0xff] %v7744_v10  ;;  %v7746_v27 = vpop.permute.xlu0 %693  ;;  %v7750_v25 = vmul.f32 %v7744_v10, %v7103_v26  ;;  %858 = vperm.xlu1 %6792, %v125_v5   ;;  %v127_v26 = vld [vmem:[%s11299_s2 + $0x158] sm:$0xff] }
  0xa7   :  { %11639 = vst [vmem:[#allocation30_spill] sm:$0xff] %v7746_v27  ;;  %v7754_v36 = vmul.f32 %v7746_v27, %v7107_v29  ;;  %853 = vperm.xlu0 %6791, %v124_v37   ;;  %v126_v27 = vld [vmem:[%s11299_s2 + $0x150] sm:$0xff] }
  0xa9   :  { %v7766_v10 = vpop.permute.xlu1 %324 }
  0xaa   :  { %11640 = vst [vmem:[#allocation31_spill] sm:$0xff] %v7766_v10  ;;  %v7768_v29 = vpop.permute.xlu0 %319  ;;  %v503_v37 = vmul.f32 %v7766_v10, %v7125_v39  ;;  %484 = vperm.xlu1 %6792, %v82_v63   ;;  %v7789_v39 = vld [vmem:[%s11302_s0 + $0x150] sm:$0xff] }
  0xab   :  { %11641 = vst [vmem:[#allocation32_spill] sm:$0xff] %v7768_v29  ;;  %v502_v5 = vmul.f32 %v7768_v29, %v7129_v40  ;;  %479 = vperm.xlu0 %6791, %v81_v51   ;;  %5837 = vmatmul.mubr.msk.bf16.gmra.mrb[16].mxu1 %vm987_vm2, %v541_v52  ;;  %v7794_v40 = vld [vmem:[%s11302_s0 + $0x158] sm:$0xff] }
  0xac   :  { %5805 = vmatmul.mubr.msk.bf16.gmra.mrb[80].mxu0 %vm987_vm2, %v968_v53  ;;  %5840 = vmatprep.mubr.msk.bf16.mxu1 %vm6822_vm0, %v11621_v24  ;;  %v969_v10 = vpack.c.bf16 %v7794_v40, %v7789_v39 }
  0xad   :  { %v542_v3 = vpack.c.bf16 %v503_v37, %v502_v5  ;;  %5808 = vmatprep.mubr.msk.bf16.mxu0 %vm6822_vm0, %v11621_v24  ;;  %v7796_v52 = vpop.permute.xlu1 %708  ;;  %v128_v37 = vld [vmem:[%s11299_s2 + $0x160] sm:$0xff] }
  0xae   :  { %11642 = vst [vmem:[#allocation33_spill] sm:$0xff] %v7796_v52  ;;  %v7798_v53 = vpop.permute.xlu0 %703  ;;  %v7802_v63 = vmul.f32 %v7796_v52, %v7145_v49  ;;  %868 = vperm.xlu1 %6792, %v127_v26   ;;  %v83_v5 = vld [vmem:[%s11300_s1 + $0x160] sm:$0xff] }
  0xaf   :  { %11643 = vst [vmem:[#allocation34_spill] sm:$0xff] %v7798_v53  ;;  %v7806_v51 = vmul.f32 %v7798_v53, %v7149_v50  ;;  %863 = vperm.xlu0 %6791, %v126_v27  }
  0xb1   :  { %v7818_v52 = vpop.permute.xlu1 %334 }
  0xb2   :  { %11644 = vst [vmem:[#allocation35_spill] sm:$0xff] %v7818_v52  ;;  %v7820_v50 = vpop.permute.xlu0 %329  ;;  %v505_v27 = vmul.f32 %v7818_v52, %v7163_v60  ;;  %873 = vperm.xlu1 %6792, %v128_v37  }
  0xb3   :  { %11645 = vst [vmem:[#allocation36_spill] sm:$0xff] %v7820_v50  ;;  %v504_v26 = vmul.f32 %v7820_v50, %v7167_v61  ;;  %489 = vperm.xlu0 %6791, %v83_v5   ;;  %5841 = vmatmul.mubr.msk.bf16.gmra.mrb[20].mxu1 %vm987_vm2, %v542_v3  ;;  %v970_v3 = vpack.c.bf16 %v7464_v16, %v7464_v16 }
  0xb4   :  { %5809 = vmatmul.mubr.msk.bf16.gmra.mrb[84].mxu0 %vm987_vm2, %v969_v10  ;;  %5844 = vmatprep.mubr.msk.bf16.mxu1 %vm6822_vm0, %v11621_v24 }
  0xb5   :  { %v543_v53 = vpack.c.bf16 %v505_v27, %v504_v26  ;;  %5812 = vmatprep.mubr.msk.bf16.mxu0 %vm6822_vm0, %v11621_v24  ;;  %v7832_v49 = vpop.permute.xlu1 %718 }
  0xb6   :  { %11646 = vst [vmem:[#allocation37_spill] sm:$0xff] %v7832_v49  ;;  %v7834_v29 = vpop.permute.xlu0 %713  ;;  %v7838_v60 = vmul.f32 %v7832_v49, %v7185_v9 }
  0xb7   :  { %11647 = vst [vmem:[#allocation38_spill] sm:$0xff] %v7834_v29  ;;  %v7842_v61 = vmul.f32 %v7834_v29, %v7189_v12 }
  0xb9   :  { %v7848_v37 = vpop.permute.xlu1 %344 }
  0xba   :  { %11648 = vst [vmem:[#allocation39_spill] sm:$0xff] %v7848_v37  ;;  %v7850_v5 = vpop.permute.xlu0 %339  ;;  %v507_v27 = vmul.f32 %v7848_v37, %v7193_v19 }
  0xbb   :  { %11649 = vst [vmem:[#allocation40_spill] sm:$0xff] %v7850_v5  ;;  %v506_v9 = vmul.f32 %v7850_v5, %v7197_v20  ;;  %5845 = vmatmul.mubr.msk.bf16.gmra.mrb[24].mxu1 %vm987_vm2, %v543_v53 }
  0xbc   :  { %5813 = vmatmul.mubr.msk.bf16.gmra.mrb[88].mxu0 %vm987_vm2, %v970_v3  ;;  %5848 = vmatprep.mubr.msk.bf16.mxu1 %vm6822_vm0, %v11621_v24 }
  0xbd   :  { %v544_v12 = vpack.c.bf16 %v507_v27, %v506_v9  ;;  %5916 = vmatprep.mubr.msk.bf16.mxu0 %vm6822_vm0, %v11621_v24  ;;  %v7862_v26 = vpop.permute.xlu1 %728 }
  0xbe   :  { %11650 = vst [vmem:[#allocation41_spill] sm:$0xff] %v7862_v26  ;;  %v7864_v10 = vpop.permute.xlu0 %723  ;;  %v7868_v19 = vmul.f32 %v7862_v26, %v7213_v32  ;;  %v11654_v32 = vpack.c.bf16 %v7540_v54, %v7519_v23  ;;  %v6800_v54 = vld [vmem:[%s11303_s5 + $0x18] sm:$0xff]  }
  0xbf   :  { %11651 = vst [vmem:[#allocation42_spill] sm:$0xff] %v7864_v10  ;;  %v7872_v20 = vmul.f32 %v7864_v10, %v7217_v33  ;;  %6011 = vmatpush3.bf16.msra.mxu1 %v6800_v54 }
  0xc0   :  { %6200 = vmatprep.subr.bf16.mxu1 %v11621_v24 }
  0xc1   :  { %v7876_v3 = vpop.permute.xlu1 %354 }
  0xc2   :  { %11652 = vst [vmem:[#allocation43_spill] sm:$0xff] %v7876_v3  ;;  %v7878_v27 = vpop.permute.xlu0 %349  ;;  %v509_v9 = vmul.f32 %v7876_v3, %v7230_v46 }
  0xc3   :  { %11653 = vst [vmem:[#allocation44_spill] sm:$0xff] %v7878_v27  ;;  %v508_v37 = vmul.f32 %v7878_v27, %v7234_v47  ;;  %5849 = vmatmul.mubr.msk.bf16.gmra.mrb[28].mxu1 %vm987_vm2, %v544_v12 }
  0xc4   :  { %5917 = vmatmul.mubr.msk.bf16.vlgmr.msra.gmra.mrb[92].mxu0 %vm987_vm2, %v11654_v32  ;;  %5852 = vmatprep.mubr.msk.bf16.mxu1 %vm6822_vm0, %v11621_v24  ;;  %v11659_v32 = vpack.c.bf16 %v7593_v45, %v7597_v41 }
  0xc5   :  { %v545_v33 = vpack.c.bf16 %v509_v9, %v508_v37  ;;  %5920 = vmatprep.mubr.msk.bf16.mxu0 %vm6822_vm0, %v11621_v24  ;;  %v7893_v53 = vpop.permute.xlu1 %738 }
  0xc6   :  { %11655 = vst [vmem:[#allocation45_spill] sm:$0xff] %v7893_v53  ;;  %v7895_v46 = vpop.permute.xlu0 %733  ;;  %v7899_v47 = vmul.f32 %v7893_v53, %v7250_v57 }
  0xc7   :  { %11656 = vst [vmem:[#allocation46_spill] sm:$0xff] %v7895_v46  ;;  %v7903_v23 = vmul.f32 %v7895_v46, %v7254_v62 }
  0xc9   :  { %v7910_v12 = vpop.permute.xlu1 %364 }
  0xca   :  { %11657 = vst [vmem:[#allocation47_spill] sm:$0xff] %v7910_v12  ;;  %v7912_v9 = vpop.permute.xlu0 %359  ;;  %v511_v57 = vmul.f32 %v7910_v12, %v7267_v13 }
  0xcb   :  { %11658 = vst [vmem:[#allocation48_spill] sm:$0xff] %v7912_v9  ;;  %v510_v62 = vmul.f32 %v7912_v9, %v7271_v18  ;;  %5853 = vmatmul.mubr.msk.bf16.gmra.mrb[32].mxu1 %vm987_vm2, %v545_v33 }
  0xcc   :  { %5921 = vmatmul.mubr.msk.bf16.gmra.mrb[96].mxu0 %vm987_vm2, %v11659_v32  ;;  %5856 = vmatprep.mubr.msk.bf16.mxu1 %vm6822_vm0, %v11621_v24 }
  0xcd   :  { %v546_v54 = vpack.c.bf16 %v511_v57, %v510_v62  ;;  %5924 = vmatprep.mubr.msk.bf16.mxu0 %vm6822_vm0, %v11621_v24  ;;  %v7928_v37 = vpop.permute.xlu1 %748 }
  0xce   :  { %11660 = vst [vmem:[#allocation49_spill] sm:$0xff] %v7928_v37  ;;  %v7930_v13 = vpop.permute.xlu0 %743  ;;  %v7934_v18 = vmul.f32 %v7928_v37, %v7287_v34  ;;  %v11664_v34 = vpack.c.bf16 %v7646_v0, %v7650_v2 }
  0xcf   :  { %11661 = vst [vmem:[#allocation50_spill] sm:$0xff] %v7930_v13  ;;  %v7938_v45 = vmul.f32 %v7930_v13, %v7291_v35  ;;  %v11684_v13 = vpack.c.bf16 %v7802_v63, %v7806_v51  ;;  %v11688_v51 = vld [vmem:[#allocation8_spill] sm:$0xff] }
  0xd1   :  { %v7942_v33 = vpop.permute.xlu1 %374 }
  0xd2   :  { %11662 = vst [vmem:[#allocation51_spill] sm:$0xff] %v7942_v33  ;;  %v7944_v57 = vpop.permute.xlu0 %369  ;;  %v513_v62 = vmul.f32 %v7942_v33, %v7304_v55 }
  0xd3   :  { %11663 = vst [vmem:[#allocation52_spill] sm:$0xff] %v7944_v57  ;;  %v512_v32 = vmul.f32 %v7944_v57, %v7308_v56  ;;  %5857 = vmatmul.mubr.msk.bf16.gmra.mrb[36].mxu1 %vm987_vm2, %v546_v54 }
  0xd4   :  { %5925 = vmatmul.mubr.msk.bf16.gmra.mrb[100].mxu0 %vm987_vm2, %v11664_v34  ;;  %5860 = vmatprep.mubr.msk.bf16.mxu1 %vm6822_vm0, %v11621_v24 }
  0xd5   :  { %v547_v35 = vpack.c.bf16 %v513_v62, %v512_v32  ;;  %5928 = vmatprep.mubr.msk.bf16.mxu0 %vm6822_vm0, %v11621_v24  ;;  %v7959_v41 = vpop.permute.xlu1 %758 }
  0xd6   :  { %11665 = vst [vmem:[#allocation53_spill] sm:$0xff] %v7959_v41  ;;  %v7961_v55 = vpop.permute.xlu0 %753  ;;  %v7965_v56 = vmul.f32 %v7959_v41, %v7324_v4  ;;  %v11669_v4 = vpack.c.bf16 %v7698_v11, %v7702_v42 }
  0xd7   :  { %11666 = vst [vmem:[#allocation54_spill] sm:$0xff] %v7961_v55  ;;  %v7969_v0 = vmul.f32 %v7961_v55, %v7328_v7  ;;  %v199_v7 = vrot.slane %v7397_v38, 7 }
  0xd9   :  { %v7973_v54 = vpop.permute.xlu1 %384 }
  0xda   :  { %11667 = vst [vmem:[#allocation55_spill] sm:$0xff] %v7973_v54  ;;  %v7975_v62 = vpop.permute.xlu0 %379  ;;  %v515_v32 = vmul.f32 %v7973_v54, %v7341_v31 }
  0xdb   :  { %11668 = vst [vmem:[#allocation56_spill] sm:$0xff] %v7975_v62  ;;  %v514_v34 = vmul.f32 %v7975_v62, %v7345_v48  ;;  %5861 = vmatmul.mubr.msk.bf16.gmra.mrb[40].mxu1 %vm987_vm2, %v547_v35 }
  0xdc   :  { %5929 = vmatmul.mubr.msk.bf16.gmra.mrb[104].mxu0 %vm987_vm2, %v11669_v4  ;;  %5864 = vmatprep.mubr.msk.bf16.mxu1 %vm6822_vm0, %v11621_v24 }
  0xdd   :  { %v548_v2 = vpack.c.bf16 %v515_v32, %v514_v34  ;;  %5932 = vmatprep.mubr.msk.bf16.mxu0 %vm6822_vm0, %v11621_v24  ;;  %v7991_v31 = vpop.permute.xlu1 %768  ;;  %v11672_v32 = vld [vmem:[#allocation3_spill] sm:$0xff] }
  0xde   :  { %11670 = vst [vmem:[#allocation57_spill] sm:$0xff] %v7991_v31  ;;  %v7993_v54 = vpop.permute.xlu0 %763  ;;  %v7997_v48 = vmul.f32 %v7991_v31, %v7366_v1  ;;  %v8003_v42 = vpop.f32.mrb[0].mxu0  ;;  %v11673_v34 = vrot.slane %v11672_v32, 7  ;;  %v11676_v31 = vld [vmem:[#allocation4_spill] sm:$0xff] }
  0xdf   :  { %11671 = vst [vmem:[#allocation58_spill] sm:$0xff] %v7993_v54  ;;  %v8001_v11 = vmul.f32 %v7993_v54, %v7370_v21  ;;  %v5726_v35 = vpop.f32.mrb[1].mxu0 }
  0xe0   :  { %v241_v4 = vsel %vm221_vm1, %v11673_v34, %v199_v7  ;;  %v8011_v41 = vpop.f32.mrb[2].mxu0  ;;  %v11677_v34 = vpack.c.bf16 %v7750_v25, %v7754_v36 }
  0xe1   :  { %v8013_v55 = vpop.permute.xlu1 %394  ;;  %v5727_v35 = vpop.f32.mrb[3].mxu0 }
  0xe2   :  { %11674 = vst [vmem:[#allocation3_spill] sm:$0xff] %v8013_v55  ;;  %v8015_v1 = vpop.permute.xlu0 %389  ;;  %v517_v21 = vmul.f32 %v8013_v55, %v241_v4  ;;  %v11680_v35 = vld [vmem:[#allocation5_spill] sm:$0xff]  ;;  %v11681_v55 = vld [vmem:[#allocation6_spill] sm:$0xff] }
  0xe3   :  { %11675 = vst [vmem:[#allocation59_spill] sm:$0xff] %v8015_v1  ;;  %v516_v54 = vmul.f32 %v8015_v1, %v11676_v31  ;;  %5865 = vmatmul.mubr.msk.bf16.gmra.mrb[44].mxu1 %vm987_vm2, %v548_v2  ;;  %v200_v2 = vrot.slane %v11680_v35, 7  ;;  %v201_v1 = vrot.slane %v11681_v55, 7 }
  0xe4   :  { %5933 = vmatmul.mubr.msk.bf16.gmra.mrb[108].mxu0 %vm987_vm2, %v11677_v34  ;;  %5868 = vmatprep.mubr.msk.bf16.mxu1 %vm6822_vm0, %v11621_v24 }
  0xe5   :  { %v549_v62 = vpack.c.bf16 %v517_v21, %v516_v54  ;;  %5936 = vmatprep.mubr.msk.bf16.mxu0 %vm6822_vm0, %v11621_v24  ;;  %v8029_v33 = vpop.permute.xlu1 %778  ;;  %v239_v34 = vsel %vm221_vm1, %v200_v2, %v201_v1  ;;  %v240_v57 = vsel %vm221_vm1, %v199_v7, %v200_v2  ;;  %v11687_v7 = vld [vmem:[#allocation7_spill] sm:$0xff] }
  0xe6   :  { %11678 = vst [vmem:[#allocation4_spill] sm:$0xff] %v8029_v33  ;;  %v8031_v4 = vpop.permute.xlu0 %773  ;;  %v8033_v31 = vpop.f32.mrb[4].mxu0  ;;  %v202_v63 = vrot.slane %v11687_v7, 7 }
  0xe7   :  { %11679 = vst [vmem:[#allocation60_spill] sm:$0xff] %v8031_v4  ;;  %v5730_v25 = vpop.f32.mrb[5].mxu0 }
  0xe8   :  { %v8037_v36 = vpop.f32.mrb[6].mxu0 }
  0xe9   :  { %v8039_v54 = vpop.permute.xlu1 %404  ;;  %v5731_v37 = vpop.f32.mrb[7].mxu0 }
  0xea   :  { %11682 = vst [vmem:[#allocation5_spill] sm:$0xff] %v8039_v54  ;;  %v8041_v21 = vpop.permute.xlu0 %399  ;;  %v519_v25 = vmul.f32 %v8039_v54, %v239_v34  ;;  %v238_v34 = vsel %vm221_vm1, %v201_v1, %v202_v63 }
  0xeb   :  { %11683 = vst [vmem:[#allocation6_spill] sm:$0xff] %v8041_v21  ;;  %5869 = vmatmul.mubr.msk.bf16.gmra.mrb[48].mxu1 %vm987_vm2, %v549_v62  ;;  %v518_v12 = vmul.f32 %v8041_v21, %v240_v57  ;;  %v11691_v21 = vpack.c.bf16 %v7838_v60, %v7842_v61  ;;  %v11695_v61 = vld [vmem:[#allocation10_spill] sm:$0xff] }
  0xec   :  { %5937 = vmatmul.mubr.msk.bf16.gmra.mrb[112].mxu0 %vm987_vm2, %v11684_v13  ;;  %5872 = vmatprep.mubr.msk.bf16.mxu1 %vm6822_vm0, %v11621_v24  ;;  %v203_v13 = vrot.slane %v11688_v51, 7 }
  0xed   :  { %5940 = vmatprep.mubr.msk.bf16.mxu0 %vm6822_vm0, %v11621_v24  ;;  %v8058_v9 = vpop.permute.xlu1 %788  ;;  %v550_v46 = vpack.c.bf16 %v519_v25, %v518_v12 }
  0xee   :  { %11685 = vst [vmem:[#allocation61_spill] sm:$0xff] %v8058_v9  ;;  %v8060_v37 = vpop.permute.xlu0 %783  ;;  %v8062_v62 = vpop.f32.mrb[8].mxu0  ;;  %v237_v57 = vsel %vm221_vm1, %v202_v63, %v203_v13 }
  0xef   :  { %11686 = vst [vmem:[#allocation62_spill] sm:$0xff] %v8060_v37  ;;  %v5734_v2 = vpop.f32.mrb[9].mxu0 }
  0xf0   :  { %v8066_v53 = vpop.f32.mrb[10].mxu0 }
  0xf1   :  { %v8068_v3 = vpop.permute.xlu1 %414  ;;  %v5735_v54 = vpop.f32.mrb[11].mxu0 }
  0xf2   :  { %11689 = vst [vmem:[#allocation7_spill] sm:$0xff] %v8068_v3  ;;  %v8070_v27 = vpop.permute.xlu0 %409  ;;  %v521_v12 = vmul.f32 %v8068_v3, %v237_v57  ;;  %v11694_v54 = vld [vmem:[#allocation9_spill] sm:$0xff] }
  0xf3   :  { %11690 = vst [vmem:[#allocation8_spill] sm:$0xff] %v8070_v27  ;;  %5873 = vmatmul.mubr.msk.bf16.gmra.mrb[52].mxu1 %vm987_vm2, %v550_v46  ;;  %v520_v25 = vmul.f32 %v8070_v27, %v238_v34  ;;  %v204_v60 = vrot.slane %v11694_v54, 7  ;;  %v11698_v27 = vpack.c.bf16 %v7868_v19, %v7872_v20  ;;  %v206_v19 = vrot.slane %v7527_v6, 7 }
  0xf4   :  { %5941 = vmatmul.mubr.msk.bf16.gmra.mrb[116].mxu0 %vm987_vm2, %v11691_v21  ;;  %5876 = vmatprep.mubr.msk.bf16.mxu1 %vm6822_vm0, %v11621_v24  ;;  %v205_v21 = vrot.slane %v11695_v61, 7  ;;  %v207_v20 = vrot.slane %v7532_v15, 7 }
  0xf5   :  { %5944 = vmatprep.mubr.msk.bf16.mxu0 %vm6822_vm0, %v11621_v24  ;;  %v8087_v2 = vpop.permute.xlu1 %798  ;;  %v551_v10 = vpack.c.bf16 %v521_v12, %v520_v25  ;;  %v236_v34 = vsel %vm221_vm1, %v203_v13, %v204_v60 }
  0xf6   :  { %11692 = vst [vmem:[#allocation63_spill] sm:$0xff] %v8087_v2  ;;  %v8089_v1 = vpop.permute.xlu0 %793  ;;  %v8091_v46 = vpop.f32.mrb[12].mxu0  ;;  %v235_v57 = vsel %vm221_vm1, %v204_v60, %v205_v21 }
  0xf7   :  { %11693 = vst [vmem:[#allocation64_spill] sm:$0xff] %v8089_v1  ;;  %v5738_v63 = vpop.f32.mrb[13].mxu0 }
  0xf8   :  { %v8095_v26 = vpop.f32.mrb[14].mxu0 }
  0xf9   :  { %v8097_v5 = vpop.permute.xlu1 %424  ;;  %v5739_v3 = vpop.f32.mrb[15].mxu0 }
  0xfa   :  { %11696 = vst [vmem:[#allocation9_spill] sm:$0xff] %v8097_v5  ;;  %v8099_v49 = vpop.permute.xlu0 %419  ;;  %v523_v12 = vmul.f32 %v8097_v5, %v235_v57  ;;  %v233_v57 = vsel %vm221_vm1, %v206_v19, %v207_v20 }
  0xfb   :  { %11697 = vst [vmem:[#allocation10_spill] sm:$0xff] %v8099_v49  ;;  %5877 = vmatmul.mubr.msk.bf16.gmra.mrb[56].mxu1 %vm987_vm2, %v551_v10  ;;  %v522_v25 = vmul.f32 %v8099_v49, %v236_v34  ;;  %v234_v34 = vsel %vm221_vm1, %v205_v21, %v206_v19  ;;  %v11703_v49 = vpack.c.bf16 %v7899_v47, %v7903_v23  ;;  %v208_v47 = vrot.slane %v7580_v28, 7 }
  0xfc   :  { %5945 = vmatmul.mubr.msk.bf16.gmra.mrb[120].mxu0 %vm987_vm2, %v11698_v27  ;;  %5880 = vmatprep.mubr.msk.bf16.mxu1 %vm6822_vm0, %v11621_v24 }
  0xfd   :  { %5948 = vmatprep.mubr.msk.bf16.mxu0 %vm6822_vm0, %v11621_v24  ;;  %v8116_v63 = vpop.permute.xlu1 %808  ;;  %v552_v60 = vpack.c.bf16 %v523_v12, %v522_v25 }
  0xfe   :  { %11699 = vst [vmem:[#allocation65_spill] sm:$0xff] %v8116_v63  ;;  %v8118_v3 = vpop.permute.xlu0 %803  ;;  %v8120_v10 = vpop.f32.mrb[16].mxu0 }
  0xff   :  { %11700 = vst [vmem:[#allocation66_spill] sm:$0xff] %v8118_v3  ;;  %v5742_v27 = vpop.f32.mrb[17].mxu0 }
 0x100   :  { %v8124_v13 = vpop.f32.mrb[18].mxu0 }
 0x101   :  { %v8126_v29 = vpop.permute.xlu1 %434  ;;  %v5743_v5 = vpop.f32.mrb[19].mxu0 }
 0x102   :  { %11701 = vst [vmem:[#allocation67_spill] sm:$0xff] %v8126_v29  ;;  %v8128_v52 = vpop.permute.xlu0 %429  ;;  %v525_v12 = vmul.f32 %v8126_v29, %v233_v57 }
 0x103   :  { %11702 = vst [vmem:[#allocation68_spill] sm:$0xff] %v8128_v52  ;;  %5881 = vmatmul.mubr.msk.bf16.gmra.mrb[60].mxu1 %vm987_vm2, %v552_v60  ;;  %v524_v25 = vmul.f32 %v8128_v52, %v234_v34  ;;  %v232_v34 = vsel %vm221_vm1, %v207_v20, %v208_v47  ;;  %v11710_v52 = vpack.c.bf16 %v7934_v18, %v7938_v45  ;;  %v210_v18 = vrot.slane %v7633_v43, 7 }
 0x104   :  { %5949 = vmatmul.mubr.msk.bf16.gmra.mrb[124].mxu0 %vm987_vm2, %v11703_v49  ;;  %5884 = vmatprep.mubr.msk.bf16.mxu1 %vm6822_vm0, %v11621_v24  ;;  %v209_v49 = vrot.slane %v7585_v30, 7 }
 0x105   :  { %5952 = vmatprep.mubr.msk.bf16.mxu0 %vm6822_vm0, %v11621_v24  ;;  %v8145_v27 = vpop.permute.xlu1 %818  ;;  %v553_v60 = vpack.c.bf16 %v525_v12, %v524_v25 }
 0x106   :  { %11704 = vst [vmem:[#allocation69_spill] sm:$0xff] %v8145_v27  ;;  %v8147_v5 = vpop.permute.xlu0 %813  ;;  %v8149_v21 = vpop.f32.mrb[20].mxu0  ;;  %v231_v57 = vsel %vm221_vm1, %v208_v47, %v209_v49 }
 0x107   :  { %11705 = vst [vmem:[#allocation70_spill] sm:$0xff] %v8147_v5  ;;  %11706 = vst [vmem:[#allocation71_spill] sm:$0xff] %v8149_v21  ;;  %v5746_v23 = vpop.f32.mrb[21].mxu0 }
 0x108   :  { %v8153_v19 = vpop.f32.mrb[22].mxu0 }
 0x109   :  { %11707 = vst [vmem:[#allocation72_spill] sm:$0xff] %v8153_v19  ;;  %v8155_v50 = vpop.permute.xlu1 %444  ;;  %v5747_v29 = vpop.f32.mrb[23].mxu0 }
 0x10a   :  { %11708 = vst [vmem:[#allocation73_spill] sm:$0xff] %v8155_v50  ;;  %v8157_v22 = vpop.permute.xlu0 %439  ;;  %v527_v12 = vmul.f32 %v8155_v50, %v231_v57 }
 0x10b   :  { %11709 = vst [vmem:[#allocation74_spill] sm:$0xff] %v8157_v22  ;;  %5885 = vmatmul.mubr.msk.bf16.gmra.mrb[64].mxu1 %vm987_vm2, %v553_v60  ;;  %v526_v25 = vmul.f32 %v8157_v22, %v232_v34  ;;  %v230_v34 = vsel %vm221_vm1, %v209_v49, %v210_v18  ;;  %v11716_v22 = vpack.c.bf16 %v7965_v56, %v7969_v0  ;;  %v585_v49 = vrot.slane %v7397_v38, 1 }
 0x10c   :  { %5953 = vmatmul.mubr.msk.bf16.gmra.mrb[128].mxu0 %vm987_vm2, %v11710_v52  ;;  %5888 = vmatprep.mubr.msk.bf16.mxu1 %vm6822_vm0, %v11621_v24  ;;  %v211_v52 = vrot.slane %v7638_v44, 7  ;;  %v586_v56 = vrot.slane %v11680_v35, 1  ;;  %v11723_v38 = vrot.slane %v11672_v32, 1 }
 0x10d   :  { %5956 = vmatprep.mubr.msk.bf16.mxu0 %vm6822_vm0, %v11621_v24  ;;  %v8174_v23 = vpop.permute.xlu1 %828  ;;  %v554_v60 = vpack.c.bf16 %v527_v12, %v526_v25 }
 0x10e   :  { %11711 = vst [vmem:[#allocation75_spill] sm:$0xff] %v8174_v23  ;;  %v8176_v29 = vpop.permute.xlu0 %823  ;;  %v8178_v20 = vpop.f32.mrb[24].mxu0  ;;  %v229_v57 = vsel %vm221_vm1, %v210_v18, %v211_v52  ;;  %v213_v18 = vrot.slane %v7690_v59, 7  ;;  %v625_v35 = vsel %vm605_vm3, %v11723_v38, %v585_v49  ;;  %v214_v38 = vrot.slane %v7737_v14, 7 }
 0x10f   :  { %11712 = vst [vmem:[#allocation76_spill] sm:$0xff] %v8176_v29  ;;  %v5750_v45 = vpop.f32.mrb[25].mxu0 }
 0x110   :  { %v8182_v47 = vpop.f32.mrb[26].mxu0 }
 0x111   :  { %11713 = vst [vmem:[#allocation77_spill] sm:$0xff] %v8182_v47  ;;  %v8184_v19 = vpop.permute.xlu1 %454  ;;  %v5751_v50 = vpop.f32.mrb[27].mxu0 }
 0x112   :  { %11714 = vst [vmem:[#allocation78_spill] sm:$0xff] %v8184_v19  ;;  %v8186_v21 = vpop.permute.xlu0 %449  ;;  %v529_v12 = vmul.f32 %v8184_v19, %v229_v57 }
 0x113   :  { %11715 = vst [vmem:[#allocation79_spill] sm:$0xff] %v8186_v21  ;;  %5889 = vmatmul.mubr.msk.bf16.gmra.mrb[68].mxu1 %vm987_vm2, %v554_v60  ;;  %v528_v25 = vmul.f32 %v8186_v21, %v230_v34  ;;  %v624_v21 = vsel %vm605_vm3, %v585_v49, %v586_v56 }
 0x114   :  { %5957 = vmatmul.mubr.msk.bf16.gmra.mrb[132].mxu0 %vm987_vm2, %v11716_v22  ;;  %5892 = vmatprep.mubr.msk.bf16.mxu1 %vm6822_vm0, %v11621_v24  ;;  %v212_v22 = vrot.slane %v7685_v58, 7  ;;  %v901_v32 = vmul.f32 %v8029_v33, %v624_v21  ;;  %v215_v21 = vrot.slane %v7742_v17, 7 }
 0x115   :  { %5960 = vmatprep.mubr.msk.bf16.mxu0 %vm6822_vm0, %v11621_v24  ;;  %v8203_v45 = vpop.permute.xlu1 %838  ;;  %v555_v57 = vpack.c.bf16 %v529_v12, %v528_v25  ;;  %v11724_v12 = vpack.c.bf16 %v7997_v48, %v8001_v11  ;;  %v900_v25 = vmul.f32 %v8031_v4, %v625_v35  ;;  %v587_v48 = vrot.slane %v11681_v55, 1 }
 0x116   :  { %11717 = vst [vmem:[#allocation80_spill] sm:$0xff] %v8203_v45  ;;  %v8205_v50 = vpop.permute.xlu0 %833  ;;  %v8209_v0 = vpop.f32.mrb[28].mxu0  ;;  %v588_v11 = vrot.slane %v11687_v7, 1  ;;  %v225_v33 = vsel %vm221_vm1, %v214_v38, %v215_v21 }
 0x117   :  { %11718 = vst [vmem:[#allocation81_spill] sm:$0xff] %v8205_v50  ;;  %11719 = vst [vmem:[#allocation82_spill] sm:$0xff] %v8209_v0  ;;  %v5754_v60 = vpop.f32.mrb[29].mxu0  ;;  %v227_v0 = vsel %vm221_vm1, %v212_v22, %v213_v18  ;;  %v623_v7 = vsel %vm605_vm3, %v586_v56, %v587_v48 }
 0x118   :  { %v8213_v47 = vpop.f32.mrb[30].mxu0  ;;  %v228_v60 = vsel %vm221_vm1, %v211_v52, %v212_v22  ;;  %v622_v55 = vsel %vm605_vm3, %v587_v48, %v588_v11  ;;  %v902_v56 = vmul.f32 %v8060_v37, %v623_v7 }
 0x119   :  { %11720 = vst [vmem:[#allocation83_spill] sm:$0xff] %v8213_v47  ;;  %v8215_v19 = vpop.permute.xlu1 %464  ;;  %v5755_v47 = vpop.f32.mrb[31].mxu0 }
 0x11a   :  { %11721 = vst [vmem:[#allocation84_spill] sm:$0xff] %v8215_v19  ;;  %v8217_v34 = vpop.permute.xlu0 %459  ;;  %v531_v52 = vmul.f32 %v8215_v19, %v227_v0  ;;  %v933_v0 = vpack.c.bf16 %v901_v32, %v900_v25  ;;  %v903_v32 = vmul.f32 %v8058_v9, %v622_v55 }
 0x11b   :  { %11722 = vst [vmem:[#allocation85_spill] sm:$0xff] %v8217_v34  ;;  %5893 = vmatmul.mubr.msk.bf16.gmra.mrb[72].mxu1 %vm987_vm2, %v555_v57  ;;  %v530_v47 = vmul.f32 %v8217_v34, %v228_v60 }
 0x11c   :  { %5961 = vmatmul.mubr.msk.bf16.gmra.mrb[136].mxu0 %vm987_vm2, %v11724_v12  ;;  %5896 = vmatprep.mubr.msk.bf16.mxu1 %vm6822_vm0, %v11621_v24 }
 0x11d   :  { %5964 = vmatprep.mubr.msk.bf16.mxu0 %vm6822_vm0, %v11621_v24  ;;  %v8242_v49 = vpop.permute.xlu1 %848  ;;  %v556_v19 = vpack.c.bf16 %v531_v52, %v530_v47  ;;  %v590_v47 = vrot.slane %v11694_v54, 1 }
 0x11e   :  { %11725 = vst [vmem:[#allocation86_spill] sm:$0xff] %v8242_v49  ;;  %v8244_v22 = vpop.permute.xlu0 %843  ;;  %v8248_v57 = vpop.f32.mrb[32].mxu0 }
 0x11f   :  { %11726 = vst [vmem:[#allocation87_spill] sm:$0xff] %v8244_v22  ;;  %v5758_v12 = vpop.f32.mrb[33].mxu0 }
 0x120   :  { %v8252_v35 = vpop.f32.mrb[34].mxu0  ;;  %v226_v12 = vsel %vm221_vm1, %v213_v18, %v214_v38  ;;  %v216_v38 = vrot.slane %v7789_v39, 7 }
 0x121   :  { %v8254_v60 = vpop.permute.xlu1 %474  ;;  %v5759_v4 = vpop.f32.mrb[35].mxu0 }
 0x122   :  { %11727 = vst [vmem:[#allocation88_spill] sm:$0xff] %v8254_v60  ;;  %v8256_v34 = vpop.permute.xlu0 %469  ;;  %v533_v25 = vmul.f32 %v8254_v60, %v225_v33  ;;  %v934_v33 = vpack.c.bf16 %v903_v32, %v902_v56  ;;  %v224_v32 = vsel %vm221_vm1, %v215_v21, %v216_v38 }
 0x123   :  { %11728 = vst [vmem:[#allocation89_spill] sm:$0xff] %v8256_v34  ;;  %5897 = vmatmul.mubr.msk.bf16.gmra.mrb[76].mxu1 %vm987_vm2, %v556_v19  ;;  %v532_v52 = vmul.f32 %v8256_v34, %v226_v12  ;;  %v589_v19 = vrot.slane %v11688_v51, 1  ;;  %v6801_v34 = vld [vmem:[%s11303_s5] sm:$0xff]  }
 0x124   :  { %5965 = vmatmul.mubr.msk.bf16.gmra.mrb[140].mxu0 %vm987_vm2, %v933_v0  ;;  %5900 = vmatprep.mubr.msk.bf16.mxu1 %vm6822_vm0, %v11621_v24  ;;  %v217_v0 = vrot.slane %v7794_v40, 7 }
 0x125   :  { %5968 = vmatprep.mubr.msk.bf16.mxu0 %vm6822_vm0, %v11621_v24  ;;  %v8276_v18 = vpop.permute.xlu1 %858  ;;  %v557_v60 = vpack.c.bf16 %v533_v25, %v532_v52  ;;  %v620_v51 = vsel %vm605_vm3, %v589_v19, %v590_v47  ;;  %v621_v54 = vsel %vm605_vm3, %v588_v11, %v589_v19  ;;  %6105 = vmatpush3.bf16.msra.mxu0 %v6801_v34 }
 0x126   :  { %11729 = vst [vmem:[#allocation90_spill] sm:$0xff] %v8276_v18  ;;  %v8278_v4 = vpop.permute.xlu0 %853  ;;  %v8282_v48 = vpop.f32.mrb[36].mxu0  ;;  %v905_v11 = vmul.f32 %v8087_v2, %v620_v51  ;;  %v904_v25 = vmul.f32 %v8089_v1, %v621_v54  ;;  %6106 = vmatprep.subr.bf16.mxu0 %v11621_v24 }
 0x127   :  { %11730 = vst [vmem:[#allocation91_spill] sm:$0xff] %v8278_v4  ;;  %v5762_v55 = vpop.f32.mrb[37].mxu0 }
 0x128   :  { %v8286_v7 = vpop.f32.mrb[38].mxu0  ;;  %v223_v55 = vsel %vm221_vm1, %v216_v38, %v217_v0  ;;  %v592_v38 = vrot.slane %v7527_v6, 1  ;;  %v935_v51 = vpack.c.bf16 %v905_v11, %v904_v25  ;;  %v593_v25 = vrot.slane %v7532_v15, 1 }
 0x129   :  { %v8297_v9 = vpop.permute.xlu1 %484  ;;  %v5763_v56 = vpop.f32.mrb[39].mxu0 }
 0x12a   :  { %v8288_v12 = vpop.permute.xlu0 %479  ;;  %11732 = vst [vmem:[#allocation93_spill] sm:$0xff] %v8297_v9  ;;  %v535_v52 = vmul.f32 %v8297_v9, %v223_v55 }
 0x12b   :  { %11731 = vst [vmem:[#allocation92_spill] sm:$0xff] %v8288_v12  ;;  %5901 = vmatmul.mubr.msk.bf16.gmra.mrb[80].mxu1 %vm987_vm2, %v557_v60  ;;  %v534_v19 = vmul.f32 %v8288_v12, %v224_v32  ;;  %v591_v60 = vrot.slane %v11695_v61, 1  ;;  %v11735_v61 = vrot.slane %v7464_v16, 7 }
 0x12c   :  { %5969 = vmatmul.mubr.msk.bf16.gmra.mrb[144].mxu0 %vm987_vm2, %v934_v33  ;;  %5904 = vmatprep.mubr.msk.bf16.mxu1 %vm6822_vm0, %v11621_v24 }
 0x12d   :  { %5972 = vmatprep.mubr.msk.bf16.mxu0 %vm6822_vm0, %v11621_v24  ;;  %v558_v54 = vpack.c.bf16 %v535_v52, %v534_v19  ;;  %v618_v55 = vsel %vm605_vm3, %v591_v60, %v592_v38  ;;  %v619_v32 = vsel %vm605_vm3, %v590_v47, %v591_v60  ;;  %v222_v6 = vsel %vm221_vm1, %v217_v0, %v11735_v61 }
 0x12e   :  { %v8313_v21 = vpop.permute.xlu0 %863  ;;  %v8317_v33 = vpop.f32.mrb[40].mxu0  ;;  %v907_v47 = vmul.f32 %v8116_v63, %v618_v55  ;;  %v906_v11 = vmul.f32 %v8118_v3, %v619_v32  ;;  %v617_v55 = vsel %vm605_vm3, %v592_v38, %v593_v25  ;;  %v595_v32 = vrot.slane %v7585_v30, 1 }
 0x12f   :  { %11733 = vst [vmem:[#allocation94_spill] sm:$0xff] %v8313_v21  ;;  %v5766_v56 = vpop.f32.mrb[41].mxu0  ;;  %v596_v61 = vrot.slane %v7633_v43, 1 }
 0x130   :  { %v8320_v37 = vpop.f32.mrb[42].mxu0  ;;  %v936_v60 = vpack.c.bf16 %v907_v47, %v906_v11 }
 0x131   :  { %v5767_v9 = vpop.f32.mrb[43].mxu0 }
 0x132   :  { %v8326_v34 = vpop.permute.xlu0 %489  ;;  %v594_v9 = vrot.slane %v7580_v28, 1  ;;  %v908_v28 = vmul.f32 %v8147_v5, %v617_v55 }
 0x133   :  { %11734 = vst [vmem:[#allocation95_spill] sm:$0xff] %v8326_v34  ;;  %5905 = vmatmul.mubr.msk.bf16.gmra.mrb[84].mxu1 %vm987_vm2, %v558_v54  ;;  %v536_v16 = vmul.f32 %v8326_v34, %v222_v6 }
 0x134   :  { %5973 = vmatmul.mubr.msk.bf16.gmra.mrb[148].mxu0 %vm987_vm2, %v935_v51  ;;  %5908 = vmatprep.mubr.msk.bf16.mxu1 %vm6822_vm0, %v11621_v24  ;;  %v616_v54 = vsel %vm605_vm3, %v593_v25, %v594_v9  ;;  %v614_v25 = vsel %vm605_vm3, %v595_v32, %v596_v61 }
 0x135   :  { %5976 = vmatprep.mubr.msk.bf16.mxu0 %vm6822_vm0, %v11621_v24  ;;  %v559_v56 = vpack.c.bf16 %v536_v16, %v536_v16  ;;  %v909_v15 = vmul.f32 %v8145_v27, %v616_v54  ;;  %v911_v30 = vmul.f32 %v8174_v23, %v614_v25 }
 0x136   :  { %v8343_v0 = vpop.f32.mrb[44].mxu0 }
 0x137   :  { %v5770_v52 = vpop.f32.mrb[45].mxu0  ;;  %v937_v11 = vpack.c.bf16 %v909_v15, %v908_v28 }
 0x138   :  { %v8345_v19 = vpop.f32.mrb[46].mxu0  ;;  %v615_v52 = vsel %vm605_vm3, %v594_v9, %v595_v32 }
 0x139   :  { %v5771_v51 = vpop.f32.mrb[47].mxu0  ;;  %v910_v43 = vmul.f32 %v8176_v29, %v615_v52 }
 0x13b   :  { %5909 = vmatmul.mubr.msk.bf16.gmra.mrb[88].mxu1 %vm987_vm2, %v559_v56  ;;  %v598_v56 = vrot.slane %v7685_v58, 1  ;;  %v938_v15 = vpack.c.bf16 %v911_v30, %v910_v43 }
 0x13c   :  { %5977 = vmatmul.mubr.msk.bf16.gmra.mrb[152].mxu0 %vm987_vm2, %v936_v60  ;;  %6012 = vmatprep.mubr.msk.bf16.mxu1 %vm6822_vm0, %v11621_v24  ;;  %v597_v60 = vrot.slane %v7638_v44, 1 }
 0x13d   :  { %5980 = vmatprep.mubr.msk.bf16.mxu0 %vm6822_vm0, %v11621_v24 }
 0x13e   :  { %v8361_v6 = vpop.f32.mrb[48].mxu0  ;;  %v612_v28 = vsel %vm605_vm3, %v597_v60, %v598_v56  ;;  %v613_v32 = vsel %vm605_vm3, %v596_v61, %v597_v60 }
 0x13f   :  { %v5774_v38 = vpop.f32.mrb[49].mxu0  ;;  %v913_v44 = vmul.f32 %v8203_v45, %v612_v28  ;;  %v912_v58 = vmul.f32 %v8205_v50, %v613_v32 }
 0x140   :  { %v8363_v47 = vpop.f32.mrb[50].mxu0  ;;  %v599_v38 = vrot.slane %v7690_v59, 1 }
 0x141   :  { %v5775_v16 = vpop.f32.mrb[51].mxu0  ;;  %v939_v30 = vpack.c.bf16 %v913_v44, %v912_v58 }
 0x142   :  { %v611_v60 = vsel %vm605_vm3, %v598_v56, %v599_v38 }
 0x144   :  { %5981 = vmatmul.mubr.msk.bf16.gmra.mrb[156].mxu0 %vm987_vm2, %v937_v11  ;;  %v600_v11 = vrot.slane %v7737_v14, 1  ;;  %v914_v14 = vmul.f32 %v8244_v22, %v611_v60 }
 0x145   :  { %5984 = vmatprep.mubr.msk.bf16.mxu0 %vm6822_vm0, %v11621_v24 }
 0x146   :  { %v8376_v51 = vpop.f32.mrb[52].mxu0  ;;  %v610_v43 = vsel %vm605_vm3, %v599_v38, %v600_v11 }
 0x147   :  { %v5778_v54 = vpop.f32.mrb[53].mxu0  ;;  %v915_v59 = vmul.f32 %v8242_v49, %v610_v43  ;;  %v11742_v49 = vld [vmem:[#allocation72_spill] sm:$0xff] }
 0x148   :  { %v8378_v55 = vpop.f32.mrb[54].mxu0  ;;  %v601_v54 = vrot.slane %v7742_v17, 1 }
 0x149   :  { %v5779_v9 = vpop.f32.mrb[55].mxu0  ;;  %v940_v44 = vpack.c.bf16 %v915_v59, %v914_v14 }
 0x14a   :  { %v609_v38 = vsel %vm605_vm3, %v600_v11, %v601_v54 }
 0x14c   :  { %5985 = vmatmul.mubr.msk.bf16.gmra.mrb[160].mxu0 %vm987_vm2, %v938_v15  ;;  %v602_v15 = vrot.slane %v7789_v39, 1  ;;  %v916_v39 = vmul.f32 %v8278_v4, %v609_v38  ;;  %v8433_v38 = vpop.permute.xlu1 %868 }
 0x14d   :  { %5988 = vmatprep.mubr.msk.bf16.mxu0 %vm6822_vm0, %v11621_v24  ;;  %11736 = vst [vmem:[#allocation96_spill] sm:$0xff] %v8433_v38 }
 0x14e   :  { %v8391_v16 = vpop.f32.mrb[56].mxu0  ;;  %v608_v58 = vsel %vm605_vm3, %v601_v54, %v602_v15 }
 0x14f   :  { %v5782_v25 = vpop.f32.mrb[57].mxu0  ;;  %v917_v17 = vmul.f32 %v8276_v18, %v608_v58 }
 0x150   :  { %v8393_v52 = vpop.f32.mrb[58].mxu0  ;;  %v603_v25 = vrot.slane %v7794_v40, 1 }
 0x151   :  { %v5783_v61 = vpop.f32.mrb[59].mxu0 }
 0x154   :  { %5989 = vmatmul.mubr.msk.bf16.gmra.mrb[164].mxu0 %vm987_vm2, %v939_v30  ;;  %v6817_v30 = vld [vmem:[%s11302_s0 + $0x160] sm:$0xff] }
 0x155   :  { %5992 = vmatprep.mubr.msk.bf16.mxu0 %vm6822_vm0, %v11621_v24  ;;  %v604_v61 = vrot.slane %v6817_v30, 1 }
 0x156   :  { %v8406_v9 = vpop.f32.mrb[60].mxu0 }
 0x157   :  { %v5786_v28 = vpop.f32.mrb[61].mxu0  ;;  %v606_v30 = vsel %vm605_vm3, %v603_v25, %v604_v61 }
 0x158   :  { %v8408_v32 = vpop.f32.mrb[62].mxu0 }
 0x159   :  { %v5787_v56 = vpop.f32.mrb[63].mxu0 }
 0x15c   :  { %5993 = vmatmul.mubr.msk.bf16.gmra.mrb[168].mxu0 %vm987_vm2, %v940_v44  ;;  %v941_v44 = vpack.c.bf16 %v917_v17, %v916_v39  ;;  %v919_v17 = vmul.f32 %v8433_v38, %v606_v30  ;;  %v8454_v30 = vpop.permute.xlu1 %873 }
 0x15d   :  { %5996 = vmatprep.mubr.msk.bf16.mxu0 %vm6822_vm0, %v11621_v24  ;;  %11737 = vst [vmem:[#allocation97_spill] sm:$0xff] %v8454_v30 }
 0x15e   :  { %v1388_v43 = vpop.f32.mrb[0].mxu1 }
 0x15f   :  { %v8423_v60 = vpop.f32.mrb[64].mxu0  ;;  %v8426_v11 = vadd.f32 %v1388_v43, %v8003_v42  ;;  %v5822_v59 = vpop.f32.mrb[1].mxu1  ;;  %v607_v42 = vsel %vm605_vm3, %v602_v15, %v603_v25 }
 0x160   :  { %v5790_v14 = vpop.f32.mrb[65].mxu0  ;;  %v1391_v54 = vpop.f32.mrb[2].mxu1 }
 0x161   :  { %v8428_v28 = vpop.f32.mrb[66].mxu0  ;;  %v8431_v56 = vadd.f32 %v1391_v54, %v8011_v41  ;;  %v5823_v58 = vpop.f32.mrb[3].mxu1  ;;  %v918_v41 = vmul.f32 %v8313_v21, %v607_v42  ;;  %v11738_v42 = vld [vmem:[#allocation2_spill] sm:$0xff] }
 0x162   :  { %v5791_v40 = vpop.f32.mrb[67].mxu0  ;;  %v11739_v38 = vrot.slane %v11738_v42, 1 }
 0x163   :  { %v942_v15 = vpack.c.bf16 %v919_v17, %v918_v41 }
 0x164   :  { %5997 = vmatmul.mubr.msk.bf16.gmra.mrb[172].mxu0 %vm987_vm2, %v941_v44  ;;  %v650_v21 = vsel %vm605_vm3, %v604_v61, %v11739_v38 }
 0x165   :  { %6000 = vmatprep.mubr.msk.bf16.mxu0 %vm6822_vm0, %v11621_v24 }
 0x166   :  { %v1396_v39 = vpop.f32.mrb[4].mxu1 }
 0x167   :  { %v8444_v43 = vpop.f32.mrb[68].mxu0  ;;  %v8447_v59 = vadd.f32 %v1396_v39, %v8033_v31  ;;  %v5826_v14 = vpop.f32.mrb[5].mxu1  ;;  %v920_v31 = vmul.f32 %v8454_v30, %v650_v21 }
 0x168   :  { %v5794_v54 = vpop.f32.mrb[69].mxu0  ;;  %v1399_v40 = vpop.f32.mrb[6].mxu1 }
 0x169   :  { %v8449_v58 = vpop.f32.mrb[70].mxu0  ;;  %v8452_v25 = vadd.f32 %v1399_v40, %v8037_v36  ;;  %v5827_v34 = vpop.f32.mrb[7].mxu1  ;;  %v943_v40 = vpack.c.bf16 %v920_v31, %v920_v31 }
 0x16a   :  { %v5795_v44 = vpop.f32.mrb[71].mxu0 }
 0x16c   :  { %6001 = vmatmul.mubr.msk.bf16.gmra.mrb[176].mxu0 %vm987_vm2, %v942_v15 }
 0x16d   :  { %6004 = vmatprep.mubr.msk.bf16.mxu0 %vm6822_vm0, %v11621_v24 }
 0x16e   :  { %v1404_v17 = vpop.f32.mrb[8].mxu1 }
 0x16f   :  { %v8464_v41 = vpop.f32.mrb[72].mxu0  ;;  %v8467_v36 = vadd.f32 %v1404_v17, %v8062_v62  ;;  %v5830_v34 = vpop.f32.mrb[9].mxu1 }
 0x170   :  { %v5798_v39 = vpop.f32.mrb[73].mxu0  ;;  %v1407_v14 = vpop.f32.mrb[10].mxu1 }
 0x171   :  { %v8469_v54 = vpop.f32.mrb[74].mxu0  ;;  %v8472_v61 = vadd.f32 %v1407_v14, %v8066_v53  ;;  %v5831_v15 = vpop.f32.mrb[11].mxu1 }
 0x172   :  { %v5799_v38 = vpop.f32.mrb[75].mxu0 }
 0x174   :  { %6005 = vmatmul.mubr.msk.bf16.gmra.mrb[180].mxu0 %vm987_vm2, %v943_v40 }
 0x175   :  { %6108 = vmatprep.mubr.msk.bf16.mxu0 %vm6822_vm0, %v11621_v24 }
 0x176   :  { %v1412_v21 = vpop.f32.mrb[12].mxu1 }
 0x177   :  { %v8477_v44 = vpop.f32.mrb[76].mxu0  ;;  %v8480_v62 = vadd.f32 %v1412_v21, %v8091_v46  ;;  %v5834_v42 = vpop.f32.mrb[13].mxu1  ;;  %v6803_v46 = vld [vmem:[%s11303_s5 + $0x8] sm:$0xff]  }
 0x178   :  { %v5802_v17 = vpop.f32.mrb[77].mxu0  ;;  %v1415_v34 = vpop.f32.mrb[14].mxu1  ;;  %6107 = vmatpush3.bf16.msra.mxu0 %v6803_v46 }
 0x179   :  { %v8482_v31 = vpop.f32.mrb[78].mxu0  ;;  %v8485_v53 = vadd.f32 %v1415_v34, %v8095_v26  ;;  %v5835_v14 = vpop.f32.mrb[15].mxu1  ;;  %6296 = vmatprep.subr.bf16.mxu0 %v11621_v24 }
 0x17a   :  { %v5803_v39 = vpop.f32.mrb[79].mxu0 }
 0x17e   :  { %v1420_v40 = vpop.f32.mrb[16].mxu1 }
 0x17f   :  { %v8487_v38 = vpop.f32.mrb[80].mxu0  ;;  %v8490_v15 = vadd.f32 %v1420_v40, %v8120_v10  ;;  %v5838_v30 = vpop.f32.mrb[17].mxu1 }
 0x180   :  { %v5806_v12 = vpop.f32.mrb[81].mxu0  ;;  %v1423_v21 = vpop.f32.mrb[18].mxu1  ;;  %v11740_v30 = vld [vmem:[#allocation71_spill] sm:$0xff] }
 0x181   :  { %v8495_v42 = vpop.f32.mrb[82].mxu0  ;;  %v8498_v26 = vadd.f32 %v1423_v21, %v8124_v13  ;;  %v5839_v34 = vpop.f32.mrb[19].mxu1 }
 0x182   :  { %v5807_v17 = vpop.f32.mrb[83].mxu0 }
 0x186   :  { %v1428_v39 = vpop.f32.mrb[20].mxu1 }
 0x187   :  { %v8501_v10 = vpop.f32.mrb[84].mxu0  ;;  %v8504_v12 = vadd.f32 %v1428_v39, %v11740_v30  ;;  %v5842_v14 = vpop.f32.mrb[21].mxu1 }
 0x188   :  { %v5810_v40 = vpop.f32.mrb[85].mxu0  ;;  %v1431_v18 = vpop.f32.mrb[22].mxu1  ;;  %v11744_v14 = vld [vmem:[#allocation77_spill] sm:$0xff] }
 0x189   :  { %v8506_v4 = vpop.f32.mrb[86].mxu0  ;;  %v8509_v22 = vadd.f32 %v1431_v18, %v11742_v49  ;;  %v5843_v21 = vpop.f32.mrb[23].mxu1  ;;  %v8522_v18 = vld [vmem:[%s11304_s4] ss:$0 sm:$0xff] }
 0x18a   :  { %11741 = vst [vmem:[#allocation2_spill] sm:$0xff] %v8506_v4  ;;  %v5811_v13 = vpop.f32.mrb[87].mxu0 }
 0x18b   :  { %v11745_v13 = vld [vmem:[#allocation82_spill] sm:$0xff] }
 0x18e   :  { %v1436_v17 = vpop.f32.mrb[24].mxu1 }
 0x18f   :  { %v8511_v46 = vpop.f32.mrb[88].mxu0  ;;  %v8514_v34 = vadd.f32 %v1436_v17, %v8178_v20  ;;  %v5846_v45 = vpop.f32.mrb[25].mxu1 }
 0x190   :  { %11743 = vst [vmem:[#allocation71_spill] sm:$0xff] %v8511_v46  ;;  %v5814_v50 = vpop.f32.mrb[89].mxu0  ;;  %v1439_v39 = vpop.f32.mrb[26].mxu1 }
 0x191   :  { %v1270_v30 = vpop.f32.mrb[90].mxu0  ;;  %v8517_v40 = vadd.f32 %v1439_v39, %v11744_v14  ;;  %v5847_v29 = vpop.f32.mrb[27].mxu1 }
 0x192   :  { %v5815_v23 = vpop.f32.mrb[91].mxu0 }
 0x193   :  { %v11746_v23 = vld [vmem:[#allocation83_spill] sm:$0xff] }
 0x196   :  { %v1444_v27 = vpop.f32.mrb[28].mxu1 }
 0x197   :  { %v1689_v49 = vpop.f32.mrb[92].mxu0  ;;  %v8525_v21 = vadd.f32 %v1444_v27, %v11745_v13  ;;  %v5850_v20 = vpop.f32.mrb[29].mxu1 }
 0x198   :  { %v1871_v45 = vadd.f32 %v1689_v49, %v8426_v11  ;;  %v5918_v50 = vpop.f32.mrb[93].mxu0  ;;  %v1447_v17 = vpop.f32.mrb[30].mxu1  ;;  %v6802_v11 = vld [vmem:[%s11303_s5 + $0x20] sm:$0xff]  }
 0x199   :  { %v1692_v30 = vpop.f32.mrb[94].mxu0  ;;  %v8530_v29 = vadd.f32 %v1447_v17, %v11746_v23  ;;  %v5851_v14 = vpop.f32.mrb[31].mxu1 }
 0x19a   :  { %v1923_v39 = vadd.f32 %v8522_v18, %v1871_v45  ;;  %v1872_v5 = vadd.f32 %v1692_v30, %v8431_v56  ;;  %v5919_v63 = vpop.f32.mrb[95].mxu0 }
 0x19c   :  { %v8533_v3 = vmax.f32 %v1923_v39, 0.0  ;;  %v1924_v27 = vadd.f32 %v8522_v18, %v1872_v5 }
 0x19e   :  { %11747 = vst [vmem:[#allocation72_spill] sm:$0xff] %v8533_v3  ;;  %v1969_v13 = vmax.f32 %v1924_v27, 0.0  ;;  %v1452_v20 = vpop.f32.mrb[32].mxu1  ;;  %v11513_v49 = vrot.slane %v8533_v3, 7 }
 0x19f   :  { %v1697_v2 = vpop.f32.mrb[96].mxu0  ;;  %v8542_v17 = vadd.f32 %v1452_v20, %v8248_v57  ;;  %v5854_v63 = vpop.f32.mrb[33].mxu1 }
 0x1a0   :  { %v2014_v45 = vrot.slane %v1969_v13, 7  ;;  %v2333_v50 = vpack.c.bf16 %v1969_v13, %v8533_v3  ;;  %v5922_v56 = vpop.f32.mrb[97].mxu0  ;;  %v1873_v30 = vadd.f32 %v1697_v2, %v8447_v59  ;;  %v1455_v5 = vpop.f32.mrb[34].mxu1  ;;  %v2172_v14 = vrot.slane %v1969_v13, 1  ;;  %v6804_v59 = vld [vmem:[%s11303_s5 + $0x28] sm:$0xff]  }
 0x1a1   :  { %v1700_v39 = vpop.f32.mrb[98].mxu0  ;;  %v8552_v27 = vadd.f32 %v1455_v5, %v8252_v35  ;;  %v5855_v1 = vpop.f32.mrb[35].mxu1  ;;  %v11516_v13 = vrot.slane %v8533_v3, 1 }
 0x1a2   :  { %v8549_v23 = vsel %vm221_vm1, %v11513_v49, %v2014_v45  ;;  %v1874_v57 = vadd.f32 %v1700_v39, %v8452_v25  ;;  %v5923_v20 = vpop.f32.mrb[99].mxu0  ;;  %6013 = vmatmul.mubr.msk.bf16.vlgmr.msra.gmra.mrb[92].mxu1 %vm987_vm2, %v2333_v50  ;;  %v1925_v2 = vadd.f32 %v8522_v18, %v1873_v30 }
 0x1a3   :  { %11748 = vst [vmem:[#allocation77_spill] sm:$0xff] %v8549_v23  ;;  %6201 = vmatpush3.bf16.msra.mxu1 %v6802_v11  ;;  %6016 = vmatprep.mubr.msk.bf16.mxu1 %vm6822_vm0, %v11621_v24  ;;  %v2259_v25 = vsel %vm605_vm3, %v11516_v13, %v2172_v14  ;;  %v11749_v23 = vld [vmem:[#allocation11_spill] sm:$0xff] }
 0x1a4   :  { %v1926_v35 = vadd.f32 %v8522_v18, %v1874_v57  ;;  %6202 = vmatprep.subr.bf16.mxu1 %v11621_v24  ;;  %v1970_v1 = vmax.f32 %v1925_v2, 0.0  ;;  %v8575_v3 = vmul.f32 %v2259_v25, %v11749_v23 }
 0x1a6   :  { %v1971_v11 = vmax.f32 %v1926_v35, 0.0  ;;  %v2015_v50 = vrot.slane %v1970_v1, 7  ;;  %v2173_v63 = vrot.slane %v1970_v1, 1  ;;  %v1460_v56 = vpop.f32.mrb[36].mxu1  ;;  %11750 = vst [vmem:[#allocation82_spill] sm:$0xff] %v8575_v3  ;;  %v11756_v3 = vld [vmem:[#allocation18_spill] sm:$0xff] }
 0x1a7   :  { %v1705_v30 = vpop.f32.mrb[100].mxu0  ;;  %6203 = vmatpush3.bf16.msra.mxu1 %v6804_v59  ;;  %v8570_v20 = vadd.f32 %v1460_v56, %v8282_v48  ;;  %v5858_v57 = vpop.f32.mrb[37].mxu1  ;;  %v11751_v48 = vld [vmem:[#allocation13_spill] sm:$0xff] }
 0x1a8   :  { %v2016_v5 = vrot.slane %v1971_v11, 7  ;;  %v2174_v39 = vrot.slane %v1971_v11, 1  ;;  %v1875_v49 = vadd.f32 %v1705_v30, %v8467_v36  ;;  %v5926_v2 = vpop.f32.mrb[101].mxu0  ;;  %6396 = vmatprep.subr.bf16.mxu1 %v11621_v24  ;;  %v2258_v35 = vsel %vm605_vm3, %v2172_v14, %v2173_v63  ;;  %v1463_v13 = vpop.f32.mrb[38].mxu1 }
 0x1a9   :  { %v1708_v46 = vpop.f32.mrb[102].mxu0  ;;  %v2334_v59 = vpack.c.bf16 %v1971_v11, %v1970_v1  ;;  %v2100_v4 = vsel %vm221_vm1, %v2014_v45, %v2015_v50  ;;  %v8582_v56 = vmul.f32 %v2258_v35, %v11751_v48  ;;  %v8586_v30 = vadd.f32 %v1463_v13, %v8286_v7  ;;  %v5859_v57 = vpop.f32.mrb[39].mxu1  ;;  %v11753_v1 = vld [vmem:[#allocation16_spill] sm:$0xff] }
 0x1aa   :  { %v1927_v36 = vadd.f32 %v8522_v18, %v1875_v49  ;;  %v1876_v25 = vadd.f32 %v1708_v46, %v8472_v61  ;;  %v5927_v2 = vpop.f32.mrb[103].mxu0  ;;  %v2099_v14 = vsel %vm221_vm1, %v2015_v50, %v2016_v5  ;;  %v8593_v11 = vmul.f32 %v2100_v4, %v11753_v1  ;;  %v11755_v61 = vld [vmem:[#allocation15_spill] sm:$0xff] }
 0x1ab   :  { %11752 = vst [vmem:[#allocation83_spill] sm:$0xff] %v8582_v56  ;;  %6017 = vmatmul.mubr.msk.bf16.gmra.mrb[96].mxu1 %vm987_vm2, %v2334_v59  ;;  %v2257_v45 = vsel %vm605_vm3, %v2173_v63, %v2174_v39  ;;  %v8603_v46 = vmul.f32 %v2099_v14, %v11755_v61 }
 0x1ac   :  { %11754 = vst [vmem:[#allocation98_spill] sm:$0xff] %v8593_v11  ;;  %v1972_v35 = vmax.f32 %v1927_v36, 0.0  ;;  %v1928_v49 = vadd.f32 %v8522_v18, %v1876_v25  ;;  %6020 = vmatprep.mubr.msk.bf16.mxu1 %vm6822_vm0, %v11621_v24  ;;  %v8614_v56 = vmul.f32 %v2257_v45, %v11756_v3  ;;  %v11759_v45 = vld [vmem:[#allocation20_spill] sm:$0xff]  ;;  %v11762_v3 = vld [vmem:[#allocation22_spill] sm:$0xff] }
 0x1ae   :  { %v2017_v13 = vrot.slane %v1972_v35, 7  ;;  %v2175_v50 = vrot.slane %v1972_v35, 1  ;;  %v1973_v59 = vmax.f32 %v1928_v49, 0.0  ;;  %v1468_v57 = vpop.f32.mrb[40].mxu1  ;;  %11757 = vst [vmem:[#allocation99_spill] sm:$0xff] %v8614_v56 }
 0x1af   :  { %v1713_v63 = vpop.f32.mrb[104].mxu0  ;;  %v8608_v25 = vadd.f32 %v1468_v57, %v8317_v33  ;;  %v5862_v1 = vpop.f32.mrb[41].mxu1  ;;  %v11758_v57 = vld [vmem:[#allocation17_spill] sm:$0xff] }
 0x1b0   :  { %v2018_v36 = vrot.slane %v1973_v59, 7  ;;  %v2176_v2 = vrot.slane %v1973_v59, 1  ;;  %v1877_v48 = vadd.f32 %v1713_v63, %v8480_v62  ;;  %v5930_v7 = vpop.f32.mrb[105].mxu0  ;;  %v1471_v23 = vpop.f32.mrb[42].mxu1  ;;  %v2335_v61 = vpack.c.bf16 %v1973_v59, %v1972_v35 }
 0x1b1   :  { %v1716_v14 = vpop.f32.mrb[106].mxu0  ;;  %v2256_v49 = vsel %vm605_vm3, %v2174_v39, %v2175_v50  ;;  %v2098_v4 = vsel %vm221_vm1, %v2016_v5, %v2017_v13  ;;  %v8620_v33 = vadd.f32 %v1471_v23, %v8320_v37  ;;  %v5863_v1 = vpop.f32.mrb[43].mxu1 }
 0x1b2   :  { %v1929_v11 = vadd.f32 %v8522_v18, %v1877_v48  ;;  %v1878_v62 = vadd.f32 %v1716_v14, %v8485_v53  ;;  %v5931_v7 = vpop.f32.mrb[107].mxu0  ;;  %v8624_v35 = vmul.f32 %v2256_v49, %v11758_v57  ;;  %v2097_v39 = vsel %vm221_vm1, %v2017_v13, %v2018_v36  ;;  %v11761_v48 = vld [vmem:[#allocation19_spill] sm:$0xff] }
 0x1b3   :  { %6021 = vmatmul.mubr.msk.bf16.gmra.mrb[100].mxu1 %vm987_vm2, %v2335_v61  ;;  %v8630_v59 = vmul.f32 %v2098_v4, %v11759_v45  ;;  %v2255_v5 = vsel %vm605_vm3, %v2175_v50, %v2176_v2  ;;  %v8640_v61 = vmul.f32 %v2097_v39, %v11761_v48 }
 0x1b4   :  { %v1974_v37 = vmax.f32 %v1929_v11, 0.0  ;;  %v1930_v23 = vadd.f32 %v8522_v18, %v1878_v62  ;;  %6024 = vmatprep.mubr.msk.bf16.mxu1 %vm6822_vm0, %v11621_v24  ;;  %v8651_v56 = vmul.f32 %v2255_v5, %v11762_v3  ;;  %v11765_v5 = vld [vmem:[#allocation24_spill] sm:$0xff]  ;;  %v11768_v3 = vld [vmem:[#allocation26_spill] sm:$0xff] }
 0x1b5   :  { %11760 = vst [vmem:[#allocation100_spill] sm:$0xff] %v8630_v59 }
 0x1b6   :  { %v2019_v63 = vrot.slane %v1974_v37, 7  ;;  %v2177_v13 = vrot.slane %v1974_v37, 1  ;;  %v1975_v14 = vmax.f32 %v1930_v23, 0.0  ;;  %v1476_v49 = vpop.f32.mrb[44].mxu1  ;;  %11763 = vst [vmem:[#allocation101_spill] sm:$0xff] %v8651_v56 }
 0x1b7   :  { %v1721_v50 = vpop.f32.mrb[108].mxu0  ;;  %v8645_v62 = vadd.f32 %v1476_v49, %v8343_v0  ;;  %v5866_v7 = vpop.f32.mrb[45].mxu1 }
 0x1b8   :  { %v2020_v11 = vrot.slane %v1975_v14, 7  ;;  %v2178_v1 = vrot.slane %v1975_v14, 1  ;;  %v1879_v45 = vadd.f32 %v1721_v50, %v8490_v15  ;;  %v5934_v53 = vpop.f32.mrb[109].mxu0  ;;  %v1479_v57 = vpop.f32.mrb[46].mxu1  ;;  %v2336_v48 = vpack.c.bf16 %v1975_v14, %v1974_v37  ;;  %v11764_v50 = vld [vmem:[#allocation21_spill] sm:$0xff] }
 0x1b9   :  { %v1724_v39 = vpop.f32.mrb[110].mxu0  ;;  %v2254_v23 = vsel %vm605_vm3, %v2176_v2, %v2177_v13  ;;  %v2096_v4 = vsel %vm221_vm1, %v2018_v36, %v2019_v63  ;;  %v8657_v0 = vadd.f32 %v1479_v57, %v8345_v19  ;;  %v5867_v49 = vpop.f32.mrb[47].mxu1 }
 0x1ba   :  { %v1931_v59 = vadd.f32 %v8522_v18, %v1879_v45  ;;  %v1880_v15 = vadd.f32 %v1724_v39, %v8498_v26  ;;  %v5935_v53 = vpop.f32.mrb[111].mxu0  ;;  %v8661_v37 = vmul.f32 %v2254_v23, %v11764_v50  ;;  %v2095_v2 = vsel %vm221_vm1, %v2019_v63, %v2020_v11  ;;  %v11767_v45 = vld [vmem:[#allocation23_spill] sm:$0xff] }
 0x1bb   :  { %6025 = vmatmul.mubr.msk.bf16.gmra.mrb[104].mxu1 %vm987_vm2, %v2336_v48  ;;  %v8667_v14 = vmul.f32 %v2096_v4, %v11765_v5  ;;  %v2253_v36 = vsel %vm605_vm3, %v2177_v13, %v2178_v1  ;;  %v8677_v48 = vmul.f32 %v2095_v2, %v11767_v45 }
 0x1bc   :  { %v1976_v19 = vmax.f32 %v1931_v59, 0.0  ;;  %v1932_v57 = vadd.f32 %v8522_v18, %v1880_v15  ;;  %6028 = vmatprep.mubr.msk.bf16.mxu1 %vm6822_vm0, %v11621_v24  ;;  %v8688_v56 = vmul.f32 %v2253_v36, %v11768_v3  ;;  %v11771_v36 = vld [vmem:[#allocation28_spill] sm:$0xff]  ;;  %v11774_v3 = vld [vmem:[#allocation30_spill] sm:$0xff] }
 0x1bd   :  { %11766 = vst [vmem:[#allocation102_spill] sm:$0xff] %v8667_v14 }
 0x1be   :  { %v2021_v7 = vrot.slane %v1976_v19, 7  ;;  %v2179_v63 = vrot.slane %v1976_v19, 1  ;;  %v1977_v39 = vmax.f32 %v1932_v57, 0.0  ;;  %v1484_v23 = vpop.f32.mrb[48].mxu1  ;;  %11769 = vst [vmem:[#allocation103_spill] sm:$0xff] %v8688_v56 }
 0x1bf   :  { %v1729_v13 = vpop.f32.mrb[112].mxu0  ;;  %v8682_v15 = vadd.f32 %v1484_v23, %v8361_v6  ;;  %v5870_v53 = vpop.f32.mrb[49].mxu1 }
 0x1c0   :  { %v2022_v59 = vrot.slane %v1977_v39, 7  ;;  %v2180_v49 = vrot.slane %v1977_v39, 1  ;;  %v1881_v5 = vadd.f32 %v1729_v13, %v8504_v12  ;;  %v5938_v26 = vpop.f32.mrb[113].mxu0  ;;  %v1487_v50 = vpop.f32.mrb[50].mxu1  ;;  %v2337_v45 = vpack.c.bf16 %v1977_v39, %v1976_v19  ;;  %v11770_v13 = vld [vmem:[#allocation25_spill] sm:$0xff] }
 0x1c1   :  { %v1732_v2 = vpop.f32.mrb[114].mxu0  ;;  %v2252_v57 = vsel %vm605_vm3, %v2178_v1, %v2179_v63  ;;  %v2094_v4 = vsel %vm221_vm1, %v2020_v11, %v2021_v7  ;;  %v8694_v6 = vadd.f32 %v1487_v50, %v8363_v47  ;;  %v5871_v23 = vpop.f32.mrb[51].mxu1 }
 0x1c2   :  { %v1933_v14 = vadd.f32 %v8522_v18, %v1881_v5  ;;  %v1882_v12 = vadd.f32 %v1732_v2, %v8509_v22  ;;  %v5939_v26 = vpop.f32.mrb[115].mxu0  ;;  %v8698_v19 = vmul.f32 %v2252_v57, %v11770_v13  ;;  %v2093_v1 = vsel %vm221_vm1, %v2021_v7, %v2022_v59  ;;  %v11773_v5 = vld [vmem:[#allocation27_spill] sm:$0xff] }
 0x1c3   :  { %6029 = vmatmul.mubr.msk.bf16.gmra.mrb[108].mxu1 %vm987_vm2, %v2337_v45  ;;  %v8704_v39 = vmul.f32 %v2094_v4, %v11771_v36  ;;  %v2251_v11 = vsel %vm605_vm3, %v2179_v63, %v2180_v49  ;;  %v8714_v45 = vmul.f32 %v2093_v1, %v11773_v5 }
 0x1c4   :  { %v1978_v47 = vmax.f32 %v1933_v14, 0.0  ;;  %v1934_v50 = vadd.f32 %v8522_v18, %v1882_v12  ;;  %6032 = vmatprep.mubr.msk.bf16.mxu1 %vm6822_vm0, %v11621_v24  ;;  %v8725_v56 = vmul.f32 %v2251_v11, %v11774_v3  ;;  %v11777_v11 = vld [vmem:[#allocation32_spill] sm:$0xff]  ;;  %v11780_v3 = vld [vmem:[#allocation34_spill] sm:$0xff] }
 0x1c5   :  { %11772 = vst [vmem:[#allocation104_spill] sm:$0xff] %v8704_v39 }
 0x1c6   :  { %v2023_v53 = vrot.slane %v1978_v47, 7  ;;  %v2181_v7 = vrot.slane %v1978_v47, 1  ;;  %v1979_v2 = vmax.f32 %v1934_v50, 0.0  ;;  %v1492_v57 = vpop.f32.mrb[52].mxu1  ;;  %11775 = vst [vmem:[#allocation105_spill] sm:$0xff] %v8725_v56 }
 0x1c7   :  { %v1737_v63 = vpop.f32.mrb[116].mxu0  ;;  %v8719_v12 = vadd.f32 %v1492_v57, %v8376_v51  ;;  %v5874_v26 = vpop.f32.mrb[53].mxu1 }
 0x1c8   :  { %v2024_v14 = vrot.slane %v1979_v2, 7  ;;  %v2182_v23 = vrot.slane %v1979_v2, 1  ;;  %v1883_v36 = vadd.f32 %v1737_v63, %v8514_v34  ;;  %v5942_v22 = vpop.f32.mrb[117].mxu0  ;;  %v1495_v13 = vpop.f32.mrb[54].mxu1  ;;  %v2338_v5 = vpack.c.bf16 %v1979_v2, %v1978_v47  ;;  %v11776_v63 = vld [vmem:[#allocation29_spill] sm:$0xff] }
 0x1c9   :  { %v1740_v1 = vpop.f32.mrb[118].mxu0  ;;  %v2250_v50 = vsel %vm605_vm3, %v2180_v49, %v2181_v7  ;;  %v2092_v4 = vsel %vm221_vm1, %v2022_v59, %v2023_v53  ;;  %v8731_v51 = vadd.f32 %v1495_v13, %v8378_v55  ;;  %v5875_v57 = vpop.f32.mrb[55].mxu1 }
 0x1ca   :  { %v1935_v39 = vadd.f32 %v8522_v18, %v1883_v36  ;;  %v1884_v34 = vadd.f32 %v1740_v1, %v8517_v40  ;;  %v5943_v22 = vpop.f32.mrb[119].mxu0  ;;  %v8735_v47 = vmul.f32 %v2250_v50, %v11776_v63  ;;  %v2091_v49 = vsel %vm221_vm1, %v2023_v53, %v2024_v14  ;;  %v11779_v36 = vld [vmem:[#allocation31_spill] sm:$0xff] }
 0x1cb   :  { %6033 = vmatmul.mubr.msk.bf16.gmra.mrb[112].mxu1 %vm987_vm2, %v2338_v5  ;;  %v8741_v2 = vmul.f32 %v2092_v4, %v11777_v11  ;;  %v2249_v59 = vsel %vm605_vm3, %v2181_v7, %v2182_v23  ;;  %v8751_v5 = vmul.f32 %v2091_v49, %v11779_v36 }
 0x1cc   :  { %v1980_v55 = vmax.f32 %v1935_v39, 0.0  ;;  %v1936_v13 = vadd.f32 %v8522_v18, %v1884_v34  ;;  %6036 = vmatprep.mubr.msk.bf16.mxu1 %vm6822_vm0, %v11621_v24  ;;  %v8762_v56 = vmul.f32 %v2249_v59, %v11780_v3  ;;  %v11783_v59 = vld [vmem:[#allocation36_spill] sm:$0xff]  ;;  %v11786_v3 = vld [vmem:[#allocation38_spill] sm:$0xff] }
 0x1cd   :  { %11778 = vst [vmem:[#allocation106_spill] sm:$0xff] %v8741_v2 }
 0x1ce   :  { %v2025_v26 = vrot.slane %v1980_v55, 7  ;;  %v2183_v53 = vrot.slane %v1980_v55, 1  ;;  %v1981_v1 = vmax.f32 %v1936_v13, 0.0  ;;  %v1500_v50 = vpop.f32.mrb[56].mxu1  ;;  %11781 = vst [vmem:[#allocation107_spill] sm:$0xff] %v8762_v56 }
 0x1cf   :  { %v1745_v7 = vpop.f32.mrb[120].mxu0  ;;  %v8756_v34 = vadd.f32 %v1500_v50, %v8391_v16  ;;  %v5878_v22 = vpop.f32.mrb[57].mxu1 }
 0x1d0   :  { %v2026_v39 = vrot.slane %v1981_v1, 7  ;;  %v2184_v57 = vrot.slane %v1981_v1, 1  ;;  %v1885_v11 = vadd.f32 %v1745_v7, %v8525_v21  ;;  %v5946_v40 = vpop.f32.mrb[121].mxu0  ;;  %v1503_v63 = vpop.f32.mrb[58].mxu1  ;;  %v2339_v36 = vpack.c.bf16 %v1981_v1, %v1980_v55  ;;  %v11782_v7 = vld [vmem:[#allocation33_spill] sm:$0xff] }
 0x1d1   :  { %v1748_v49 = vpop.f32.mrb[122].mxu0  ;;  %v2248_v13 = vsel %vm605_vm3, %v2182_v23, %v2183_v53  ;;  %v2090_v4 = vsel %vm221_vm1, %v2024_v14, %v2025_v26  ;;  %v8768_v16 = vadd.f32 %v1503_v63, %v8393_v52  ;;  %v5879_v50 = vpop.f32.mrb[59].mxu1 }
 0x1d2   :  { %v1937_v2 = vadd.f32 %v8522_v18, %v1885_v11  ;;  %v1886_v21 = vadd.f32 %v1748_v49, %v8530_v29  ;;  %v5947_v40 = vpop.f32.mrb[123].mxu0  ;;  %v8772_v55 = vmul.f32 %v2248_v13, %v11782_v7  ;;  %v2089_v23 = vsel %vm221_vm1, %v2025_v26, %v2026_v39  ;;  %v11785_v11 = vld [vmem:[#allocation35_spill] sm:$0xff] }
 0x1d3   :  { %6037 = vmatmul.mubr.msk.bf16.gmra.mrb[116].mxu1 %vm987_vm2, %v2339_v36  ;;  %v8778_v1 = vmul.f32 %v2090_v4, %v11783_v59  ;;  %v2247_v14 = vsel %vm605_vm3, %v2183_v53, %v2184_v57  ;;  %v8788_v36 = vmul.f32 %v2089_v23, %v11785_v11 }
 0x1d4   :  { %v1982_v52 = vmax.f32 %v1937_v2, 0.0  ;;  %v1938_v63 = vadd.f32 %v8522_v18, %v1886_v21  ;;  %6040 = vmatprep.mubr.msk.bf16.mxu1 %vm6822_vm0, %v11621_v24  ;;  %v8799_v56 = vmul.f32 %v2247_v14, %v11786_v3  ;;  %v11789_v14 = vld [vmem:[#allocation40_spill] sm:$0xff]  ;;  %v11792_v3 = vld [vmem:[#allocation42_spill] sm:$0xff] }
 0x1d5   :  { %11784 = vst [vmem:[#allocation108_spill] sm:$0xff] %v8778_v1 }
 0x1d6   :  { %v2027_v22 = vrot.slane %v1982_v52, 7  ;;  %v2185_v26 = vrot.slane %v1982_v52, 1  ;;  %v1983_v49 = vmax.f32 %v1938_v63, 0.0  ;;  %v1508_v13 = vpop.f32.mrb[60].mxu1  ;;  %11787 = vst [vmem:[#allocation109_spill] sm:$0xff] %v8799_v56 }
 0x1d7   :  { %v1753_v53 = vpop.f32.mrb[124].mxu0  ;;  %v8793_v21 = vadd.f32 %v1508_v13, %v8406_v9  ;;  %v5882_v40 = vpop.f32.mrb[61].mxu1 }
 0x1d8   :  { %v2028_v2 = vrot.slane %v1983_v49, 7  ;;  %v2186_v50 = vrot.slane %v1983_v49, 1  ;;  %v1887_v59 = vadd.f32 %v1753_v53, %v8542_v17  ;;  %v5950_v29 = vpop.f32.mrb[125].mxu0  ;;  %v1511_v7 = vpop.f32.mrb[62].mxu1  ;;  %v2340_v11 = vpack.c.bf16 %v1983_v49, %v1982_v52  ;;  %v11788_v53 = vld [vmem:[#allocation37_spill] sm:$0xff] }
 0x1d9   :  { %v1756_v23 = vpop.f32.mrb[126].mxu0  ;;  %v2246_v63 = vsel %vm605_vm3, %v2184_v57, %v2185_v26  ;;  %v2088_v4 = vsel %vm221_vm1, %v2026_v39, %v2027_v22  ;;  %v8805_v9 = vadd.f32 %v1511_v7, %v8408_v32  ;;  %v5883_v13 = vpop.f32.mrb[63].mxu1 }
 0x1da   :  { %v1939_v1 = vadd.f32 %v8522_v18, %v1887_v59  ;;  %v1888_v17 = vadd.f32 %v1756_v23, %v8552_v27  ;;  %v5951_v29 = vpop.f32.mrb[127].mxu0  ;;  %v8809_v52 = vmul.f32 %v2246_v63, %v11788_v53  ;;  %v2087_v57 = vsel %vm221_vm1, %v2027_v22, %v2028_v2  ;;  %v11791_v59 = vld [vmem:[#allocation39_spill] sm:$0xff] }
 0x1db   :  { %6041 = vmatmul.mubr.msk.bf16.gmra.mrb[120].mxu1 %vm987_vm2, %v2340_v11  ;;  %v8815_v49 = vmul.f32 %v2088_v4, %v11789_v14  ;;  %v2245_v39 = vsel %vm605_vm3, %v2185_v26, %v2186_v50  ;;  %v8825_v11 = vmul.f32 %v2087_v57, %v11791_v59 }
 0x1dc   :  { %v1984_v32 = vmax.f32 %v1939_v1, 0.0  ;;  %v1940_v7 = vadd.f32 %v8522_v18, %v1888_v17  ;;  %6044 = vmatprep.mubr.msk.bf16.mxu1 %vm6822_vm0, %v11621_v24  ;;  %v8836_v56 = vmul.f32 %v2245_v39, %v11792_v3  ;;  %v11795_v39 = vld [vmem:[#allocation44_spill] sm:$0xff]  ;;  %v11798_v3 = vld [vmem:[#allocation46_spill] sm:$0xff] }
 0x1dd   :  { %11790 = vst [vmem:[#allocation110_spill] sm:$0xff] %v8815_v49 }
 0x1de   :  { %v2029_v40 = vrot.slane %v1984_v32, 7  ;;  %v2187_v22 = vrot.slane %v1984_v32, 1  ;;  %v1985_v23 = vmax.f32 %v1940_v7, 0.0  ;;  %v1516_v63 = vpop.f32.mrb[64].mxu1  ;;  %11793 = vst [vmem:[#allocation111_spill] sm:$0xff] %v8836_v56 }
 0x1df   :  { %v1761_v26 = vpop.f32.mrb[128].mxu0  ;;  %v8830_v17 = vadd.f32 %v1516_v63, %v8423_v60  ;;  %v5886_v29 = vpop.f32.mrb[65].mxu1 }
 0x1e0   :  { %v2030_v1 = vrot.slane %v1985_v23, 7  ;;  %v2188_v13 = vrot.slane %v1985_v23, 1  ;;  %v1889_v14 = vadd.f32 %v1761_v26, %v8570_v20  ;;  %v5954_v27 = vpop.f32.mrb[129].mxu0  ;;  %v1519_v53 = vpop.f32.mrb[66].mxu1  ;;  %v2341_v59 = vpack.c.bf16 %v1985_v23, %v1984_v32  ;;  %v11794_v26 = vld [vmem:[#allocation41_spill] sm:$0xff] }
 0x1e1   :  { %v1764_v57 = vpop.f32.mrb[130].mxu0  ;;  %v2244_v7 = vsel %vm605_vm3, %v2186_v50, %v2187_v22  ;;  %v2086_v4 = vsel %vm221_vm1, %v2028_v2, %v2029_v40  ;;  %v8842_v60 = vadd.f32 %v1519_v53, %v8428_v28  ;;  %v5887_v63 = vpop.f32.mrb[67].mxu1 }
 0x1e2   :  { %v1941_v49 = vadd.f32 %v8522_v18, %v1889_v14  ;;  %v1890_v20 = vadd.f32 %v1764_v57, %v8586_v30  ;;  %v5955_v27 = vpop.f32.mrb[131].mxu0  ;;  %v8846_v32 = vmul.f32 %v2244_v7, %v11794_v26  ;;  %v2085_v50 = vsel %vm221_vm1, %v2029_v40, %v2030_v1  ;;  %v11797_v14 = vld [vmem:[#allocation43_spill] sm:$0xff] }
 0x1e3   :  { %6045 = vmatmul.mubr.msk.bf16.gmra.mrb[124].mxu1 %vm987_vm2, %v2341_v59  ;;  %v8852_v23 = vmul.f32 %v2086_v4, %v11795_v39  ;;  %v2243_v2 = vsel %vm605_vm3, %v2187_v22, %v2188_v13  ;;  %v8862_v59 = vmul.f32 %v2085_v50, %v11797_v14 }
 0x1e4   :  { %v1986_v28 = vmax.f32 %v1941_v49, 0.0  ;;  %v1942_v53 = vadd.f32 %v8522_v18, %v1890_v20  ;;  %6048 = vmatprep.mubr.msk.bf16.mxu1 %vm6822_vm0, %v11621_v24  ;;  %v8873_v56 = vmul.f32 %v2243_v2, %v11798_v3  ;;  %v11801_v2 = vld [vmem:[#allocation48_spill] sm:$0xff]  ;;  %v11804_v3 = vld [vmem:[#allocation50_spill] sm:$0xff] }
 0x1e5   :  { %11796 = vst [vmem:[#allocation112_spill] sm:$0xff] %v8852_v23 }
 0x1e6   :  { %v2031_v29 = vrot.slane %v1986_v28, 7  ;;  %v2189_v40 = vrot.slane %v1986_v28, 1  ;;  %v1987_v57 = vmax.f32 %v1942_v53, 0.0  ;;  %v1524_v7 = vpop.f32.mrb[68].mxu1  ;;  %11799 = vst [vmem:[#allocation113_spill] sm:$0xff] %v8873_v56 }
 0x1e7   :  { %v1769_v22 = vpop.f32.mrb[132].mxu0  ;;  %v8867_v20 = vadd.f32 %v1524_v7, %v8444_v43  ;;  %v5890_v27 = vpop.f32.mrb[69].mxu1 }
 0x1e8   :  { %v2032_v49 = vrot.slane %v1987_v57, 7  ;;  %v2190_v63 = vrot.slane %v1987_v57, 1  ;;  %v1891_v39 = vadd.f32 %v1769_v22, %v8608_v25  ;;  %v5958_v30 = vpop.f32.mrb[133].mxu0  ;;  %v1527_v26 = vpop.f32.mrb[70].mxu1  ;;  %v2342_v14 = vpack.c.bf16 %v1987_v57, %v1986_v28  ;;  %v11800_v22 = vld [vmem:[#allocation45_spill] sm:$0xff] }
 0x1e9   :  { %v1772_v50 = vpop.f32.mrb[134].mxu0  ;;  %v2242_v53 = vsel %vm605_vm3, %v2188_v13, %v2189_v40  ;;  %v2084_v4 = vsel %vm221_vm1, %v2030_v1, %v2031_v29  ;;  %v8879_v43 = vadd.f32 %v1527_v26, %v8449_v58  ;;  %v5891_v7 = vpop.f32.mrb[71].mxu1 }
 0x1ea   :  { %v1943_v23 = vadd.f32 %v8522_v18, %v1891_v39  ;;  %v1892_v25 = vadd.f32 %v1772_v50, %v8620_v33  ;;  %v5959_v30 = vpop.f32.mrb[135].mxu0  ;;  %v8883_v28 = vmul.f32 %v2242_v53, %v11800_v22  ;;  %v2083_v13 = vsel %vm221_vm1, %v2031_v29, %v2032_v49  ;;  %v11803_v39 = vld [vmem:[#allocation47_spill] sm:$0xff] }
 0x1eb   :  { %6049 = vmatmul.mubr.msk.bf16.gmra.mrb[128].mxu1 %vm987_vm2, %v2342_v14  ;;  %v8889_v57 = vmul.f32 %v2084_v4, %v11801_v2  ;;  %v2241_v1 = vsel %vm605_vm3, %v2189_v40, %v2190_v63  ;;  %v8899_v14 = vmul.f32 %v2083_v13, %v11803_v39 }
 0x1ec   :  { %v1988_v58 = vmax.f32 %v1943_v23, 0.0  ;;  %v1944_v26 = vadd.f32 %v8522_v18, %v1892_v25  ;;  %6052 = vmatprep.mubr.msk.bf16.mxu1 %vm6822_vm0, %v11621_v24  ;;  %v8910_v56 = vmul.f32 %v2241_v1, %v11804_v3  ;;  %v11807_v1 = vld [vmem:[#allocation52_spill] sm:$0xff]  ;;  %v11810_v3 = vld [vmem:[#allocation54_spill] sm:$0xff] }
 0x1ed   :  { %11802 = vst [vmem:[#allocation114_spill] sm:$0xff] %v8889_v57 }
 0x1ee   :  { %v2033_v27 = vrot.slane %v1988_v58, 7  ;;  %v2191_v29 = vrot.slane %v1988_v58, 1  ;;  %v1989_v50 = vmax.f32 %v1944_v26, 0.0  ;;  %v1532_v53 = vpop.f32.mrb[72].mxu1  ;;  %11805 = vst [vmem:[#allocation115_spill] sm:$0xff] %v8910_v56 }
 0x1ef   :  { %v1777_v40 = vpop.f32.mrb[136].mxu0  ;;  %v8904_v25 = vadd.f32 %v1532_v53, %v8464_v41  ;;  %v5894_v30 = vpop.f32.mrb[73].mxu1 }
 0x1f0   :  { %v2034_v23 = vrot.slane %v1989_v50, 7  ;;  %v2192_v7 = vrot.slane %v1989_v50, 1  ;;  %v1893_v2 = vadd.f32 %v1777_v40, %v8645_v62  ;;  %v5962_v33 = vpop.f32.mrb[137].mxu0  ;;  %v1535_v22 = vpop.f32.mrb[74].mxu1  ;;  %v2343_v39 = vpack.c.bf16 %v1989_v50, %v1988_v58  ;;  %v11806_v40 = vld [vmem:[#allocation49_spill] sm:$0xff] }
 0x1f1   :  { %v1780_v13 = vpop.f32.mrb[138].mxu0  ;;  %v2240_v26 = vsel %vm605_vm3, %v2190_v63, %v2191_v29  ;;  %v2082_v4 = vsel %vm221_vm1, %v2032_v49, %v2033_v27  ;;  %v8916_v41 = vadd.f32 %v1535_v22, %v8469_v54  ;;  %v5895_v53 = vpop.f32.mrb[75].mxu1 }
 0x1f2   :  { %v1945_v57 = vadd.f32 %v8522_v18, %v1893_v2  ;;  %v1894_v62 = vadd.f32 %v1780_v13, %v8657_v0  ;;  %v5963_v33 = vpop.f32.mrb[139].mxu0  ;;  %v8920_v58 = vmul.f32 %v2240_v26, %v11806_v40  ;;  %v2081_v63 = vsel %vm221_vm1, %v2033_v27, %v2034_v23  ;;  %v11809_v2 = vld [vmem:[#allocation51_spill] sm:$0xff] }
 0x1f3   :  { %6053 = vmatmul.mubr.msk.bf16.gmra.mrb[132].mxu1 %vm987_vm2, %v2343_v39  ;;  %v8926_v50 = vmul.f32 %v2082_v4, %v11807_v1  ;;  %v2239_v49 = vsel %vm605_vm3, %v2191_v29, %v2192_v7  ;;  %v8936_v39 = vmul.f32 %v2081_v63, %v11809_v2 }
 0x1f4   :  { %v1990_v54 = vmax.f32 %v1945_v57, 0.0  ;;  %v1946_v22 = vadd.f32 %v8522_v18, %v1894_v62  ;;  %6056 = vmatprep.mubr.msk.bf16.mxu1 %vm6822_vm0, %v11621_v24  ;;  %v8947_v56 = vmul.f32 %v2239_v49, %v11810_v3  ;;  %v11813_v49 = vld [vmem:[#allocation56_spill] sm:$0xff]  ;;  %v11816_v3 = vld [vmem:[#allocation58_spill] sm:$0xff] }
 0x1f5   :  { %11808 = vst [vmem:[#allocation116_spill] sm:$0xff] %v8926_v50 }
 0x1f6   :  { %v2035_v30 = vrot.slane %v1990_v54, 7  ;;  %v2193_v27 = vrot.slane %v1990_v54, 1  ;;  %v1991_v13 = vmax.f32 %v1946_v22, 0.0  ;;  %v1540_v26 = vpop.f32.mrb[76].mxu1  ;;  %11811 = vst [vmem:[#allocation117_spill] sm:$0xff] %v8947_v56 }
 0x1f7   :  { %v1785_v29 = vpop.f32.mrb[140].mxu0  ;;  %v8941_v62 = vadd.f32 %v1540_v26, %v8477_v44  ;;  %v5898_v33 = vpop.f32.mrb[77].mxu1 }
 0x1f8   :  { %v2036_v57 = vrot.slane %v1991_v13, 7  ;;  %v2194_v53 = vrot.slane %v1991_v13, 1  ;;  %v1895_v1 = vadd.f32 %v1785_v29, %v8682_v15  ;;  %v5966_v0 = vpop.f32.mrb[141].mxu0  ;;  %v1543_v40 = vpop.f32.mrb[78].mxu1  ;;  %v2344_v2 = vpack.c.bf16 %v1991_v13, %v1990_v54  ;;  %v11812_v29 = vld [vmem:[#allocation53_spill] sm:$0xff] }
 0x1f9   :  { %v1788_v63 = vpop.f32.mrb[142].mxu0  ;;  %v2238_v22 = vsel %vm605_vm3, %v2192_v7, %v2193_v27  ;;  %v2080_v4 = vsel %vm221_vm1, %v2034_v23, %v2035_v30  ;;  %v8953_v44 = vadd.f32 %v1543_v40, %v8482_v31  ;;  %v5899_v26 = vpop.f32.mrb[79].mxu1 }
 0x1fa   :  { %v1947_v50 = vadd.f32 %v8522_v18, %v1895_v1  ;;  %v1896_v15 = vadd.f32 %v1788_v63, %v8694_v6  ;;  %v5967_v0 = vpop.f32.mrb[143].mxu0  ;;  %v8957_v54 = vmul.f32 %v2238_v22, %v11812_v29  ;;  %v2079_v7 = vsel %vm221_vm1, %v2035_v30, %v2036_v57  ;;  %v11815_v1 = vld [vmem:[#allocation55_spill] sm:$0xff] }
 0x1fb   :  { %6057 = vmatmul.mubr.msk.bf16.gmra.mrb[136].mxu1 %vm987_vm2, %v2344_v2  ;;  %v8963_v13 = vmul.f32 %v2080_v4, %v11813_v49  ;;  %v2237_v23 = vsel %vm605_vm3, %v2193_v27, %v2194_v53  ;;  %v8973_v2 = vmul.f32 %v2079_v7, %v11815_v1 }
 0x1fc   :  { %v1992_v31 = vmax.f32 %v1947_v50, 0.0  ;;  %v1948_v40 = vadd.f32 %v8522_v18, %v1896_v15  ;;  %6060 = vmatprep.mubr.msk.bf16.mxu1 %vm6822_vm0, %v11621_v24  ;;  %v8984_v56 = vmul.f32 %v2237_v23, %v11816_v3  ;;  %v11819_v23 = vld [vmem:[#allocation59_spill] sm:$0xff]  ;;  %v11822_v3 = vld [vmem:[#allocation60_spill] sm:$0xff] }
 0x1fd   :  { %11814 = vst [vmem:[#allocation118_spill] sm:$0xff] %v8963_v13 }
 0x1fe   :  { %v2037_v33 = vrot.slane %v1992_v31, 7  ;;  %v2195_v30 = vrot.slane %v1992_v31, 1  ;;  %v1993_v63 = vmax.f32 %v1948_v40, 0.0  ;;  %v1548_v22 = vpop.f32.mrb[80].mxu1  ;;  %11817 = vst [vmem:[#allocation119_spill] sm:$0xff] %v8984_v56 }
 0x1ff   :  { %v1793_v27 = vpop.f32.mrb[144].mxu0  ;;  %v8978_v15 = vadd.f32 %v1548_v22, %v8487_v38  ;;  %v5902_v0 = vpop.f32.mrb[81].mxu1 }
 0x200   :  { %v2038_v50 = vrot.slane %v1993_v63, 7  ;;  %v2196_v26 = vrot.slane %v1993_v63, 1  ;;  %v1897_v49 = vadd.f32 %v1793_v27, %v8719_v12  ;;  %v5970_v6 = vpop.f32.mrb[145].mxu0  ;;  %v1551_v29 = vpop.f32.mrb[82].mxu1  ;;  %v2345_v1 = vpack.c.bf16 %v1993_v63, %v1992_v31  ;;  %v11818_v27 = vld [vmem:[#allocation57_spill] sm:$0xff] }
 0x201   :  { %v1796_v7 = vpop.f32.mrb[146].mxu0  ;;  %v2236_v40 = vsel %vm605_vm3, %v2194_v53, %v2195_v30  ;;  %v2078_v4 = vsel %vm221_vm1, %v2036_v57, %v2037_v33  ;;  %v8990_v38 = vadd.f32 %v1551_v29, %v8495_v42  ;;  %v5903_v22 = vpop.f32.mrb[83].mxu1 }
 0x202   :  { %v1949_v13 = vadd.f32 %v8522_v18, %v1897_v49  ;;  %v1898_v12 = vadd.f32 %v1796_v7, %v8731_v51  ;;  %v5971_v6 = vpop.f32.mrb[147].mxu0  ;;  %v8994_v31 = vmul.f32 %v2236_v40, %v11818_v27  ;;  %v2077_v53 = vsel %vm221_vm1, %v2037_v33, %v2038_v50  ;;  %v11821_v49 = vld [vmem:[#allocation3_spill] sm:$0xff] }
 0x203   :  { %6061 = vmatmul.mubr.msk.bf16.gmra.mrb[140].mxu1 %vm987_vm2, %v2345_v1  ;;  %v9000_v63 = vmul.f32 %v2078_v4, %v11819_v23  ;;  %v2235_v57 = vsel %vm605_vm3, %v2195_v30, %v2196_v26  ;;  %v9010_v1 = vmul.f32 %v2077_v53, %v11821_v49 }
 0x204   :  { %v1994_v42 = vmax.f32 %v1949_v13, 0.0  ;;  %v1950_v29 = vadd.f32 %v8522_v18, %v1898_v12  ;;  %6064 = vmatprep.mubr.msk.bf16.mxu1 %vm6822_vm0, %v11621_v24  ;;  %v9021_v56 = vmul.f32 %v2235_v57, %v11822_v3  ;;  %v11827_v57 = vld [vmem:[#allocation6_spill] sm:$0xff] }
 0x205   :  { %11820 = vst [vmem:[#allocation120_spill] sm:$0xff] %v9000_v63 }
 0x206   :  { %v2039_v0 = vrot.slane %v1994_v42, 7  ;;  %v2197_v33 = vrot.slane %v1994_v42, 1  ;;  %v1995_v7 = vmax.f32 %v1950_v29, 0.0  ;;  %v1556_v40 = vpop.f32.mrb[84].mxu1  ;;  %11823 = vst [vmem:[#allocation121_spill] sm:$0xff] %v9021_v56  ;;  %v11831_v56 = vld [vmem:[#allocation62_spill] sm:$0xff] }
 0x207   :  { %v1801_v30 = vpop.f32.mrb[148].mxu0  ;;  %v9015_v12 = vadd.f32 %v1556_v40, %v8501_v10  ;;  %v5906_v6 = vpop.f32.mrb[85].mxu1  ;;  %v11824_v10 = vld [vmem:[#allocation2_spill] sm:$0xff] }
 0x208   :  { %v2040_v13 = vrot.slane %v1995_v7, 7  ;;  %v2198_v22 = vrot.slane %v1995_v7, 1  ;;  %v1899_v23 = vadd.f32 %v1801_v30, %v8756_v34  ;;  %v5974_v51 = vpop.f32.mrb[149].mxu0  ;;  %v1559_v27 = vpop.f32.mrb[86].mxu1  ;;  %v2346_v49 = vpack.c.bf16 %v1995_v7, %v1994_v42  ;;  %v11825_v30 = vld [vmem:[#allocation4_spill] sm:$0xff] }
 0x209   :  { %v1804_v53 = vpop.f32.mrb[150].mxu0  ;;  %v2234_v29 = vsel %vm605_vm3, %v2196_v26, %v2197_v33  ;;  %v2076_v4 = vsel %vm221_vm1, %v2038_v50, %v2039_v0  ;;  %v9027_v40 = vadd.f32 %v1559_v27, %v11824_v10  ;;  %v5907_v6 = vpop.f32.mrb[87].mxu1 }
 0x20a   :  { %v1951_v63 = vadd.f32 %v8522_v18, %v1899_v23  ;;  %v1900_v34 = vadd.f32 %v1804_v53, %v8768_v16  ;;  %v5975_v51 = vpop.f32.mrb[151].mxu0  ;;  %v9031_v42 = vmul.f32 %v2234_v29, %v11825_v30  ;;  %v2075_v26 = vsel %vm221_vm1, %v2039_v0, %v2040_v13  ;;  %v11829_v53 = vld [vmem:[#allocation5_spill] sm:$0xff] }
 0x20b   :  { %6065 = vmatmul.mubr.msk.bf16.gmra.mrb[144].mxu1 %vm987_vm2, %v2346_v49  ;;  %v9037_v7 = vmul.f32 %v2076_v4, %v11827_v57  ;;  %v2233_v50 = vsel %vm605_vm3, %v2197_v33, %v2198_v22  ;;  %v9047_v49 = vmul.f32 %v2075_v26, %v11829_v53 }
 0x20c   :  { %11826 = vst [vmem:[#allocation2_spill] sm:$0xff] %v9031_v42  ;;  %v1996_v27 = vmax.f32 %v1951_v63, 0.0  ;;  %v1952_v23 = vadd.f32 %v8522_v18, %v1900_v34  ;;  %6068 = vmatprep.mubr.msk.bf16.mxu1 %vm6822_vm0, %v11621_v24  ;;  %v11830_v18 = vld [vmem:[#allocation71_spill] sm:$0xff]  ;;  %v9058_v42 = vmul.f32 %v2233_v50, %v11831_v56  ;;  %v11838_v56 = vld [vmem:[#allocation64_spill] sm:$0xff] }
 0x20d   :  { %11828 = vst [vmem:[#allocation122_spill] sm:$0xff] %v9037_v7 }
 0x20e   :  { %v2041_v29 = vrot.slane %v1996_v27, 7  ;;  %v2199_v0 = vrot.slane %v1996_v27, 1  ;;  %v1997_v10 = vmax.f32 %v1952_v23, 0.0  ;;  %v1564_v6 = vpop.f32.mrb[88].mxu1  ;;  %11832 = vst [vmem:[#allocation71_spill] sm:$0xff] %v9058_v42 }
 0x20f   :  { %v1809_v33 = vpop.f32.mrb[152].mxu0  ;;  %v9052_v34 = vadd.f32 %v1564_v6, %v11830_v18  ;;  %v5910_v57 = vpop.f32.mrb[89].mxu1  ;;  %v9065_v6 = vld [vmem:[%s11304_s4] ss:$0 sm:$0xff] }
 0x210   :  { %v2042_v63 = vrot.slane %v1997_v10, 7  ;;  %v2200_v51 = vrot.slane %v1997_v10, 1  ;;  %v1901_v30 = vadd.f32 %v1809_v33, %v8793_v21  ;;  %v5978_v16 = vpop.f32.mrb[153].mxu0  ;;  %v1567_v3 = vpop.f32.mrb[90].mxu1  ;;  %v2347_v53 = vpack.c.bf16 %v1997_v10, %v1996_v27  ;;  %v11836_v33 = vld [vmem:[#allocation7_spill] sm:$0xff] }
 0x211   :  { %v1812_v26 = vpop.f32.mrb[154].mxu0  ;;  %v2232_v23 = vsel %vm605_vm3, %v2198_v22, %v2199_v0  ;;  %v2074_v4 = vsel %vm221_vm1, %v2040_v13, %v2041_v29  ;;  %v5911_v57 = vpop.f32.mrb[91].mxu1  ;;  %v11833_v16 = vld [vmem:[#allocation61_spill] sm:$0xff]  ;;  %v11834_v13 = vld [vmem:[#allocation8_spill] sm:$0xff] }
 0x212   :  { %v1953_v21 = vadd.f32 %v9065_v6, %v1901_v30  ;;  %v1902_v3 = vadd.f32 %v1812_v26, %v8805_v9  ;;  %v5979_v27 = vpop.f32.mrb[155].mxu0  ;;  %v9070_v10 = vmul.f32 %v2232_v23, %v11833_v16  ;;  %v2073_v22 = vsel %vm221_vm1, %v2041_v29, %v2042_v63 }
 0x213   :  { %6069 = vmatmul.mubr.msk.bf16.gmra.mrb[148].mxu1 %vm987_vm2, %v2347_v53  ;;  %v9076_v50 = vmul.f32 %v2074_v4, %v11834_v13  ;;  %v9079_v18 = vmul.f32 %v2073_v22, %v11836_v33  ;;  %v2231_v30 = vsel %vm605_vm3, %v2199_v0, %v2200_v51 }
 0x214   :  { %v1998_v57 = vmax.f32 %v1953_v21, 0.0  ;;  %v1954_v9 = vadd.f32 %v9065_v6, %v1902_v3  ;;  %6072 = vmatprep.mubr.msk.bf16.mxu1 %vm6822_vm0, %v11621_v24  ;;  %v9094_v7 = vmul.f32 %v2231_v30, %v11838_v56  ;;  %v11842_v30 = vld [vmem:[#allocation9_spill] sm:$0xff] }
 0x215   :  { %11835 = vst [vmem:[#allocation123_spill] sm:$0xff] %v9076_v50  ;;  %11837 = vst [vmem:[#allocation124_spill] sm:$0xff] %v9079_v18  ;;  %v11839_v18 = vld [vmem:[#allocation63_spill] sm:$0xff] }
 0x216   :  { %v2043_v4 = vrot.slane %v1998_v57, 7  ;;  %v2201_v26 = vrot.slane %v1998_v57, 1  ;;  %v1999_v23 = vmax.f32 %v1954_v9, 0.0 }
 0x217   :  { %v1817_v27 = vpop.f32.mrb[156].mxu0 }
 0x218   :  { %v2044_v22 = vrot.slane %v1999_v23, 7  ;;  %v2202_v33 = vrot.slane %v1999_v23, 1  ;;  %v1903_v0 = vadd.f32 %v1817_v27, %v8830_v17  ;;  %v5982_v21 = vpop.f32.mrb[157].mxu0  ;;  %v2348_v13 = vpack.c.bf16 %v1999_v23, %v1998_v57 }
 0x219   :  { %v1820_v3 = vpop.f32.mrb[158].mxu0  ;;  %v2230_v16 = vsel %vm605_vm3, %v2200_v51, %v2201_v26  ;;  %v2072_v53 = vsel %vm221_vm1, %v2042_v63, %v2043_v4  ;;  %v11840_v51 = vld [vmem:[#allocation10_spill] sm:$0xff] }
 0x21a   :  { %v1955_v29 = vadd.f32 %v9065_v6, %v1903_v0  ;;  %v1904_v9 = vadd.f32 %v1820_v3, %v8842_v60  ;;  %v5983_v50 = vpop.f32.mrb[159].mxu0  ;;  %v9101_v42 = vmul.f32 %v2230_v16, %v11839_v18  ;;  %v2071_v17 = vsel %vm221_vm1, %v2043_v4, %v2044_v22 }
 0x21b   :  { %6073 = vmatmul.mubr.msk.bf16.gmra.mrb[152].mxu1 %vm987_vm2, %v2348_v13  ;;  %v9107_v57 = vmul.f32 %v2072_v53, %v11840_v51  ;;  %v9110_v23 = vmul.f32 %v2071_v17, %v11842_v30  ;;  %v2229_v63 = vsel %vm605_vm3, %v2201_v26, %v2202_v33  ;;  %v11844_v51 = vld [vmem:[#allocation66_spill] sm:$0xff] }
 0x21c   :  { %v2000_v27 = vmax.f32 %v1955_v29, 0.0  ;;  %v1956_v60 = vadd.f32 %v9065_v6, %v1904_v9  ;;  %6076 = vmatprep.mubr.msk.bf16.mxu1 %vm6822_vm0, %v11621_v24  ;;  %v9125_v18 = vmul.f32 %v2229_v63, %v11844_v51  ;;  %v11848_v63 = vld [vmem:[#allocation67_spill] sm:$0xff] }
 0x21d   :  { %11841 = vst [vmem:[#allocation125_spill] sm:$0xff] %v9107_v57  ;;  %11843 = vst [vmem:[#allocation126_spill] sm:$0xff] %v9110_v23  ;;  %v11845_v57 = vld [vmem:[#allocation65_spill] sm:$0xff] }
 0x21e   :  { %v2045_v50 = vrot.slane %v2000_v27, 7  ;;  %v2203_v53 = vrot.slane %v2000_v27, 1  ;;  %v2001_v4 = vmax.f32 %v1956_v60, 0.0 }
 0x21f   :  { %v1825_v0 = vpop.f32.mrb[160].mxu0 }
 0x220   :  { %v2046_v21 = vrot.slane %v2001_v4, 7  ;;  %v2204_v3 = vrot.slane %v2001_v4, 1  ;;  %v1905_v26 = vadd.f32 %v1825_v0, %v8867_v20  ;;  %v5986_v29 = vpop.f32.mrb[161].mxu0  ;;  %v2349_v17 = vpack.c.bf16 %v2001_v4, %v2000_v27 }
 0x221   :  { %v1828_v9 = vpop.f32.mrb[162].mxu0  ;;  %v2228_v30 = vsel %vm605_vm3, %v2202_v33, %v2203_v53  ;;  %v2070_v13 = vsel %vm221_vm1, %v2044_v22, %v2045_v50  ;;  %v11846_v33 = vld [vmem:[#allocation68_spill] sm:$0xff] }
 0x222   :  { %v1957_v16 = vadd.f32 %v9065_v6, %v1905_v26  ;;  %v1906_v60 = vadd.f32 %v1828_v9, %v8879_v43  ;;  %v5987_v56 = vpop.f32.mrb[163].mxu0  ;;  %v9132_v23 = vmul.f32 %v2228_v30, %v11845_v57  ;;  %v2069_v20 = vsel %vm221_vm1, %v2045_v50, %v2046_v21 }
 0x223   :  { %6077 = vmatmul.mubr.msk.bf16.gmra.mrb[156].mxu1 %vm987_vm2, %v2349_v17  ;;  %v9138_v27 = vmul.f32 %v2070_v13, %v11846_v33  ;;  %v9141_v4 = vmul.f32 %v2069_v20, %v11848_v63  ;;  %v2227_v22 = vsel %vm605_vm3, %v2203_v53, %v2204_v3  ;;  %v11850_v33 = vld [vmem:[#allocation70_spill] sm:$0xff] }
 0x224   :  { %v2002_v0 = vmax.f32 %v1957_v16, 0.0  ;;  %v1958_v56 = vadd.f32 %v9065_v6, %v1906_v60  ;;  %6080 = vmatprep.mubr.msk.bf16.mxu1 %vm6822_vm0, %v11621_v24  ;;  %v9156_v57 = vmul.f32 %v2227_v22, %v11850_v33  ;;  %v11854_v22 = vld [vmem:[#allocation73_spill] sm:$0xff]  ;;  %v11855_v33 = vld [vmem:[#allocation79_spill] sm:$0xff] }
 0x225   :  { %11847 = vst [vmem:[#allocation127_spill] sm:$0xff] %v9138_v27  ;;  %11849 = vst [vmem:[#allocation128_spill] sm:$0xff] %v9141_v4  ;;  %v11851_v27 = vld [vmem:[#allocation69_spill] sm:$0xff] }
 0x226   :  { %v2047_v13 = vrot.slane %v2002_v0, 7  ;;  %v2205_v50 = vrot.slane %v2002_v0, 1  ;;  %v2003_v26 = vmax.f32 %v1958_v56, 0.0 }
 0x227   :  { %v1833_v29 = vpop.f32.mrb[164].mxu0 }
 0x228   :  { %v2048_v17 = vrot.slane %v2003_v26, 7  ;;  %v2206_v9 = vrot.slane %v2003_v26, 1  ;;  %v1907_v53 = vadd.f32 %v1833_v29, %v8904_v25  ;;  %v5990_v16 = vpop.f32.mrb[165].mxu0  ;;  %v2350_v20 = vpack.c.bf16 %v2003_v26, %v2002_v0 }
 0x229   :  { %v1836_v60 = vpop.f32.mrb[166].mxu0  ;;  %v2226_v63 = vsel %vm605_vm3, %v2204_v3, %v2205_v50  ;;  %v2068_v30 = vsel %vm221_vm1, %v2046_v21, %v2047_v13  ;;  %v11852_v3 = vld [vmem:[#allocation74_spill] sm:$0xff] }
 0x22a   :  { %v1959_v43 = vadd.f32 %v9065_v6, %v1907_v53  ;;  %v1908_v56 = vadd.f32 %v1836_v60, %v8916_v41  ;;  %v5991_v51 = vpop.f32.mrb[167].mxu0  ;;  %v9163_v4 = vmul.f32 %v2226_v63, %v11851_v27  ;;  %v2067_v25 = vsel %vm221_vm1, %v2047_v13, %v2048_v17 }
 0x22b   :  { %6081 = vmatmul.mubr.msk.bf16.gmra.mrb[160].mxu1 %vm987_vm2, %v2350_v20  ;;  %v9169_v0 = vmul.f32 %v2068_v30, %v11852_v3  ;;  %v9172_v26 = vmul.f32 %v2067_v25, %v11854_v22  ;;  %v2225_v21 = vsel %vm605_vm3, %v2205_v50, %v2206_v9 }
 0x22c   :  { %v2004_v29 = vmax.f32 %v1959_v43, 0.0  ;;  %v1960_v41 = vadd.f32 %v9065_v6, %v1908_v56  ;;  %6084 = vmatprep.mubr.msk.bf16.mxu1 %vm6822_vm0, %v11621_v24 }
 0x22d   :  { %11853 = vst [vmem:[#allocation129_spill] sm:$0xff] %v9169_v0 }
 0x22e   :  { %v2049_v30 = vrot.slane %v2004_v29, 7  ;;  %v2207_v13 = vrot.slane %v2004_v29, 1  ;;  %v2005_v53 = vmax.f32 %v1960_v41, 0.0 }
 0x22f   :  { %v1841_v16 = vpop.f32.mrb[168].mxu0 }
 0x230   :  { %v2066_v20 = vsel %vm221_vm1, %v2048_v17, %v2049_v30  ;;  %v2050_v50 = vrot.slane %v2005_v53, 7  ;;  %v2208_v43 = vrot.slane %v2005_v53, 1  ;;  %v1909_v60 = vadd.f32 %v1841_v16, %v8941_v62  ;;  %v5994_v56 = vpop.f32.mrb[169].mxu0  ;;  %v11857_v62 = vld [vmem:[#allocation78_spill] sm:$0xff] }
 0x231   :  { %v1844_v25 = vpop.f32.mrb[170].mxu0  ;;  %v2351_v22 = vpack.c.bf16 %v2005_v53, %v2004_v29  ;;  %v2224_v51 = vsel %vm605_vm3, %v2206_v9, %v2207_v13  ;;  %v9195_v0 = vmul.f32 %v2066_v20, %v11855_v33  ;;  %v11859_v9 = vld [vmem:[#allocation76_spill] sm:$0xff] }
 0x232   :  { %v2065_v63 = vsel %vm221_vm1, %v2049_v30, %v2050_v50  ;;  %v2223_v41 = vsel %vm605_vm3, %v2207_v13, %v2208_v43  ;;  %v1961_v3 = vadd.f32 %v9065_v6, %v1909_v60  ;;  %v1910_v17 = vadd.f32 %v1844_v25, %v8953_v44  ;;  %v5995_v27 = vpop.f32.mrb[171].mxu0  ;;  %v11861_v30 = vld [vmem:[#allocation75_spill] sm:$0xff]  ;;  %v11863_v44 = vld [vmem:[#allocation80_spill] sm:$0xff] }
 0x233   :  { %11856 = vst [vmem:[#allocation130_spill] sm:$0xff] %v9195_v0  ;;  %v9198_v16 = vmul.f32 %v2065_v63, %v11857_v62  ;;  %6085 = vmatmul.mubr.msk.bf16.gmra.mrb[164].mxu1 %vm987_vm2, %v2351_v22  ;;  %v9202_v29 = vmul.f32 %v2225_v21, %v11859_v9  ;;  %v9205_v53 = vmul.f32 %v2224_v51, %v11861_v30  ;;  %v11862_v62 = vld [vmem:[#allocation81_spill] sm:$0xff] }
 0x234   :  { %v2006_v13 = vmax.f32 %v1961_v3, 0.0  ;;  %v1962_v60 = vadd.f32 %v9065_v6, %v1910_v17  ;;  %6088 = vmatprep.mubr.msk.bf16.mxu1 %vm6822_vm0, %v11621_v24  ;;  %v9219_v33 = vmul.f32 %v2223_v41, %v11862_v62 }
 0x235   :  { %11858 = vst [vmem:[#allocation131_spill] sm:$0xff] %v9198_v16  ;;  %11860 = vst [vmem:[#allocation132_spill] sm:$0xff] %v9202_v29 }
 0x236   :  { %v2051_v63 = vrot.slane %v2006_v13, 7  ;;  %v2209_v22 = vrot.slane %v2006_v13, 1  ;;  %v2007_v20 = vmax.f32 %v1962_v60, 0.0 }
 0x237   :  { %v1849_v21 = vpop.f32.mrb[172].mxu0 }
 0x238   :  { %v2064_v51 = vsel %vm221_vm1, %v2050_v50, %v2051_v63  ;;  %v2222_v3 = vsel %vm605_vm3, %v2208_v43, %v2209_v22  ;;  %v2052_v56 = vrot.slane %v2007_v20, 7  ;;  %v2210_v25 = vrot.slane %v2007_v20, 1  ;;  %v5998_v17 = vpop.f32.mrb[173].mxu0 }
 0x239   :  { %v9222_v30 = vmul.f32 %v2222_v3, %v11863_v44  ;;  %v1911_v27 = vadd.f32 %v1849_v21, %v8978_v15  ;;  %v1852_v9 = vpop.f32.mrb[174].mxu0  ;;  %v2352_v60 = vpack.c.bf16 %v2007_v20, %v2006_v13  ;;  %v11864_v17 = vld [vmem:[#allocation85_spill] sm:$0xff]  ;;  %v11865_v3 = vld [vmem:[#allocation84_spill] sm:$0xff] }
 0x23a   :  { %v2063_v0 = vsel %vm221_vm1, %v2051_v63, %v2052_v56  ;;  %v2221_v50 = vsel %vm605_vm3, %v2209_v22, %v2210_v25  ;;  %v1912_v43 = vadd.f32 %v1852_v9, %v8990_v38  ;;  %v5999_v16 = vpop.f32.mrb[175].mxu0  ;;  %v9231_v29 = vmul.f32 %v2064_v51, %v11864_v17  ;;  %v11866_v17 = vld [vmem:[#allocation87_spill] sm:$0xff] }
 0x23b   :  { %v9236_v44 = vmul.f32 %v2063_v0, %v11865_v3  ;;  %v1963_v15 = vadd.f32 %v9065_v6, %v1911_v27  ;;  %6089 = vmatmul.mubr.msk.bf16.gmra.mrb[168].mxu1 %vm987_vm2, %v2352_v60  ;;  %v9251_v38 = vmul.f32 %v2221_v50, %v11866_v17 }
 0x23c   :  { %v1964_v13 = vadd.f32 %v9065_v6, %v1912_v43  ;;  %6092 = vmatprep.mubr.msk.bf16.mxu1 %vm6822_vm0, %v11621_v24 }
 0x23d   :  { %v2008_v16 = vmax.f32 %v1963_v15, 0.0  ;;  %v11867_v15 = vld [vmem:[#allocation86_spill] sm:$0xff] }
 0x23e   :  { %v2009_v9 = vmax.f32 %v1964_v13, 0.0 }
 0x23f   :  { %v2053_v63 = vrot.slane %v2008_v16, 7  ;;  %v2211_v22 = vrot.slane %v2008_v16, 1  ;;  %v1857_v20 = vpop.f32.mrb[176].mxu0 }
 0x240   :  { %v2054_v21 = vrot.slane %v2009_v9, 7  ;;  %v2212_v0 = vrot.slane %v2009_v9, 1  ;;  %v1913_v51 = vadd.f32 %v1857_v20, %v9015_v12  ;;  %v6002_v27 = vpop.f32.mrb[177].mxu0  ;;  %v2353_v41 = vpack.c.bf16 %v2009_v9, %v2008_v16  ;;  %v11868_v9 = vld [vmem:[#allocation89_spill] sm:$0xff] }
 0x241   :  { %v2062_v60 = vsel %vm221_vm1, %v2052_v56, %v2053_v63  ;;  %v2220_v43 = vsel %vm605_vm3, %v2210_v25, %v2211_v22  ;;  %v1860_v3 = vpop.f32.mrb[178].mxu0  ;;  %v11870_v56 = vld [vmem:[#allocation88_spill] sm:$0xff] }
 0x242   :  { %v9254_v13 = vmul.f32 %v2220_v43, %v11867_v15  ;;  %v2061_v62 = vsel %vm221_vm1, %v2053_v63, %v2054_v21  ;;  %v2219_v12 = vsel %vm605_vm3, %v2211_v22, %v2212_v0  ;;  %v6003_v16 = vpop.f32.mrb[179].mxu0  ;;  %v9261_v20 = vmul.f32 %v2062_v60, %v11868_v9  ;;  %v11872_v63 = vld [vmem:[#allocation91_spill] sm:$0xff] }
 0x243   :  { %v9264_v27 = vmul.f32 %v2061_v62, %v11870_v56  ;;  %v1965_v25 = vadd.f32 %v9065_v6, %v1913_v51  ;;  %v1914_v50 = vadd.f32 %v1860_v3, %v9027_v40  ;;  %6093 = vmatmul.mubr.msk.bf16.gmra.mrb[172].mxu1 %vm987_vm2, %v2353_v41 }
 0x244   :  { %11869 = vst [vmem:[#allocation133_spill] sm:$0xff] %v9261_v20  ;;  %6096 = vmatprep.mubr.msk.bf16.mxu1 %vm6822_vm0, %v11621_v24 }
 0x245   :  { %11871 = vst [vmem:[#allocation134_spill] sm:$0xff] %v9264_v27  ;;  %v2010_v22 = vmax.f32 %v1965_v25, 0.0  ;;  %v1966_v60 = vadd.f32 %v9065_v6, %v1914_v50  ;;  %v9282_v25 = vmul.f32 %v2219_v12, %v11872_v63  ;;  %v11873_v50 = vld [vmem:[#allocation90_spill] sm:$0xff]  ;;  %v11875_v12 = vld [vmem:[#allocation93_spill] sm:$0xff] }
 0x247   :  { %v2055_v62 = vrot.slane %v2010_v22, 7  ;;  %v2213_v16 = vrot.slane %v2010_v22, 1  ;;  %v2011_v56 = vmax.f32 %v1966_v60, 0.0  ;;  %v1865_v51 = vpop.f32.mrb[180].mxu0 }
 0x248   :  { %v1915_v40 = vadd.f32 %v1865_v51, %v9052_v34  ;;  %v6006_v3 = vpop.f32.mrb[181].mxu0 }
 0x249   :  { %v2060_v41 = vsel %vm221_vm1, %v2054_v21, %v2055_v62  ;;  %v2218_v43 = vsel %vm605_vm3, %v2212_v0, %v2213_v16  ;;  %v2056_v9 = vrot.slane %v2011_v56, 7  ;;  %v2214_v15 = vrot.slane %v2011_v56, 1  ;;  %v1868_v17 = vpop.f32.mrb[182].mxu0  ;;  %v11874_v0 = vld [vmem:[#allocation92_spill] sm:$0xff] }
 0x24a   :  { %v9285_v20 = vmul.f32 %v2218_v43, %v11873_v50  ;;  %v1967_v60 = vadd.f32 %v9065_v6, %v1915_v40  ;;  %v6007_v27 = vpop.f32.mrb[183].mxu0  ;;  %v2354_v34 = vpack.c.bf16 %v2011_v56, %v2010_v22  ;;  %v9293_v3 = vmul.f32 %v2060_v41, %v11874_v0  ;;  %v11880_v6 = vld [vmem:[#allocation94_spill] sm:$0xff] }
 0x24b   :  { %v2059_v51 = vsel %vm221_vm1, %v2055_v62, %v2056_v9  ;;  %v2217_v21 = vsel %vm605_vm3, %v2213_v16, %v2214_v15  ;;  %v11876_v62 = vld [vmem:[#allocation72_spill] sm:$0xff] }
 0x24c   :  { %v9298_v63 = vmul.f32 %v2059_v51, %v11875_v12  ;;  %v9300_v43 = vmax.f32 %v1967_v60, 0.0  ;;  %6097 = vmatmul.mubr.msk.bf16.gmra.mrb[176].mxu1 %vm987_vm2, %v2354_v34  ;;  %v11877_v16 = vrot.slane %v11876_v62, 7  ;;  %v11878_v60 = vld [vmem:[#allocation14_spill] sm:$0xff]  ;;  %v11879_v34 = vld [vmem:[#allocation77_spill] sm:$0xff]  ;;  %v9324_v17 = vmul.f32 %v2217_v21, %v11880_v6  ;;  %v11881_v12 = vld [vmem:[#allocation12_spill] sm:$0xff] }
 0x24d   :  { %6100 = vmatprep.mubr.msk.bf16.mxu1 %vm6822_vm0, %v11621_v24  ;;  %v2104_v51 = vmul.f32 %v11879_v34, %v11878_v60  ;;  %v6806_v21 = vld [vmem:[%s11305_s7 + $0x28] sm:$0xff]  }
 0x24e   :  { %v2057_v56 = vrot.slane %v9300_v43, 7  ;;  %v2215_v27 = vrot.slane %v9300_v43, 1  ;;  %v2355_v62 = vpack.c.bf16 %v9300_v43, %v9300_v43 }
 0x250   :  { %v9311_v22 = vsel %vm221_vm1, %v2056_v9, %v2057_v56  ;;  %v2102_v40 = vsel %vm221_vm1, %v2057_v56, %v11877_v16  ;;  %v2216_v41 = vsel %vm605_vm3, %v2214_v15, %v2215_v27  ;;  %v11882_v9 = vld [vmem:[#allocation96_spill] sm:$0xff]  ;;  %v6805_v56 = vld [vmem:[%s11305_s7 + $0x20] sm:$0xff]  }
 0x251   :  { %v2103_v0 = vmul.f32 %v2102_v40, %v11881_v12  ;;  %v9328_v50 = vmul.f32 %v2216_v41, %v11882_v9  ;;  %v11886_v41 = vld [vmem:[#allocation98_spill] sm:$0xff] }
 0x252   :  { %v11887_v34 = vpack.c.bf16 %v8603_v46, %v11886_v41  ;;  %v11890_v46 = vld [vmem:[#allocation100_spill] sm:$0xff] }
 0x253   :  { %v2327_v15 = vpack.c.bf16 %v9328_v50, %v9324_v17  ;;  %v2148_v16 = vpack.c.bf16 %v2104_v51, %v2103_v0  ;;  %v11883_v0 = vld [vmem:[#allocation83_spill] sm:$0xff]  ;;  %v6807_v51 = vld [vmem:[%s11305_s7 + $0x30] sm:$0xff]  }
 0x254   :  { %6101 = vmatmul.mubr.msk.bf16.gmra.mrb[180].mxu1 %vm987_vm2, %v2355_v62  ;;  %v11884_v62 = vld [vmem:[#allocation82_spill] sm:$0xff] }
 0x255   :  { %6109 = vmatmul.mubr.msk.bf16.vlgmr.msra.gmra.mrb[184].mxu0 %vm987_vm2, %v2148_v16  ;;  %6204 = vmatprep.mubr.msk.bf16.mxu1 %vm6822_vm0, %v11621_v24  ;;  %v11885_v40 = vpack.c.bf16 %v11883_v0, %v11884_v62  ;;  %v11892_v0 = vld [vmem:[#allocation101_spill] sm:$0xff] }
 0x256   :  { %6112 = vmatprep.mubr.msk.bf16.mxu0 %vm6822_vm0, %v11621_v24  ;;  %6297 = vmatpush3.bf16.msra.mxu0 %v6805_v56  ;;  %v11888_v56 = vld [vmem:[#allocation99_spill] sm:$0xff]  ;;  %v11893_v62 = vpack.c.bf16 %v8661_v37, %v11892_v0  ;;  %v11898_v37 = vld [vmem:[#allocation104_spill] sm:$0xff] }
 0x257   :  { %6298 = vmatprep.subr.bf16.mxu0 %v11621_v24  ;;  %v11889_v16 = vpack.c.bf16 %v8624_v35, %v11888_v56  ;;  %v11894_v35 = vld [vmem:[#allocation102_spill] sm:$0xff] }
 0x25a   :  { %6299 = vmatpush3.bf16.msra.mxu0 %v6806_v21  ;;  %v11891_v21 = vpack.c.bf16 %v8640_v61, %v11890_v46  ;;  %v11896_v61 = vld [vmem:[#allocation103_spill] sm:$0xff] }
 0x25b   :  { %6300 = vmatprep.subr.bf16.mxu0 %v11621_v24  ;;  %v11897_v41 = vpack.c.bf16 %v8698_v19, %v11896_v61  ;;  %v11900_v19 = vld [vmem:[#allocation105_spill] sm:$0xff] }
 0x25c   :  { %6205 = vmatmul.mubr.msk.bf16.vlgmr.msra.gmra.mrb[184].mxu1 %vm987_vm2, %v11885_v40  ;;  %v11895_v40 = vpack.c.bf16 %v8677_v48, %v11894_v35  ;;  %v11901_v46 = vpack.c.bf16 %v8735_v47, %v11900_v19  ;;  %v11904_v47 = vld [vmem:[#allocation107_spill] sm:$0xff] }
 0x25d   :  { %6113 = vmatmul.mubr.msk.bf16.gmra.mrb[188].mxu0 %vm987_vm2, %v11887_v34  ;;  %6208 = vmatprep.mubr.msk.bf16.mxu1 %vm6822_vm0, %v11621_v24  ;;  %v11905_v61 = vpack.c.bf16 %v8772_v55, %v11904_v47  ;;  %v11908_v55 = vld [vmem:[#allocation109_spill] sm:$0xff]  ;;  %v11912_v47 = vld [vmem:[#allocation111_spill] sm:$0xff] }
 0x25e   :  { %6116 = vmatprep.mubr.msk.bf16.mxu0 %vm6822_vm0, %v11621_v24  ;;  %6301 = vmatpush3.bf16.msra.mxu0 %v6807_v51  ;;  %v11899_v51 = vpack.c.bf16 %v8714_v45, %v11898_v37  ;;  %v11909_v19 = vpack.c.bf16 %v8809_v52, %v11908_v55 }
 0x25f   :  { %6302 = vmatprep.subr.bf16.mxu0 %v11621_v24 }
 0x264   :  { %6209 = vmatmul.mubr.msk.bf16.gmra.mrb[188].mxu1 %vm987_vm2, %v11889_v16 }
 0x265   :  { %6117 = vmatmul.mubr.msk.bf16.gmra.mrb[192].mxu0 %vm987_vm2, %v11891_v21  ;;  %6212 = vmatprep.mubr.msk.bf16.mxu1 %vm6822_vm0, %v11621_v24  ;;  %v11902_v21 = vld [vmem:[#allocation106_spill] sm:$0xff] }
 0x266   :  { %6120 = vmatprep.mubr.msk.bf16.mxu0 %vm6822_vm0, %v11621_v24  ;;  %v11903_v45 = vpack.c.bf16 %v8751_v5, %v11902_v21  ;;  %v11906_v5 = vld [vmem:[#allocation108_spill] sm:$0xff] }
 0x26c   :  { %6213 = vmatmul.mubr.msk.bf16.gmra.mrb[192].mxu1 %vm987_vm2, %v11893_v62 }
 0x26d   :  { %6121 = vmatmul.mubr.msk.bf16.gmra.mrb[196].mxu0 %vm987_vm2, %v11895_v40  ;;  %6216 = vmatprep.mubr.msk.bf16.mxu1 %vm6822_vm0, %v11621_v24 }
 0x26e   :  { %6124 = vmatprep.mubr.msk.bf16.mxu0 %vm6822_vm0, %v11621_v24 }
 0x274   :  { %6217 = vmatmul.mubr.msk.bf16.gmra.mrb[196].mxu1 %vm987_vm2, %v11897_v41  ;;  %v11907_v41 = vpack.c.bf16 %v8788_v36, %v11906_v5  ;;  %v6808_v36 = vld [vmem:[%s11305_s7 + $0x38] sm:$0xff]  }
 0x275   :  { %v9392_v34 = vpop.f32.mrb[92].mxu1  ;;  %6125 = vmatmul.mubr.msk.bf16.gmra.mrb[200].mxu0 %vm987_vm2, %v11899_v51  ;;  %6220 = vmatprep.mubr.msk.bf16.mxu1 %vm6822_vm0, %v11621_v24 }
 0x276   :  { %v6014_v48 = vpop.f32.mrb[93].mxu1  ;;  %6128 = vmatprep.mubr.msk.bf16.mxu0 %vm6822_vm0, %v11621_v24  ;;  %6303 = vmatpush3.bf16.msra.mxu0 %v6808_v36 }
 0x277   :  { %v9402_v56 = vpop.f32.mrb[94].mxu1  ;;  %6496 = vmatprep.subr.bf16.mxu0 %v11621_v24 }
 0x278   :  { %v6015_v16 = vpop.f32.mrb[95].mxu1 }
 0x27c   :  { %6221 = vmatmul.mubr.msk.bf16.gmra.mrb[200].mxu1 %vm987_vm2, %v11901_v46  ;;  %v11910_v46 = vld [vmem:[#allocation110_spill] sm:$0xff] }
 0x27d   :  { %6129 = vmatmul.mubr.msk.bf16.gmra.mrb[204].mxu0 %vm987_vm2, %v11903_v45  ;;  %6224 = vmatprep.mubr.msk.bf16.mxu1 %vm6822_vm0, %v11621_v24  ;;  %v11911_v21 = vpack.c.bf16 %v8825_v11, %v11910_v46  ;;  %v11913_v11 = vpack.c.bf16 %v8846_v32, %v11912_v47  ;;  %v11916_v32 = vld [vmem:[#allocation113_spill] sm:$0xff] }
 0x27e   :  { %v9414_v0 = vpop.f32.mrb[96].mxu1  ;;  %6132 = vmatprep.mubr.msk.bf16.mxu0 %vm6822_vm0, %v11621_v24 }
 0x27f   :  { %v6018_v62 = vpop.f32.mrb[97].mxu1 }
 0x280   :  { %v9418_v35 = vpop.f32.mrb[98].mxu1 }
 0x281   :  { %v6019_v40 = vpop.f32.mrb[99].mxu1 }
 0x284   :  { %6225 = vmatmul.mubr.msk.bf16.gmra.mrb[204].mxu1 %vm987_vm2, %v11905_v61  ;;  %v11914_v61 = vld [vmem:[#allocation112_spill] sm:$0xff] }
 0x285   :  { %6133 = vmatmul.mubr.msk.bf16.gmra.mrb[208].mxu0 %vm987_vm2, %v11907_v41  ;;  %6228 = vmatprep.mubr.msk.bf16.mxu1 %vm6822_vm0, %v11621_v24  ;;  %v11915_v5 = vpack.c.bf16 %v8862_v59, %v11914_v61  ;;  %v11918_v59 = vld [vmem:[#allocation114_spill] sm:$0xff] }
 0x286   :  { %v9430_v37 = vpop.f32.mrb[100].mxu1  ;;  %6136 = vmatprep.mubr.msk.bf16.mxu0 %vm6822_vm0, %v11621_v24  ;;  %v11919_v36 = vpack.c.bf16 %v8899_v14, %v11918_v59  ;;  %v11922_v14 = vld [vmem:[#allocation116_spill] sm:$0xff] }
 0x287   :  { %v6022_v51 = vpop.f32.mrb[101].mxu1 }
 0x288   :  { %v9434_v48 = vpop.f32.mrb[102].mxu1 }
 0x289   :  { %v6023_v16 = vpop.f32.mrb[103].mxu1 }
 0x28c   :  { %6229 = vmatmul.mubr.msk.bf16.gmra.mrb[208].mxu1 %vm987_vm2, %v11909_v19  ;;  %v11917_v19 = vpack.c.bf16 %v8883_v28, %v11916_v32  ;;  %v11920_v28 = vld [vmem:[#allocation115_spill] sm:$0xff] }
 0x28d   :  { %6137 = vmatmul.mubr.msk.bf16.gmra.mrb[212].mxu0 %vm987_vm2, %v11911_v21  ;;  %6232 = vmatprep.mubr.msk.bf16.mxu1 %vm6822_vm0, %v11621_v24  ;;  %v11921_v47 = vpack.c.bf16 %v8920_v58, %v11920_v28  ;;  %v11924_v58 = vld [vmem:[#allocation117_spill] sm:$0xff] }
 0x28e   :  { %v9449_v45 = vpop.f32.mrb[104].mxu1  ;;  %6140 = vmatprep.mubr.msk.bf16.mxu0 %vm6822_vm0, %v11621_v24  ;;  %v11925_v32 = vpack.c.bf16 %v8957_v54, %v11924_v58  ;;  %v11928_v54 = vld [vmem:[#allocation119_spill] sm:$0xff]  ;;  %v11933_v58 = vld [vmem:[#allocation121_spill] sm:$0xff] }
 0x28f   :  { %v6026_v52 = vpop.f32.mrb[105].mxu1  ;;  %v11929_v28 = vpack.c.bf16 %v8994_v31, %v11928_v54  ;;  %v11932_v31 = vld [vmem:[#allocation2_spill] sm:$0xff] }
 0x290   :  { %v9454_v62 = vpop.f32.mrb[106].mxu1 }
 0x291   :  { %v6027_v40 = vpop.f32.mrb[107].mxu1 }
 0x294   :  { %6233 = vmatmul.mubr.msk.bf16.gmra.mrb[212].mxu1 %vm987_vm2, %v11913_v11  ;;  %v11923_v11 = vpack.c.bf16 %v8936_v39, %v11922_v14  ;;  %v11926_v39 = vld [vmem:[#allocation118_spill] sm:$0xff] }
 0x295   :  { %6141 = vmatmul.mubr.msk.bf16.gmra.mrb[216].mxu0 %vm987_vm2, %v11915_v5  ;;  %6236 = vmatprep.mubr.msk.bf16.mxu1 %vm6822_vm0, %v11621_v24 }
 0x296   :  { %v9466_v41 = vpop.f32.mrb[108].mxu1  ;;  %6144 = vmatprep.mubr.msk.bf16.mxu0 %vm6822_vm0, %v11621_v24 }
 0x297   :  { %v6030_v51 = vpop.f32.mrb[109].mxu1 }
 0x298   :  { %v9470_v16 = vpop.f32.mrb[110].mxu1 }
 0x299   :  { %v6031_v55 = vpop.f32.mrb[111].mxu1 }
 0x29c   :  { %6237 = vmatmul.mubr.msk.bf16.gmra.mrb[216].mxu1 %vm987_vm2, %v11917_v19  ;;  %v11927_v19 = vpack.c.bf16 %v8973_v2, %v11926_v39  ;;  %v11930_v2 = vld [vmem:[#allocation120_spill] sm:$0xff] }
 0x29d   :  { %6145 = vmatmul.mubr.msk.bf16.gmra.mrb[220].mxu0 %vm987_vm2, %v11919_v36  ;;  %6240 = vmatprep.mubr.msk.bf16.mxu1 %vm6822_vm0, %v11621_v24 }
 0x29e   :  { %v9482_v46 = vpop.f32.mrb[112].mxu1  ;;  %6148 = vmatprep.mubr.msk.bf16.mxu0 %vm6822_vm0, %v11621_v24 }
 0x29f   :  { %v6034_v21 = vpop.f32.mrb[113].mxu1 }
 0x2a0   :  { %v9486_v52 = vpop.f32.mrb[114].mxu1 }
 0x2a1   :  { %v6035_v40 = vpop.f32.mrb[115].mxu1 }
 0x2a4   :  { %6241 = vmatmul.mubr.msk.bf16.gmra.mrb[220].mxu1 %vm987_vm2, %v11921_v47  ;;  %v11931_v47 = vpack.c.bf16 %v9010_v1, %v11930_v2  ;;  %v11935_v1 = vld [vmem:[#allocation122_spill] sm:$0xff] }
 0x2a5   :  { %6149 = vmatmul.mubr.msk.bf16.gmra.mrb[224].mxu0 %vm987_vm2, %v11923_v11  ;;  %6244 = vmatprep.mubr.msk.bf16.mxu1 %vm6822_vm0, %v11621_v24  ;;  %v11936_v39 = vpack.c.bf16 %v9047_v49, %v11935_v1  ;;  %v11939_v49 = vld [vmem:[#allocation124_spill] sm:$0xff]  ;;  %v11942_v1 = vpack.c.bf16 %v9101_v42, %v9094_v7  ;;  %v11946_v42 = vpack.c.bf16 %v9132_v23, %v9125_v18  ;;  %v11951_v23 = vld [vmem:[#allocation129_spill] sm:$0xff] }
 0x2a6   :  { %v9498_v61 = vpop.f32.mrb[116].mxu1  ;;  %6152 = vmatprep.mubr.msk.bf16.mxu0 %vm6822_vm0, %v11621_v24  ;;  %v11947_v7 = vld [vmem:[#allocation128_spill] sm:$0xff]  ;;  %v11950_v18 = vpack.c.bf16 %v9163_v4, %v9156_v57 }
 0x2a7   :  { %v6038_v5 = vpop.f32.mrb[117].mxu1  ;;  %v11953_v57 = vld [vmem:[#allocation132_spill] sm:$0xff] }
 0x2a8   :  { %v9502_v51 = vpop.f32.mrb[118].mxu1  ;;  %v11954_v4 = vpack.c.bf16 %v9205_v53, %v11953_v57  ;;  %v11958_v53 = vpack.c.bf16 %v9222_v30, %v9219_v33  ;;  %v11960_v33 = vpack.c.bf16 %v9254_v13, %v9251_v38  ;;  %v11961_v30 = vld [vmem:[#allocation134_spill] sm:$0xff] }
 0x2a9   :  { %v6039_v55 = vpop.f32.mrb[119].mxu1 }
 0x2ac   :  { %6245 = vmatmul.mubr.msk.bf16.gmra.mrb[224].mxu1 %vm987_vm2, %v11925_v32  ;;  %v11934_v32 = vpack.c.bf16 %v11932_v31, %v11933_v58 }
 0x2ad   :  { %6153 = vmatmul.mubr.msk.bf16.gmra.mrb[228].mxu0 %vm987_vm2, %v11927_v19  ;;  %6248 = vmatprep.mubr.msk.bf16.mxu1 %vm6822_vm0, %v11621_v24 }
 0x2ae   :  { %v9514_v59 = vpop.f32.mrb[120].mxu1  ;;  %6156 = vmatprep.mubr.msk.bf16.mxu0 %vm6822_vm0, %v11621_v24 }
 0x2af   :  { %v6042_v36 = vpop.f32.mrb[121].mxu1 }
 0x2b0   :  { %v9518_v21 = vpop.f32.mrb[122].mxu1 }
 0x2b1   :  { %v6043_v40 = vpop.f32.mrb[123].mxu1 }
 0x2b4   :  { %6249 = vmatmul.mubr.msk.bf16.gmra.mrb[228].mxu1 %vm987_vm2, %v11929_v28  ;;  %v11937_v28 = vld [vmem:[#allocation71_spill] sm:$0xff] }
 0x2b5   :  { %6157 = vmatmul.mubr.msk.bf16.gmra.mrb[232].mxu0 %vm987_vm2, %v11931_v47  ;;  %6252 = vmatprep.mubr.msk.bf16.mxu1 %vm6822_vm0, %v11621_v24  ;;  %v11938_v2 = vpack.c.bf16 %v9070_v10, %v11937_v28  ;;  %v11940_v47 = vld [vmem:[#allocation123_spill] sm:$0xff] }
 0x2b6   :  { %v9530_v14 = vpop.f32.mrb[124].mxu1  ;;  %6160 = vmatprep.mubr.msk.bf16.mxu0 %vm6822_vm0, %v11621_v24 }
 0x2b7   :  { %v6046_v11 = vpop.f32.mrb[125].mxu1 }
 0x2b8   :  { %v9534_v5 = vpop.f32.mrb[126].mxu1  ;;  %v11941_v11 = vpack.c.bf16 %v11939_v49, %v11940_v47 }
 0x2b9   :  { %v6047_v55 = vpop.f32.mrb[127].mxu1 }
 0x2ba   :  { %v6809_v55 = vld [vmem:[%s11305_s7] sm:$0xff]  }
 0x2bb   :  { %6397 = vmatpush3.bf16.msra.mxu1 %v6809_v55 }
 0x2bc   :  { %6253 = vmatmul.mubr.msk.bf16.gmra.mrb[232].mxu1 %vm987_vm2, %v11934_v32  ;;  %6398 = vmatprep.subr.bf16.mxu1 %v11621_v24 }
 0x2bd   :  { %6161 = vmatmul.mubr.msk.bf16.gmra.mrb[236].mxu0 %vm987_vm2, %v11936_v39  ;;  %6256 = vmatprep.mubr.msk.bf16.mxu1 %vm6822_vm0, %v11621_v24  ;;  %v11943_v39 = vld [vmem:[#allocation126_spill] sm:$0xff] }
 0x2be   :  { %v9546_v19 = vpop.f32.mrb[128].mxu1  ;;  %6164 = vmatprep.mubr.msk.bf16.mxu0 %vm6822_vm0, %v11621_v24 }
 0x2bf   :  { %v6050_v36 = vpop.f32.mrb[129].mxu1 }
 0x2c0   :  { %v9550_v40 = vpop.f32.mrb[130].mxu1  ;;  %v11944_v36 = vld [vmem:[#allocation125_spill] sm:$0xff] }
 0x2c1   :  { %v6051_v54 = vpop.f32.mrb[131].mxu1 }
 0x2c2   :  { %v11945_v54 = vpack.c.bf16 %v11943_v39, %v11944_v36  ;;  %v11952_v36 = vpack.c.bf16 %v9172_v26, %v11951_v23  ;;  %v11955_v26 = vld [vmem:[#allocation131_spill] sm:$0xff]  ;;  %v11959_v23 = vpack.c.bf16 %v9236_v44, %v9231_v29  ;;  %v11962_v44 = vld [vmem:[#allocation133_spill] sm:$0xff] }
 0x2c3   :  { %v6811_v29 = vld [vmem:[%s11305_s7 + $0x8] sm:$0xff]  }
 0x2c4   :  { %6257 = vmatmul.mubr.msk.bf16.gmra.mrb[236].mxu1 %vm987_vm2, %v11938_v2 }
 0x2c5   :  { %6165 = vmatmul.mubr.msk.bf16.gmra.mrb[240].mxu0 %vm987_vm2, %v11941_v11  ;;  %6260 = vmatprep.mubr.msk.bf16.mxu1 %vm6822_vm0, %v11621_v24  ;;  %v11948_v11 = vld [vmem:[#allocation127_spill] sm:$0xff] }
 0x2c6   :  { %v9565_v31 = vpop.f32.mrb[132].mxu1  ;;  %6168 = vmatprep.mubr.msk.bf16.mxu0 %vm6822_vm0, %v11621_v24  ;;  %v11949_v55 = vpack.c.bf16 %v11947_v7, %v11948_v11  ;;  %v11956_v7 = vld [vmem:[#allocation130_spill] sm:$0xff]  ;;  %6399 = vmatpush3.bf16.msra.mxu1 %v6811_v29 }
 0x2c7   :  { %v6054_v10 = vpop.f32.mrb[133].mxu1  ;;  %v11957_v11 = vpack.c.bf16 %v11955_v26, %v11956_v7  ;;  %6400 = vmatprep.subr.bf16.mxu1 %v11621_v24 }
 0x2c8   :  { %v9569_v58 = vpop.f32.mrb[134].mxu1 }
 0x2c9   :  { %v6055_v32 = vpop.f32.mrb[135].mxu1 }
 0x2cc   :  { %6261 = vmatmul.mubr.msk.bf16.gmra.mrb[240].mxu1 %vm987_vm2, %v11942_v1 }
 0x2cd   :  { %6169 = vmatmul.mubr.msk.bf16.gmra.mrb[244].mxu0 %vm987_vm2, %v11945_v54  ;;  %6264 = vmatprep.mubr.msk.bf16.mxu1 %vm6822_vm0, %v11621_v24 }
 0x2ce   :  { %v9582_v28 = vpop.f32.mrb[136].mxu1  ;;  %6172 = vmatprep.mubr.msk.bf16.mxu0 %vm6822_vm0, %v11621_v24 }
 0x2cf   :  { %v6058_v2 = vpop.f32.mrb[137].mxu1 }
 0x2d0   :  { %v9586_v49 = vpop.f32.mrb[138].mxu1 }
 0x2d1   :  { %v6059_v47 = vpop.f32.mrb[139].mxu1 }
 0x2d4   :  { %6265 = vmatmul.mubr.msk.bf16.gmra.mrb[244].mxu1 %vm987_vm2, %v11946_v42 }
 0x2d5   :  { %6173 = vmatmul.mubr.msk.bf16.gmra.mrb[248].mxu0 %vm987_vm2, %v11949_v55  ;;  %6268 = vmatprep.mubr.msk.bf16.mxu1 %vm6822_vm0, %v11621_v24 }
 0x2d6   :  { %v9598_v10 = vpop.f32.mrb[140].mxu1  ;;  %6176 = vmatprep.mubr.msk.bf16.mxu0 %vm6822_vm0, %v11621_v24 }
 0x2d7   :  { %v6062_v32 = vpop.f32.mrb[141].mxu1 }
 0x2d8   :  { %v9602_v1 = vpop.f32.mrb[142].mxu1 }
 0x2d9   :  { %v6063_v39 = vpop.f32.mrb[143].mxu1 }
 0x2dc   :  { %6269 = vmatmul.mubr.msk.bf16.gmra.mrb[248].mxu1 %vm987_vm2, %v11950_v18 }
 0x2dd   :  { %6177 = vmatmul.mubr.msk.bf16.gmra.mrb[252].mxu0 %vm987_vm2, %v11952_v36  ;;  %6272 = vmatprep.mubr.msk.bf16.mxu1 %vm6822_vm0, %v11621_v24 }
 0x2de   :  { %v9614_v54 = vpop.f32.mrb[144].mxu1  ;;  %6180 = vmatprep.mubr.msk.bf16.mxu0 %vm6822_vm0, %v11621_v24 }
 0x2df   :  { %v6066_v2 = vpop.f32.mrb[145].mxu1 }
 0x2e0   :  { %v9618_v47 = vpop.f32.mrb[146].mxu1 }
 0x2e1   :  { %v6067_v42 = vpop.f32.mrb[147].mxu1 }
 0x2e4   :  { %6273 = vmatmul.mubr.msk.bf16.gmra.mrb[252].mxu1 %vm987_vm2, %v11954_v4  ;;  %v11963_v4 = vpack.c.bf16 %v11961_v30, %v11962_v44 }
 0x2e5   :  { %6181 = vmatmul.mubr.msk.bf16.gmra.mrb[0].mxu0 %vm987_vm2, %v11957_v11  ;;  %6276 = vmatprep.mubr.msk.bf16.mxu1 %vm6822_vm0, %v11621_v24  ;;  %v11964_v11 = vpack.c.bf16 %v9285_v20, %v9282_v25 }
 0x2e6   :  { %v9630_v55 = vpop.f32.mrb[148].mxu1  ;;  %6184 = vmatprep.mubr.msk.bf16.mxu0 %vm6822_vm0, %v11621_v24 }
 0x2e7   :  { %v6070_v32 = vpop.f32.mrb[149].mxu1 }
 0x2e8   :  { %v9634_v39 = vpop.f32.mrb[150].mxu1  ;;  %v11965_v32 = vpack.c.bf16 %v9298_v63, %v9293_v3 }
 0x2e9   :  { %v6071_v18 = vpop.f32.mrb[151].mxu1 }
 0x2ec   :  { %6277 = vmatmul.mubr.msk.bf16.gmra.mrb[0].mxu1 %vm987_vm2, %v11958_v53  ;;  %v11966_v53 = vld [vmem:[#allocation95_spill] sm:$0xff] }
 0x2ed   :  { %6185 = vmatmul.mubr.msk.bf16.gmra.mrb[4].mxu0 %vm987_vm2, %v11959_v23  ;;  %6280 = vmatprep.mubr.msk.bf16.mxu1 %vm6822_vm0, %v11621_v24  ;;  %v2147_v23 = vmul.f32 %v9311_v22, %v11966_v53  ;;  %v11969_v22 = vld [vmem:[#allocation97_spill] sm:$0xff] }
 0x2ee   :  { %v9646_v36 = vpop.f32.mrb[152].mxu1  ;;  %6188 = vmatprep.mubr.msk.bf16.mxu0 %vm6822_vm0, %v11621_v24 }
 0x2ef   :  { %v6074_v2 = vpop.f32.mrb[153].mxu1 }
 0x2f0   :  { %v9650_v42 = vpop.f32.mrb[154].mxu1 }
 0x2f1   :  { %v6075_v57 = vpop.f32.mrb[155].mxu1 }
 0x2f2   :  { %v2170_v57 = vpack.c.bf16 %v2147_v23, %v2147_v23 }
 0x2f4   :  { %6281 = vmatmul.mubr.msk.bf16.gmra.mrb[4].mxu1 %vm987_vm2, %v11960_v33  ;;  %v11967_v33 = vld [vmem:[#allocation72_spill] sm:$0xff] }
 0x2f5   :  { %6189 = vmatmul.mubr.msk.bf16.gmra.mrb[8].mxu0 %vm987_vm2, %v11963_v4  ;;  %6284 = vmatprep.mubr.msk.bf16.mxu1 %vm6822_vm0, %v11621_v24  ;;  %v11968_v63 = vrot.slane %v11967_v33, 1 }
 0x2f6   :  { %v9665_v26 = vpop.f32.mrb[156].mxu1  ;;  %6192 = vmatprep.mubr.msk.bf16.mxu0 %vm6822_vm0, %v11621_v24 }
 0x2f7   :  { %v6078_v38 = vpop.f32.mrb[157].mxu1  ;;  %v2260_v3 = vsel %vm605_vm3, %v2215_v27, %v11968_v63 }
 0x2f8   :  { %v9670_v13 = vpop.f32.mrb[158].mxu1  ;;  %v2305_v29 = vmul.f32 %v2260_v3, %v11969_v22 }
 0x2f9   :  { %v6079_v7 = vpop.f32.mrb[159].mxu1 }
 0x2fa   :  { %v2328_v4 = vpack.c.bf16 %v2305_v29, %v2305_v29 }
 0x2fc   :  { %6285 = vmatmul.mubr.msk.bf16.gmra.mrb[8].mxu1 %vm987_vm2, %v11964_v11 }
 0x2fd   :  { %6193 = vmatmul.mubr.msk.bf16.gmra.mrb[12].mxu0 %vm987_vm2, %v11965_v32  ;;  %6288 = vmatprep.mubr.msk.bf16.mxu1 %vm6822_vm0, %v11621_v24 }
 0x2fe   :  { %v9682_v18 = vpop.f32.mrb[160].mxu1  ;;  %6196 = vmatprep.mubr.msk.bf16.mxu0 %vm6822_vm0, %v11621_v24 }
 0x2ff   :  { %v6082_v2 = vpop.f32.mrb[161].mxu1 }
 0x300   :  { %v9688_v20 = vpop.f32.mrb[162].mxu1  ;;  %v6813_v2 = vld [vmem:[%s11305_s7 + $0x10] sm:$0xff]  }
 0x301   :  { %v6083_v25 = vpop.f32.mrb[163].mxu1  ;;  %6401 = vmatpush3.bf16.msra.mxu1 %v6813_v2  ;;  %v9736_v2 = vld [vmem:[%s11306_s6] ss:$0 sm:$0xff] }
 0x302   :  { %6402 = vmatprep.subr.bf16.mxu1 %v11621_v24 }
 0x304   :  { %6289 = vmatmul.mubr.msk.bf16.gmra.mrb[12].mxu1 %vm987_vm2, %v2327_v15 }
 0x305   :  { %6197 = vmatmul.mubr.msk.bf16.gmra.mrb[16].mxu0 %vm987_vm2, %v2170_v57  ;;  %6292 = vmatprep.mubr.msk.bf16.mxu1 %vm6822_vm0, %v11621_v24 }
 0x306   :  { %v9704_v30 = vpop.f32.mrb[164].mxu1  ;;  %6304 = vmatprep.mubr.msk.bf16.mxu0 %vm6822_vm0, %v11621_v24 }
 0x307   :  { %v6086_v43 = vpop.f32.mrb[165].mxu1 }
 0x308   :  { %v9708_v44 = vpop.f32.mrb[166].mxu1 }
 0x309   :  { %v6087_v27 = vpop.f32.mrb[167].mxu1 }
 0x30c   :  { %6293 = vmatmul.mubr.msk.bf16.gmra.mrb[16].mxu1 %vm987_vm2, %v2328_v4 }
 0x30d   :  { %6404 = vmatprep.mubr.msk.bf16.mxu1 %vm6822_vm0, %v11621_v24 }
 0x30e   :  { %v9713_v50 = vpop.f32.mrb[168].mxu1 }
 0x30f   :  { %v6090_v17 = vpop.f32.mrb[169].mxu1 }
 0x310   :  { %v9715_v15 = vpop.f32.mrb[170].mxu1 }
 0x311   :  { %11970 = vst [vmem:[#allocation77_spill] sm:$0xff] %v9715_v15  ;;  %v6091_v38 = vpop.f32.mrb[171].mxu1 }
 0x316   :  { %v9717_v7 = vpop.f32.mrb[172].mxu1 }
 0x317   :  { %11971 = vst [vmem:[#allocation83_spill] sm:$0xff] %v9717_v7  ;;  %v6094_v11 = vpop.f32.mrb[173].mxu1 }
 0x318   :  { %v9719_v32 = vpop.f32.mrb[174].mxu1 }
 0x319   :  { %11972 = vst [vmem:[#allocation82_spill] sm:$0xff] %v9719_v32  ;;  %v6095_v23 = vpop.f32.mrb[175].mxu1 }
 0x31f   :  { %v9724_v25 = vpop.f32.mrb[176].mxu1 }
 0x320   :  { %11973 = vst [vmem:[#allocation98_spill] sm:$0xff] %v9724_v25  ;;  %v6098_v57 = vpop.f32.mrb[177].mxu1 }
 0x321   :  { %v9726_v33 = vpop.f32.mrb[178].mxu1 }
 0x322   :  { %11974 = vst [vmem:[#allocation99_spill] sm:$0xff] %v9726_v33  ;;  %v6099_v63 = vpop.f32.mrb[179].mxu1 }
 0x327   :  { %v9729_v3 = vpop.f32.mrb[180].mxu1 }
 0x328   :  { %11975 = vst [vmem:[#allocation100_spill] sm:$0xff] %v9729_v3  ;;  %v6102_v29 = vpop.f32.mrb[181].mxu1  ;;  %v2772_v43 = vpop.f32.mrb[184].mxu0 }
 0x329   :  { %v2654_v27 = vpop.f32.mrb[182].mxu1  ;;  %v2773_v4 = vadd.f32 %v2772_v43, %v9392_v34  ;;  %v6110_v17 = vpop.f32.mrb[185].mxu0 }
 0x32a   :  { %v6103_v38 = vpop.f32.mrb[183].mxu1  ;;  %v2775_v11 = vpop.f32.mrb[186].mxu0 }
 0x32b   :  { %v2776_v23 = vadd.f32 %v2775_v11, %v9402_v56  ;;  %v6111_v22 = vpop.f32.mrb[187].mxu0 }
 0x32f   :  { %v3073_v57 = vpop.f32.mrb[184].mxu1 }
 0x330   :  { %v3255_v63 = vadd.f32 %v3073_v57, %v2773_v4  ;;  %v6206_v53 = vpop.f32.mrb[185].mxu1  ;;  %v2780_v9 = vpop.f32.mrb[188].mxu0 }
 0x331   :  { %v3076_v29 = vpop.f32.mrb[186].mxu1  ;;  %v2781_v27 = vadd.f32 %v2780_v9, %v9414_v0  ;;  %v6114_v12 = vpop.f32.mrb[189].mxu0  ;;  %v6810_v9 = vld [vmem:[%s11305_s7 + $0x40] sm:$0xff]  }
 0x332   :  { %v3307_v34 = vadd.f32 %v9736_v2, %v3255_v63  ;;  %v3256_v43 = vadd.f32 %v3076_v29, %v2776_v23  ;;  %v6207_v17 = vpop.f32.mrb[187].mxu1  ;;  %v2783_v38 = vpop.f32.mrb[190].mxu0 }
 0x333   :  { %v2784_v56 = vadd.f32 %v2783_v38, %v9418_v35  ;;  %v6115_v22 = vpop.f32.mrb[191].mxu0 }
 0x334   :  { %v9741_v11 = vmax.f32 %v3307_v34, 0.0  ;;  %v3308_v6 = vadd.f32 %v9736_v2, %v3256_v43 }
 0x336   :  { %11976 = vst [vmem:[#allocation101_spill] sm:$0xff] %v9741_v11  ;;  %v3353_v60 = vmax.f32 %v3308_v6, 0.0  ;;  %v11559_v12 = vrot.slane %v9741_v11, 7 }
 0x337   :  { %v3081_v4 = vpop.f32.mrb[188].mxu1 }
 0x338   :  { %v3398_v0 = vrot.slane %v3353_v60, 7  ;;  %v3721_v53 = vpack.c.bf16 %v3353_v60, %v9741_v11  ;;  %v3257_v23 = vadd.f32 %v3081_v4, %v2781_v27  ;;  %v6210_v57 = vpop.f32.mrb[189].mxu1  ;;  %v2788_v35 = vpop.f32.mrb[192].mxu0  ;;  %v3556_v43 = vrot.slane %v3353_v60, 1 }
 0x339   :  { %v3084_v63 = vpop.f32.mrb[190].mxu1  ;;  %v2789_v29 = vadd.f32 %v2788_v35, %v9430_v37  ;;  %v6118_v34 = vpop.f32.mrb[193].mxu0  ;;  %v6812_v37 = vld [vmem:[%s11305_s7 + $0x48] sm:$0xff]   ;;  %v11558_v60 = vrot.slane %v9741_v11, 1 }
 0x33a   :  { %v9754_v6 = vsel %vm221_vm1, %v11559_v12, %v3398_v0  ;;  %v3309_v17 = vadd.f32 %v9736_v2, %v3257_v23  ;;  %v3258_v38 = vadd.f32 %v3084_v63, %v2784_v56  ;;  %v6211_v22 = vpop.f32.mrb[191].mxu1  ;;  %6305 = vmatmul.mubr.msk.bf16.vlgmr.msra.gmra.mrb[20].mxu0 %vm3776_vm4, %v3721_v53  ;;  %v2791_v27 = vpop.f32.mrb[194].mxu0  ;;  %v11978_v12 = vld [vmem:[#allocation11_spill] sm:$0xff] }
 0x33b   :  { %11977 = vst [vmem:[#allocation102_spill] sm:$0xff] %v9754_v6  ;;  %6497 = vmatpush3.bf16.msra.mxu0 %v6810_v9  ;;  %v2792_v4 = vadd.f32 %v2791_v27, %v9434_v48  ;;  %v6119_v57 = vpop.f32.mrb[195].mxu0  ;;  %6308 = vmatprep.mubr.msk.bf16.mxu0 %vm6822_vm0, %v11621_v24  ;;  %v3643_v48 = vsel %vm605_vm3, %v11558_v60, %v3556_v43  ;;  %v6814_v60 = vld [vmem:[%s11305_s7 + $0x50] sm:$0xff]  }
 0x33c   :  { %v3354_v35 = vmax.f32 %v3309_v17, 0.0  ;;  %v3310_v56 = vadd.f32 %v9736_v2, %v3258_v38  ;;  %6498 = vmatprep.subr.bf16.mxu0 %v11621_v24 }
 0x33e   :  { %v3399_v9 = vrot.slane %v3354_v35, 7  ;;  %v3557_v53 = vrot.slane %v3354_v35, 1  ;;  %v3355_v23 = vmax.f32 %v3310_v56, 0.0  ;;  %v9780_v56 = vmul.f32 %v3643_v48, %v11978_v12  ;;  %v11980_v12 = vld [vmem:[#allocation16_spill] sm:$0xff] }
 0x33f   :  { %v3089_v63 = vpop.f32.mrb[192].mxu1  ;;  %6499 = vmatpush3.bf16.msra.mxu0 %v6812_v37  ;;  %v11979_v37 = vld [vmem:[#allocation13_spill] sm:$0xff] }
 0x340   :  { %v3484_v34 = vsel %vm221_vm1, %v3398_v0, %v3399_v9  ;;  %v3642_v17 = vsel %vm605_vm3, %v3556_v43, %v3557_v53  ;;  %v3400_v22 = vrot.slane %v3355_v23, 7  ;;  %v3558_v38 = vrot.slane %v3355_v23, 1  ;;  %v6214_v27 = vpop.f32.mrb[193].mxu1  ;;  %v2796_v57 = vpop.f32.mrb[196].mxu0  ;;  %6500 = vmatprep.subr.bf16.mxu0 %v11621_v24 }
 0x341   :  { %v9783_v11 = vmul.f32 %v3642_v17, %v11979_v37  ;;  %v3722_v0 = vpack.c.bf16 %v3355_v23, %v3354_v35  ;;  %v3259_v6 = vadd.f32 %v3089_v63, %v2789_v29  ;;  %v3092_v3 = vpop.f32.mrb[194].mxu1  ;;  %v6122_v43 = vpop.f32.mrb[197].mxu0  ;;  %v2797_v32 = vadd.f32 %v2796_v57, %v9449_v45  ;;  %v11981_v29 = vld [vmem:[#allocation15_spill] sm:$0xff] }
 0x342   :  { %v3483_v27 = vsel %vm221_vm1, %v3399_v9, %v3400_v22  ;;  %v3641_v33 = vsel %vm605_vm3, %v3557_v53, %v3558_v38  ;;  %v3260_v25 = vadd.f32 %v3092_v3, %v2792_v4  ;;  %v6215_v7 = vpop.f32.mrb[195].mxu1  ;;  %v2799_v15 = vpop.f32.mrb[198].mxu0  ;;  %v9791_v48 = vmul.f32 %v3484_v34, %v11980_v12 }
 0x343   :  { %v9796_v23 = vmul.f32 %v3483_v27, %v11981_v29  ;;  %v3311_v63 = vadd.f32 %v9736_v2, %v3259_v6  ;;  %6309 = vmatmul.mubr.msk.bf16.gmra.mrb[24].mxu0 %vm3776_vm4, %v3722_v0  ;;  %v6123_v9 = vpop.f32.mrb[199].mxu0  ;;  %v2800_v45 = vadd.f32 %v2799_v15, %v9454_v62 }
 0x344   :  { %v3312_v3 = vadd.f32 %v9736_v2, %v3260_v25  ;;  %6312 = vmatprep.mubr.msk.bf16.mxu0 %vm6822_vm0, %v11621_v24  ;;  %6501 = vmatpush3.bf16.msra.mxu0 %v6814_v60 }
 0x345   :  { %v3356_v4 = vmax.f32 %v3311_v63, 0.0  ;;  %6502 = vmatprep.subr.bf16.mxu0 %v11621_v24  ;;  %v11982_v63 = vld [vmem:[#allocation18_spill] sm:$0xff] }
 0x346   :  { %v3357_v53 = vmax.f32 %v3312_v3, 0.0  ;;  %v9813_v9 = vmul.f32 %v3641_v33, %v11982_v63  ;;  %v11983_v3 = vld [vmem:[#allocation17_spill] sm:$0xff] }
 0x347   :  { %v3401_v34 = vrot.slane %v3356_v4, 7  ;;  %v3559_v6 = vrot.slane %v3356_v4, 1  ;;  %v3097_v17 = vpop.f32.mrb[196].mxu1 }
 0x348   :  { %v3402_v57 = vrot.slane %v3357_v53, 7  ;;  %v3560_v37 = vrot.slane %v3357_v53, 1  ;;  %v3723_v0 = vpack.c.bf16 %v3357_v53, %v3356_v4  ;;  %v3261_v25 = vadd.f32 %v3097_v17, %v2797_v32  ;;  %v6218_v43 = vpop.f32.mrb[197].mxu1  ;;  %v2804_v62 = vpop.f32.mrb[200].mxu0  ;;  %v11984_v17 = vld [vmem:[#allocation20_spill] sm:$0xff] }
 0x349   :  { %v3482_v15 = vsel %vm221_vm1, %v3400_v22, %v3401_v34  ;;  %v3640_v60 = vsel %vm605_vm3, %v3558_v38, %v3559_v6  ;;  %v3100_v27 = vpop.f32.mrb[198].mxu1  ;;  %v2805_v12 = vadd.f32 %v2804_v62, %v9466_v41  ;;  %v6126_v29 = vpop.f32.mrb[201].mxu0  ;;  %v11986_v43 = vld [vmem:[#allocation19_spill] sm:$0xff] }
 0x34a   :  { %v9816_v7 = vmul.f32 %v3640_v60, %v11983_v3  ;;  %v3481_v32 = vsel %vm221_vm1, %v3401_v34, %v3402_v57  ;;  %v3639_v4 = vsel %vm605_vm3, %v3559_v6, %v3560_v37  ;;  %v6219_v22 = vpop.f32.mrb[199].mxu1  ;;  %v2807_v53 = vpop.f32.mrb[202].mxu0  ;;  %v9823_v38 = vmul.f32 %v3482_v15, %v11984_v17  ;;  %v11988_v34 = vld [vmem:[#allocation22_spill] sm:$0xff] }
 0x34b   :  { %v9826_v41 = vmul.f32 %v3481_v32, %v11986_v43  ;;  %v3313_v33 = vadd.f32 %v9736_v2, %v3261_v25  ;;  %v3262_v62 = vadd.f32 %v3100_v27, %v2800_v45  ;;  %6313 = vmatmul.mubr.msk.bf16.gmra.mrb[28].mxu0 %vm3776_vm4, %v3723_v0  ;;  %v6127_v60 = vpop.f32.mrb[203].mxu0  ;;  %v2808_v29 = vadd.f32 %v2807_v53, %v9470_v16  ;;  %v6815_v45 = vld [vmem:[%s11305_s7 + $0x18] sm:$0xff]  }
 0x34c   :  { %11985 = vst [vmem:[#allocation103_spill] sm:$0xff] %v9823_v38  ;;  %6316 = vmatprep.mubr.msk.bf16.mxu0 %vm6822_vm0, %v11621_v24  ;;  %v6816_v0 = vld [vmem:[%s11305_s7 + $0x58] sm:$0xff]   ;;  %6403 = vmatpush3.bf16.msra.mxu1 %v6815_v45  ;;  %v9849_v35 = vmul.f32 %v3639_v4, %v11988_v34  ;;  %v11990_v4 = vld [vmem:[#allocation24_spill] sm:$0xff] }
 0x34d   :  { %11987 = vst [vmem:[#allocation104_spill] sm:$0xff] %v9826_v41  ;;  %v3358_v15 = vmax.f32 %v3313_v33, 0.0  ;;  %v3314_v63 = vadd.f32 %v9736_v2, %v3262_v62  ;;  %6503 = vmatpush3.bf16.msra.mxu0 %v6816_v0 }
 0x34f   :  { %v3403_v25 = vrot.slane %v3358_v15, 7  ;;  %v3561_v27 = vrot.slane %v3358_v15, 1  ;;  %v3359_v16 = vmax.f32 %v3314_v63, 0.0  ;;  %v3105_v3 = vpop.f32.mrb[200].mxu1  ;;  %v11989_v63 = vld [vmem:[#allocation21_spill] sm:$0xff] }
 0x350   :  { %v3263_v32 = vadd.f32 %v3105_v3, %v2805_v12  ;;  %v6222_v22 = vpop.f32.mrb[201].mxu1  ;;  %v2812_v53 = vpop.f32.mrb[204].mxu0 }
 0x351   :  { %v3480_v17 = vsel %vm221_vm1, %v3402_v57, %v3403_v25  ;;  %v3638_v43 = vsel %vm605_vm3, %v3560_v37, %v3561_v27  ;;  %v3404_v33 = vrot.slane %v3359_v16, 7  ;;  %v3562_v62 = vrot.slane %v3359_v16, 1  ;;  %v3108_v60 = vpop.f32.mrb[202].mxu1  ;;  %v6130_v6 = vpop.f32.mrb[205].mxu0 }
 0x352   :  { %v9852_v38 = vmul.f32 %v3638_v43, %v11989_v63  ;;  %v3724_v45 = vpack.c.bf16 %v3359_v16, %v3358_v15  ;;  %v3315_v12 = vadd.f32 %v9736_v2, %v3263_v32  ;;  %v6223_v0 = vpop.f32.mrb[203].mxu1  ;;  %v2815_v3 = vpop.f32.mrb[206].mxu0  ;;  %v3264_v22 = vadd.f32 %v3108_v60, %v2808_v29  ;;  %v11992_v16 = vld [vmem:[#allocation23_spill] sm:$0xff] }
 0x353   :  { %v3479_v57 = vsel %vm221_vm1, %v3403_v25, %v3404_v33  ;;  %v3637_v37 = vsel %vm605_vm3, %v3561_v27, %v3562_v62  ;;  %v2813_v6 = vadd.f32 %v2812_v53, %v9482_v46  ;;  %v6131_v41 = vpop.f32.mrb[207].mxu0  ;;  %v9861_v34 = vmul.f32 %v3480_v17, %v11990_v4 }
 0x354   :  { %v9866_v32 = vmul.f32 %v3479_v57, %v11992_v16  ;;  %v3360_v43 = vmax.f32 %v3315_v12, 0.0  ;;  %6317 = vmatmul.mubr.msk.bf16.gmra.mrb[32].mxu0 %vm3776_vm4, %v3724_v45  ;;  %v3316_v25 = vadd.f32 %v9736_v2, %v3264_v22  ;;  %v2816_v27 = vadd.f32 %v2815_v3, %v9486_v52  ;;  %v11994_v52 = vld [vmem:[#allocation26_spill] sm:$0xff]  ;;  %v11996_v57 = vld [vmem:[#allocation25_spill] sm:$0xff] }
 0x355   :  { %11991 = vst [vmem:[#allocation105_spill] sm:$0xff] %v9861_v34  ;;  %6320 = vmatprep.mubr.msk.bf16.mxu0 %vm6822_vm0, %v11621_v24  ;;  %v9880_v3 = vmul.f32 %v3637_v37, %v11994_v52 }
 0x356   :  { %11993 = vst [vmem:[#allocation106_spill] sm:$0xff] %v9866_v32  ;;  %v3405_v41 = vrot.slane %v3360_v43, 7  ;;  %v3563_v29 = vrot.slane %v3360_v43, 1  ;;  %v3361_v53 = vmax.f32 %v3316_v25, 0.0 }
 0x357   :  { %v3113_v17 = vpop.f32.mrb[204].mxu1  ;;  %11995 = vst [vmem:[#allocation107_spill] sm:$0xff] %v9880_v3 }
 0x358   :  { %v3478_v60 = vsel %vm221_vm1, %v3404_v33, %v3405_v41  ;;  %v3636_v63 = vsel %vm605_vm3, %v3562_v62, %v3563_v29  ;;  %v3265_v45 = vadd.f32 %v3113_v17, %v2813_v6  ;;  %v6226_v12 = vpop.f32.mrb[205].mxu1  ;;  %v2820_v0 = vpop.f32.mrb[208].mxu0  ;;  %v3406_v4 = vrot.slane %v3361_v53, 7 }
 0x359   :  { %v9883_v22 = vmul.f32 %v3636_v63, %v11996_v57  ;;  %v3564_v16 = vrot.slane %v3361_v53, 1  ;;  %v3116_v46 = vpop.f32.mrb[206].mxu1  ;;  %v6134_v25 = vpop.f32.mrb[209].mxu0  ;;  %v3725_v15 = vpack.c.bf16 %v3361_v53, %v3360_v43  ;;  %v2821_v32 = vadd.f32 %v2820_v0, %v9498_v61  ;;  %v11997_v43 = vld [vmem:[#allocation28_spill] sm:$0xff] }
 0x35a   :  { %v3317_v34 = vadd.f32 %v9736_v2, %v3265_v45  ;;  %v3266_v33 = vadd.f32 %v3116_v46, %v2816_v27  ;;  %v6227_v62 = vpop.f32.mrb[207].mxu1  ;;  %v2823_v6 = vpop.f32.mrb[210].mxu0  ;;  %v3477_v37 = vsel %vm221_vm1, %v3405_v41, %v3406_v4  ;;  %v9895_v53 = vmul.f32 %v3478_v60, %v11997_v43  ;;  %v11999_v27 = vld [vmem:[#allocation27_spill] sm:$0xff] }
 0x35b   :  { %v3635_v63 = vsel %vm605_vm3, %v3563_v29, %v3564_v16  ;;  %v2824_v12 = vadd.f32 %v2823_v6, %v9502_v51  ;;  %v6135_v52 = vpop.f32.mrb[211].mxu0  ;;  %v9898_v46 = vmul.f32 %v3477_v37, %v11999_v27  ;;  %v12001_v6 = vld [vmem:[#allocation30_spill] sm:$0xff] }
 0x35c   :  { %11998 = vst [vmem:[#allocation108_spill] sm:$0xff] %v9895_v53  ;;  %v3362_v61 = vmax.f32 %v3317_v34, 0.0  ;;  %v3318_v45 = vadd.f32 %v9736_v2, %v3266_v33  ;;  %6321 = vmatmul.mubr.msk.bf16.gmra.mrb[36].mxu0 %vm3776_vm4, %v3725_v15  ;;  %v9911_v37 = vmul.f32 %v3635_v63, %v12001_v6  ;;  %v12002_v52 = vld [vmem:[#allocation29_spill] sm:$0xff]  ;;  %v12003_v63 = vld [vmem:[#allocation32_spill] sm:$0xff] }
 0x35d   :  { %12000 = vst [vmem:[#allocation109_spill] sm:$0xff] %v9898_v46  ;;  %6324 = vmatprep.mubr.msk.bf16.mxu0 %vm6822_vm0, %v11621_v24 }
 0x35e   :  { %v3407_v29 = vrot.slane %v3362_v61, 7  ;;  %v3565_v51 = vrot.slane %v3362_v61, 1  ;;  %v3363_v0 = vmax.f32 %v3318_v45, 0.0 }
 0x35f   :  { %v3121_v57 = vpop.f32.mrb[208].mxu1 }
 0x360   :  { %v3476_v60 = vsel %vm221_vm1, %v3406_v4, %v3407_v29  ;;  %v3634_v34 = vsel %vm605_vm3, %v3564_v16, %v3565_v51  ;;  %v3408_v25 = vrot.slane %v3363_v0, 7  ;;  %v3566_v33 = vrot.slane %v3363_v0, 1  ;;  %v6230_v62 = vpop.f32.mrb[209].mxu1  ;;  %v2828_v15 = vpop.f32.mrb[212].mxu0 }
 0x361   :  { %v9914_v43 = vmul.f32 %v3634_v34, %v12002_v52  ;;  %v3726_v27 = vpack.c.bf16 %v3363_v0, %v3362_v61  ;;  %v3267_v41 = vadd.f32 %v3121_v57, %v2821_v32  ;;  %v3124_v45 = vpop.f32.mrb[210].mxu1  ;;  %v6138_v17 = vpop.f32.mrb[213].mxu0  ;;  %v2829_v62 = vadd.f32 %v2828_v15, %v9514_v59  ;;  %v12004_v32 = vld [vmem:[#allocation31_spill] sm:$0xff] }
 0x362   :  { %v3475_v4 = vsel %vm221_vm1, %v3407_v29, %v3408_v25  ;;  %v3633_v16 = vsel %vm605_vm3, %v3565_v51, %v3566_v33  ;;  %v3268_v53 = vadd.f32 %v3124_v45, %v2824_v12  ;;  %v6231_v46 = vpop.f32.mrb[211].mxu1  ;;  %v2831_v3 = vpop.f32.mrb[214].mxu0  ;;  %v9922_v6 = vmul.f32 %v3476_v60, %v12003_v63  ;;  %v12007_v12 = vld [vmem:[#allocation33_spill] sm:$0xff] }
 0x363   :  { %v9927_v0 = vmul.f32 %v3475_v4, %v12004_v32  ;;  %v3319_v17 = vadd.f32 %v9736_v2, %v3267_v41  ;;  %v6139_v29 = vpop.f32.mrb[215].mxu0  ;;  %v2832_v59 = vadd.f32 %v2831_v3, %v9518_v21 }
 0x364   :  { %v3320_v57 = vadd.f32 %v9736_v2, %v3268_v53  ;;  %6325 = vmatmul.mubr.msk.bf16.gmra.mrb[40].mxu0 %vm3776_vm4, %v3726_v27  ;;  %v12005_v29 = vld [vmem:[#allocation34_spill] sm:$0xff] }
 0x365   :  { %v3364_v46 = vmax.f32 %v3319_v17, 0.0  ;;  %6328 = vmatprep.mubr.msk.bf16.mxu0 %vm6822_vm0, %v11621_v24 }
 0x366   :  { %v3365_v51 = vmax.f32 %v3320_v57, 0.0  ;;  %v9943_v57 = vmul.f32 %v3633_v16, %v12005_v29 }
 0x367   :  { %v3409_v60 = vrot.slane %v3364_v46, 7  ;;  %v3567_v34 = vrot.slane %v3364_v46, 1  ;;  %v3129_v15 = vpop.f32.mrb[212].mxu1 }
 0x368   :  { %v3410_v52 = vrot.slane %v3365_v51, 7  ;;  %v3568_v41 = vrot.slane %v3365_v51, 1  ;;  %v3727_v45 = vpack.c.bf16 %v3365_v51, %v3364_v46  ;;  %v3269_v4 = vadd.f32 %v3129_v15, %v2829_v62  ;;  %v6234_v53 = vpop.f32.mrb[213].mxu1  ;;  %v2836_v63 = vpop.f32.mrb[216].mxu0  ;;  %12006 = vst [vmem:[#allocation110_spill] sm:$0xff] %v9943_v57  ;;  %v12008_v15 = vld [vmem:[#allocation36_spill] sm:$0xff] }
 0x369   :  { %v3474_v21 = vsel %vm221_vm1, %v3408_v25, %v3409_v60  ;;  %v3632_v3 = vsel %vm605_vm3, %v3566_v33, %v3567_v34  ;;  %v3132_v27 = vpop.f32.mrb[214].mxu1  ;;  %v2837_v32 = vadd.f32 %v2836_v63, %v9530_v14  ;;  %v6142_v17 = vpop.f32.mrb[217].mxu0  ;;  %v12010_v53 = vld [vmem:[#allocation35_spill] sm:$0xff] }
 0x36a   :  { %v9946_v61 = vmul.f32 %v3632_v3, %v12007_v12  ;;  %v3473_v62 = vsel %vm221_vm1, %v3409_v60, %v3410_v52  ;;  %v3631_v46 = vsel %vm605_vm3, %v3567_v34, %v3568_v41  ;;  %v6235_v25 = vpop.f32.mrb[215].mxu1  ;;  %v2839_v51 = vpop.f32.mrb[218].mxu0  ;;  %v9953_v33 = vmul.f32 %v3474_v21, %v12008_v15  ;;  %v12013_v12 = vld [vmem:[#allocation37_spill] sm:$0xff] }
 0x36b   :  { %v9956_v14 = vmul.f32 %v3473_v62, %v12010_v53  ;;  %v3321_v16 = vadd.f32 %v9736_v2, %v3269_v4  ;;  %v3270_v63 = vadd.f32 %v3132_v27, %v2832_v59  ;;  %v6143_v17 = vpop.f32.mrb[219].mxu0  ;;  %v2840_v60 = vadd.f32 %v2839_v51, %v9534_v5 }
 0x36c   :  { %12009 = vst [vmem:[#allocation111_spill] sm:$0xff] %v9953_v33  ;;  %6329 = vmatmul.mubr.msk.bf16.gmra.mrb[44].mxu0 %vm3776_vm4, %v3727_v45  ;;  %v12012_v17 = vld [vmem:[#allocation38_spill] sm:$0xff] }
 0x36d   :  { %12011 = vst [vmem:[#allocation112_spill] sm:$0xff] %v9956_v14  ;;  %v3366_v3 = vmax.f32 %v3321_v16, 0.0  ;;  %v3322_v21 = vadd.f32 %v9736_v2, %v3270_v63  ;;  %6332 = vmatprep.mubr.msk.bf16.mxu0 %vm6822_vm0, %v11621_v24  ;;  %v9973_v34 = vmul.f32 %v3631_v46, %v12012_v17  ;;  %v12014_v46 = vld [vmem:[#allocation40_spill] sm:$0xff] }
 0x36f   :  { %v3411_v29 = vrot.slane %v3366_v3, 7  ;;  %v3569_v4 = vrot.slane %v3366_v3, 1  ;;  %v3367_v59 = vmax.f32 %v3322_v21, 0.0  ;;  %v3137_v27 = vpop.f32.mrb[216].mxu1 }
 0x370   :  { %v3271_v62 = vadd.f32 %v3137_v27, %v2837_v32  ;;  %v6238_v25 = vpop.f32.mrb[217].mxu1  ;;  %v2844_v15 = vpop.f32.mrb[220].mxu0 }
 0x371   :  { %v3472_v45 = vsel %vm221_vm1, %v3410_v52, %v3411_v29  ;;  %v3630_v5 = vsel %vm605_vm3, %v3568_v41, %v3569_v4  ;;  %v3412_v51 = vrot.slane %v3367_v59, 7  ;;  %v3570_v53 = vrot.slane %v3367_v59, 1  ;;  %v3140_v16 = vpop.f32.mrb[218].mxu1  ;;  %v6146_v63 = vpop.f32.mrb[221].mxu0 }
 0x372   :  { %v9976_v33 = vmul.f32 %v3630_v5, %v12013_v12  ;;  %v3728_v21 = vpack.c.bf16 %v3367_v59, %v3366_v3  ;;  %v3323_v32 = vadd.f32 %v9736_v2, %v3271_v62  ;;  %v6239_v27 = vpop.f32.mrb[219].mxu1  ;;  %v2847_v25 = vpop.f32.mrb[222].mxu0  ;;  %v3272_v14 = vadd.f32 %v3140_v16, %v2840_v60  ;;  %v12016_v3 = vld [vmem:[#allocation39_spill] sm:$0xff] }
 0x373   :  { %v3471_v52 = vsel %vm221_vm1, %v3411_v29, %v3412_v51  ;;  %v3629_v41 = vsel %vm605_vm3, %v3569_v4, %v3570_v53  ;;  %v2845_v63 = vadd.f32 %v2844_v15, %v9546_v19  ;;  %v6147_v57 = vpop.f32.mrb[223].mxu0  ;;  %v9985_v17 = vmul.f32 %v3472_v45, %v12014_v46 }
 0x374   :  { %v9990_v59 = vmul.f32 %v3471_v52, %v12016_v3  ;;  %v3368_v62 = vmax.f32 %v3323_v32, 0.0  ;;  %6333 = vmatmul.mubr.msk.bf16.gmra.mrb[48].mxu0 %vm3776_vm4, %v3728_v21  ;;  %v3324_v29 = vadd.f32 %v9736_v2, %v3272_v14  ;;  %v2848_v4 = vadd.f32 %v2847_v25, %v9550_v40  ;;  %v12018_v40 = vld [vmem:[#allocation42_spill] sm:$0xff]  ;;  %v12020_v25 = vld [vmem:[#allocation41_spill] sm:$0xff] }
 0x375   :  { %12015 = vst [vmem:[#allocation113_spill] sm:$0xff] %v9985_v17  ;;  %6336 = vmatprep.mubr.msk.bf16.mxu0 %vm6822_vm0, %v11621_v24  ;;  %v10004_v27 = vmul.f32 %v3629_v41, %v12018_v40 }
 0x376   :  { %12017 = vst [vmem:[#allocation114_spill] sm:$0xff] %v9990_v59  ;;  %v3413_v57 = vrot.slane %v3368_v62, 7  ;;  %v3571_v60 = vrot.slane %v3368_v62, 1  ;;  %v3369_v15 = vmax.f32 %v3324_v29, 0.0 }
 0x377   :  { %v3145_v45 = vpop.f32.mrb[220].mxu1  ;;  %12019 = vst [vmem:[#allocation115_spill] sm:$0xff] %v10004_v27 }
 0x378   :  { %v3470_v5 = vsel %vm221_vm1, %v3412_v51, %v3413_v57  ;;  %v3628_v16 = vsel %vm605_vm3, %v3570_v53, %v3571_v60  ;;  %v3273_v21 = vadd.f32 %v3145_v45, %v2845_v63  ;;  %v6242_v14 = vpop.f32.mrb[221].mxu1  ;;  %v2852_v32 = vpop.f32.mrb[224].mxu0  ;;  %v3414_v46 = vrot.slane %v3369_v15, 7 }
 0x379   :  { %v10007_v52 = vmul.f32 %v3628_v16, %v12020_v25  ;;  %v3572_v3 = vrot.slane %v3369_v15, 1  ;;  %v3148_v19 = vpop.f32.mrb[222].mxu1  ;;  %v6150_v29 = vpop.f32.mrb[225].mxu0  ;;  %v3729_v12 = vpack.c.bf16 %v3369_v15, %v3368_v62  ;;  %v2853_v59 = vadd.f32 %v2852_v32, %v9565_v31  ;;  %v12021_v62 = vld [vmem:[#allocation44_spill] sm:$0xff] }
 0x37a   :  { %v3325_v17 = vadd.f32 %v9736_v2, %v3273_v21  ;;  %v3274_v51 = vadd.f32 %v3148_v19, %v2848_v4  ;;  %v6243_v53 = vpop.f32.mrb[223].mxu1  ;;  %v2855_v63 = vpop.f32.mrb[226].mxu0  ;;  %v3469_v41 = vsel %vm221_vm1, %v3413_v57, %v3414_v46  ;;  %v10019_v15 = vmul.f32 %v3470_v5, %v12021_v62  ;;  %v12023_v4 = vld [vmem:[#allocation43_spill] sm:$0xff] }
 0x37b   :  { %v3627_v16 = vsel %vm605_vm3, %v3571_v60, %v3572_v3  ;;  %v2856_v14 = vadd.f32 %v2855_v63, %v9569_v58  ;;  %v6151_v40 = vpop.f32.mrb[227].mxu0  ;;  %v10022_v19 = vmul.f32 %v3469_v41, %v12023_v4  ;;  %v12025_v63 = vld [vmem:[#allocation46_spill] sm:$0xff] }
 0x37c   :  { %12022 = vst [vmem:[#allocation116_spill] sm:$0xff] %v10019_v15  ;;  %v3370_v31 = vmax.f32 %v3325_v17, 0.0  ;;  %v3326_v21 = vadd.f32 %v9736_v2, %v3274_v51  ;;  %6337 = vmatmul.mubr.msk.bf16.gmra.mrb[52].mxu0 %vm3776_vm4, %v3729_v12  ;;  %v10035_v41 = vmul.f32 %v3627_v16, %v12025_v63  ;;  %v12026_v40 = vld [vmem:[#allocation45_spill] sm:$0xff]  ;;  %v12027_v16 = vld [vmem:[#allocation48_spill] sm:$0xff] }
 0x37d   :  { %12024 = vst [vmem:[#allocation117_spill] sm:$0xff] %v10022_v19  ;;  %6340 = vmatprep.mubr.msk.bf16.mxu0 %vm6822_vm0, %v11621_v24 }
 0x37e   :  { %v3415_v60 = vrot.slane %v3370_v31, 7  ;;  %v3573_v58 = vrot.slane %v3370_v31, 1  ;;  %v3371_v32 = vmax.f32 %v3326_v21, 0.0 }
 0x37f   :  { %v3153_v25 = vpop.f32.mrb[224].mxu1 }
 0x380   :  { %v3468_v5 = vsel %vm221_vm1, %v3414_v46, %v3415_v60  ;;  %v3626_v17 = vsel %vm605_vm3, %v3572_v3, %v3573_v58  ;;  %v3416_v29 = vrot.slane %v3371_v32, 7  ;;  %v3574_v51 = vrot.slane %v3371_v32, 1  ;;  %v6246_v53 = vpop.f32.mrb[225].mxu1  ;;  %v2860_v12 = vpop.f32.mrb[228].mxu0 }
 0x381   :  { %v10038_v62 = vmul.f32 %v3626_v17, %v12026_v40  ;;  %v3730_v4 = vpack.c.bf16 %v3371_v32, %v3370_v31  ;;  %v3275_v57 = vadd.f32 %v3153_v25, %v2853_v59  ;;  %v3156_v21 = vpop.f32.mrb[226].mxu1  ;;  %v6154_v45 = vpop.f32.mrb[229].mxu0  ;;  %v2861_v53 = vadd.f32 %v2860_v12, %v9582_v28  ;;  %v12028_v59 = vld [vmem:[#allocation47_spill] sm:$0xff] }
 0x382   :  { %v3467_v46 = vsel %vm221_vm1, %v3415_v60, %v3416_v29  ;;  %v3625_v3 = vsel %vm605_vm3, %v3573_v58, %v3574_v51  ;;  %v3276_v15 = vadd.f32 %v3156_v21, %v2856_v14  ;;  %v6247_v19 = vpop.f32.mrb[227].mxu1  ;;  %v2863_v27 = vpop.f32.mrb[230].mxu0  ;;  %v10046_v63 = vmul.f32 %v3468_v5, %v12027_v16  ;;  %v12031_v14 = vld [vmem:[#allocation49_spill] sm:$0xff] }
 0x383   :  { %v10051_v32 = vmul.f32 %v3467_v46, %v12028_v59  ;;  %v3327_v45 = vadd.f32 %v9736_v2, %v3275_v57  ;;  %v6155_v60 = vpop.f32.mrb[231].mxu0  ;;  %v2864_v28 = vadd.f32 %v2863_v27, %v9586_v49 }
 0x384   :  { %v3328_v25 = vadd.f32 %v9736_v2, %v3276_v15  ;;  %6341 = vmatmul.mubr.msk.bf16.gmra.mrb[56].mxu0 %vm3776_vm4, %v3730_v4  ;;  %v12029_v60 = vld [vmem:[#allocation50_spill] sm:$0xff] }
 0x385   :  { %v3372_v19 = vmax.f32 %v3327_v45, 0.0  ;;  %6344 = vmatprep.mubr.msk.bf16.mxu0 %vm6822_vm0, %v11621_v24 }
 0x386   :  { %v3373_v58 = vmax.f32 %v3328_v25, 0.0  ;;  %v10067_v25 = vmul.f32 %v3625_v3, %v12029_v60 }
 0x387   :  { %v3417_v5 = vrot.slane %v3372_v19, 7  ;;  %v3575_v17 = vrot.slane %v3372_v19, 1  ;;  %v3161_v12 = vpop.f32.mrb[228].mxu1 }
 0x388   :  { %v3418_v40 = vrot.slane %v3373_v58, 7  ;;  %v3576_v57 = vrot.slane %v3373_v58, 1  ;;  %v3731_v21 = vpack.c.bf16 %v3373_v58, %v3372_v19  ;;  %v3277_v46 = vadd.f32 %v3161_v12, %v2861_v53  ;;  %v6250_v15 = vpop.f32.mrb[229].mxu1  ;;  %v2868_v16 = vpop.f32.mrb[232].mxu0  ;;  %12030 = vst [vmem:[#allocation118_spill] sm:$0xff] %v10067_v25  ;;  %v12032_v12 = vld [vmem:[#allocation52_spill] sm:$0xff] }
 0x389   :  { %v3466_v49 = vsel %vm221_vm1, %v3416_v29, %v3417_v5  ;;  %v3624_v27 = vsel %vm605_vm3, %v3574_v51, %v3575_v17  ;;  %v3164_v4 = vpop.f32.mrb[230].mxu1  ;;  %v2869_v59 = vadd.f32 %v2868_v16, %v9598_v10  ;;  %v6158_v45 = vpop.f32.mrb[233].mxu0  ;;  %v12034_v15 = vld [vmem:[#allocation51_spill] sm:$0xff] }
 0x38a   :  { %v10070_v31 = vmul.f32 %v3624_v27, %v12031_v14  ;;  %v3465_v53 = vsel %vm221_vm1, %v3417_v5, %v3418_v40  ;;  %v3623_v19 = vsel %vm605_vm3, %v3575_v17, %v3576_v57  ;;  %v6251_v29 = vpop.f32.mrb[231].mxu1  ;;  %v2871_v58 = vpop.f32.mrb[234].mxu0  ;;  %v10077_v51 = vmul.f32 %v3466_v49, %v12032_v12  ;;  %v12037_v14 = vld [vmem:[#allocation53_spill] sm:$0xff] }
 0x38b   :  { %v10080_v10 = vmul.f32 %v3465_v53, %v12034_v15  ;;  %v3329_v3 = vadd.f32 %v9736_v2, %v3277_v46  ;;  %v3278_v16 = vadd.f32 %v3164_v4, %v2864_v28  ;;  %v6159_v45 = vpop.f32.mrb[235].mxu0  ;;  %v2872_v5 = vadd.f32 %v2871_v58, %v9602_v1 }
 0x38c   :  { %12033 = vst [vmem:[#allocation119_spill] sm:$0xff] %v10077_v51  ;;  %6345 = vmatmul.mubr.msk.bf16.gmra.mrb[60].mxu0 %vm3776_vm4, %v3731_v21  ;;  %v12036_v45 = vld [vmem:[#allocation54_spill] sm:$0xff] }
 0x38d   :  { %12035 = vst [vmem:[#allocation120_spill] sm:$0xff] %v10080_v10  ;;  %v3374_v27 = vmax.f32 %v3329_v3, 0.0  ;;  %v3330_v49 = vadd.f32 %v9736_v2, %v3278_v16  ;;  %6348 = vmatprep.mubr.msk.bf16.mxu0 %vm6822_vm0, %v11621_v24  ;;  %v10097_v17 = vmul.f32 %v3623_v19, %v12036_v45  ;;  %v12038_v19 = vld [vmem:[#allocation56_spill] sm:$0xff] }
 0x38f   :  { %v3419_v60 = vrot.slane %v3374_v27, 7  ;;  %v3577_v46 = vrot.slane %v3374_v27, 1  ;;  %v3375_v28 = vmax.f32 %v3330_v49, 0.0  ;;  %v3169_v4 = vpop.f32.mrb[232].mxu1 }
 0x390   :  { %v3279_v53 = vadd.f32 %v3169_v4, %v2869_v59  ;;  %v6254_v29 = vpop.f32.mrb[233].mxu1  ;;  %v2876_v12 = vpop.f32.mrb[236].mxu0 }
 0x391   :  { %v3464_v21 = vsel %vm221_vm1, %v3418_v40, %v3419_v60  ;;  %v3622_v1 = vsel %vm605_vm3, %v3576_v57, %v3577_v46  ;;  %v3420_v58 = vrot.slane %v3375_v28, 7  ;;  %v3578_v15 = vrot.slane %v3375_v28, 1  ;;  %v3172_v3 = vpop.f32.mrb[234].mxu1  ;;  %v6162_v16 = vpop.f32.mrb[237].mxu0 }
 0x392   :  { %v10100_v51 = vmul.f32 %v3622_v1, %v12037_v14  ;;  %v3732_v49 = vpack.c.bf16 %v3375_v28, %v3374_v27  ;;  %v3331_v59 = vadd.f32 %v9736_v2, %v3279_v53  ;;  %v6255_v4 = vpop.f32.mrb[235].mxu1  ;;  %v2879_v29 = vpop.f32.mrb[238].mxu0  ;;  %v3280_v10 = vadd.f32 %v3172_v3, %v2872_v5  ;;  %v12040_v27 = vld [vmem:[#allocation55_spill] sm:$0xff] }
 0x393   :  { %v3463_v40 = vsel %vm221_vm1, %v3419_v60, %v3420_v58  ;;  %v3621_v57 = vsel %vm605_vm3, %v3577_v46, %v3578_v15  ;;  %v2877_v16 = vadd.f32 %v2876_v12, %v9614_v54  ;;  %v6163_v25 = vpop.f32.mrb[239].mxu0  ;;  %v10109_v45 = vmul.f32 %v3464_v21, %v12038_v19  ;;  %v12042_v4 = vld [vmem:[#allocation58_spill] sm:$0xff] }
 0x394   :  { %v10114_v28 = vmul.f32 %v3463_v40, %v12040_v27  ;;  %v3376_v53 = vmax.f32 %v3331_v59, 0.0  ;;  %6349 = vmatmul.mubr.msk.bf16.gmra.mrb[64].mxu0 %vm3776_vm4, %v3732_v49  ;;  %v3332_v60 = vadd.f32 %v9736_v2, %v3280_v10  ;;  %v2880_v46 = vadd.f32 %v2879_v29, %v9618_v47  ;;  %v12044_v40 = vld [vmem:[#allocation57_spill] sm:$0xff] }
 0x395   :  { %12039 = vst [vmem:[#allocation2_spill] sm:$0xff] %v10109_v45  ;;  %6352 = vmatprep.mubr.msk.bf16.mxu0 %vm6822_vm0, %v11621_v24  ;;  %v11580_v12 = vmov 0.0|0.0   ;;  %v10129_v29 = vmul.f32 %v3621_v57, %v12042_v4 }
 0x396   :  { %12041 = vst [vmem:[#allocation121_spill] sm:$0xff] %v10114_v28  ;;  %v3421_v25 = vrot.slane %v3376_v53, 7  ;;  %v3579_v5 = vrot.slane %v3376_v53, 1  ;;  %6763 = vmatprep.subr.bf16.mxu1 %v11580_v12  ;;  %v3377_v21 = vmax.f32 %v3332_v60, 0.0 }
 0x397   :  { %v3177_v1 = vpop.f32.mrb[236].mxu1  ;;  %12043 = vst [vmem:[#allocation122_spill] sm:$0xff] %v10129_v29 }
 0x398   :  { %v3462_v3 = vsel %vm221_vm1, %v3420_v58, %v3421_v25  ;;  %v3620_v10 = vsel %vm605_vm3, %v3578_v15, %v3579_v5  ;;  %v3281_v47 = vadd.f32 %v3177_v1, %v2877_v16  ;;  %v6258_v49 = vpop.f32.mrb[237].mxu1  ;;  %v2884_v59 = vpop.f32.mrb[240].mxu0  ;;  %v3422_v27 = vrot.slane %v3377_v21, 7 }
 0x399   :  { %v10132_v19 = vmul.f32 %v3620_v10, %v12044_v40  ;;  %v3580_v54 = vrot.slane %v3377_v21, 1  ;;  %v3180_v14 = vpop.f32.mrb[238].mxu1  ;;  %v6166_v60 = vpop.f32.mrb[241].mxu0  ;;  %v3733_v12 = vpack.c.bf16 %v3377_v21, %v3376_v53  ;;  %v2885_v28 = vadd.f32 %v2884_v59, %v9630_v55  ;;  %v12045_v53 = vld [vmem:[#allocation59_spill] sm:$0xff] }
 0x39a   :  { %v3333_v45 = vadd.f32 %v9736_v2, %v3281_v47  ;;  %v3282_v58 = vadd.f32 %v3180_v14, %v2880_v46  ;;  %v6259_v15 = vpop.f32.mrb[239].mxu1  ;;  %v2887_v16 = vpop.f32.mrb[242].mxu0  ;;  %v3461_v57 = vsel %vm221_vm1, %v3421_v25, %v3422_v27  ;;  %v10144_v21 = vmul.f32 %v3462_v3, %v12045_v53  ;;  %v12047_v14 = vld [vmem:[#allocation3_spill] sm:$0xff] }
 0x39b   :  { %v3619_v10 = vsel %vm605_vm3, %v3579_v5, %v3580_v54  ;;  %v2888_v49 = vadd.f32 %v2887_v16, %v9634_v39  ;;  %v6167_v4 = vpop.f32.mrb[243].mxu0  ;;  %v10147_v46 = vmul.f32 %v3461_v57, %v12047_v14  ;;  %v12049_v16 = vld [vmem:[#allocation60_spill] sm:$0xff] }
 0x39c   :  { %12046 = vst [vmem:[#allocation71_spill] sm:$0xff] %v10144_v21  ;;  %v3378_v55 = vmax.f32 %v3333_v45, 0.0  ;;  %v3334_v47 = vadd.f32 %v9736_v2, %v3282_v58  ;;  %6353 = vmatmul.mubr.msk.bf16.gmra.mrb[68].mxu0 %vm3776_vm4, %v3733_v12  ;;  %v10160_v57 = vmul.f32 %v3619_v10, %v12049_v16  ;;  %v12050_v4 = vld [vmem:[#allocation4_spill] sm:$0xff]  ;;  %v12051_v10 = vld [vmem:[#allocation6_spill] sm:$0xff] }
 0x39d   :  { %12048 = vst [vmem:[#allocation124_spill] sm:$0xff] %v10147_v46  ;;  %6356 = vmatprep.mubr.msk.bf16.mxu0 %vm6822_vm0, %v11621_v24 }
 0x39e   :  { %v3423_v5 = vrot.slane %v3378_v55, 7  ;;  %v3581_v39 = vrot.slane %v3378_v55, 1  ;;  %v3379_v59 = vmax.f32 %v3334_v47, 0.0 }
 0x39f   :  { %v3185_v40 = vpop.f32.mrb[240].mxu1 }
 0x3a0   :  { %v3460_v3 = vsel %vm221_vm1, %v3422_v27, %v3423_v5  ;;  %v3618_v45 = vsel %vm605_vm3, %v3580_v54, %v3581_v39  ;;  %v3424_v60 = vrot.slane %v3379_v59, 7  ;;  %v3582_v58 = vrot.slane %v3379_v59, 1  ;;  %v6262_v15 = vpop.f32.mrb[241].mxu1  ;;  %v2892_v12 = vpop.f32.mrb[244].mxu0 }
 0x3a1   :  { %v10163_v53 = vmul.f32 %v3618_v45, %v12050_v4  ;;  %v3734_v14 = vpack.c.bf16 %v3379_v59, %v3378_v55  ;;  %v3283_v25 = vadd.f32 %v3185_v40, %v2885_v28  ;;  %v3188_v47 = vpop.f32.mrb[242].mxu1  ;;  %v6170_v1 = vpop.f32.mrb[245].mxu0  ;;  %v2893_v15 = vadd.f32 %v2892_v12, %v9646_v36  ;;  %v12052_v28 = vld [vmem:[#allocation5_spill] sm:$0xff] }
 0x3a2   :  { %v3459_v27 = vsel %vm221_vm1, %v3423_v5, %v3424_v60  ;;  %v3617_v54 = vsel %vm605_vm3, %v3581_v39, %v3582_v58  ;;  %v3284_v21 = vadd.f32 %v3188_v47, %v2888_v49  ;;  %v6263_v46 = vpop.f32.mrb[243].mxu1  ;;  %v2895_v29 = vpop.f32.mrb[246].mxu0  ;;  %v10171_v16 = vmul.f32 %v3460_v3, %v12051_v10  ;;  %v12055_v49 = vld [vmem:[#allocation61_spill] sm:$0xff] }
 0x3a3   :  { %v10176_v59 = vmul.f32 %v3459_v27, %v12052_v28  ;;  %v3335_v1 = vadd.f32 %v9736_v2, %v3283_v25  ;;  %v6171_v5 = vpop.f32.mrb[247].mxu0  ;;  %v2896_v36 = vadd.f32 %v2895_v29, %v9650_v42 }
 0x3a4   :  { %v3336_v40 = vadd.f32 %v9736_v2, %v3284_v21  ;;  %6357 = vmatmul.mubr.msk.bf16.gmra.mrb[72].mxu0 %vm3776_vm4, %v3734_v14  ;;  %v12053_v5 = vld [vmem:[#allocation62_spill] sm:$0xff] }
 0x3a5   :  { %v3380_v46 = vmax.f32 %v3335_v1, 0.0  ;;  %6360 = vmatprep.mubr.msk.bf16.mxu0 %vm6822_vm0, %v11621_v24 }
 0x3a6   :  { %v3381_v39 = vmax.f32 %v3336_v40, 0.0  ;;  %v10192_v40 = vmul.f32 %v3617_v54, %v12053_v5 }
 0x3a7   :  { %v3425_v3 = vrot.slane %v3380_v46, 7  ;;  %v3583_v45 = vrot.slane %v3380_v46, 1  ;;  %v3193_v12 = vpop.f32.mrb[244].mxu1 }
 0x3a8   :  { %v3426_v4 = vrot.slane %v3381_v39, 7  ;;  %v3584_v25 = vrot.slane %v3381_v39, 1  ;;  %v3735_v47 = vpack.c.bf16 %v3381_v39, %v3380_v46  ;;  %v3285_v27 = vadd.f32 %v3193_v12, %v2893_v15  ;;  %v6266_v21 = vpop.f32.mrb[245].mxu1  ;;  %v2900_v10 = vpop.f32.mrb[248].mxu0  ;;  %12054 = vst [vmem:[#allocation123_spill] sm:$0xff] %v10192_v40  ;;  %v12056_v12 = vld [vmem:[#allocation8_spill] sm:$0xff] }
 0x3a9   :  { %v3458_v42 = vsel %vm221_vm1, %v3424_v60, %v3425_v3  ;;  %v3616_v29 = vsel %vm605_vm3, %v3582_v58, %v3583_v45  ;;  %v3196_v14 = vpop.f32.mrb[246].mxu1  ;;  %v2901_v28 = vadd.f32 %v2900_v10, %v9665_v26  ;;  %v6174_v1 = vpop.f32.mrb[249].mxu0  ;;  %v12058_v21 = vld [vmem:[#allocation7_spill] sm:$0xff] }
 0x3aa   :  { %v10195_v55 = vmul.f32 %v3616_v29, %v12055_v49  ;;  %v3457_v15 = vsel %vm221_vm1, %v3425_v3, %v3426_v4  ;;  %v3615_v46 = vsel %vm605_vm3, %v3583_v45, %v3584_v25  ;;  %v6267_v60 = vpop.f32.mrb[247].mxu1  ;;  %v2903_v39 = vpop.f32.mrb[250].mxu0  ;;  %v10202_v58 = vmul.f32 %v3458_v42, %v12056_v12  ;;  %v10217_v42 = vld [vmem:[%s11306_s6] ss:$0 sm:$0xff]  ;;  %v12061_v49 = vld [vmem:[#allocation63_spill] sm:$0xff] }
 0x3ab   :  { %v10205_v26 = vmul.f32 %v3457_v15, %v12058_v21  ;;  %v3337_v54 = vadd.f32 %v9736_v2, %v3285_v27  ;;  %v3286_v10 = vadd.f32 %v3196_v14, %v2896_v36  ;;  %v6175_v1 = vpop.f32.mrb[251].mxu0  ;;  %v2904_v3 = vadd.f32 %v2903_v39, %v9670_v13 }
 0x3ac   :  { %12057 = vst [vmem:[#allocation126_spill] sm:$0xff] %v10202_v58  ;;  %6361 = vmatmul.mubr.msk.bf16.gmra.mrb[76].mxu0 %vm3776_vm4, %v3735_v47  ;;  %v12060_v1 = vld [vmem:[#allocation64_spill] sm:$0xff] }
 0x3ad   :  { %12059 = vst [vmem:[#allocation125_spill] sm:$0xff] %v10205_v26  ;;  %v3382_v29 = vmax.f32 %v3337_v54, 0.0  ;;  %v3338_v2 = vadd.f32 %v10217_v42, %v3286_v10  ;;  %6364 = vmatprep.mubr.msk.bf16.mxu0 %vm6822_vm0, %v11621_v24  ;;  %v10227_v45 = vmul.f32 %v3615_v46, %v12060_v1  ;;  %v12062_v46 = vld [vmem:[#allocation10_spill] sm:$0xff] }
 0x3af   :  { %v3427_v36 = vrot.slane %v3382_v29, 7  ;;  %v3585_v27 = vrot.slane %v3382_v29, 1  ;;  %v3383_v14 = vmax.f32 %v3338_v2, 0.0  ;;  %v3201_v47 = vpop.f32.mrb[248].mxu1 }
 0x3b0   :  { %v3287_v5 = vadd.f32 %v3201_v47, %v2901_v28  ;;  %v6270_v13 = vpop.f32.mrb[249].mxu1  ;;  %v2908_v15 = vpop.f32.mrb[252].mxu0 }
 0x3b1   :  { %v3456_v60 = vsel %vm221_vm1, %v3426_v4, %v3427_v36  ;;  %v3614_v39 = vsel %vm605_vm3, %v3584_v25, %v3585_v27  ;;  %v3428_v12 = vrot.slane %v3383_v14, 7  ;;  %v3586_v21 = vrot.slane %v3383_v14, 1  ;;  %v3204_v54 = vpop.f32.mrb[250].mxu1  ;;  %v6178_v10 = vpop.f32.mrb[253].mxu0 }
 0x3b2   :  { %v10230_v58 = vmul.f32 %v3614_v39, %v12061_v49  ;;  %v3736_v2 = vpack.c.bf16 %v3383_v14, %v3382_v29  ;;  %v3339_v28 = vadd.f32 %v10217_v42, %v3287_v5  ;;  %v6271_v47 = vpop.f32.mrb[251].mxu1  ;;  %v2911_v13 = vpop.f32.mrb[254].mxu0  ;;  %v3288_v26 = vadd.f32 %v3204_v54, %v2904_v3  ;;  %v12064_v29 = vld [vmem:[#allocation9_spill] sm:$0xff] }
 0x3b3   :  { %v3455_v4 = vsel %vm221_vm1, %v3427_v36, %v3428_v12  ;;  %v3613_v25 = vsel %vm605_vm3, %v3585_v27, %v3586_v21  ;;  %v2909_v10 = vadd.f32 %v2908_v15, %v9682_v18  ;;  %v6179_v40 = vpop.f32.mrb[255].mxu0  ;;  %v10239_v1 = vmul.f32 %v3456_v60, %v12062_v46 }
 0x3b4   :  { %v10244_v14 = vmul.f32 %v3455_v4, %v12064_v29  ;;  %v3384_v5 = vmax.f32 %v3339_v28, 0.0  ;;  %6365 = vmatmul.mubr.msk.bf16.gmra.mrb[80].mxu0 %vm3776_vm4, %v3736_v2  ;;  %v3340_v36 = vadd.f32 %v10217_v42, %v3288_v26  ;;  %v2912_v27 = vadd.f32 %v2911_v13, %v9688_v20  ;;  %v12066_v20 = vld [vmem:[#allocation66_spill] sm:$0xff]  ;;  %v12068_v13 = vld [vmem:[#allocation65_spill] sm:$0xff] }
 0x3b5   :  { %12063 = vst [vmem:[#allocation128_spill] sm:$0xff] %v10239_v1  ;;  %6368 = vmatprep.mubr.msk.bf16.mxu0 %vm6822_vm0, %v11621_v24  ;;  %v10258_v47 = vmul.f32 %v3613_v25, %v12066_v20 }
 0x3b6   :  { %12065 = vst [vmem:[#allocation127_spill] sm:$0xff] %v10244_v14  ;;  %v3429_v40 = vrot.slane %v3384_v5, 7  ;;  %v3587_v3 = vrot.slane %v3384_v5, 1  ;;  %v3385_v15 = vmax.f32 %v3340_v36, 0.0 }
 0x3b7   :  { %v3209_v60 = vpop.f32.mrb[252].mxu1  ;;  %12067 = vst [vmem:[#allocation129_spill] sm:$0xff] %v10258_v47 }
 0x3b8   :  { %v3454_v39 = vsel %vm221_vm1, %v3428_v12, %v3429_v40  ;;  %v3612_v54 = vsel %vm605_vm3, %v3586_v21, %v3587_v3  ;;  %v3289_v2 = vadd.f32 %v3209_v60, %v2909_v10  ;;  %v6274_v26 = vpop.f32.mrb[253].mxu1  ;;  %v2916_v28 = vpop.f32.mrb[0].mxu0  ;;  %v3430_v46 = vrot.slane %v3385_v15, 7 }
 0x3b9   :  { %v10261_v4 = vmul.f32 %v3612_v54, %v12068_v13  ;;  %v3588_v29 = vrot.slane %v3385_v15, 1  ;;  %v3212_v18 = vpop.f32.mrb[254].mxu1  ;;  %v6182_v36 = vpop.f32.mrb[1].mxu0  ;;  %v3737_v49 = vpack.c.bf16 %v3385_v15, %v3384_v5  ;;  %v2917_v14 = vadd.f32 %v2916_v28, %v9704_v30  ;;  %v12069_v5 = vld [vmem:[#allocation68_spill] sm:$0xff] }
 0x3ba   :  { %v3341_v1 = vadd.f32 %v10217_v42, %v3289_v2  ;;  %v3290_v12 = vadd.f32 %v3212_v18, %v2912_v27  ;;  %v6275_v21 = vpop.f32.mrb[255].mxu1  ;;  %v2919_v10 = vpop.f32.mrb[2].mxu0  ;;  %v3453_v25 = vsel %vm221_vm1, %v3429_v40, %v3430_v46  ;;  %v10273_v15 = vmul.f32 %v3454_v39, %v12069_v5  ;;  %v12071_v27 = vld [vmem:[#allocation67_spill] sm:$0xff] }
 0x3bb   :  { %v3611_v54 = vsel %vm605_vm3, %v3587_v3, %v3588_v29  ;;  %v2920_v26 = vadd.f32 %v2919_v10, %v9708_v44  ;;  %v6183_v20 = vpop.f32.mrb[3].mxu0  ;;  %v10276_v18 = vmul.f32 %v3453_v25, %v12071_v27  ;;  %v12073_v10 = vld [vmem:[#allocation70_spill] sm:$0xff] }
 0x3bc   :  { %12070 = vst [vmem:[#allocation132_spill] sm:$0xff] %v10273_v15  ;;  %v3386_v30 = vmax.f32 %v3341_v1, 0.0  ;;  %v3342_v2 = vadd.f32 %v10217_v42, %v3290_v12  ;;  %6369 = vmatmul.mubr.msk.bf16.gmra.mrb[84].mxu0 %vm3776_vm4, %v3737_v49  ;;  %v10289_v25 = vmul.f32 %v3611_v54, %v12073_v10  ;;  %v12075_v20 = vld [vmem:[#allocation69_spill] sm:$0xff]  ;;  %v12076_v54 = vld [vmem:[#allocation74_spill] sm:$0xff] }
 0x3bd   :  { %12072 = vst [vmem:[#allocation131_spill] sm:$0xff] %v10276_v18  ;;  %6372 = vmatprep.mubr.msk.bf16.mxu0 %vm6822_vm0, %v11621_v24 }
 0x3be   :  { %v3431_v3 = vrot.slane %v3386_v30, 7  ;;  %v3589_v44 = vrot.slane %v3386_v30, 1  ;;  %v3387_v28 = vmax.f32 %v3342_v2, 0.0  ;;  %12074 = vst [vmem:[#allocation130_spill] sm:$0xff] %v10289_v25 }
 0x3bf   :  { %v3217_v13 = vpop.f32.mrb[0].mxu1 }
 0x3c0   :  { %v3452_v39 = vsel %vm221_vm1, %v3430_v46, %v3431_v3  ;;  %v3610_v1 = vsel %vm605_vm3, %v3588_v29, %v3589_v44  ;;  %v3432_v36 = vrot.slane %v3387_v28, 7  ;;  %v3590_v12 = vrot.slane %v3387_v28, 1  ;;  %v6278_v21 = vpop.f32.mrb[1].mxu1  ;;  %v2924_v49 = vpop.f32.mrb[4].mxu0 }
 0x3c1   :  { %v10292_v5 = vmul.f32 %v3610_v1, %v12075_v20  ;;  %v3738_v27 = vpack.c.bf16 %v3387_v28, %v3386_v30  ;;  %v3291_v40 = vadd.f32 %v3217_v13, %v2917_v14  ;;  %v3220_v2 = vpop.f32.mrb[2].mxu1  ;;  %v6186_v60 = vpop.f32.mrb[5].mxu0  ;;  %v2925_v21 = vadd.f32 %v2924_v49, %v9713_v50  ;;  %v12078_v14 = vld [vmem:[#allocation73_spill] sm:$0xff] }
 0x3c2   :  { %v3451_v46 = vsel %vm221_vm1, %v3431_v3, %v3432_v36  ;;  %v3609_v29 = vsel %vm605_vm3, %v3589_v44, %v3590_v12  ;;  %v3292_v15 = vadd.f32 %v3220_v2, %v2920_v26  ;;  %v6279_v18 = vpop.f32.mrb[3].mxu1  ;;  %v2927_v47 = vpop.f32.mrb[6].mxu0  ;;  %v10300_v10 = vmul.f32 %v3452_v39, %v12076_v54  ;;  %v12080_v26 = vld [vmem:[#allocation77_spill] sm:$0xff] }
 0x3c3   :  { %v10305_v28 = vmul.f32 %v3451_v46, %v12078_v14  ;;  %v3343_v60 = vadd.f32 %v10217_v42, %v3291_v40  ;;  %v6187_v3 = vpop.f32.mrb[7].mxu0  ;;  %v2928_v50 = vadd.f32 %v2927_v47, %v12080_v26 }
 0x3c4   :  { %12077 = vst [vmem:[#allocation134_spill] sm:$0xff] %v10300_v10  ;;  %v3344_v13 = vadd.f32 %v10217_v42, %v3292_v15  ;;  %6373 = vmatmul.mubr.msk.bf16.gmra.mrb[88].mxu0 %vm3776_vm4, %v3738_v27  ;;  %v12081_v3 = vld [vmem:[#allocation83_spill] sm:$0xff] }
 0x3c5   :  { %12079 = vst [vmem:[#allocation133_spill] sm:$0xff] %v10305_v28  ;;  %v3388_v44 = vmax.f32 %v3343_v60, 0.0  ;;  %6376 = vmatprep.mubr.msk.bf16.mxu0 %vm6822_vm0, %v11621_v24  ;;  %v12084_v10 = vld [vmem:[#allocation75_spill] sm:$0xff] }
 0x3c6   :  { %v3389_v39 = vmax.f32 %v3344_v13, 0.0  ;;  %v12082_v13 = vld [vmem:[#allocation76_spill] sm:$0xff] }
 0x3c7   :  { %v3433_v1 = vrot.slane %v3388_v44, 7  ;;  %v3591_v49 = vrot.slane %v3388_v44, 1  ;;  %v3225_v20 = vpop.f32.mrb[4].mxu1  ;;  %v10321_v30 = vmul.f32 %v3609_v29, %v12082_v13 }
 0x3c8   :  { %v3434_v2 = vrot.slane %v3389_v39, 7  ;;  %v3592_v40 = vrot.slane %v3389_v39, 1  ;;  %v3739_v46 = vpack.c.bf16 %v3389_v39, %v3388_v44  ;;  %v3293_v54 = vadd.f32 %v3225_v20, %v2925_v21  ;;  %v6282_v15 = vpop.f32.mrb[5].mxu1  ;;  %v2932_v14 = vpop.f32.mrb[8].mxu0  ;;  %v12086_v20 = vld [vmem:[#allocation79_spill] sm:$0xff] }
 0x3c9   :  { %v3450_v47 = vsel %vm221_vm1, %v3432_v36, %v3433_v1  ;;  %v3608_v27 = vsel %vm605_vm3, %v3590_v12, %v3591_v49  ;;  %v3228_v60 = vpop.f32.mrb[6].mxu1  ;;  %v2933_v26 = vadd.f32 %v2932_v14, %v12081_v3  ;;  %v6190_v18 = vpop.f32.mrb[9].mxu0  ;;  %12083 = vst [vmem:[#allocation72_spill] sm:$0xff] %v10321_v30  ;;  %v12088_v15 = vld [vmem:[#allocation78_spill] sm:$0xff] }
 0x3ca   :  { %v10324_v28 = vmul.f32 %v3608_v27, %v12084_v10  ;;  %v3449_v21 = vsel %vm221_vm1, %v3433_v1, %v3434_v2  ;;  %v3607_v44 = vsel %vm605_vm3, %v3591_v49, %v3592_v40  ;;  %v6283_v36 = vpop.f32.mrb[7].mxu1  ;;  %v2935_v39 = vpop.f32.mrb[10].mxu0  ;;  %v10331_v12 = vmul.f32 %v3450_v47, %v12086_v20  ;;  %v12090_v1 = vld [vmem:[#allocation82_spill] sm:$0xff]  ;;  %v12091_v49 = vld [vmem:[#allocation81_spill] sm:$0xff] }
 0x3cb   :  { %v10334_v14 = vmul.f32 %v3449_v21, %v12088_v15  ;;  %v3345_v29 = vadd.f32 %v10217_v42, %v3293_v54  ;;  %v3294_v18 = vadd.f32 %v3228_v60, %v2928_v50  ;;  %v6191_v3 = vpop.f32.mrb[11].mxu0  ;;  %v2936_v27 = vadd.f32 %v2935_v39, %v12090_v1 }
 0x3cc   :  { %12085 = vst [vmem:[#allocation11_spill] sm:$0xff] %v10324_v28  ;;  %12087 = vst [vmem:[#allocation13_spill] sm:$0xff] %v10331_v12  ;;  %6377 = vmatmul.mubr.msk.bf16.gmra.mrb[92].mxu0 %vm3776_vm4, %v3739_v46  ;;  %v10351_v10 = vmul.f32 %v3607_v44, %v12091_v49  ;;  %v12093_v12 = vld [vmem:[#allocation80_spill] sm:$0xff]  ;;  %v12095_v28 = vld [vmem:[#allocation98_spill] sm:$0xff] }
 0x3cd   :  { %12089 = vst [vmem:[#allocation16_spill] sm:$0xff] %v10334_v14  ;;  %v3390_v13 = vmax.f32 %v3345_v29, 0.0  ;;  %v3346_v47 = vadd.f32 %v10217_v42, %v3294_v18  ;;  %6380 = vmatprep.mubr.msk.bf16.mxu0 %vm6822_vm0, %v11621_v24  ;;  %v12096_v44 = vld [vmem:[#allocation85_spill] sm:$0xff] }
 0x3ce   :  { %12092 = vst [vmem:[#allocation15_spill] sm:$0xff] %v10351_v10  ;;  %v12103_v10 = vld [vmem:[#allocation100_spill] sm:$0xff] }
 0x3cf   :  { %v3435_v21 = vrot.slane %v3390_v13, 7  ;;  %v3593_v54 = vrot.slane %v3390_v13, 1  ;;  %v3391_v50 = vmax.f32 %v3346_v47, 0.0  ;;  %v3233_v60 = vpop.f32.mrb[8].mxu1 }
 0x3d0   :  { %v3295_v36 = vadd.f32 %v3233_v60, %v2933_v26  ;;  %v6286_v20 = vpop.f32.mrb[9].mxu1  ;;  %v2940_v15 = vpop.f32.mrb[12].mxu0 }
 0x3d1   :  { %v3448_v46 = vsel %vm221_vm1, %v3434_v2, %v3435_v21  ;;  %v3606_v39 = vsel %vm605_vm3, %v3592_v40, %v3593_v54  ;;  %v3436_v3 = vrot.slane %v3391_v50, 7  ;;  %v3594_v29 = vrot.slane %v3391_v50, 1  ;;  %v3236_v1 = vpop.f32.mrb[10].mxu1  ;;  %v6194_v18 = vpop.f32.mrb[13].mxu0 }
 0x3d2   :  { %v10354_v14 = vmul.f32 %v3606_v39, %v12093_v12  ;;  %v3740_v47 = vpack.c.bf16 %v3391_v50, %v3390_v13  ;;  %v3347_v26 = vadd.f32 %v10217_v42, %v3295_v36  ;;  %v6287_v60 = vpop.f32.mrb[11].mxu1  ;;  %v2943_v20 = vpop.f32.mrb[14].mxu0  ;;  %v3296_v30 = vadd.f32 %v3236_v1, %v2936_v27  ;;  %v12098_v13 = vld [vmem:[#allocation84_spill] sm:$0xff]  ;;  %v12100_v39 = vld [vmem:[#allocation99_spill] sm:$0xff] }
 0x3d3   :  { %v3447_v2 = vsel %vm221_vm1, %v3435_v21, %v3436_v3  ;;  %v3605_v40 = vsel %vm605_vm3, %v3593_v54, %v3594_v29  ;;  %v2941_v18 = vadd.f32 %v2940_v15, %v12095_v28  ;;  %v6195_v25 = vpop.f32.mrb[15].mxu0  ;;  %v10363_v49 = vmul.f32 %v3448_v46, %v12096_v44  ;;  %v12102_v44 = vld [vmem:[#allocation86_spill] sm:$0xff] }
 0x3d4   :  { %12094 = vst [vmem:[#allocation18_spill] sm:$0xff] %v10354_v14  ;;  %v10368_v50 = vmul.f32 %v3447_v2, %v12098_v13  ;;  %v3392_v36 = vmax.f32 %v3347_v26, 0.0  ;;  %6381 = vmatmul.mubr.msk.bf16.gmra.mrb[96].mxu0 %vm3776_vm4, %v3740_v47  ;;  %v3348_v21 = vadd.f32 %v10217_v42, %v3296_v30  ;;  %v2944_v54 = vadd.f32 %v2943_v20, %v12100_v39  ;;  %v12101_v20 = vld [vmem:[#allocation87_spill] sm:$0xff] }
 0x3d5   :  { %12097 = vst [vmem:[#allocation17_spill] sm:$0xff] %v10363_v49  ;;  %6384 = vmatprep.mubr.msk.bf16.mxu0 %vm6822_vm0, %v11621_v24  ;;  %v10382_v2 = vmul.f32 %v3605_v40, %v12101_v20  ;;  %v12104_v20 = vld [vmem:[#allocation89_spill] sm:$0xff] }
 0x3d6   :  { %12099 = vst [vmem:[#allocation20_spill] sm:$0xff] %v10368_v50  ;;  %v3437_v28 = vrot.slane %v3392_v36, 7  ;;  %v3595_v27 = vrot.slane %v3392_v36, 1  ;;  %v3393_v15 = vmax.f32 %v3348_v21, 0.0 }
 0x3d7   :  { %v3241_v46 = vpop.f32.mrb[12].mxu1 }
 0x3d8   :  { %v3446_v1 = vsel %vm221_vm1, %v3436_v3, %v3437_v28  ;;  %v3604_v47 = vsel %vm605_vm3, %v3594_v29, %v3595_v27  ;;  %v3297_v26 = vadd.f32 %v3241_v46, %v2941_v18  ;;  %v6290_v30 = vpop.f32.mrb[13].mxu1  ;;  %v2948_v60 = vpop.f32.mrb[16].mxu0  ;;  %v3438_v39 = vrot.slane %v3393_v15, 7 }
 0x3d9   :  { %v10385_v13 = vmul.f32 %v3604_v47, %v12102_v44  ;;  %v3596_v25 = vrot.slane %v3393_v15, 1  ;;  %v3244_v12 = vpop.f32.mrb[14].mxu1  ;;  %v6198_v21 = vpop.f32.mrb[17].mxu0  ;;  %v3741_v49 = vpack.c.bf16 %v3393_v15, %v3392_v36  ;;  %v2949_v14 = vadd.f32 %v2948_v60, %v12103_v10  ;;  %v12106_v36 = vld [vmem:[#allocation88_spill] sm:$0xff] }
 0x3da   :  { %v3349_v50 = vadd.f32 %v10217_v42, %v3297_v26  ;;  %v3298_v3 = vadd.f32 %v3244_v12, %v2944_v54  ;;  %v6291_v29 = vpop.f32.mrb[15].mxu1  ;;  %v2951_v18 = vpop.f32.mrb[18].mxu0  ;;  %v3445_v40 = vsel %vm221_vm1, %v3437_v28, %v3438_v39  ;;  %v10396_v44 = vmul.f32 %v3446_v1, %v12104_v20 }
 0x3db   :  { %v3603_v47 = vsel %vm605_vm3, %v3595_v27, %v3596_v25  ;;  %v6199_v30 = vpop.f32.mrb[19].mxu0  ;;  %v10399_v15 = vmul.f32 %v3445_v40, %v12106_v36  ;;  %v12108_v40 = vld [vmem:[#allocation90_spill] sm:$0xff] }
 0x3dc   :  { %12105 = vst [vmem:[#allocation19_spill] sm:$0xff] %v10396_v44  ;;  %v3394_v12 = vmax.f32 %v3349_v50, 0.0  ;;  %v3350_v10 = vadd.f32 %v10217_v42, %v3298_v3  ;;  %6385 = vmatmul.mubr.msk.bf16.gmra.mrb[100].mxu0 %vm3776_vm4, %v3741_v49  ;;  %v12107_v49 = vld [vmem:[#allocation91_spill] sm:$0xff] }
 0x3dd   :  { %6388 = vmatprep.mubr.msk.bf16.mxu0 %vm6822_vm0, %v11621_v24  ;;  %v10412_v18 = vmul.f32 %v3603_v47, %v12107_v49 }
 0x3de   :  { %v3439_v28 = vrot.slane %v3394_v12, 7  ;;  %v3597_v27 = vrot.slane %v3394_v12, 1  ;;  %v3395_v26 = vmax.f32 %v3350_v10, 0.0 }
 0x3df   :  { %v3249_v60 = vpop.f32.mrb[16].mxu1 }
 0x3e0   :  { %v3444_v1 = vsel %vm221_vm1, %v3438_v39, %v3439_v28  ;;  %v3602_v50 = vsel %vm605_vm3, %v3596_v25, %v3597_v27  ;;  %v3440_v21 = vrot.slane %v3395_v26, 7  ;;  %v3598_v3 = vrot.slane %v3395_v26, 1  ;;  %v6294_v29 = vpop.f32.mrb[17].mxu1  ;;  %v12109_v25 = vld [vmem:[#allocation92_spill] sm:$0xff] }
 0x3e1   :  { %v10415_v30 = vmul.f32 %v3602_v50, %v12108_v40  ;;  %v3742_v20 = vpack.c.bf16 %v3395_v26, %v3394_v12  ;;  %v3299_v36 = vadd.f32 %v3249_v60, %v2949_v14  ;;  %v3252_v54 = vpop.f32.mrb[18].mxu1  ;;  %v10422_v44 = vmul.f32 %v3444_v1, %v12109_v25  ;;  %v12110_v29 = vld [vmem:[#allocation93_spill] sm:$0xff]  ;;  %v12111_v26 = vld [vmem:[#allocation14_spill] sm:$0xff] }
 0x3e2   :  { %v3443_v10 = vsel %vm221_vm1, %v3439_v28, %v3440_v21  ;;  %v3601_v39 = vsel %vm605_vm3, %v3597_v27, %v3598_v3  ;;  %v6295_v46 = vpop.f32.mrb[19].mxu1  ;;  %v4830_v27 = vld [vmem:[%s11307_s9] sm:$0xff]  ;;  %v12113_v40 = vld [vmem:[#allocation101_spill] sm:$0xff] }
 0x3e3   :  { %v10427_v49 = vmul.f32 %v3443_v10, %v12110_v29  ;;  %v3351_v12 = vadd.f32 %v10217_v42, %v3299_v36  ;;  %v4831_v42 = vld [vmem:[%s11307_s9 + $0x8] sm:$0xff]  ;;  %v12112_v60 = vld [vmem:[#allocation102_spill] sm:$0xff] }
 0x3e4   :  { %6389 = vmatmul.mubr.msk.bf16.gmra.mrb[104].mxu0 %vm3776_vm4, %v3742_v20  ;;  %v3488_v1 = vmul.f32 %v12112_v60, %v12111_v26  ;;  %v12114_v20 = vrot.slane %v12113_v40, 7  ;;  %v12115_v25 = vld [vmem:[#allocation94_spill] sm:$0xff]  ;;  %v12117_v26 = vld [vmem:[#allocation96_spill] sm:$0xff]  ;;  %v6764_v47 = vpack.c.bf16 %v4831_v42, %v4830_v27  ;;  %v12118_v27 = vmov 0.0|0.0  }
 0x3e5   :  { %v10433_v54 = vmax.f32 %v3351_v12, 0.0  ;;  %6392 = vmatprep.mubr.msk.bf16.mxu0 %vm6822_vm0, %v11621_v24  ;;  %v10460_v29 = vmul.f32 %v3601_v39, %v12115_v25  ;;  %v12116_v12 = vld [vmem:[#allocation12_spill] sm:$0xff]  ;;  %v4833_v39 = vld [vmem:[%s11307_s9 + $0x18] sm:$0xff]  ;;  %v4834_v42 = vld [vmem:[%s11307_s9 + $0x20] sm:$0xff] }
 0x3e6   :  { %v4839_v25 = vld [vmem:[%s11307_s9 + $0x48] sm:$0xff] }
 0x3e7   :  { %v3441_v46 = vrot.slane %v10433_v54, 7  ;;  %v3599_v28 = vrot.slane %v10433_v54, 1 }
 0x3e9   :  { %v10449_v50 = vsel %vm221_vm1, %v3440_v21, %v3441_v46  ;;  %v3486_v36 = vsel %vm221_vm1, %v3441_v46, %v12114_v20  ;;  %v3600_v10 = vsel %vm605_vm3, %v3598_v3, %v3599_v28  ;;  %v3743_v21 = vpack.c.bf16 %v10433_v54, %v10433_v54  ;;  %v4832_v3 = vld [vmem:[%s11307_s9 + $0x10] sm:$0xff] }
 0x3ea   :  { %v3487_v14 = vmul.f32 %v3486_v36, %v12116_v12  ;;  %v10464_v60 = vmul.f32 %v3600_v10, %v12117_v26  ;;  %v4837_v36 = vld [vmem:[%s11307_s9 + $0x38] sm:$0xff]  ;;  %v12120_v10 = vpack.c.bf16 %v9796_v23, %v9791_v48  ;;  %v12121_v48 = vpack.c.bf16 %v9816_v7, %v9813_v9  ;;  %v12122_v23 = vld [vmem:[#allocation104_spill] sm:$0xff]  ;;  %v12123_v26 = vld [vmem:[#allocation103_spill] sm:$0xff] }
 0x3eb   :  { %v12125_v7 = vpack.c.bf16 %v9852_v38, %v9849_v35  ;;  %v12126_v9 = vld [vmem:[#allocation106_spill] sm:$0xff]  ;;  %v4841_v35 = vld [vmem:[%s11307_s9 + $0x58] sm:$0xff] }
 0x3ec   :  { %v3532_v40 = vpack.c.bf16 %v3488_v1, %v3487_v14  ;;  %v3711_v46 = vpack.c.bf16 %v10464_v60, %v10460_v29  ;;  %6393 = vmatmul.mubr.msk.bf16.gmra.mrb[108].mxu0 %vm3776_vm4, %v3743_v21  ;;  %v6767_v14 = vpack.c.bf16 %v4833_v39, %v4832_v3  ;;  %v4835_v1 = vld [vmem:[%s11307_s9 + $0x28] sm:$0xff]  ;;  %v12124_v21 = vpack.c.bf16 %v12122_v23, %v12123_v26  ;;  %v12127_v3 = vld [vmem:[#allocation105_spill] sm:$0xff] }
 0x3ed   :  { %6504 = vmatprep.mubr.msk.bf16.mxu0 %vm6822_vm0, %v11621_v24  ;;  %v6770_v20 = vpack.c.bf16 %v4835_v1, %v4834_v42  ;;  %v12128_v39 = vpack.c.bf16 %v12126_v9, %v12127_v3  ;;  %v12129_v42 = vld [vmem:[#allocation107_spill] sm:$0xff] }
 0x3ee   :  { %6405 = vmatmul.mubr.msk.bf16.vlgmr.msra.gmra.mrb[20].mxu1 %vm3776_vm4, %v3532_v40  ;;  %v12119_v40 = vpack.c.bf16 %v9783_v11, %v9780_v56  ;;  %v4838_v56 = vld [vmem:[%s11307_s9 + $0x40] sm:$0xff]  ;;  %v12130_v1 = vpack.c.bf16 %v9883_v22, %v12129_v42 }
 0x3ef   :  { %6408 = vmatprep.mubr.msk.bf16.mxu1 %vm6822_vm0, %v11621_v24  ;;  %6765 = vmatpush3.bf16.msra.mxu1 %v6764_v47  ;;  %v4836_v47 = vld [vmem:[%s11307_s9 + $0x30] sm:$0xff]  ;;  %v6776_v12 = vpack.c.bf16 %v4839_v25, %v4838_v56  ;;  %v12134_v56 = vpack.c.bf16 %v9914_v43, %v9911_v37  ;;  %v12136_v37 = vld [vmem:[#allocation110_spill] sm:$0xff] }
 0x3f0   :  { %6766 = vmatprep.subr.bf16.mxu1 %v12118_v27  ;;  %v6773_v11 = vpack.c.bf16 %v4837_v36, %v4836_v47  ;;  %v12132_v47 = vld [vmem:[#allocation108_spill] sm:$0xff]  ;;  %v12137_v43 = vpack.c.bf16 %v9946_v61, %v12136_v37  ;;  %v4842_v61 = vld [vmem:[%s11307_s9 + $0x60] sm:$0xff] }
 0x3f1   :  { %v12142_v42 = vld [vmem:[#allocation114_spill] sm:$0xff] }
 0x3f3   :  { %6768 = vmatpush3.bf16.msra.mxu1 %v6767_v14  ;;  %v4840_v14 = vld [vmem:[%s11307_s9 + $0x50] sm:$0xff] }
 0x3f4   :  { %6505 = vmatmul.mubr.msk.bf16.vlgmr.msra.gmra.mrb[112].mxu0 %vm3776_vm4, %v12119_v40  ;;  %6769 = vmatprep.subr.bf16.mxu1 %v12118_v27  ;;  %v6779_v38 = vpack.c.bf16 %v4841_v35, %v4840_v14  ;;  %v12131_v40 = vld [vmem:[#allocation109_spill] sm:$0xff]  ;;  %v4843_v14 = vld [vmem:[%s11307_s9 + $0x68] sm:$0xff] }
 0x3f5   :  { %6508 = vmatprep.mubr.msk.bf16.mxu0 %vm6822_vm0, %v11621_v24  ;;  %v12133_v36 = vpack.c.bf16 %v12131_v40, %v12132_v47  ;;  %v6782_v35 = vpack.c.bf16 %v4843_v14, %v4842_v61  ;;  %v12154_v14 = vld [vmem:[#allocation120_spill] sm:$0xff] }
 0x3f6   :  { %6409 = vmatmul.mubr.msk.bf16.gmra.mrb[24].mxu1 %vm3776_vm4, %v12120_v10 }
 0x3f7   :  { %6412 = vmatprep.mubr.msk.bf16.mxu1 %vm6822_vm0, %v11621_v24  ;;  %6771 = vmatpush3.bf16.msra.mxu1 %v6770_v20 }
 0x3f8   :  { %6772 = vmatprep.subr.bf16.mxu1 %v12118_v27 }
 0x3fb   :  { %6774 = vmatpush3.bf16.msra.mxu1 %v6773_v11 }
 0x3fc   :  { %6509 = vmatmul.mubr.msk.bf16.gmra.mrb[116].mxu0 %vm3776_vm4, %v12121_v48  ;;  %6775 = vmatprep.subr.bf16.mxu1 %v12118_v27 }
 0x3fd   :  { %6512 = vmatprep.mubr.msk.bf16.mxu0 %vm6822_vm0, %v11621_v24 }
 0x3fe   :  { %6413 = vmatmul.mubr.msk.bf16.gmra.mrb[28].mxu1 %vm3776_vm4, %v12124_v21 }
 0x3ff   :  { %6416 = vmatprep.mubr.msk.bf16.mxu1 %vm6822_vm0, %v11621_v24  ;;  %6777 = vmatpush3.bf16.msra.mxu1 %v6776_v12  ;;  %v12135_v12 = vpack.c.bf16 %v9927_v0, %v9922_v6  ;;  %v12138_v6 = vld [vmem:[#allocation112_spill] sm:$0xff]  ;;  %v12139_v0 = vld [vmem:[#allocation111_spill] sm:$0xff] }
 0x400   :  { %6778 = vmatprep.subr.bf16.mxu1 %v12118_v27 }
 0x403   :  { %6780 = vmatpush3.bf16.msra.mxu1 %v6779_v38  ;;  %v12141_v38 = vpack.c.bf16 %v9976_v33, %v9973_v34 }
 0x404   :  { %6513 = vmatmul.mubr.msk.bf16.gmra.mrb[120].mxu0 %vm3776_vm4, %v12125_v7  ;;  %6781 = vmatprep.subr.bf16.mxu1 %v12118_v27  ;;  %v12140_v7 = vpack.c.bf16 %v12138_v6, %v12139_v0  ;;  %v12151_v6 = vpack.c.bf16 %v10051_v32, %v10046_v63  ;;  %v12152_v32 = vld [vmem:[#allocation118_spill] sm:$0xff] }
 0x405   :  { %6516 = vmatprep.mubr.msk.bf16.mxu0 %vm6822_vm0, %v11621_v24  ;;  %v12153_v61 = vpack.c.bf16 %v10070_v31, %v12152_v32  ;;  %v12157_v31 = vpack.c.bf16 %v10100_v51, %v10097_v17  ;;  %v12161_v51 = vld [vmem:[#allocation122_spill] sm:$0xff] }
 0x406   :  { %6417 = vmatmul.mubr.msk.bf16.gmra.mrb[32].mxu1 %vm3776_vm4, %v12128_v39  ;;  %v12162_v17 = vpack.c.bf16 %v10132_v19, %v12161_v51  ;;  %v12166_v19 = vpack.c.bf16 %v10163_v53, %v10160_v57  ;;  %v12168_v57 = vld [vmem:[#allocation123_spill] sm:$0xff] }
 0x407   :  { %6420 = vmatprep.mubr.msk.bf16.mxu1 %vm6822_vm0, %v11621_v24  ;;  %6783 = vmatpush3.bf16.msra.mxu1 %v6782_v35  ;;  %v12155_v35 = vld [vmem:[#allocation119_spill] sm:$0xff]  ;;  %v12169_v53 = vpack.c.bf16 %v10195_v55, %v12168_v57  ;;  %v12173_v55 = vpack.c.bf16 %v10230_v58, %v10227_v45  ;;  %v12177_v58 = vld [vmem:[#allocation129_spill] sm:$0xff] }
 0x408   :  { %6784 = vmatprep.subr.bf16.mxu1 %v12118_v27  ;;  %v12147_v27 = vld [vmem:[#allocation117_spill] sm:$0xff]  ;;  %v12178_v45 = vpack.c.bf16 %v10261_v4, %v12177_v58  ;;  %v12182_v4 = vld [vmem:[#allocation130_spill] sm:$0xff] }
 0x409   :  { %v12184_v57 = vld [vmem:[#allocation133_spill] sm:$0xff] }
 0x40c   :  { %6517 = vmatmul.mubr.msk.bf16.gmra.mrb[124].mxu0 %vm3776_vm4, %v12130_v1  ;;  %v12143_v1 = vld [vmem:[#allocation113_spill] sm:$0xff] }
 0x40d   :  { %v10551_v20 = vpop.f32.mrb[20].mxu0  ;;  %6520 = vmatprep.mubr.msk.bf16.mxu0 %vm6822_vm0, %v11621_v24  ;;  %v12144_v40 = vpack.c.bf16 %v12142_v42, %v12143_v1 }
 0x40e   :  { %6421 = vmatmul.mubr.msk.bf16.gmra.mrb[36].mxu1 %vm3776_vm4, %v12133_v36  ;;  %v6306_v10 = vpop.f32.mrb[21].mxu0 }
 0x40f   :  { %v10560_v11 = vpop.f32.mrb[22].mxu0  ;;  %6424 = vmatprep.mubr.msk.bf16.mxu1 %vm6822_vm0, %v11621_v24  ;;  %v12145_v10 = vld [vmem:[#allocation115_spill] sm:$0xff] }
 0x410   :  { %v6307_v22 = vpop.f32.mrb[23].mxu0 }
 0x411   :  { %v12146_v22 = vpack.c.bf16 %v10007_v52, %v12145_v10  ;;  %v12150_v52 = vpack.c.bf16 %v10038_v62, %v10035_v41  ;;  %v4844_v41 = vld [vmem:[%s11307_s9 + $0x70] sm:$0xff]  ;;  %v4845_v62 = vld [vmem:[%s11307_s9 + $0x78] sm:$0xff]  ;;  %v12159_v10 = vld [vmem:[#allocation2_spill] sm:$0xff] }
 0x414   :  { %6521 = vmatmul.mubr.msk.bf16.gmra.mrb[128].mxu0 %vm3776_vm4, %v12134_v56  ;;  %v12148_v56 = vld [vmem:[#allocation116_spill] sm:$0xff] }
 0x415   :  { %6524 = vmatprep.mubr.msk.bf16.mxu0 %vm6822_vm0, %v11621_v24 }
 0x416   :  { %v10570_v25 = vpop.f32.mrb[24].mxu0  ;;  %6425 = vmatmul.mubr.msk.bf16.gmra.mrb[40].mxu1 %vm3776_vm4, %v12135_v12  ;;  %v12149_v12 = vpack.c.bf16 %v12147_v27, %v12148_v56 }
 0x417   :  { %v6310_v48 = vpop.f32.mrb[25].mxu0  ;;  %6428 = vmatprep.mubr.msk.bf16.mxu1 %vm6822_vm0, %v11621_v24 }
 0x418   :  { %v10578_v23 = vpop.f32.mrb[26].mxu0 }
 0x419   :  { %v6311_v26 = vpop.f32.mrb[27].mxu0 }
 0x41c   :  { %6525 = vmatmul.mubr.msk.bf16.gmra.mrb[132].mxu0 %vm3776_vm4, %v12137_v43 }
 0x41d   :  { %6528 = vmatprep.mubr.msk.bf16.mxu0 %vm6822_vm0, %v11621_v24 }
 0x41e   :  { %v10586_v21 = vpop.f32.mrb[28].mxu0  ;;  %6429 = vmatmul.mubr.msk.bf16.gmra.mrb[44].mxu1 %vm3776_vm4, %v12140_v7 }
 0x41f   :  { %v6314_v9 = vpop.f32.mrb[29].mxu0  ;;  %6432 = vmatprep.mubr.msk.bf16.mxu1 %vm6822_vm0, %v11621_v24 }
 0x420   :  { %v10594_v3 = vpop.f32.mrb[30].mxu0 }
 0x421   :  { %v6315_v39 = vpop.f32.mrb[31].mxu0 }
 0x422   :  { %v6785_v39 = vpack.c.bf16 %v4845_v62, %v4844_v41 }
 0x424   :  { %6529 = vmatmul.mubr.msk.bf16.gmra.mrb[136].mxu0 %vm3776_vm4, %v12141_v38  ;;  %6786 = vmatpush3.bf16.msra.mxu1 %v6785_v39  ;;  %v12156_v38 = vpack.c.bf16 %v12154_v14, %v12155_v35 }
 0x425   :  { %6532 = vmatprep.mubr.msk.bf16.mxu0 %vm6822_vm0, %v11621_v24 }
 0x426   :  { %6433 = vmatmul.mubr.msk.bf16.gmra.mrb[48].mxu1 %vm3776_vm4, %v12144_v40 }
 0x427   :  { %v10613_v47 = vpop.f32.mrb[32].mxu0  ;;  %6436 = vmatprep.mubr.msk.bf16.mxu1 %vm6822_vm0, %v11621_v24 }
 0x428   :  { %v6318_v36 = vpop.f32.mrb[33].mxu0 }
 0x429   :  { %v10617_v33 = vpop.f32.mrb[34].mxu0 }
 0x42a   :  { %v6319_v34 = vpop.f32.mrb[35].mxu0 }
 0x42b   :  { %v12158_v34 = vld [vmem:[#allocation121_spill] sm:$0xff] }
 0x42c   :  { %6533 = vmatmul.mubr.msk.bf16.gmra.mrb[140].mxu0 %vm3776_vm4, %v12146_v22  ;;  %v12160_v22 = vpack.c.bf16 %v12158_v34, %v12159_v10  ;;  %v12174_v10 = vld [vmem:[#allocation127_spill] sm:$0xff] }
 0x42d   :  { %6536 = vmatprep.mubr.msk.bf16.mxu0 %vm6822_vm0, %v11621_v24 }
 0x42e   :  { %6437 = vmatmul.mubr.msk.bf16.gmra.mrb[52].mxu1 %vm3776_vm4, %v12149_v12 }
 0x42f   :  { %v10629_v48 = vpop.f32.mrb[36].mxu0  ;;  %6440 = vmatprep.mubr.msk.bf16.mxu1 %vm6822_vm0, %v11621_v24 }
 0x430   :  { %v6322_v26 = vpop.f32.mrb[37].mxu0 }
 0x431   :  { %v10633_v37 = vpop.f32.mrb[38].mxu0 }
 0x432   :  { %v6323_v43 = vpop.f32.mrb[39].mxu0 }
 0x433   :  { %v12163_v43 = vld [vmem:[#allocation124_spill] sm:$0xff] }
 0x434   :  { %6537 = vmatmul.mubr.msk.bf16.gmra.mrb[144].mxu0 %vm3776_vm4, %v12150_v52  ;;  %v12164_v52 = vld [vmem:[#allocation71_spill] sm:$0xff] }
 0x435   :  { %6540 = vmatprep.mubr.msk.bf16.mxu0 %vm6822_vm0, %v11621_v24 }
 0x436   :  { %6441 = vmatmul.mubr.msk.bf16.gmra.mrb[56].mxu1 %vm3776_vm4, %v12151_v6  ;;  %v12165_v6 = vpack.c.bf16 %v12163_v43, %v12164_v52  ;;  %v12179_v52 = vld [vmem:[#allocation131_spill] sm:$0xff] }
 0x437   :  { %v10645_v0 = vpop.f32.mrb[40].mxu0  ;;  %6444 = vmatprep.mubr.msk.bf16.mxu1 %vm6822_vm0, %v11621_v24 }
 0x438   :  { %v6326_v7 = vpop.f32.mrb[41].mxu0 }
 0x439   :  { %v10655_v9 = vpop.f32.mrb[42].mxu0 }
 0x43a   :  { %v6327_v63 = vpop.f32.mrb[43].mxu0 }
 0x43b   :  { %v12167_v63 = vpack.c.bf16 %v10176_v59, %v10171_v16  ;;  %v12170_v16 = vld [vmem:[#allocation125_spill] sm:$0xff]  ;;  %v12171_v59 = vld [vmem:[#allocation126_spill] sm:$0xff] }
 0x43c   :  { %6541 = vmatmul.mubr.msk.bf16.gmra.mrb[148].mxu0 %vm3776_vm4, %v12153_v61 }
 0x43d   :  { %6544 = vmatprep.mubr.msk.bf16.mxu0 %vm6822_vm0, %v11621_v24 }
 0x43e   :  { %6445 = vmatmul.mubr.msk.bf16.gmra.mrb[60].mxu1 %vm3776_vm4, %v12156_v38  ;;  %v12172_v38 = vpack.c.bf16 %v12170_v16, %v12171_v59 }
 0x43f   :  { %v10667_v42 = vpop.f32.mrb[44].mxu0  ;;  %6448 = vmatprep.mubr.msk.bf16.mxu1 %vm6822_vm0, %v11621_v24 }
 0x440   :  { %v6330_v1 = vpop.f32.mrb[45].mxu0 }
 0x441   :  { %v10671_v40 = vpop.f32.mrb[46].mxu0 }
 0x442   :  { %v6331_v36 = vpop.f32.mrb[47].mxu0 }
 0x444   :  { %6545 = vmatmul.mubr.msk.bf16.gmra.mrb[152].mxu0 %vm3776_vm4, %v12157_v31 }
 0x445   :  { %6548 = vmatprep.mubr.msk.bf16.mxu0 %vm6822_vm0, %v11621_v24 }
 0x446   :  { %6449 = vmatmul.mubr.msk.bf16.gmra.mrb[64].mxu1 %vm3776_vm4, %v12160_v22  ;;  %v12175_v22 = vld [vmem:[#allocation128_spill] sm:$0xff] }
 0x447   :  { %v10683_v27 = vpop.f32.mrb[48].mxu0  ;;  %6452 = vmatprep.mubr.msk.bf16.mxu1 %vm6822_vm0, %v11621_v24 }
 0x448   :  { %v6334_v56 = vpop.f32.mrb[49].mxu0 }
 0x449   :  { %v10687_v12 = vpop.f32.mrb[50].mxu0  ;;  %v12176_v56 = vpack.c.bf16 %v12174_v10, %v12175_v22  ;;  %v12190_v22 = vld [vmem:[#allocation16_spill] sm:$0xff] }
 0x44a   :  { %v6335_v26 = vpop.f32.mrb[51].mxu0 }
 0x44c   :  { %6549 = vmatmul.mubr.msk.bf16.gmra.mrb[156].mxu0 %vm3776_vm4, %v12162_v17 }
 0x44d   :  { %6552 = vmatprep.mubr.msk.bf16.mxu0 %vm6822_vm0, %v11621_v24 }
 0x44e   :  { %6453 = vmatmul.mubr.msk.bf16.gmra.mrb[68].mxu1 %vm3776_vm4, %v12165_v6  ;;  %v12180_v6 = vld [vmem:[#allocation132_spill] sm:$0xff] }
 0x44f   :  { %v10699_v7 = vpop.f32.mrb[52].mxu0  ;;  %6456 = vmatprep.mubr.msk.bf16.mxu1 %vm6822_vm0, %v11621_v24 }
 0x450   :  { %v6338_v41 = vpop.f32.mrb[53].mxu0 }
 0x451   :  { %v10703_v62 = vpop.f32.mrb[54].mxu0  ;;  %v12181_v41 = vpack.c.bf16 %v12179_v52, %v12180_v6  ;;  %v12193_v6 = vld [vmem:[#allocation18_spill] sm:$0xff] }
 0x452   :  { %v6339_v39 = vpop.f32.mrb[55].mxu0 }
 0x454   :  { %6553 = vmatmul.mubr.msk.bf16.gmra.mrb[160].mxu0 %vm3776_vm4, %v12166_v19 }
 0x455   :  { %6556 = vmatprep.mubr.msk.bf16.mxu0 %vm6822_vm0, %v11621_v24 }
 0x456   :  { %6457 = vmatmul.mubr.msk.bf16.gmra.mrb[72].mxu1 %vm3776_vm4, %v12167_v63 }
 0x457   :  { %v10715_v32 = vpop.f32.mrb[56].mxu0  ;;  %6460 = vmatprep.mubr.msk.bf16.mxu1 %vm6822_vm0, %v11621_v24 }
 0x458   :  { %v6342_v61 = vpop.f32.mrb[57].mxu0 }
 0x459   :  { %v10719_v14 = vpop.f32.mrb[58].mxu0 }
 0x45a   :  { %v6343_v35 = vpop.f32.mrb[59].mxu0 }
 0x45b   :  { %v12183_v35 = vpack.c.bf16 %v10292_v5, %v12182_v4  ;;  %v12187_v5 = vld [vmem:[#allocation11_spill] sm:$0xff]  ;;  %v12197_v4 = vld [vmem:[#allocation17_spill] sm:$0xff] }
 0x45c   :  { %6557 = vmatmul.mubr.msk.bf16.gmra.mrb[164].mxu0 %vm3776_vm4, %v12169_v53  ;;  %v12185_v53 = vld [vmem:[#allocation134_spill] sm:$0xff] }
 0x45d   :  { %6560 = vmatprep.mubr.msk.bf16.mxu0 %vm6822_vm0, %v11621_v24  ;;  %v12186_v16 = vpack.c.bf16 %v12184_v57, %v12185_v53 }
 0x45e   :  { %6461 = vmatmul.mubr.msk.bf16.gmra.mrb[76].mxu1 %vm3776_vm4, %v12172_v38 }
 0x45f   :  { %v10731_v1 = vpop.f32.mrb[60].mxu0  ;;  %6464 = vmatprep.mubr.msk.bf16.mxu1 %vm6822_vm0, %v11621_v24 }
 0x460   :  { %v6346_v36 = vpop.f32.mrb[61].mxu0 }
 0x461   :  { %v10735_v31 = vpop.f32.mrb[62].mxu0 }
 0x462   :  { %v6347_v34 = vpop.f32.mrb[63].mxu0 }
 0x464   :  { %6561 = vmatmul.mubr.msk.bf16.gmra.mrb[168].mxu0 %vm3776_vm4, %v12173_v55  ;;  %v12188_v55 = vld [vmem:[#allocation72_spill] sm:$0xff] }
 0x465   :  { %6564 = vmatprep.mubr.msk.bf16.mxu0 %vm6822_vm0, %v11621_v24  ;;  %v12189_v10 = vpack.c.bf16 %v12187_v5, %v12188_v55  ;;  %v12200_v5 = vld [vmem:[#allocation19_spill] sm:$0xff] }
 0x466   :  { %6465 = vmatmul.mubr.msk.bf16.gmra.mrb[80].mxu1 %vm3776_vm4, %v12176_v56  ;;  %v12191_v56 = vld [vmem:[#allocation13_spill] sm:$0xff]  ;;  %v12201_v55 = vpack.c.bf16 %v10399_v15, %v12200_v5 }
 0x467   :  { %v10747_v26 = vpop.f32.mrb[64].mxu0  ;;  %6468 = vmatprep.mubr.msk.bf16.mxu1 %vm6822_vm0, %v11621_v24 }
 0x468   :  { %v6350_v51 = vpop.f32.mrb[65].mxu0 }
 0x469   :  { %v10751_v17 = vpop.f32.mrb[66].mxu0  ;;  %v12192_v51 = vpack.c.bf16 %v12190_v22, %v12191_v56 }
 0x46a   :  { %v6351_v43 = vpop.f32.mrb[67].mxu0 }
 0x46c   :  { %6565 = vmatmul.mubr.msk.bf16.gmra.mrb[172].mxu0 %vm3776_vm4, %v12178_v45 }
 0x46d   :  { %6568 = vmatprep.mubr.msk.bf16.mxu0 %vm6822_vm0, %v11621_v24 }
 0x46e   :  { %6469 = vmatmul.mubr.msk.bf16.gmra.mrb[84].mxu1 %vm3776_vm4, %v12181_v41  ;;  %v12194_v41 = vld [vmem:[#allocation15_spill] sm:$0xff] }
 0x46f   :  { %v10763_v39 = vpop.f32.mrb[68].mxu0  ;;  %6472 = vmatprep.mubr.msk.bf16.mxu1 %vm6822_vm0, %v11621_v24 }
 0x470   :  { %v6354_v19 = vpop.f32.mrb[69].mxu0 }
 0x471   :  { %v10767_v63 = vpop.f32.mrb[70].mxu0  ;;  %v12195_v19 = vpack.c.bf16 %v12193_v6, %v12194_v41  ;;  %v12205_v41 = vld [vmem:[#allocation101_spill] sm:$0xff] }
 0x472   :  { %v6355_v61 = vpop.f32.mrb[71].mxu0 }
 0x473   :  { %v12196_v61 = vld [vmem:[#allocation20_spill] sm:$0xff] }
 0x474   :  { %6569 = vmatmul.mubr.msk.bf16.gmra.mrb[176].mxu0 %vm3776_vm4, %v12183_v35  ;;  %v12198_v35 = vpack.c.bf16 %v12196_v61, %v12197_v4 }
 0x475   :  { %6572 = vmatprep.mubr.msk.bf16.mxu0 %vm6822_vm0, %v11621_v24 }
 0x476   :  { %6473 = vmatmul.mubr.msk.bf16.gmra.mrb[88].mxu1 %vm3776_vm4, %v12186_v16 }
 0x477   :  { %v10779_v59 = vpop.f32.mrb[72].mxu0  ;;  %6476 = vmatprep.mubr.msk.bf16.mxu1 %vm6822_vm0, %v11621_v24 }
 0x478   :  { %v6358_v38 = vpop.f32.mrb[73].mxu0 }
 0x479   :  { %v10783_v36 = vpop.f32.mrb[74].mxu0 }
 0x47a   :  { %v6359_v34 = vpop.f32.mrb[75].mxu0 }
 0x47b   :  { %v12199_v34 = vpack.c.bf16 %v10385_v13, %v10382_v2  ;;  %v12202_v2 = vpack.c.bf16 %v10415_v30, %v10412_v18  ;;  %v12203_v13 = vpack.c.bf16 %v10427_v49, %v10422_v44 }
 0x47c   :  { %6573 = vmatmul.mubr.msk.bf16.gmra.mrb[180].mxu0 %vm3776_vm4, %v12189_v10 }
 0x47d   :  { %6576 = vmatprep.mubr.msk.bf16.mxu0 %vm6822_vm0, %v11621_v24 }
 0x47e   :  { %6477 = vmatmul.mubr.msk.bf16.gmra.mrb[92].mxu1 %vm3776_vm4, %v12192_v51 }
 0x47f   :  { %v10795_v43 = vpop.f32.mrb[76].mxu0  ;;  %6480 = vmatprep.mubr.msk.bf16.mxu1 %vm6822_vm0, %v11621_v24 }
 0x480   :  { %v6362_v58 = vpop.f32.mrb[77].mxu0 }
 0x481   :  { %v10799_v45 = vpop.f32.mrb[78].mxu0  ;;  %v12204_v58 = vld [vmem:[#allocation95_spill] sm:$0xff] }
 0x482   :  { %v6363_v52 = vpop.f32.mrb[79].mxu0 }
 0x483   :  { %v3531_v52 = vmul.f32 %v10449_v50, %v12204_v58  ;;  %v12207_v50 = vld [vmem:[#allocation97_spill] sm:$0xff] }
 0x484   :  { %6577 = vmatmul.mubr.msk.bf16.gmra.mrb[184].mxu0 %vm3776_vm4, %v12195_v19  ;;  %v12206_v19 = vrot.slane %v12205_v41, 1 }
 0x485   :  { %6580 = vmatprep.mubr.msk.bf16.mxu0 %vm6822_vm0, %v11621_v24  ;;  %v3554_v49 = vpack.c.bf16 %v3531_v52, %v3531_v52 }
 0x486   :  { %6481 = vmatmul.mubr.msk.bf16.gmra.mrb[96].mxu1 %vm3776_vm4, %v12198_v35  ;;  %v3644_v44 = vsel %vm605_vm3, %v3599_v28, %v12206_v19 }
 0x487   :  { %v10811_v57 = vpop.f32.mrb[80].mxu0  ;;  %6484 = vmatprep.mubr.msk.bf16.mxu1 %vm6822_vm0, %v11621_v24  ;;  %v3689_v61 = vmul.f32 %v3644_v44, %v12207_v50 }
 0x488   :  { %v6366_v53 = vpop.f32.mrb[81].mxu0 }
 0x489   :  { %v10815_v16 = vpop.f32.mrb[82].mxu0  ;;  %v3712_v28 = vpack.c.bf16 %v3689_v61, %v3689_v61 }
 0x48a   :  { %v6367_v38 = vpop.f32.mrb[83].mxu0 }
 0x48c   :  { %6581 = vmatmul.mubr.msk.bf16.gmra.mrb[188].mxu0 %vm3776_vm4, %v12199_v34 }
 0x48d   :  { %6584 = vmatprep.mubr.msk.bf16.mxu0 %vm6822_vm0, %v11621_v24 }
 0x48e   :  { %6485 = vmatmul.mubr.msk.bf16.gmra.mrb[100].mxu1 %vm3776_vm4, %v12201_v55 }
 0x48f   :  { %v10827_v10 = vpop.f32.mrb[84].mxu0  ;;  %6488 = vmatprep.mubr.msk.bf16.mxu1 %vm6822_vm0, %v11621_v24 }
 0x490   :  { %v6370_v22 = vpop.f32.mrb[85].mxu0 }
 0x491   :  { %v10831_v56 = vpop.f32.mrb[86].mxu0 }
 0x492   :  { %v6371_v51 = vpop.f32.mrb[87].mxu0 }
 0x494   :  { %6585 = vmatmul.mubr.msk.bf16.gmra.mrb[192].mxu0 %vm3776_vm4, %v12202_v2 }
 0x495   :  { %6588 = vmatprep.mubr.msk.bf16.mxu0 %vm6822_vm0, %v11621_v24 }
 0x496   :  { %6489 = vmatmul.mubr.msk.bf16.gmra.mrb[104].mxu1 %vm3776_vm4, %v12203_v13 }
 0x497   :  { %v10843_v15 = vpop.f32.mrb[88].mxu0  ;;  %6492 = vmatprep.mubr.msk.bf16.mxu1 %vm6822_vm0, %v11621_v24 }
 0x498   :  { %v6374_v6 = vpop.f32.mrb[89].mxu0 }
 0x499   :  { %v10849_v18 = vpop.f32.mrb[90].mxu0 }
 0x49a   :  { %v6375_v30 = vpop.f32.mrb[91].mxu0 }
 0x49c   :  { %6589 = vmatmul.mubr.msk.bf16.gmra.mrb[196].mxu0 %vm3776_vm4, %v3711_v46 }
 0x49d   :  { %6592 = vmatprep.mubr.msk.bf16.mxu0 %vm6822_vm0, %v11621_v24 }
 0x49e   :  { %6493 = vmatmul.mubr.msk.bf16.gmra.mrb[108].mxu1 %vm3776_vm4, %v3554_v49 }
 0x49f   :  { %v10865_v4 = vpop.f32.mrb[92].mxu0  ;;  %6628 = vmatprep.mubr.msk.f32.mxu1 %vm6822_vm0, %v11621_v24 }
 0x4a0   :  { %v6378_v8 = vpop.f32.mrb[93].mxu0 }
 0x4a1   :  { %v10869_v54 = vpop.f32.mrb[94].mxu0 }
 0x4a2   :  { %v6379_v35 = vpop.f32.mrb[95].mxu0 }
 0x4a4   :  { %6593 = vmatmul.mubr.msk.bf16.gmra.mrb[200].mxu0 %vm3776_vm4, %v3712_v28  ;;  %v10891_v28 = vld [vmem:[%s11308_s8] ss:$0 sm:$0xff] }
 0x4a7   :  { %v10872_v29 = vpop.f32.mrb[96].mxu0 }
 0x4a8   :  { %v6382_v60 = vpop.f32.mrb[97].mxu0 }
 0x4a9   :  { %v10874_v46 = vpop.f32.mrb[98].mxu0 }
 0x4aa   :  { %v6383_v53 = vpop.f32.mrb[99].mxu0 }
 0x4af   :  { %v10876_v38 = vpop.f32.mrb[100].mxu0 }
 0x4b0   :  { %v6386_v34 = vpop.f32.mrb[101].mxu0 }
 0x4b1   :  { %v10878_v5 = vpop.f32.mrb[102].mxu0 }
 0x4b2   :  { %v6387_v55 = vpop.f32.mrb[103].mxu0 }
 0x4b7   :  { %v10880_v22 = vpop.f32.mrb[104].mxu0 }
 0x4b8   :  { %v6390_v51 = vpop.f32.mrb[105].mxu0 }
 0x4b9   :  { %v10882_v2 = vpop.f32.mrb[106].mxu0 }
 0x4ba   :  { %v6391_v13 = vpop.f32.mrb[107].mxu0 }
 0x4bf   :  { %v10884_v58 = vpop.f32.mrb[108].mxu0 }
 0x4c0   :  { %v6394_v52 = vpop.f32.mrb[109].mxu0 }
 0x4c1   :  { %v4059_v6 = vpop.f32.mrb[110].mxu0  ;;  %v4189_v30 = vpop.f32.mrb[20].mxu1 }
 0x4c2   :  { %v6395_v41 = vpop.f32.mrb[111].mxu0  ;;  %v4190_v19 = vadd.f32 %v4189_v30, %v10551_v20  ;;  %v6406_v44 = vpop.f32.mrb[21].mxu1 }
 0x4c3   :  { %v4192_v49 = vpop.f32.mrb[22].mxu1 }
 0x4c4   :  { %v4193_v50 = vadd.f32 %v4192_v49, %v10560_v11  ;;  %v6407_v61 = vpop.f32.mrb[23].mxu1 }
 0x4c7   :  { %v4506_v8 = vpop.f32.mrb[112].mxu0 }
 0x4c8   :  { %v4688_v35 = vadd.f32 %v4506_v8, %v4190_v19  ;;  %v6506_v60 = vpop.f32.mrb[113].mxu0 }
 0x4c9   :  { %v4509_v53 = vpop.f32.mrb[114].mxu0  ;;  %v4197_v34 = vpop.f32.mrb[24].mxu1 }
 0x4ca   :  { %v4740_v55 = vadd.f32 %v10891_v28, %v4688_v35  ;;  %v4689_v51 = vadd.f32 %v4509_v53, %v4193_v50  ;;  %v4198_v20 = vadd.f32 %v4197_v34, %v10570_v25  ;;  %v6507_v13 = vpop.f32.mrb[115].mxu0  ;;  %v6410_v52 = vpop.f32.mrb[25].mxu1 }
 0x4cb   :  { %v4200_v6 = vpop.f32.mrb[26].mxu1 }
 0x4cc   :  { %v4785_v11 = vmax.f32 %v4740_v55, 0.0  ;;  %v4741_v30 = vadd.f32 %v10891_v28, %v4689_v51  ;;  %v4201_v41 = vadd.f32 %v4200_v6, %v10578_v23  ;;  %v6411_v44 = vpop.f32.mrb[27].mxu1 }
 0x4ce   :  { %6629 = vmatmul.mubr.f32.vlgmr.msra.gmra.mrb[112].mxu1 %v4785_v11  ;;  %v4786_v19 = vmax.f32 %v4741_v30, 0.0 }
 0x4cf   :  { %v4514_v49 = vpop.f32.mrb[116].mxu0  ;;  %6631 = vmatprep.mubr.msk.f32.mxu1 %vm6822_vm0, %v11621_v24 }
 0x4d0   :  { %v4690_v61 = vadd.f32 %v4514_v49, %v4198_v20  ;;  %v6510_v8 = vpop.f32.mrb[117].mxu0 }
 0x4d1   :  { %v4517_v50 = vpop.f32.mrb[118].mxu0  ;;  %v4205_v35 = vpop.f32.mrb[28].mxu1 }
 0x4d2   :  { %v4742_v25 = vadd.f32 %v10891_v28, %v4690_v61  ;;  %v4691_v60 = vadd.f32 %v4517_v50, %v4201_v41  ;;  %v4206_v53 = vadd.f32 %v4205_v35, %v10586_v21  ;;  %v6511_v34 = vpop.f32.mrb[119].mxu0  ;;  %6632 = vmatmul.mubr.f32.gmra.mrb[114].mxu1 %v4786_v19  ;;  %v6414_v55 = vpop.f32.mrb[29].mxu1 }
 0x4d3   :  { %v4208_v23 = vpop.f32.mrb[30].mxu1  ;;  %6634 = vmatprep.mubr.msk.f32.mxu1 %vm6822_vm0, %v11621_v24 }
 0x4d4   :  { %v4787_v51 = vmax.f32 %v4742_v25, 0.0  ;;  %v4743_v13 = vadd.f32 %v10891_v28, %v4691_v60  ;;  %v4209_v20 = vadd.f32 %v4208_v23, %v10594_v3  ;;  %v6415_v52 = vpop.f32.mrb[31].mxu1 }
 0x4d6   :  { %6635 = vmatmul.mubr.f32.gmra.mrb[116].mxu1 %v4787_v51  ;;  %v4788_v11 = vmax.f32 %v4743_v13, 0.0 }
 0x4d7   :  { %v4522_v6 = vpop.f32.mrb[120].mxu0  ;;  %6637 = vmatprep.mubr.msk.f32.mxu1 %vm6822_vm0, %v11621_v24 }
 0x4d8   :  { %v4692_v21 = vadd.f32 %v4522_v6, %v4206_v53  ;;  %v6514_v30 = vpop.f32.mrb[121].mxu0 }
 0x4d9   :  { %v4525_v41 = vpop.f32.mrb[122].mxu0  ;;  %v4213_v44 = vpop.f32.mrb[32].mxu1 }
 0x4da   :  { %v4744_v49 = vadd.f32 %v10891_v28, %v4692_v21  ;;  %v4693_v19 = vadd.f32 %v4525_v41, %v4209_v20  ;;  %v4214_v61 = vadd.f32 %v4213_v44, %v10613_v47  ;;  %v6515_v8 = vpop.f32.mrb[123].mxu0  ;;  %6638 = vmatmul.mubr.f32.gmra.mrb[118].mxu1 %v4788_v11  ;;  %v6418_v50 = vpop.f32.mrb[33].mxu1 }
 0x4db   :  { %v4216_v3 = vpop.f32.mrb[34].mxu1  ;;  %6640 = vmatprep.mubr.msk.f32.mxu1 %vm6822_vm0, %v11621_v24 }
 0x4dc   :  { %v4789_v35 = vmax.f32 %v4744_v49, 0.0  ;;  %v4745_v25 = vadd.f32 %v10891_v28, %v4693_v19  ;;  %v4217_v60 = vadd.f32 %v4216_v3, %v10617_v33  ;;  %v6419_v53 = vpop.f32.mrb[35].mxu1 }
 0x4de   :  { %6641 = vmatmul.mubr.f32.gmra.mrb[120].mxu1 %v4789_v35  ;;  %v4790_v55 = vmax.f32 %v4745_v25, 0.0 }
 0x4df   :  { %v4530_v34 = vpop.f32.mrb[124].mxu0  ;;  %6643 = vmatprep.mubr.msk.f32.mxu1 %vm6822_vm0, %v11621_v24 }
 0x4e0   :  { %v4694_v47 = vadd.f32 %v4530_v34, %v4214_v61  ;;  %v6518_v23 = vpop.f32.mrb[125].mxu0 }
 0x4e1   :  { %v4533_v51 = vpop.f32.mrb[126].mxu0  ;;  %v4221_v13 = vpop.f32.mrb[36].mxu1 }
 0x4e2   :  { %v4746_v20 = vadd.f32 %v10891_v28, %v4694_v47  ;;  %v4695_v52 = vadd.f32 %v4533_v51, %v4217_v60  ;;  %v4222_v6 = vadd.f32 %v4221_v13, %v10629_v48  ;;  %v6519_v11 = vpop.f32.mrb[127].mxu0  ;;  %6644 = vmatmul.mubr.f32.gmra.mrb[122].mxu1 %v4790_v55  ;;  %v6422_v21 = vpop.f32.mrb[37].mxu1 }
 0x4e3   :  { %v4224_v33 = vpop.f32.mrb[38].mxu1  ;;  %6646 = vmatprep.mubr.msk.f32.mxu1 %vm6822_vm0, %v11621_v24 }
 0x4e4   :  { %v4791_v30 = vmax.f32 %v4746_v20, 0.0  ;;  %v4747_v41 = vadd.f32 %v10891_v28, %v4695_v52  ;;  %v4225_v44 = vadd.f32 %v4224_v33, %v10633_v37  ;;  %v6423_v49 = vpop.f32.mrb[39].mxu1 }
 0x4e6   :  { %6647 = vmatmul.mubr.f32.gmra.mrb[124].mxu1 %v4791_v30  ;;  %v4792_v61 = vmax.f32 %v4747_v41, 0.0 }
 0x4e7   :  { %v4538_v19 = vpop.f32.mrb[128].mxu0  ;;  %6649 = vmatprep.mubr.msk.f32.mxu1 %vm6822_vm0, %v11621_v24 }
 0x4e8   :  { %v4696_v48 = vadd.f32 %v4538_v19, %v4222_v6  ;;  %v6522_v8 = vpop.f32.mrb[129].mxu0 }
 0x4e9   :  { %v4541_v50 = vpop.f32.mrb[130].mxu0  ;;  %v4229_v3 = vpop.f32.mrb[40].mxu1 }
 0x4ea   :  { %v4748_v35 = vadd.f32 %v10891_v28, %v4696_v48  ;;  %v4697_v25 = vadd.f32 %v4541_v50, %v4225_v44  ;;  %v4230_v60 = vadd.f32 %v4229_v3, %v10645_v0  ;;  %v6523_v53 = vpop.f32.mrb[131].mxu0  ;;  %6650 = vmatmul.mubr.f32.gmra.mrb[126].mxu1 %v4792_v61  ;;  %v6426_v34 = vpop.f32.mrb[41].mxu1 }
 0x4eb   :  { %v4232_v37 = vpop.f32.mrb[42].mxu1  ;;  %6652 = vmatprep.mubr.msk.f32.mxu1 %vm6822_vm0, %v11621_v24 }
 0x4ec   :  { %v4793_v55 = vmax.f32 %v4748_v35, 0.0  ;;  %v4749_v47 = vadd.f32 %v10891_v28, %v4697_v25  ;;  %v4233_v23 = vadd.f32 %v4232_v37, %v10655_v9  ;;  %v6427_v51 = vpop.f32.mrb[43].mxu1 }
 0x4ee   :  { %6653 = vmatmul.mubr.f32.gmra.mrb[128].mxu1 %v4793_v55  ;;  %v4794_v20 = vmax.f32 %v4749_v47, 0.0 }
 0x4ef   :  { %v4546_v13 = vpop.f32.mrb[132].mxu0  ;;  %6655 = vmatprep.mubr.msk.f32.mxu1 %vm6822_vm0, %v11621_v24 }
 0x4f0   :  { %v4698_v0 = vadd.f32 %v4546_v13, %v4230_v60  ;;  %v6526_v52 = vpop.f32.mrb[133].mxu0 }
 0x4f1   :  { %v4549_v6 = vpop.f32.mrb[134].mxu0  ;;  %v4237_v11 = vpop.f32.mrb[44].mxu1 }
 0x4f2   :  { %v4750_v21 = vadd.f32 %v10891_v28, %v4698_v0  ;;  %v4699_v33 = vadd.f32 %v4549_v6, %v4233_v23  ;;  %v4238_v30 = vadd.f32 %v4237_v11, %v10667_v42  ;;  %v6527_v41 = vpop.f32.mrb[135].mxu0  ;;  %6656 = vmatmul.mubr.f32.gmra.mrb[130].mxu1 %v4794_v20  ;;  %v6430_v44 = vpop.f32.mrb[45].mxu1 }
 0x4f3   :  { %v4240_v9 = vpop.f32.mrb[46].mxu1  ;;  %6658 = vmatprep.mubr.msk.f32.mxu1 %vm6822_vm0, %v11621_v24 }
 0x4f4   :  { %v4795_v49 = vmax.f32 %v4750_v21, 0.0  ;;  %v4751_v19 = vadd.f32 %v10891_v28, %v4699_v33  ;;  %v4241_v61 = vadd.f32 %v4240_v9, %v10671_v40  ;;  %v6431_v48 = vpop.f32.mrb[47].mxu1 }
 0x4f6   :  { %6659 = vmatmul.mubr.f32.gmra.mrb[132].mxu1 %v4795_v49  ;;  %v4796_v50 = vmax.f32 %v4751_v19, 0.0 }
 0x4f7   :  { %v4554_v8 = vpop.f32.mrb[136].mxu0  ;;  %6661 = vmatprep.mubr.msk.f32.mxu1 %vm6822_vm0, %v11621_v24 }
 0x4f8   :  { %v4700_v42 = vadd.f32 %v4554_v8, %v4238_v30  ;;  %v6530_v3 = vpop.f32.mrb[137].mxu0 }
 0x4f9   :  { %v4557_v35 = vpop.f32.mrb[138].mxu0  ;;  %v4245_v25 = vpop.f32.mrb[48].mxu1 }
 0x4fa   :  { %v4752_v60 = vadd.f32 %v10891_v28, %v4700_v42  ;;  %v4701_v53 = vadd.f32 %v4557_v35, %v4241_v61  ;;  %v4246_v34 = vadd.f32 %v4245_v25, %v10683_v27  ;;  %v6531_v37 = vpop.f32.mrb[139].mxu0  ;;  %6662 = vmatmul.mubr.f32.gmra.mrb[134].mxu1 %v4796_v50  ;;  %v6434_v55 = vpop.f32.mrb[49].mxu1 }
 0x4fb   :  { %v4248_v40 = vpop.f32.mrb[50].mxu1  ;;  %6664 = vmatprep.mubr.msk.f32.mxu1 %vm6822_vm0, %v11621_v24 }
 0x4fc   :  { %v4797_v47 = vmax.f32 %v4752_v60, 0.0  ;;  %v4753_v23 = vadd.f32 %v10891_v28, %v4701_v53  ;;  %v4249_v51 = vadd.f32 %v4248_v40, %v10687_v12  ;;  %v6435_v13 = vpop.f32.mrb[51].mxu1 }
 0x4fe   :  { %6665 = vmatmul.mubr.f32.gmra.mrb[136].mxu1 %v4797_v47  ;;  %v4798_v0 = vmax.f32 %v4753_v23, 0.0 }
 0x4ff   :  { %v4562_v20 = vpop.f32.mrb[140].mxu0  ;;  %6667 = vmatprep.mubr.msk.f32.mxu1 %vm6822_vm0, %v11621_v24 }
 0x500   :  { %v4702_v27 = vadd.f32 %v4562_v20, %v4246_v34  ;;  %v6534_v52 = vpop.f32.mrb[141].mxu0 }
 0x501   :  { %v4565_v6 = vpop.f32.mrb[142].mxu0  ;;  %v4253_v11 = vpop.f32.mrb[52].mxu1 }
 0x502   :  { %v4754_v21 = vadd.f32 %v10891_v28, %v4702_v27  ;;  %v4703_v33 = vadd.f32 %v4565_v6, %v4249_v51  ;;  %v4254_v30 = vadd.f32 %v4253_v11, %v10699_v7  ;;  %v6535_v41 = vpop.f32.mrb[143].mxu0  ;;  %6668 = vmatmul.mubr.f32.gmra.mrb[138].mxu1 %v4798_v0  ;;  %v6438_v44 = vpop.f32.mrb[53].mxu1 }
 0x503   :  { %v4256_v12 = vpop.f32.mrb[54].mxu1  ;;  %6670 = vmatprep.mubr.msk.f32.mxu1 %vm6822_vm0, %v11621_v24 }
 0x504   :  { %v4799_v9 = vmax.f32 %v4754_v21, 0.0  ;;  %v4755_v49 = vadd.f32 %v10891_v28, %v4703_v33  ;;  %v4257_v19 = vadd.f32 %v4256_v12, %v10703_v62  ;;  %v6439_v61 = vpop.f32.mrb[55].mxu1 }
 0x506   :  { %6671 = vmatmul.mubr.f32.gmra.mrb[140].mxu1 %v4799_v9  ;;  %v4800_v8 = vmax.f32 %v4755_v49, 0.0 }
 0x507   :  { %v4570_v48 = vpop.f32.mrb[144].mxu0  ;;  %6673 = vmatprep.mubr.msk.f32.mxu1 %vm6822_vm0, %v11621_v24 }
 0x508   :  { %v4704_v7 = vadd.f32 %v4570_v48, %v4254_v30  ;;  %v6538_v50 = vpop.f32.mrb[145].mxu0 }
 0x509   :  { %v4573_v42 = vpop.f32.mrb[146].mxu0  ;;  %v4261_v3 = vpop.f32.mrb[56].mxu1 }
 0x50a   :  { %v4756_v35 = vadd.f32 %v10891_v28, %v4704_v7  ;;  %v4705_v25 = vadd.f32 %v4573_v42, %v4257_v19  ;;  %v4262_v60 = vadd.f32 %v4261_v3, %v10715_v32  ;;  %v6539_v53 = vpop.f32.mrb[147].mxu0  ;;  %6674 = vmatmul.mubr.f32.gmra.mrb[142].mxu1 %v4800_v8  ;;  %v6442_v34 = vpop.f32.mrb[57].mxu1 }
 0x50b   :  { %v4264_v62 = vpop.f32.mrb[58].mxu1  ;;  %6676 = vmatprep.mubr.msk.f32.mxu1 %vm6822_vm0, %v11621_v24 }
 0x50c   :  { %v4801_v37 = vmax.f32 %v4756_v35, 0.0  ;;  %v4757_v55 = vadd.f32 %v10891_v28, %v4705_v25  ;;  %v4265_v40 = vadd.f32 %v4264_v62, %v10719_v14  ;;  %v6443_v47 = vpop.f32.mrb[59].mxu1 }
 0x50e   :  { %6677 = vmatmul.mubr.f32.gmra.mrb[144].mxu1 %v4801_v37  ;;  %v4802_v51 = vmax.f32 %v4757_v55, 0.0 }
 0x50f   :  { %v4578_v23 = vpop.f32.mrb[148].mxu0  ;;  %6679 = vmatprep.mubr.msk.f32.mxu1 %vm6822_vm0, %v11621_v24 }
 0x510   :  { %v4706_v32 = vadd.f32 %v4578_v23, %v4262_v60  ;;  %v6542_v13 = vpop.f32.mrb[149].mxu0 }
 0x511   :  { %v4581_v20 = vpop.f32.mrb[150].mxu0  ;;  %v4269_v0 = vpop.f32.mrb[60].mxu1 }
 0x512   :  { %v4758_v27 = vadd.f32 %v10891_v28, %v4706_v32  ;;  %v4707_v52 = vadd.f32 %v4581_v20, %v4265_v40  ;;  %v4270_v6 = vadd.f32 %v4269_v0, %v10731_v1  ;;  %v6543_v11 = vpop.f32.mrb[151].mxu0  ;;  %6680 = vmatmul.mubr.f32.gmra.mrb[146].mxu1 %v4802_v51  ;;  %v6446_v21 = vpop.f32.mrb[61].mxu1 }
 0x513   :  { %v4272_v14 = vpop.f32.mrb[62].mxu1  ;;  %6682 = vmatprep.mubr.msk.f32.mxu1 %vm6822_vm0, %v11621_v24 }
 0x514   :  { %v4803_v33 = vmax.f32 %v4758_v27, 0.0  ;;  %v4759_v30 = vadd.f32 %v10891_v28, %v4707_v52  ;;  %v4273_v41 = vadd.f32 %v4272_v14, %v10735_v31  ;;  %v6447_v44 = vpop.f32.mrb[63].mxu1 }
 0x516   :  { %6683 = vmatmul.mubr.f32.gmra.mrb[148].mxu1 %v4803_v33  ;;  %v4804_v9 = vmax.f32 %v4759_v30, 0.0 }
 0x517   :  { %v4586_v12 = vpop.f32.mrb[152].mxu0  ;;  %6685 = vmatprep.mubr.msk.f32.mxu1 %vm6822_vm0, %v11621_v24 }
 0x518   :  { %v4708_v1 = vadd.f32 %v4586_v12, %v4270_v6  ;;  %v6546_v49 = vpop.f32.mrb[153].mxu0 }
 0x519   :  { %v4589_v19 = vpop.f32.mrb[154].mxu0  ;;  %v4277_v61 = vpop.f32.mrb[64].mxu1 }
 0x51a   :  { %v4760_v48 = vadd.f32 %v10891_v28, %v4708_v1  ;;  %v4709_v8 = vadd.f32 %v4589_v19, %v4273_v41  ;;  %v4278_v7 = vadd.f32 %v4277_v61, %v10747_v26  ;;  %v6547_v50 = vpop.f32.mrb[155].mxu0  ;;  %6686 = vmatmul.mubr.f32.gmra.mrb[150].mxu1 %v4804_v9  ;;  %v6450_v42 = vpop.f32.mrb[65].mxu1 }
 0x51b   :  { %v4280_v31 = vpop.f32.mrb[66].mxu1  ;;  %6688 = vmatprep.mubr.msk.f32.mxu1 %vm6822_vm0, %v11621_v24 }
 0x51c   :  { %v4805_v3 = vmax.f32 %v4760_v48, 0.0  ;;  %v4761_v35 = vadd.f32 %v10891_v28, %v4709_v8  ;;  %v4281_v25 = vadd.f32 %v4280_v31, %v10751_v17  ;;  %v6451_v60 = vpop.f32.mrb[67].mxu1 }
 0x51e   :  { %6689 = vmatmul.mubr.f32.gmra.mrb[152].mxu1 %v4805_v3  ;;  %v4806_v34 = vmax.f32 %v4761_v35, 0.0 }
 0x51f   :  { %v4594_v53 = vpop.f32.mrb[156].mxu0  ;;  %6691 = vmatprep.mubr.msk.f32.mxu1 %vm6822_vm0, %v11621_v24 }
 0x520   :  { %v4710_v26 = vadd.f32 %v4594_v53, %v4278_v7  ;;  %v6550_v62 = vpop.f32.mrb[157].mxu0 }
 0x521   :  { %v4597_v37 = vpop.f32.mrb[158].mxu0  ;;  %v4285_v55 = vpop.f32.mrb[68].mxu1 }
 0x522   :  { %v4762_v40 = vadd.f32 %v10891_v28, %v4710_v26  ;;  %v4711_v47 = vadd.f32 %v4597_v37, %v4281_v25  ;;  %v4286_v23 = vadd.f32 %v4285_v55, %v10763_v39  ;;  %v6551_v51 = vpop.f32.mrb[159].mxu0  ;;  %6692 = vmatmul.mubr.f32.gmra.mrb[154].mxu1 %v4806_v34  ;;  %v6454_v32 = vpop.f32.mrb[69].mxu1 }
 0x523   :  { %v4288_v17 = vpop.f32.mrb[70].mxu1  ;;  %6694 = vmatprep.mubr.msk.f32.mxu1 %vm6822_vm0, %v11621_v24 }
 0x524   :  { %v4807_v13 = vmax.f32 %v4762_v40, 0.0  ;;  %v4763_v20 = vadd.f32 %v10891_v28, %v4711_v47  ;;  %v4289_v0 = vadd.f32 %v4288_v17, %v10767_v63  ;;  %v6455_v27 = vpop.f32.mrb[71].mxu1 }
 0x526   :  { %6695 = vmatmul.mubr.f32.gmra.mrb[156].mxu1 %v4807_v13  ;;  %v4808_v6 = vmax.f32 %v4763_v20, 0.0 }
 0x527   :  { %v4602_v52 = vpop.f32.mrb[160].mxu0  ;;  %6697 = vmatprep.mubr.msk.f32.mxu1 %vm6822_vm0, %v11621_v24 }
 0x528   :  { %v4712_v39 = vadd.f32 %v4602_v52, %v4286_v23  ;;  %v6554_v11 = vpop.f32.mrb[161].mxu0 }
 0x529   :  { %v4605_v21 = vpop.f32.mrb[162].mxu0  ;;  %v4293_v14 = vpop.f32.mrb[72].mxu1 }
 0x52a   :  { %v4764_v33 = vadd.f32 %v10891_v28, %v4712_v39  ;;  %v4713_v30 = vadd.f32 %v4605_v21, %v4289_v0  ;;  %v4294_v41 = vadd.f32 %v4293_v14, %v10779_v59  ;;  %v6555_v44 = vpop.f32.mrb[163].mxu0  ;;  %6698 = vmatmul.mubr.f32.gmra.mrb[158].mxu1 %v4808_v6  ;;  %v6458_v12 = vpop.f32.mrb[73].mxu1 }
 0x52b   :  { %v4296_v63 = vpop.f32.mrb[74].mxu1  ;;  %6700 = vmatprep.mubr.msk.f32.mxu1 %vm6822_vm0, %v11621_v24 }
 0x52c   :  { %v4809_v9 = vmax.f32 %v4764_v33, 0.0  ;;  %v4765_v1 = vadd.f32 %v10891_v28, %v4713_v30  ;;  %v4297_v49 = vadd.f32 %v4296_v63, %v10783_v36  ;;  %v6459_v19 = vpop.f32.mrb[75].mxu1 }
 0x52e   :  { %6701 = vmatmul.mubr.f32.gmra.mrb[160].mxu1 %v4809_v9  ;;  %v4810_v48 = vmax.f32 %v4765_v1, 0.0 }
 0x52f   :  { %v4610_v61 = vpop.f32.mrb[164].mxu0  ;;  %6703 = vmatprep.mubr.msk.f32.mxu1 %vm6822_vm0, %v11621_v24 }
 0x530   :  { %v4714_v59 = vadd.f32 %v4610_v61, %v4294_v41  ;;  %v6558_v8 = vpop.f32.mrb[165].mxu0 }
 0x531   :  { %v4613_v7 = vpop.f32.mrb[166].mxu0  ;;  %v4301_v50 = vpop.f32.mrb[76].mxu1 }
 0x532   :  { %v4766_v42 = vadd.f32 %v10891_v28, %v4714_v59  ;;  %v4715_v31 = vadd.f32 %v4613_v7, %v4297_v49  ;;  %v4302_v3 = vadd.f32 %v4301_v50, %v10795_v43  ;;  %v6559_v35 = vpop.f32.mrb[167].mxu0  ;;  %6704 = vmatmul.mubr.f32.gmra.mrb[162].mxu1 %v4810_v48  ;;  %v6462_v25 = vpop.f32.mrb[77].mxu1 }
 0x533   :  { %v4304_v36 = vpop.f32.mrb[78].mxu1  ;;  %6706 = vmatprep.mubr.msk.f32.mxu1 %vm6822_vm0, %v11621_v24 }
 0x534   :  { %v4811_v60 = vmax.f32 %v4766_v42, 0.0  ;;  %v4767_v53 = vadd.f32 %v10891_v28, %v4715_v31  ;;  %v4305_v34 = vadd.f32 %v4304_v36, %v10799_v45  ;;  %v6463_v26 = vpop.f32.mrb[79].mxu1 }
 0x536   :  { %6707 = vmatmul.mubr.f32.gmra.mrb[164].mxu1 %v4811_v60  ;;  %v4812_v37 = vmax.f32 %v4767_v53, 0.0 }
 0x537   :  { %v4618_v62 = vpop.f32.mrb[168].mxu0  ;;  %6709 = vmatprep.mubr.msk.f32.mxu1 %vm6822_vm0, %v11621_v24 }
 0x538   :  { %v4716_v43 = vadd.f32 %v4618_v62, %v4302_v3  ;;  %v6562_v55 = vpop.f32.mrb[169].mxu0 }
 0x539   :  { %v4621_v40 = vpop.f32.mrb[170].mxu0  ;;  %v4309_v47 = vpop.f32.mrb[80].mxu1 }
 0x53a   :  { %v4768_v23 = vadd.f32 %v10891_v28, %v4716_v43  ;;  %v4717_v51 = vadd.f32 %v4621_v40, %v4305_v34  ;;  %v4310_v32 = vadd.f32 %v4309_v47, %v10811_v57  ;;  %v6563_v17 = vpop.f32.mrb[171].mxu0  ;;  %6710 = vmatmul.mubr.f32.gmra.mrb[166].mxu1 %v4812_v37  ;;  %v6466_v13 = vpop.f32.mrb[81].mxu1 }
 0x53b   :  { %v4312_v45 = vpop.f32.mrb[82].mxu1  ;;  %6712 = vmatprep.mubr.msk.f32.mxu1 %vm6822_vm0, %v11621_v24 }
 0x53c   :  { %v4813_v20 = vmax.f32 %v4768_v23, 0.0  ;;  %v4769_v0 = vadd.f32 %v10891_v28, %v4717_v51  ;;  %v4313_v27 = vadd.f32 %v4312_v45, %v10815_v16  ;;  %v6467_v52 = vpop.f32.mrb[83].mxu1 }
 0x53e   :  { %6713 = vmatmul.mubr.f32.gmra.mrb[168].mxu1 %v4813_v20  ;;  %v4814_v39 = vmax.f32 %v4769_v0, 0.0 }
 0x53f   :  { %v4626_v6 = vpop.f32.mrb[172].mxu0  ;;  %6715 = vmatprep.mubr.msk.f32.mxu1 %vm6822_vm0, %v11621_v24 }
 0x540   :  { %v4718_v57 = vadd.f32 %v4626_v6, %v4310_v32  ;;  %v6566_v11 = vpop.f32.mrb[173].mxu0 }
 0x541   :  { %v4629_v21 = vpop.f32.mrb[174].mxu0  ;;  %v4317_v14 = vpop.f32.mrb[84].mxu1 }
 0x542   :  { %v4770_v33 = vadd.f32 %v10891_v28, %v4718_v57  ;;  %v4719_v30 = vadd.f32 %v4629_v21, %v4313_v27  ;;  %v4318_v41 = vadd.f32 %v4317_v14, %v10827_v10  ;;  %v6567_v44 = vpop.f32.mrb[175].mxu0  ;;  %6716 = vmatmul.mubr.f32.gmra.mrb[170].mxu1 %v4814_v39  ;;  %v6470_v12 = vpop.f32.mrb[85].mxu1 }
 0x543   :  { %v4320_v16 = vpop.f32.mrb[86].mxu1  ;;  %6718 = vmatprep.mubr.msk.f32.mxu1 %vm6822_vm0, %v11621_v24 }
 0x544   :  { %v4815_v63 = vmax.f32 %v4770_v33, 0.0  ;;  %v4771_v9 = vadd.f32 %v10891_v28, %v4719_v30  ;;  %v4321_v1 = vadd.f32 %v4320_v16, %v10831_v56  ;;  %v6471_v49 = vpop.f32.mrb[87].mxu1 }
 0x546   :  { %6719 = vmatmul.mubr.f32.gmra.mrb[172].mxu1 %v4815_v63  ;;  %v4816_v61 = vmax.f32 %v4771_v9, 0.0 }
 0x547   :  { %v4634_v19 = vpop.f32.mrb[176].mxu0  ;;  %6721 = vmatprep.mubr.msk.f32.mxu1 %vm6822_vm0, %v11621_v24 }
 0x548   :  { %v4720_v10 = vadd.f32 %v4634_v19, %v4318_v41  ;;  %v6570_v48 = vpop.f32.mrb[177].mxu0 }
 0x549   :  { %v4637_v59 = vpop.f32.mrb[178].mxu0  ;;  %v4325_v8 = vpop.f32.mrb[88].mxu1 }
 0x54a   :  { %v4772_v7 = vadd.f32 %v10891_v28, %v4720_v10  ;;  %v4721_v50 = vadd.f32 %v4637_v59, %v4321_v1  ;;  %v4326_v42 = vadd.f32 %v4325_v8, %v10843_v15  ;;  %v6571_v31 = vpop.f32.mrb[179].mxu0  ;;  %6722 = vmatmul.mubr.f32.gmra.mrb[174].mxu1 %v4816_v61  ;;  %v6474_v3 = vpop.f32.mrb[89].mxu1 }
 0x54b   :  { %v4328_v56 = vpop.f32.mrb[90].mxu1  ;;  %6724 = vmatprep.mubr.msk.f32.mxu1 %vm6822_vm0, %v11621_v24 }
 0x54c   :  { %v4817_v35 = vmax.f32 %v4772_v7, 0.0  ;;  %v4773_v25 = vadd.f32 %v10891_v28, %v4721_v50  ;;  %v4329_v36 = vadd.f32 %v4328_v56, %v10849_v18  ;;  %v6475_v60 = vpop.f32.mrb[91].mxu1 }
 0x54e   :  { %6725 = vmatmul.mubr.f32.gmra.mrb[176].mxu1 %v4817_v35  ;;  %v4818_v34 = vmax.f32 %v4773_v25, 0.0 }
 0x54f   :  { %v4642_v53 = vpop.f32.mrb[180].mxu0  ;;  %6727 = vmatprep.mubr.msk.f32.mxu1 %vm6822_vm0, %v11621_v24 }
 0x550   :  { %v4722_v15 = vadd.f32 %v4642_v53, %v4326_v42  ;;  %v6574_v26 = vpop.f32.mrb[181].mxu0 }
 0x551   :  { %v4645_v62 = vpop.f32.mrb[182].mxu0  ;;  %v4333_v37 = vpop.f32.mrb[92].mxu1 }
 0x552   :  { %v4774_v43 = vadd.f32 %v10891_v28, %v4722_v15  ;;  %v4723_v55 = vadd.f32 %v4645_v62, %v4329_v36  ;;  %v4334_v40 = vadd.f32 %v4333_v37, %v10865_v4  ;;  %v6575_v47 = vpop.f32.mrb[183].mxu0  ;;  %6728 = vmatmul.mubr.f32.gmra.mrb[178].mxu1 %v4818_v34  ;;  %v6478_v23 = vpop.f32.mrb[93].mxu1 }
 0x553   :  { %v4336_v18 = vpop.f32.mrb[94].mxu1  ;;  %6730 = vmatprep.mubr.msk.f32.mxu1 %vm6822_vm0, %v11621_v24 }
 0x554   :  { %v4819_v51 = vmax.f32 %v4774_v43, 0.0  ;;  %v4775_v32 = vadd.f32 %v10891_v28, %v4723_v55  ;;  %v4337_v17 = vadd.f32 %v4336_v18, %v10869_v54  ;;  %v6479_v13 = vpop.f32.mrb[95].mxu1 }
 0x556   :  { %6731 = vmatmul.mubr.f32.gmra.mrb[180].mxu1 %v4819_v51  ;;  %v4820_v20 = vmax.f32 %v4775_v32, 0.0 }
 0x557   :  { %v4650_v45 = vpop.f32.mrb[184].mxu0  ;;  %6733 = vmatprep.mubr.msk.f32.mxu1 %vm6822_vm0, %v11621_v24 }
 0x558   :  { %v4724_v4 = vadd.f32 %v4650_v45, %v4334_v40  ;;  %v6578_v0 = vpop.f32.mrb[185].mxu0 }
 0x559   :  { %v4653_v27 = vpop.f32.mrb[186].mxu0  ;;  %v4341_v52 = vpop.f32.mrb[96].mxu1 }
 0x55a   :  { %v4776_v6 = vadd.f32 %v10891_v28, %v4724_v4  ;;  %v4725_v39 = vadd.f32 %v4653_v27, %v4337_v17  ;;  %v4342_v57 = vadd.f32 %v4341_v52, %v10872_v29  ;;  %v6579_v11 = vpop.f32.mrb[187].mxu0  ;;  %6734 = vmatmul.mubr.f32.gmra.mrb[182].mxu1 %v4820_v20  ;;  %v6482_v21 = vpop.f32.mrb[97].mxu1 }
 0x55b   :  { %v4344_v54 = vpop.f32.mrb[98].mxu1  ;;  %6736 = vmatprep.mubr.msk.f32.mxu1 %vm6822_vm0, %v11621_v24  ;;  %v11072_v11 = vld [vmem:[%s11309_s10] ss:$0 sm:$0xff] }
 0x55c   :  { %v4821_v14 = vmax.f32 %v4776_v6, 0.0  ;;  %v4777_v33 = vadd.f32 %v10891_v28, %v4725_v39  ;;  %v4345_v30 = vadd.f32 %v4344_v54, %v10874_v46  ;;  %v6483_v41 = vpop.f32.mrb[99].mxu1 }
 0x55e   :  { %6737 = vmatmul.mubr.f32.gmra.mrb[184].mxu1 %v4821_v14  ;;  %v4822_v12 = vmax.f32 %v4777_v33, 0.0 }
 0x55f   :  { %v4658_v44 = vpop.f32.mrb[188].mxu0  ;;  %6739 = vmatprep.mubr.msk.f32.mxu1 %vm6822_vm0, %v11621_v24 }
 0x560   :  { %v4726_v29 = vadd.f32 %v4658_v44, %v4342_v57  ;;  %v6582_v16 = vpop.f32.mrb[189].mxu0 }
 0x561   :  { %v4661_v63 = vpop.f32.mrb[190].mxu0  ;;  %v4349_v9 = vpop.f32.mrb[100].mxu1 }
 0x562   :  { %v4778_v1 = vadd.f32 %v10891_v28, %v4726_v29  ;;  %v4727_v49 = vadd.f32 %v4661_v63, %v4345_v30  ;;  %v4350_v19 = vadd.f32 %v4349_v9, %v10876_v38  ;;  %v6583_v61 = vpop.f32.mrb[191].mxu0  ;;  %6740 = vmatmul.mubr.f32.gmra.mrb[186].mxu1 %v4822_v12  ;;  %v6486_v10 = vpop.f32.mrb[101].mxu1 }
 0x563   :  { %v4352_v46 = vpop.f32.mrb[102].mxu1  ;;  %6742 = vmatprep.mubr.msk.f32.mxu1 %vm6822_vm0, %v11621_v24 }
 0x564   :  { %v4823_v48 = vmax.f32 %v4778_v1, 0.0  ;;  %v4779_v59 = vadd.f32 %v10891_v28, %v4727_v49  ;;  %v4353_v8 = vadd.f32 %v4352_v46, %v10878_v5  ;;  %v6487_v7 = vpop.f32.mrb[103].mxu1 }
 0x566   :  { %6743 = vmatmul.mubr.f32.gmra.mrb[188].mxu1 %v4823_v48  ;;  %v4824_v42 = vmax.f32 %v4779_v59, 0.0 }
 0x567   :  { %v4666_v50 = vpop.f32.mrb[192].mxu0  ;;  %6745 = vmatprep.mubr.msk.f32.mxu1 %vm6822_vm0, %v11621_v24 }
 0x568   :  { %v4728_v38 = vadd.f32 %v4666_v50, %v4350_v19  ;;  %v6586_v31 = vpop.f32.mrb[193].mxu0 }
 0x569   :  { %v4669_v3 = vpop.f32.mrb[194].mxu0  ;;  %v4357_v56 = vpop.f32.mrb[104].mxu1 }
 0x56a   :  { %v4780_v35 = vadd.f32 %v10891_v28, %v4728_v38  ;;  %v4729_v25 = vadd.f32 %v4669_v3, %v4353_v8  ;;  %v4358_v36 = vadd.f32 %v4357_v56, %v10880_v22  ;;  %v6587_v60 = vpop.f32.mrb[195].mxu0  ;;  %6746 = vmatmul.mubr.f32.gmra.mrb[190].mxu1 %v4824_v42  ;;  %v6490_v53 = vpop.f32.mrb[105].mxu1 }
 0x56b   :  { %v4360_v5 = vpop.f32.mrb[106].mxu1  ;;  %6748 = vmatprep.mubr.msk.f32.mxu1 %vm6822_vm0, %v11621_v24 }
 0x56c   :  { %v4825_v34 = vmax.f32 %v4780_v35, 0.0  ;;  %v4781_v15 = vadd.f32 %v10891_v28, %v4729_v25  ;;  %v4361_v26 = vadd.f32 %v4360_v5, %v10882_v2  ;;  %v6491_v62 = vpop.f32.mrb[107].mxu1 }
 0x56e   :  { %6749 = vmatmul.mubr.f32.gmra.mrb[192].mxu1 %v4825_v34  ;;  %v4826_v43 = vmax.f32 %v4781_v15, 0.0 }
 0x56f   :  { %v4674_v37 = vpop.f32.mrb[196].mxu0  ;;  %6751 = vmatprep.mubr.msk.f32.mxu1 %vm6822_vm0, %v11621_v24 }
 0x570   :  { %v4730_v22 = vadd.f32 %v4674_v37, %v4358_v36  ;;  %v6590_v55 = vpop.f32.mrb[197].mxu0 }
 0x571   :  { %v4677_v40 = vpop.f32.mrb[198].mxu0  ;;  %v4365_v47 = vpop.f32.mrb[108].mxu1 }
 0x572   :  { %v4782_v23 = vadd.f32 %v10891_v28, %v4730_v22  ;;  %v4731_v18 = vadd.f32 %v4677_v40, %v4361_v26  ;;  %v4366_v51 = vadd.f32 %v4365_v47, %v10884_v58  ;;  %v6591_v32 = vpop.f32.mrb[199].mxu0  ;;  %6752 = vmatmul.mubr.f32.gmra.mrb[194].mxu1 %v4826_v43  ;;  %v6494_v17 = vpop.f32.mrb[109].mxu1 }
 0x573   :  { %v4368_v2 = vpop.f32.mrb[110].mxu1  ;;  %6754 = vmatprep.mubr.msk.f32.mxu1 %vm6822_vm0, %v11621_v24 }
 0x574   :  { %v4827_v13 = vmax.f32 %v4782_v23, 0.0  ;;  %v4783_v45 = vadd.f32 %v10891_v28, %v4731_v18  ;;  %v6495_v20 = vpop.f32.mrb[111].mxu1 }
 0x576   :  { %6755 = vmatmul.mubr.f32.gmra.mrb[196].mxu1 %v4827_v13  ;;  %v4828_v0 = vmax.f32 %v4783_v45, 0.0 }
 0x577   :  { %v4682_v4 = vpop.f32.mrb[200].mxu0  ;;  %6757 = vmatprep.mubr.msk.f32.mxu1 %vm6822_vm0, %v11621_v24 }
 0x578   :  { %v4732_v27 = vadd.f32 %v4682_v4, %v4366_v51  ;;  %v6594_v52 = vpop.f32.mrb[201].mxu0 }
 0x579   :  { %v4685_v58 = vpop.f32.mrb[202].mxu0 }
 0x57a   :  { %v4784_v6 = vadd.f32 %v10891_v28, %v4732_v27  ;;  %v6595_v39 = vpop.f32.mrb[203].mxu0  ;;  %6758 = vmatmul.mubr.f32.gmra.mrb[198].mxu1 %v4828_v0 }
 0x57b   :  { %6760 = vmatprep.mubr.msk.f32.mxu1 %vm6822_vm0, %v11621_v24 }
 0x57c   :  { %v4829_v57 = vmax.f32 %v4784_v6, 0.0 }
 0x57e   :  { %6761 = vmatmul.mubr.f32.gmra.mrb[200].mxu1 %v4829_v57 }
 0x5a1   :  { %v4919_v21 = vpop.f32.mrb[112].mxu1 }
 0x5a2   :  { %v4920_v54 = vadd.f32 %v11072_v11, %v4919_v21  ;;  %v6630_v14 = vpop.f32.mrb[113].mxu1 }
 0x5a4   :  { %5144 = vst.msk [vmem:[%s11310_s11] sm:$0xff] %vm5143_vm5, %v4920_v54 }
 0x5a5   :  { %v4924_v28 = vpop.f32.mrb[114].mxu1 }
 0x5a6   :  { %v4925_v24 = vadd.f32 %v11072_v11, %v4924_v28  ;;  %v6633_v33 = vpop.f32.mrb[115].mxu1 }
 0x5a8   :  { %5145 = vst.msk [vmem:[%s11310_s11 + $0x8] sm:$0xff] %vm5143_vm5, %v4925_v24 }
 0x5a9   :  { %v4929_v30 = vpop.f32.mrb[116].mxu1 }
 0x5aa   :  { %v4930_v41 = vadd.f32 %v11072_v11, %v4929_v30  ;;  %v6636_v44 = vpop.f32.mrb[117].mxu1 }
 0x5ac   :  { %5146 = vst.msk [vmem:[%s11310_s11 + $0x10] sm:$0xff] %vm5143_vm5, %v4930_v41 }
 0x5ad   :  { %v4934_v12 = vpop.f32.mrb[118].mxu1 }
 0x5ae   :  { %v4935_v29 = vadd.f32 %v11072_v11, %v4934_v12  ;;  %v6639_v16 = vpop.f32.mrb[119].mxu1 }
 0x5b0   :  { %5147 = vst.msk [vmem:[%s11310_s11 + $0x18] sm:$0xff] %vm5143_vm5, %v4935_v29 }
 0x5b1   :  { %v4939_v63 = vpop.f32.mrb[120].mxu1 }
 0x5b2   :  { %v4940_v9 = vadd.f32 %v11072_v11, %v4939_v63  ;;  %v6642_v1 = vpop.f32.mrb[121].mxu1 }
 0x5b4   :  { %5148 = vst.msk [vmem:[%s11310_s11 + $0x20] sm:$0xff] %vm5143_vm5, %v4940_v9 }
 0x5b5   :  { %v4944_v49 = vpop.f32.mrb[122].mxu1 }
 0x5b6   :  { %v4945_v19 = vadd.f32 %v11072_v11, %v4944_v49  ;;  %v6645_v61 = vpop.f32.mrb[123].mxu1 }
 0x5b8   :  { %5149 = vst.msk [vmem:[%s11310_s11 + $0x28] sm:$0xff] %vm5143_vm5, %v4945_v19 }
 0x5b9   :  { %v4949_v10 = vpop.f32.mrb[124].mxu1 }
 0x5ba   :  { %v4950_v46 = vadd.f32 %v11072_v11, %v4949_v10  ;;  %v6648_v48 = vpop.f32.mrb[125].mxu1 }
 0x5bc   :  { %5150 = vst.msk [vmem:[%s11310_s11 + $0x30] sm:$0xff] %vm5143_vm5, %v4950_v46 }
 0x5bd   :  { %v4954_v59 = vpop.f32.mrb[126].mxu1 }
 0x5be   :  { %v4955_v8 = vadd.f32 %v11072_v11, %v4954_v59  ;;  %v6651_v7 = vpop.f32.mrb[127].mxu1 }
 0x5c0   :  { %5151 = vst.msk [vmem:[%s11310_s11 + $0x38] sm:$0xff] %vm5143_vm5, %v4955_v8 }
 0x5c1   :  { %v4959_v50 = vpop.f32.mrb[128].mxu1 }
 0x5c2   :  { %v4960_v42 = vadd.f32 %v11072_v11, %v4959_v50  ;;  %v6654_v38 = vpop.f32.mrb[129].mxu1 }
 0x5c4   :  { %5152 = vst.msk [vmem:[%s11310_s11 + $0x40] sm:$0xff] %vm5143_vm5, %v4960_v42 }
 0x5c5   :  { %v4964_v31 = vpop.f32.mrb[130].mxu1 }
 0x5c6   :  { %v4965_v3 = vadd.f32 %v11072_v11, %v4964_v31  ;;  %v6657_v56 = vpop.f32.mrb[131].mxu1 }
 0x5c8   :  { %5153 = vst.msk [vmem:[%s11310_s11 + $0x48] sm:$0xff] %vm5143_vm5, %v4965_v3 }
 0x5c9   :  { %v4969_v35 = vpop.f32.mrb[132].mxu1 }
 0x5ca   :  { %v4970_v25 = vadd.f32 %v11072_v11, %v4969_v35  ;;  %v6660_v36 = vpop.f32.mrb[133].mxu1 }
 0x5cc   :  { %5154 = vst.msk [vmem:[%s11310_s11 + $0x50] sm:$0xff] %vm5143_vm5, %v4970_v25 }
 0x5cd   :  { %v4974_v60 = vpop.f32.mrb[134].mxu1 }
 0x5ce   :  { %v4975_v53 = vadd.f32 %v11072_v11, %v4974_v60  ;;  %v6663_v5 = vpop.f32.mrb[135].mxu1 }
 0x5d0   :  { %5155 = vst.msk [vmem:[%s11310_s11 + $0x58] sm:$0xff] %vm5143_vm5, %v4975_v53 }
 0x5d1   :  { %v4979_v34 = vpop.f32.mrb[136].mxu1 }
 0x5d2   :  { %v4980_v15 = vadd.f32 %v11072_v11, %v4979_v34  ;;  %v6666_v26 = vpop.f32.mrb[137].mxu1 }
 0x5d4   :  { %5156 = vst.msk [vmem:[%s11310_s11 + $0x60] sm:$0xff] %vm5143_vm5, %v4980_v15 }
 0x5d5   :  { %v4984_v62 = vpop.f32.mrb[138].mxu1 }
 0x5d6   :  { %v4985_v37 = vadd.f32 %v11072_v11, %v4984_v62  ;;  %v6669_v43 = vpop.f32.mrb[139].mxu1 }
 0x5d8   :  { %5157 = vst.msk [vmem:[%s11310_s11 + $0x68] sm:$0xff] %vm5143_vm5, %v4985_v37 }
 0x5d9   :  { %v4989_v22 = vpop.f32.mrb[140].mxu1 }
 0x5da   :  { %v4990_v55 = vadd.f32 %v11072_v11, %v4989_v22  ;;  %v6672_v40 = vpop.f32.mrb[141].mxu1 }
 0x5dc   :  { %5158 = vst.msk [vmem:[%s11310_s11 + $0x70] sm:$0xff] %vm5143_vm5, %v4990_v55 }
 0x5dd   :  { %v4994_v47 = vpop.f32.mrb[142].mxu1 }
 0x5de   :  { %v4995_v23 = vadd.f32 %v11072_v11, %v4994_v47  ;;  %v6675_v18 = vpop.f32.mrb[143].mxu1 }
 0x5e0   :  { %5159 = vst.msk [vmem:[%s11310_s11 + $0x78] sm:$0xff] %vm5143_vm5, %v4995_v23 }
 0x5e1   :  { %v4999_v51 = vpop.f32.mrb[144].mxu1 }
 0x5e2   :  { %v5000_v32 = vadd.f32 %v11072_v11, %v4999_v51  ;;  %v6678_v17 = vpop.f32.mrb[145].mxu1 }
 0x5e4   :  { %5160 = vst.msk [vmem:[%s11310_s11 + $0x80] sm:$0xff] %vm5143_vm5, %v5000_v32 }
 0x5e5   :  { %v5004_v2 = vpop.f32.mrb[146].mxu1 }
 0x5e6   :  { %v5005_v13 = vadd.f32 %v11072_v11, %v5004_v2  ;;  %v6681_v45 = vpop.f32.mrb[147].mxu1 }
 0x5e8   :  { %5161 = vst.msk [vmem:[%s11310_s11 + $0x88] sm:$0xff] %vm5143_vm5, %v5005_v13 }
 0x5e9   :  { %v5009_v20 = vpop.f32.mrb[148].mxu1 }
 0x5ea   :  { %v5010_v4 = vadd.f32 %v11072_v11, %v5009_v20  ;;  %v6684_v0 = vpop.f32.mrb[149].mxu1 }
 0x5ec   :  { %5162 = vst.msk [vmem:[%s11310_s11 + $0x90] sm:$0xff] %vm5143_vm5, %v5010_v4 }
 0x5ed   :  { %v5014_v27 = vpop.f32.mrb[150].mxu1 }
 0x5ee   :  { %v5015_v52 = vadd.f32 %v11072_v11, %v5014_v27  ;;  %v6687_v58 = vpop.f32.mrb[151].mxu1 }
 0x5f0   :  { %5163 = vst.msk [vmem:[%s11310_s11 + $0x98] sm:$0xff] %vm5143_vm5, %v5015_v52 }
 0x5f1   :  { %v5019_v6 = vpop.f32.mrb[152].mxu1 }
 0x5f2   :  { %v5020_v39 = vadd.f32 %v11072_v11, %v5019_v6  ;;  %v6690_v57 = vpop.f32.mrb[153].mxu1 }
 0x5f4   :  { %5164 = vst.msk [vmem:[%s11310_s11 + $0xa0] sm:$0xff] %vm5143_vm5, %v5020_v39 }
 0x5f5   :  { %v5024_v21 = vpop.f32.mrb[154].mxu1 }
 0x5f6   :  { %v5025_v54 = vadd.f32 %v11072_v11, %v5024_v21  ;;  %v6693_v14 = vpop.f32.mrb[155].mxu1 }
 0x5f8   :  { %5165 = vst.msk [vmem:[%s11310_s11 + $0xa8] sm:$0xff] %vm5143_vm5, %v5025_v54 }
 0x5f9   :  { %v5029_v28 = vpop.f32.mrb[156].mxu1 }
 0x5fa   :  { %v5030_v24 = vadd.f32 %v11072_v11, %v5029_v28  ;;  %v6696_v33 = vpop.f32.mrb[157].mxu1 }
 0x5fc   :  { %5166 = vst.msk [vmem:[%s11310_s11 + $0xb0] sm:$0xff] %vm5143_vm5, %v5030_v24 }
 0x5fd   :  { %v5034_v30 = vpop.f32.mrb[158].mxu1 }
 0x5fe   :  { %v5035_v41 = vadd.f32 %v11072_v11, %v5034_v30  ;;  %v6699_v44 = vpop.f32.mrb[159].mxu1 }
 0x600   :  { %5167 = vst.msk [vmem:[%s11310_s11 + $0xb8] sm:$0xff] %vm5143_vm5, %v5035_v41 }
 0x601   :  { %v5039_v12 = vpop.f32.mrb[160].mxu1 }
 0x602   :  { %v5040_v29 = vadd.f32 %v11072_v11, %v5039_v12  ;;  %v6702_v16 = vpop.f32.mrb[161].mxu1 }
 0x604   :  { %5168 = vst.msk [vmem:[%s11310_s11 + $0xc0] sm:$0xff] %vm5143_vm5, %v5040_v29 }
 0x605   :  { %v5044_v63 = vpop.f32.mrb[162].mxu1 }
 0x606   :  { %v5045_v9 = vadd.f32 %v11072_v11, %v5044_v63  ;;  %v6705_v1 = vpop.f32.mrb[163].mxu1 }
 0x608   :  { %5169 = vst.msk [vmem:[%s11310_s11 + $0xc8] sm:$0xff] %vm5143_vm5, %v5045_v9 }
 0x609   :  { %v5049_v49 = vpop.f32.mrb[164].mxu1 }
 0x60a   :  { %v5050_v19 = vadd.f32 %v11072_v11, %v5049_v49  ;;  %v6708_v61 = vpop.f32.mrb[165].mxu1 }
 0x60c   :  { %5170 = vst.msk [vmem:[%s11310_s11 + $0xd0] sm:$0xff] %vm5143_vm5, %v5050_v19 }
 0x60d   :  { %v5054_v10 = vpop.f32.mrb[166].mxu1 }
 0x60e   :  { %v5055_v46 = vadd.f32 %v11072_v11, %v5054_v10  ;;  %v6711_v48 = vpop.f32.mrb[167].mxu1 }
 0x610   :  { %5171 = vst.msk [vmem:[%s11310_s11 + $0xd8] sm:$0xff] %vm5143_vm5, %v5055_v46 }
 0x611   :  { %v5059_v59 = vpop.f32.mrb[168].mxu1 }
 0x612   :  { %v5060_v8 = vadd.f32 %v11072_v11, %v5059_v59  ;;  %v6714_v7 = vpop.f32.mrb[169].mxu1 }
 0x614   :  { %5172 = vst.msk [vmem:[%s11310_s11 + $0xe0] sm:$0xff] %vm5143_vm5, %v5060_v8 }
 0x615   :  { %v5064_v50 = vpop.f32.mrb[170].mxu1 }
 0x616   :  { %v5065_v42 = vadd.f32 %v11072_v11, %v5064_v50  ;;  %v6717_v38 = vpop.f32.mrb[171].mxu1 }
 0x618   :  { %5173 = vst.msk [vmem:[%s11310_s11 + $0xe8] sm:$0xff] %vm5143_vm5, %v5065_v42 }
 0x619   :  { %v5069_v31 = vpop.f32.mrb[172].mxu1 }
 0x61a   :  { %v5070_v3 = vadd.f32 %v11072_v11, %v5069_v31  ;;  %v6720_v56 = vpop.f32.mrb[173].mxu1 }
 0x61c   :  { %5174 = vst.msk [vmem:[%s11310_s11 + $0xf0] sm:$0xff] %vm5143_vm5, %v5070_v3 }
 0x61d   :  { %v5074_v35 = vpop.f32.mrb[174].mxu1 }
 0x61e   :  { %v5075_v25 = vadd.f32 %v11072_v11, %v5074_v35  ;;  %v6723_v36 = vpop.f32.mrb[175].mxu1 }
 0x620   :  { %5175 = vst.msk [vmem:[%s11310_s11 + $0xf8] sm:$0xff] %vm5143_vm5, %v5075_v25 }
 0x621   :  { %v5079_v60 = vpop.f32.mrb[176].mxu1 }
 0x622   :  { %v5080_v53 = vadd.f32 %v11072_v11, %v5079_v60  ;;  %v6726_v5 = vpop.f32.mrb[177].mxu1 }
 0x624   :  { %5176 = vst.msk [vmem:[%s11310_s11 + $0x100] sm:$0xff] %vm5143_vm5, %v5080_v53 }
 0x625   :  { %v5084_v34 = vpop.f32.mrb[178].mxu1 }
 0x626   :  { %v5085_v15 = vadd.f32 %v11072_v11, %v5084_v34  ;;  %v6729_v26 = vpop.f32.mrb[179].mxu1 }
 0x628   :  { %5177 = vst.msk [vmem:[%s11310_s11 + $0x108] sm:$0xff] %vm5143_vm5, %v5085_v15 }
 0x629   :  { %v5089_v62 = vpop.f32.mrb[180].mxu1 }
 0x62a   :  { %v5090_v37 = vadd.f32 %v11072_v11, %v5089_v62  ;;  %v6732_v43 = vpop.f32.mrb[181].mxu1 }
 0x62c   :  { %5178 = vst.msk [vmem:[%s11310_s11 + $0x110] sm:$0xff] %vm5143_vm5, %v5090_v37 }
 0x62d   :  { %v5094_v22 = vpop.f32.mrb[182].mxu1 }
 0x62e   :  { %v5095_v55 = vadd.f32 %v11072_v11, %v5094_v22  ;;  %v6735_v40 = vpop.f32.mrb[183].mxu1 }
 0x630   :  { %5179 = vst.msk [vmem:[%s11310_s11 + $0x118] sm:$0xff] %vm5143_vm5, %v5095_v55 }
 0x631   :  { %v5099_v47 = vpop.f32.mrb[184].mxu1 }
 0x632   :  { %v5100_v23 = vadd.f32 %v11072_v11, %v5099_v47  ;;  %v6738_v18 = vpop.f32.mrb[185].mxu1 }
 0x634   :  { %5180 = vst.msk [vmem:[%s11310_s11 + $0x120] sm:$0xff] %vm5143_vm5, %v5100_v23 }
 0x635   :  { %v5104_v51 = vpop.f32.mrb[186].mxu1 }
 0x636   :  { %v5105_v32 = vadd.f32 %v11072_v11, %v5104_v51  ;;  %v6741_v17 = vpop.f32.mrb[187].mxu1 }
 0x638   :  { %5181 = vst.msk [vmem:[%s11310_s11 + $0x128] sm:$0xff] %vm5143_vm5, %v5105_v32 }
 0x639   :  { %v5109_v2 = vpop.f32.mrb[188].mxu1 }
 0x63a   :  { %v5110_v13 = vadd.f32 %v11072_v11, %v5109_v2  ;;  %v6744_v45 = vpop.f32.mrb[189].mxu1 }
 0x63c   :  { %5182 = vst.msk [vmem:[%s11310_s11 + $0x130] sm:$0xff] %vm5143_vm5, %v5110_v13 }
 0x63d   :  { %v5114_v20 = vpop.f32.mrb[190].mxu1 }
 0x63e   :  { %v5115_v4 = vadd.f32 %v11072_v11, %v5114_v20  ;;  %v6747_v0 = vpop.f32.mrb[191].mxu1 }
 0x640   :  { %5183 = vst.msk [vmem:[%s11310_s11 + $0x138] sm:$0xff] %vm5143_vm5, %v5115_v4 }
 0x641   :  { %v5119_v27 = vpop.f32.mrb[192].mxu1 }
 0x642   :  { %v5120_v52 = vadd.f32 %v11072_v11, %v5119_v27  ;;  %v6750_v58 = vpop.f32.mrb[193].mxu1 }
 0x644   :  { %5184 = vst.msk [vmem:[%s11310_s11 + $0x140] sm:$0xff] %vm5143_vm5, %v5120_v52 }
 0x645   :  { %v5124_v6 = vpop.f32.mrb[194].mxu1 }
 0x646   :  { %v5125_v39 = vadd.f32 %v11072_v11, %v5124_v6  ;;  %v6753_v57 = vpop.f32.mrb[195].mxu1 }
 0x648   :  { %5185 = vst.msk [vmem:[%s11310_s11 + $0x148] sm:$0xff] %vm5143_vm5, %v5125_v39 }
 0x649   :  { %v5129_v21 = vpop.f32.mrb[196].mxu1 }
 0x64a   :  { %v5130_v54 = vadd.f32 %v11072_v11, %v5129_v21  ;;  %v6756_v14 = vpop.f32.mrb[197].mxu1 }
 0x64c   :  { %5186 = vst.msk [vmem:[%s11310_s11 + $0x150] sm:$0xff] %vm5143_vm5, %v5130_v54 }
 0x64d   :  { %v5134_v28 = vpop.f32.mrb[198].mxu1 }
 0x64e   :  { %v5135_v24 = vadd.f32 %v11072_v11, %v5134_v28  ;;  %v6759_v33 = vpop.f32.mrb[199].mxu1 }
 0x650   :  { %5187 = vst.msk [vmem:[%s11310_s11 + $0x158] sm:$0xff] %vm5143_vm5, %v5135_v24 }
 0x651   :  { %v5139_v30 = vpop.f32.mrb[200].mxu1 }
 0x652   :  { %v5140_v41 = vadd.f32 %v11072_v11, %v5139_v30  ;;  %v6762_v44 = vpop.f32.mrb[201].mxu1 }
 0x654   :  { %5188 = vst.msk [vmem:[%s11310_s11 + $0x160] sm:$0xff] %vm5143_vm5, %v5140_v41 }

</bundles_post_ra>
